<compile_context>
chip_gen: v6e
topology: v6e:2x2x1
jax: 0.10.0
libtpu: 0.0.40
codegen_flags: <defaults>
</compile_context>

<pallas_src>
import functools

import jax
import jax.numpy as jnp
from jax.experimental import pallas as pl
from jax.experimental.pallas import tpu as pltpu

LEAKY_SLOPE = 0.1
BN_EPS = 1e-5

LANE = 128                       # Cout tile (lane width)
ROW_BLOCK = 8                    # minimum row tile granularity
TILE_BUDGET = 4 * 1024 * 1024    # fp32 output tile budget (double-buffered)
VMEM_LIMIT = 32 * 1024 * 1024    # safe scoped-VMEM on v5e / v6e / v7x


# --------------------------------------------------------------------------
# in-kernel helpers
# --------------------------------------------------------------------------
def _im2col_3x3(xpad_ref, row0, TH, W, Cin):
    """Gather the 3x3 taps for a TH-row output block -> (TH*W, 9*Cin) patch."""
    pieces = []
    for kh in range(3):
        rows = xpad_ref[pl.ds(row0 + kh, TH)]            # (TH, W+2, Cin) bf16
        for kw in range(3):
            pieces.append(rows[:, kw:kw + W, :].reshape(TH * W, Cin))
    return jnp.concatenate(pieces, axis=-1)              # (TH*W, 9*Cin)


def _build_halo(xpad_ref, x_ref, H, W):
    """Zero-padded image in VMEM scratch (replaces a jnp.pad HBM round trip)."""
    xpad_ref[...] = jnp.zeros_like(xpad_ref)
    xpad_ref[1:1 + H, 1:1 + W, :] = x_ref[0]


# --------------------------------------------------------------------------
# pass 1: per-channel sum / sum-of-squares of the conv output (BN statistics)
# --------------------------------------------------------------------------
def _stats_kernel_k3(x_ref, w_ref, sum_ref, sq_ref, xpad_ref, *, TH):
    n = pl.program_id(1)
    h = pl.program_id(2)
    _, H, W, Cin = x_ref.shape

    @pl.when(h == 0)
    def _():
        _build_halo(xpad_ref, x_ref, H, W)

    row0 = pl.multiple_of(h * TH, TH)
    patch = _im2col_3x3(xpad_ref, row0, TH, W, Cin)
    acc = jnp.dot(patch, w_ref[...], preferred_element_type=jnp.float32)

    @pl.when(jnp.logical_and(n == 0, h == 0))
    def _():
        sum_ref[...] = jnp.zeros_like(sum_ref)
        sq_ref[...] = jnp.zeros_like(sq_ref)

    sum_ref[...] += jnp.sum(acc, axis=0, keepdims=True)
    sq_ref[...] += jnp.sum(acc * acc, axis=0, keepdims=True)


def _stats_kernel_k1(x_ref, w_ref, sum_ref, sq_ref):
    n = pl.program_id(1)
    h = pl.program_id(2)
    _, TH, W, Cin = x_ref.shape

    patch = x_ref[0].reshape(TH * W, Cin)
    acc = jnp.dot(patch, w_ref[...], preferred_element_type=jnp.float32)

    @pl.when(jnp.logical_and(n == 0, h == 0))
    def _():
        sum_ref[...] = jnp.zeros_like(sum_ref)
        sq_ref[...] = jnp.zeros_like(sq_ref)

    sum_ref[...] += jnp.sum(acc, axis=0, keepdims=True)
    sq_ref[...] += jnp.sum(acc * acc, axis=0, keepdims=True)


# --------------------------------------------------------------------------
# pass 2: conv recompute fused with BN affine + LeakyReLU (no HBM intermediate)
# --------------------------------------------------------------------------
def _fused_kernel_k3(x_ref, w_ref, scale_ref, shift_ref, out_ref, xpad_ref, *, TH):
    h = pl.program_id(2)
    _, H, W, Cin = x_ref.shape
    TCo = out_ref.shape[-1]

    @pl.when(h == 0)
    def _():
        _build_halo(xpad_ref, x_ref, H, W)

    row0 = pl.multiple_of(h * TH, TH)
    patch = _im2col_3x3(xpad_ref, row0, TH, W, Cin)
    acc = jnp.dot(patch, w_ref[...], preferred_element_type=jnp.float32)

    y = acc * scale_ref[...] + shift_ref[...]            # (TH*W, TCo)
    y = jnp.where(y >= 0, y, LEAKY_SLOPE * y)
    out_ref[...] = y.reshape(1, TH, W, TCo).astype(out_ref.dtype)


def _fused_kernel_k1(x_ref, w_ref, scale_ref, shift_ref, out_ref):
    _, TH, W, Cin = x_ref.shape
    TCo = out_ref.shape[-1]

    patch = x_ref[0].reshape(TH * W, Cin)
    acc = jnp.dot(patch, w_ref[...], preferred_element_type=jnp.float32)

    y = acc * scale_ref[...] + shift_ref[...]
    y = jnp.where(y >= 0, y, LEAKY_SLOPE * y)
    out_ref[...] = y.reshape(1, TH, W, TCo).astype(out_ref.dtype)


# --------------------------------------------------------------------------
# host wrapper
# --------------------------------------------------------------------------
def _pick_row_block(H, W, TCo):
    """Biggest row tile (multiple of 8 dividing H) under the VMEM tile budget."""
    if H % ROW_BLOCK != 0 or H * W * TCo * 4 <= TILE_BUDGET:
        return H
    best = ROW_BLOCK
    for th in range(ROW_BLOCK, H + 1, ROW_BLOCK):
        if H % th == 0 and th * W * TCo * 4 <= TILE_BUDGET:
            best = th
    return best


@jax.jit
def cnn_block_forward(x_nchw, w_oihw, gamma, beta):
    """CNNBlock forward (stride 1, "same" padding, use_batch_norm=True).

    x: (N, Cin, H, W) f32,  w: (Cout, Cin, k, k) with k in {1, 3},
    gamma/beta: (Cout,).  Returns (N, Cout, H, W) f32.
    """
    N, Cin, H, W = x_nchw.shape
    Cout, _, KH, KW = w_oihw.shape
    assert KH == KW and KH in (1, 3), (KH, KW)
    k = KH
    pad = (k - 1) // 2

    TCo = LANE
    Coutp = ((Cout + LANE - 1) // LANE) * LANE
    TH = _pick_row_block(H, W, TCo)
    NCO, NH = Coutp // TCo, H // TH

    # Layout glue: NHWC, channels on lanes, bf16 MXU operands.
    x_nhwc = jnp.transpose(x_nchw, (0, 2, 3, 1)).astype(jnp.bfloat16)
    w_flat = jnp.transpose(w_oihw, (2, 3, 1, 0)).reshape(k * k * Cin, Cout)
    w_flat = jnp.pad(w_flat, ((0, 0), (0, Coutp - Cout))).astype(jnp.bfloat16)
    gamma_p = jnp.pad(gamma.astype(jnp.float32), (0, Coutp - Cout),
                      constant_values=1.0)
    beta_p = jnp.pad(beta.astype(jnp.float32), (0, Coutp - Cout))

    w_spec = pl.BlockSpec((k * k * Cin, TCo), lambda co, n, h: (0, co))
    stat_spec = pl.BlockSpec((1, TCo), lambda co, n, h: (0, co))
    stat_shape = jax.ShapeDtypeStruct((1, Coutp), jnp.float32)

    if k == 3:
        # whole image per batch element (block index depends only on n), halo
        # built in VMEM scratch inside the kernel.
        x_spec = pl.BlockSpec((1, H, W, Cin), lambda co, n, h: (n, 0, 0, 0))
        scratch = [pltpu.VMEM((H + 2 * pad, W + 2 * pad, Cin), jnp.bfloat16)]
        stats_kernel = functools.partial(_stats_kernel_k3, TH=TH)
        fused_kernel = functools.partial(_fused_kernel_k3, TH=TH)
        sem_pass2 = ("parallel", "parallel", "arbitrary")   # scratch dep on h
    else:
        # pointwise conv: straight row-block tiling, no halo scratch needed.
        x_spec = pl.BlockSpec((1, TH, W, Cin), lambda co, n, h: (n, h, 0, 0))
        scratch = []
        stats_kernel = _stats_kernel_k1
        fused_kernel = _fused_kernel_k1
        sem_pass2 = ("parallel", "parallel", "parallel")
    sem_pass1 = ("parallel", "arbitrary", "arbitrary")       # BN reduction axes

    # ---- pass 1: per-channel sum / sum-of-squares --------------------------
    ssum, ssq = pl.pallas_call(
        stats_kernel,
        grid=(NCO, N, NH),
        in_specs=[x_spec, w_spec],
        out_specs=[stat_spec, stat_spec],
        out_shape=[stat_shape, stat_shape],
        scratch_shapes=scratch,
        compiler_params=pltpu.CompilerParams(
            dimension_semantics=sem_pass1,
            vmem_limit_bytes=VMEM_LIMIT),
    )(x_nhwc, w_flat)

    # ---- tiny per-channel XLA step: fold BN stats into scale / shift -------
    cnt = jnp.float32(N * H * W)
    mean = ssum[0] / cnt
    var = jnp.maximum(ssq[0] / cnt - mean * mean, 0.0)       # biased batch var
    scale = gamma_p * jax.lax.rsqrt(var + BN_EPS)
    shift = beta_p - mean * scale

    # ---- pass 2: conv recompute + normalize + LeakyReLU (lane-dense) -------
    y = pl.pallas_call(
        fused_kernel,
        grid=(NCO, N, NH),
        in_specs=[x_spec, w_spec, stat_spec, stat_spec],
        out_specs=pl.BlockSpec((1, TH, W, TCo), lambda co, n, h: (n, h, 0, co)),
        out_shape=jax.ShapeDtypeStruct((N, H, W, Coutp), jnp.float32),
        scratch_shapes=scratch,
        compiler_params=pltpu.CompilerParams(
            dimension_semantics=sem_pass2,
            vmem_limit_bytes=VMEM_LIMIT),
    )(x_nhwc, w_flat, scale.reshape(1, Coutp), shift.reshape(1, Coutp))

    # Strip channel padding, back to PyTorch's NCHW convention.
    y = y[:, :, :, :Cout]
    return jnp.transpose(y, (0, 3, 1, 2))


# --------------------------------------------------------------------------
# pure-JAX fp32 reference: conv + training-mode BN + LeakyReLU
# --------------------------------------------------------------------------
def reference_forward(x_nchw, w_oihw, gamma, beta):
    k = w_oihw.shape[-1]
    pad = (k - 1) // 2
    y = jax.lax.conv_general_dilated(
        x_nchw.astype(jnp.float32), w_oihw.astype(jnp.float32),
        window_strides=(1, 1), padding=((pad, pad), (pad, pad)),
        dimension_numbers=("NCHW", "OIHW", "NCHW"))
    mean = jnp.mean(y, axis=(0, 2, 3), keepdims=True)
    var = jnp.mean((y - mean) ** 2, axis=(0, 2, 3), keepdims=True)
    yhat = (y - mean) * jax.lax.rsqrt(var + BN_EPS)
    yhat = yhat * gamma.reshape(1, -1, 1, 1) + beta.reshape(1, -1, 1, 1)
    return jnp.where(yhat >= 0, yhat, LEAKY_SLOPE * yhat)


if __name__ == "__main__":
    key = jax.random.PRNGKey(0)
    k1, k2, k3, k4, k5, k6, k7, k8 = jax.random.split(key, 8)

    # --- 3x3 / stride-1 / pad-1 CNNBlock (YOLOv3 stem shape class) ----------
    N, Cin, Cout, H, W = 2, 4, 8, 16, 16
    x = jax.random.normal(k1, (N, Cin, H, W), dtype=jnp.float32)
    w = jax.random.normal(k2, (Cout, Cin, 3, 3), dtype=jnp.float32) * 0.1
    gamma = jax.random.uniform(k3, (Cout,), minval=0.5, maxval=1.5,
                               dtype=jnp.float32)
    beta = jax.random.normal(k4, (Cout,), dtype=jnp.float32) * 0.1

    out = jax.block_until_ready(cnn_block_forward(x, w, gamma, beta))
    assert out.shape == (N, Cout, H, W), out.shape

    # Exact-ish check against a reference fed the same bf16 operand rounding
    # (the kernel feeds the MXU bf16 operands with fp32 accumulation).
    xq = x.astype(jnp.bfloat16).astype(jnp.float32)
    wq = w.astype(jnp.bfloat16).astype(jnp.float32)
    ref_q = jax.block_until_ready(reference_forward(xq, wq, gamma, beta))
    err_q = float(jnp.max(jnp.abs(out - ref_q)))
    assert jnp.allclose(out, ref_q, rtol=2e-3, atol=2e-3), err_q

    # Sanity check against the pure-fp32 PyTorch-style reference.
    ref_f = jax.block_until_ready(reference_forward(x, w, gamma, beta))
    err_f = float(jnp.max(jnp.abs(out - ref_f)))
    assert jnp.allclose(out, ref_f, rtol=1e-1, atol=1e-1), err_f

    # --- 1x1 / stride-1 pointwise CNNBlock (ResidualBlock / head blocks) ----
    N2, Cin2, Cout2 = 2, 8, 4
    x2 = jax.random.normal(k5, (N2, Cin2, H, W), dtype=jnp.float32)
    w2 = jax.random.normal(k6, (Cout2, Cin2, 1, 1), dtype=jnp.float32) * 0.1
    gamma2 = jax.random.uniform(k7, (Cout2,), minval=0.5, maxval=1.5,
                                dtype=jnp.float32)
    beta2 = jax.random.normal(k8, (Cout2,), dtype=jnp.float32) * 0.1

    out2 = jax.block_until_ready(cnn_block_forward(x2, w2, gamma2, beta2))
    assert out2.shape == (N2, Cout2, H, W), out2.shape

    ref2 = jax.block_until_ready(reference_forward(
        x2.astype(jnp.bfloat16).astype(jnp.float32),
        w2.astype(jnp.bfloat16).astype(jnp.float32), gamma2, beta2))
    err2 = float(jnp.max(jnp.abs(out2 - ref2)))
    assert jnp.allclose(out2, ref2, rtol=2e-3, atol=2e-3), err2

    print("KERNEL_OK")
</pallas_src>

<mosaic_0001>
module attributes {stable_mosaic.version = 11 : i64} {
  func.func @_stats_kernel_k3(%arg0: i32, %arg1: i32, %arg2: i32, %arg3: memref<1x16x16x4xbf16, #tpu.memory_space<vmem>>, %arg4: memref<36x128xbf16, #tpu.memory_space<vmem>>, %arg5: memref<1x128xf32, #tpu.memory_space<vmem>>, %arg6: memref<1x128xf32, #tpu.memory_space<vmem>>, %arg7: memref<18x18x4xbf16, #tpu.memory_space<vmem>>) attributes {dimension_semantics = [#tpu.dimension_semantics<parallel>, #tpu.dimension_semantics<arbitrary>, #tpu.dimension_semantics<arbitrary>], iteration_bounds = array<i64: 1, 2, 1>, scalar_prefetch = 0 : i64, scratch_operands = 1 : i64, tpu.core_type = #tpu.core_type<tc>, window_params = [{transform_indices = @transform_0, window_bounds = array<i64: 1, 16, 16, 4>}, {transform_indices = @transform_1, window_bounds = array<i64: 36, 128>}, {transform_indices = @transform_2, window_bounds = array<i64: 1, 128>}, {transform_indices = @transform_3, window_bounds = array<i64: 1, 128>}]} {
    %c0_i32 = arith.constant 0 : i32
    %0 = arith.cmpi eq, %arg2, %c0_i32 : i32
    %1 = arith.extui %0 : i1 to i32
    %c0_i32_0 = arith.constant 0 : i32
    %2 = arith.cmpi ne, %1, %c0_i32_0 : i32
    scf.if %2 {
      %cst_22 = arith.constant 0.000000e+00 : bf16
      %51 = vector.broadcast %cst_22 : bf16 to vector<18x18x4xbf16>
      %c0_23 = arith.constant 0 : index
      %c0_24 = arith.constant 0 : index
      %c0_25 = arith.constant 0 : index
      %52 = vector.load %arg7[%c0_23, %c0_24, %c0_25] : memref<18x18x4xbf16, #tpu.memory_space<vmem>>, vector<18x18x4xbf16>
      tpu.vector_store %arg7[%c0_23, %c0_24, %c0_25], %51 {strides = array<i32>} : memref<18x18x4xbf16, #tpu.memory_space<vmem>>, vector<18x18x4xbf16>,
      %c0_26 = arith.constant 0 : index
      %c0_27 = arith.constant 0 : index
      %c0_28 = arith.constant 0 : index
      %c0_29 = arith.constant 0 : index
      %53 = vector.load %arg3[%c0_26, %c0_27, %c0_28, %c0_29] : memref<1x16x16x4xbf16, #tpu.memory_space<vmem>>, vector<1x16x16x4xbf16>
      %54 = vector.shape_cast %53 : vector<1x16x16x4xbf16> to vector<16x16x4xbf16>
      %c1 = arith.constant 1 : index
      %c1_30 = arith.constant 1 : index
      %c0_31 = arith.constant 0 : index
      %55 = vector.load %arg7[%c1, %c1_30, %c0_31] : memref<18x18x4xbf16, #tpu.memory_space<vmem>>, vector<16x16x4xbf16>
      tpu.vector_store %arg7[%c1, %c1_30, %c0_31], %54 {strides = array<i32>} : memref<18x18x4xbf16, #tpu.memory_space<vmem>>, vector<16x16x4xbf16>,
    } else {
    }
    %c16_i32 = arith.constant 16 : i32
    %3 = arith.muli %arg2, %c16_i32 : i32
    %4 = tpu.assume_multiple %3, 16 : i32
    %c0_i32_1 = arith.constant 0 : i32
    %5 = arith.addi %4, %c0_i32_1 : i32
    %6 = arith.index_cast %5 : i32 to index
    %c0 = arith.constant 0 : index
    %c0_2 = arith.constant 0 : index
    %7 = vector.load %arg7[%6, %c0, %c0_2] : memref<18x18x4xbf16, #tpu.memory_space<vmem>>, vector<16x18x4xbf16>
    %8 = vector.extract_strided_slice %7 {offsets = [0, 0, 0], sizes = [16, 16, 4], strides = [1, 1, 1]} : vector<16x18x4xbf16> to vector<16x16x4xbf16>
    %9 = vector.shape_cast %8 : vector<16x16x4xbf16> to vector<256x4xbf16>
    %10 = vector.extract_strided_slice %7 {offsets = [0, 1, 0], sizes = [16, 16, 4], strides = [1, 1, 1]} : vector<16x18x4xbf16> to vector<16x16x4xbf16>
    %11 = vector.shape_cast %10 : vector<16x16x4xbf16> to vector<256x4xbf16>
    %12 = vector.extract_strided_slice %7 {offsets = [0, 2, 0], sizes = [16, 16, 4], strides = [1, 1, 1]} : vector<16x18x4xbf16> to vector<16x16x4xbf16>
    %13 = vector.shape_cast %12 : vector<16x16x4xbf16> to vector<256x4xbf16>
    %c1_i32 = arith.constant 1 : i32
    %14 = arith.addi %4, %c1_i32 : i32
    %15 = arith.index_cast %14 : i32 to index
    %c0_3 = arith.constant 0 : index
    %c0_4 = arith.constant 0 : index
    %16 = vector.load %arg7[%15, %c0_3, %c0_4] : memref<18x18x4xbf16, #tpu.memory_space<vmem>>, vector<16x18x4xbf16>
    %17 = vector.extract_strided_slice %16 {offsets = [0, 0, 0], sizes = [16, 16, 4], strides = [1, 1, 1]} : vector<16x18x4xbf16> to vector<16x16x4xbf16>
    %18 = vector.shape_cast %17 : vector<16x16x4xbf16> to vector<256x4xbf16>
    %19 = vector.extract_strided_slice %16 {offsets = [0, 1, 0], sizes = [16, 16, 4], strides = [1, 1, 1]} : vector<16x18x4xbf16> to vector<16x16x4xbf16>
    %20 = vector.shape_cast %19 : vector<16x16x4xbf16> to vector<256x4xbf16>
    %21 = vector.extract_strided_slice %16 {offsets = [0, 2, 0], sizes = [16, 16, 4], strides = [1, 1, 1]} : vector<16x18x4xbf16> to vector<16x16x4xbf16>
    %22 = vector.shape_cast %21 : vector<16x16x4xbf16> to vector<256x4xbf16>
    %c2_i32 = arith.constant 2 : i32
    %23 = arith.addi %4, %c2_i32 : i32
    %24 = arith.index_cast %23 : i32 to index
    %c0_5 = arith.constant 0 : index
    %c0_6 = arith.constant 0 : index
    %25 = vector.load %arg7[%24, %c0_5, %c0_6] : memref<18x18x4xbf16, #tpu.memory_space<vmem>>, vector<16x18x4xbf16>
    %26 = vector.extract_strided_slice %25 {offsets = [0, 0, 0], sizes = [16, 16, 4], strides = [1, 1, 1]} : vector<16x18x4xbf16> to vector<16x16x4xbf16>
    %27 = vector.shape_cast %26 : vector<16x16x4xbf16> to vector<256x4xbf16>
    %28 = vector.extract_strided_slice %25 {offsets = [0, 1, 0], sizes = [16, 16, 4], strides = [1, 1, 1]} : vector<16x18x4xbf16> to vector<16x16x4xbf16>
    %29 = vector.shape_cast %28 : vector<16x16x4xbf16> to vector<256x4xbf16>
    %30 = vector.extract_strided_slice %25 {offsets = [0, 2, 0], sizes = [16, 16, 4], strides = [1, 1, 1]} : vector<16x18x4xbf16> to vector<16x16x4xbf16>
    %31 = vector.shape_cast %30 : vector<16x16x4xbf16> to vector<256x4xbf16>
    %32 = tpu.concatenate %9, %11, %13, %18, %20, %22, %27, %29, %31 in 1 : vector<256x4xbf16>, vector<256x4xbf16>, vector<256x4xbf16>, vector<256x4xbf16>, vector<256x4xbf16>, vector<256x4xbf16>, vector<256x4xbf16>, vector<256x4xbf16>, vector<256x4xbf16> -> vector<256x36xbf16>
    %c0_7 = arith.constant 0 : index
    %c0_8 = arith.constant 0 : index
    %33 = vector.load %arg4[%c0_7, %c0_8] : memref<36x128xbf16, #tpu.memory_space<vmem>>, vector<36x128xbf16>
    %cst = arith.constant dense<0.000000e+00> : vector<256x128xf32>
    %34 = tpu.matmul %32, %33, %cst {dimension_numbers = #tpu.dot_dimension_numbers<[1], [0], [0], [1], [0, 0, 1, 1], [], []>} : vector<256x36xbf16>, vector<36x128xbf16>, vector<256x128xf32> -> vector<256x128xf32>
    %c0_i32_9 = arith.constant 0 : i32
    %35 = arith.cmpi eq, %arg1, %c0_i32_9 : i32
    %c0_i32_10 = arith.constant 0 : i32
    %36 = arith.cmpi eq, %arg2, %c0_i32_10 : i32
    %37 = arith.andi %35, %36 : i1
    %38 = arith.extui %37 : i1 to i32
    %c0_i32_11 = arith.constant 0 : i32
    %39 = arith.cmpi ne, %38, %c0_i32_11 : i32
    scf.if %39 {
      %cst_22 = arith.constant 0.000000e+00 : f32
      %51 = vector.broadcast %cst_22 : f32 to vector<1x128xf32>
      %c0_23 = arith.constant 0 : index
      %c0_24 = arith.constant 0 : index
      %52 = vector.load %arg5[%c0_23, %c0_24] : memref<1x128xf32, #tpu.memory_space<vmem>>, vector<1x128xf32>
      tpu.vector_store %arg5[%c0_23, %c0_24], %51 {strides = array<i32>} : memref<1x128xf32, #tpu.memory_space<vmem>>, vector<1x128xf32>,
      %cst_25 = arith.constant 0.000000e+00 : f32
      %53 = vector.broadcast %cst_25 : f32 to vector<1x128xf32>
      %c0_26 = arith.constant 0 : index
      %c0_27 = arith.constant 0 : index
      %54 = vector.load %arg6[%c0_26, %c0_27] : memref<1x128xf32, #tpu.memory_space<vmem>>, vector<1x128xf32>
      tpu.vector_store %arg6[%c0_26, %c0_27], %53 {strides = array<i32>} : memref<1x128xf32, #tpu.memory_space<vmem>>, vector<1x128xf32>,
    } else {
    }
    %c0_12 = arith.constant 0 : index
    %c0_13 = arith.constant 0 : index
    %40 = vector.load %arg5[%c0_12, %c0_13] : memref<1x128xf32, #tpu.memory_space<vmem>>, vector<1x128xf32>
    %cst_14 = arith.constant dense<0.000000e+00> : vector<128xf32>
    %41 = vector.multi_reduction <add>, %34, %cst_14 [0] : vector<256x128xf32> to vector<128xf32>
    %42 = vector.shape_cast %41 : vector<128xf32> to vector<1x128xf32>
    %43 = arith.addf %40, %42 : vector<1x128xf32>
    %c0_15 = arith.constant 0 : index
    %c0_16 = arith.constant 0 : index
    %44 = vector.load %arg5[%c0_15, %c0_16] : memref<1x128xf32, #tpu.memory_space<vmem>>, vector<1x128xf32>
    tpu.vector_store %arg5[%c0_15, %c0_16], %43 {strides = array<i32>} : memref<1x128xf32, #tpu.memory_space<vmem>>, vector<1x128xf32>,
    %c0_17 = arith.constant 0 : index
    %c0_18 = arith.constant 0 : index
    %45 = vector.load %arg6[%c0_17, %c0_18] : memref<1x128xf32, #tpu.memory_space<vmem>>, vector<1x128xf32>
    %46 = arith.mulf %34, %34 : vector<256x128xf32>
    %cst_19 = arith.constant dense<0.000000e+00> : vector<128xf32>
    %47 = vector.multi_reduction <add>, %46, %cst_19 [0] : vector<256x128xf32> to vector<128xf32>
    %48 = vector.shape_cast %47 : vector<128xf32> to vector<1x128xf32>
    %49 = arith.addf %45, %48 : vector<1x128xf32>
    %c0_20 = arith.constant 0 : index
    %c0_21 = arith.constant 0 : index
    %50 = vector.load %arg6[%c0_20, %c0_21] : memref<1x128xf32, #tpu.memory_space<vmem>>, vector<1x128xf32>
    tpu.vector_store %arg6[%c0_20, %c0_21], %49 {strides = array<i32>} : memref<1x128xf32, #tpu.memory_space<vmem>>, vector<1x128xf32>,
    return
  }
  func.func @transform_0(%arg0: i32, %arg1: i32, %arg2: i32) -> (i32, i32, i32, i32) {
    %c0_i32 = arith.constant 0 : i32
    %c0_i32_0 = arith.constant 0 : i32
    %c0_i32_1 = arith.constant 0 : i32
    %c0_i32_2 = arith.constant 0 : i32
    return %arg1, %c0_i32, %c0_i32_0, %c0_i32_1 : i32, i32, i32, i32
  }
  func.func @transform_1(%arg0: i32, %arg1: i32, %arg2: i32) -> (i32, i32) {
    %c0_i32 = arith.constant 0 : i32
    %c0_i32_0 = arith.constant 0 : i32
    return %c0_i32, %arg0 : i32, i32
  }
  func.func @transform_2(%arg0: i32, %arg1: i32, %arg2: i32) -> (i32, i32) {
    %c0_i32 = arith.constant 0 : i32
    %c0_i32_0 = arith.constant 0 : i32
    return %c0_i32, %arg0 : i32, i32
  }
  func.func @transform_3(%arg0: i32, %arg1: i32, %arg2: i32) -> (i32, i32) {
    %c0_i32 = arith.constant 0 : i32
    %c0_i32_0 = arith.constant 0 : i32
    return %c0_i32, %arg0 : i32, i32
  }
}

module attributes {stable_mosaic.version = 11 : i64} {
  func.func @_fused_kernel_k3(%arg0: i32, %arg1: i32, %arg2: i32, %arg3: memref<1x16x16x4xbf16, #tpu.memory_space<vmem>>, %arg4: memref<36x128xbf16, #tpu.memory_space<vmem>>, %arg5: memref<1x128xf32, #tpu.memory_space<vmem>>, %arg6: memref<1x128xf32, #tpu.memory_space<vmem>>, %arg7: memref<1x16x16x128xf32, #tpu.memory_space<vmem>>, %arg8: memref<18x18x4xbf16, #tpu.memory_space<vmem>>) attributes {dimension_semantics = [#tpu.dimension_semantics<parallel>, #tpu.dimension_semantics<parallel>, #tpu.dimension_semantics<arbitrary>], iteration_bounds = array<i64: 1, 2, 1>, scalar_prefetch = 0 : i64, scratch_operands = 1 : i64, tpu.core_type = #tpu.core_type<tc>, window_params = [{transform_indices = @transform_0, window_bounds = array<i64: 1, 16, 16, 4>}, {transform_indices = @transform_1, window_bounds = array<i64: 36, 128>}, {transform_indices = @transform_2, window_bounds = array<i64: 1, 128>}, {transform_indices = @transform_3, window_bounds = array<i64: 1, 128>}, {transform_indices = @transform_4, window_bounds = array<i64: 1, 16, 16, 128>}]} {
    %c0_i32 = arith.constant 0 : i32
    %0 = arith.cmpi eq, %arg2, %c0_i32 : i32
    %1 = arith.extui %0 : i1 to i32
    %c0_i32_0 = arith.constant 0 : i32
    %2 = arith.cmpi ne, %1, %c0_i32_0 : i32
    scf.if %2 {
      %cst_19 = arith.constant 0.000000e+00 : bf16
      %48 = vector.broadcast %cst_19 : bf16 to vector<18x18x4xbf16>
      %c0_20 = arith.constant 0 : index
      %c0_21 = arith.constant 0 : index
      %c0_22 = arith.constant 0 : index
      %49 = vector.load %arg8[%c0_20, %c0_21, %c0_22] : memref<18x18x4xbf16, #tpu.memory_space<vmem>>, vector<18x18x4xbf16>
      tpu.vector_store %arg8[%c0_20, %c0_21, %c0_22], %48 {strides = array<i32>} : memref<18x18x4xbf16, #tpu.memory_space<vmem>>, vector<18x18x4xbf16>,
      %c0_23 = arith.constant 0 : index
      %c0_24 = arith.constant 0 : index
      %c0_25 = arith.constant 0 : index
      %c0_26 = arith.constant 0 : index
      %50 = vector.load %arg3[%c0_23, %c0_24, %c0_25, %c0_26] : memref<1x16x16x4xbf16, #tpu.memory_space<vmem>>, vector<1x16x16x4xbf16>
      %51 = vector.shape_cast %50 : vector<1x16x16x4xbf16> to vector<16x16x4xbf16>
      %c1 = arith.constant 1 : index
      %c1_27 = arith.constant 1 : index
      %c0_28 = arith.constant 0 : index
      %52 = vector.load %arg8[%c1, %c1_27, %c0_28] : memref<18x18x4xbf16, #tpu.memory_space<vmem>>, vector<16x16x4xbf16>
      tpu.vector_store %arg8[%c1, %c1_27, %c0_28], %51 {strides = array<i32>} : memref<18x18x4xbf16, #tpu.memory_space<vmem>>, vector<16x16x4xbf16>,
    } else {
    }
    %c16_i32 = arith.constant 16 : i32
    %3 = arith.muli %arg2, %c16_i32 : i32
    %4 = tpu.assume_multiple %3, 16 : i32
    %c0_i32_1 = arith.constant 0 : i32
    %5 = arith.addi %4, %c0_i32_1 : i32
    %6 = arith.index_cast %5 : i32 to index
    %c0 = arith.constant 0 : index
    %c0_2 = arith.constant 0 : index
    %7 = vector.load %arg8[%6, %c0, %c0_2] : memref<18x18x4xbf16, #tpu.memory_space<vmem>>, vector<16x18x4xbf16>
    %8 = vector.extract_strided_slice %7 {offsets = [0, 0, 0], sizes = [16, 16, 4], strides = [1, 1, 1]} : vector<16x18x4xbf16> to vector<16x16x4xbf16>
    %9 = vector.shape_cast %8 : vector<16x16x4xbf16> to vector<256x4xbf16>
    %10 = vector.extract_strided_slice %7 {offsets = [0, 1, 0], sizes = [16, 16, 4], strides = [1, 1, 1]} : vector<16x18x4xbf16> to vector<16x16x4xbf16>
    %11 = vector.shape_cast %10 : vector<16x16x4xbf16> to vector<256x4xbf16>
    %12 = vector.extract_strided_slice %7 {offsets = [0, 2, 0], sizes = [16, 16, 4], strides = [1, 1, 1]} : vector<16x18x4xbf16> to vector<16x16x4xbf16>
    %13 = vector.shape_cast %12 : vector<16x16x4xbf16> to vector<256x4xbf16>
    %c1_i32 = arith.constant 1 : i32
    %14 = arith.addi %4, %c1_i32 : i32
    %15 = arith.index_cast %14 : i32 to index
    %c0_3 = arith.constant 0 : index
    %c0_4 = arith.constant 0 : index
    %16 = vector.load %arg8[%15, %c0_3, %c0_4] : memref<18x18x4xbf16, #tpu.memory_space<vmem>>, vector<16x18x4xbf16>
    %17 = vector.extract_strided_slice %16 {offsets = [0, 0, 0], sizes = [16, 16, 4], strides = [1, 1, 1]} : vector<16x18x4xbf16> to vector<16x16x4xbf16>
    %18 = vector.shape_cast %17 : vector<16x16x4xbf16> to vector<256x4xbf16>
    %19 = vector.extract_strided_slice %16 {offsets = [0, 1, 0], sizes = [16, 16, 4], strides = [1, 1, 1]} : vector<16x18x4xbf16> to vector<16x16x4xbf16>
    %20 = vector.shape_cast %19 : vector<16x16x4xbf16> to vector<256x4xbf16>
    %21 = vector.extract_strided_slice %16 {offsets = [0, 2, 0], sizes = [16, 16, 4], strides = [1, 1, 1]} : vector<16x18x4xbf16> to vector<16x16x4xbf16>
    %22 = vector.shape_cast %21 : vector<16x16x4xbf16> to vector<256x4xbf16>
    %c2_i32 = arith.constant 2 : i32
    %23 = arith.addi %4, %c2_i32 : i32
    %24 = arith.index_cast %23 : i32 to index
    %c0_5 = arith.constant 0 : index
    %c0_6 = arith.constant 0 : index
    %25 = vector.load %arg8[%24, %c0_5, %c0_6] : memref<18x18x4xbf16, #tpu.memory_space<vmem>>, vector<16x18x4xbf16>
    %26 = vector.extract_strided_slice %25 {offsets = [0, 0, 0], sizes = [16, 16, 4], strides = [1, 1, 1]} : vector<16x18x4xbf16> to vector<16x16x4xbf16>
    %27 = vector.shape_cast %26 : vector<16x16x4xbf16> to vector<256x4xbf16>
    %28 = vector.extract_strided_slice %25 {offsets = [0, 1, 0], sizes = [16, 16, 4], strides = [1, 1, 1]} : vector<16x18x4xbf16> to vector<16x16x4xbf16>
    %29 = vector.shape_cast %28 : vector<16x16x4xbf16> to vector<256x4xbf16>
    %30 = vector.extract_strided_slice %25 {offsets = [0, 2, 0], sizes = [16, 16, 4], strides = [1, 1, 1]} : vector<16x18x4xbf16> to vector<16x16x4xbf16>
    %31 = vector.shape_cast %30 : vector<16x16x4xbf16> to vector<256x4xbf16>
    %32 = tpu.concatenate %9, %11, %13, %18, %20, %22, %27, %29, %31 in 1 : vector<256x4xbf16>, vector<256x4xbf16>, vector<256x4xbf16>, vector<256x4xbf16>, vector<256x4xbf16>, vector<256x4xbf16>, vector<256x4xbf16>, vector<256x4xbf16>, vector<256x4xbf16> -> vector<256x36xbf16>
    %c0_7 = arith.constant 0 : index
    %c0_8 = arith.constant 0 : index
    %33 = vector.load %arg4[%c0_7, %c0_8] : memref<36x128xbf16, #tpu.memory_space<vmem>>, vector<36x128xbf16>
    %cst = arith.constant dense<0.000000e+00> : vector<256x128xf32>
    %34 = tpu.matmul %32, %33, %cst {dimension_numbers = #tpu.dot_dimension_numbers<[1], [0], [0], [1], [0, 0, 1, 1], [], []>} : vector<256x36xbf16>, vector<36x128xbf16>, vector<256x128xf32> -> vector<256x128xf32>
    %c0_9 = arith.constant 0 : index
    %c0_10 = arith.constant 0 : index
    %35 = vector.load %arg5[%c0_9, %c0_10] : memref<1x128xf32, #tpu.memory_space<vmem>>, vector<1x128xf32>
    %36 = vector.broadcast %35 : vector<1x128xf32> to vector<256x128xf32>
    %37 = arith.mulf %34, %36 : vector<256x128xf32>
    %c0_11 = arith.constant 0 : index
    %c0_12 = arith.constant 0 : index
    %38 = vector.load %arg6[%c0_11, %c0_12] : memref<1x128xf32, #tpu.memory_space<vmem>>, vector<1x128xf32>
    %39 = vector.broadcast %38 : vector<1x128xf32> to vector<256x128xf32>
    %40 = arith.addf %37, %39 : vector<256x128xf32>
    %cst_13 = arith.constant 0.000000e+00 : f32
    %41 = vector.broadcast %cst_13 : f32 to vector<256x128xf32>
    %42 = arith.cmpf oge, %40, %41 : vector<256x128xf32>
    %cst_14 = arith.constant 1.000000e-01 : f32
    %43 = vector.broadcast %cst_14 : f32 to vector<256x128xf32>
    %44 = arith.mulf %43, %40 : vector<256x128xf32>
    %45 = arith.select %42, %40, %44 : vector<256x128xi1>, vector<256x128xf32>
    %46 = vector.shape_cast %45 : vector<256x128xf32> to vector<1x16x16x128xf32>
    %c0_15 = arith.constant 0 : index
    %c0_16 = arith.constant 0 : index
    %c0_17 = arith.constant 0 : index
    %c0_18 = arith.constant 0 : index
    %47 = vector.load %arg7[%c0_15, %c0_16, %c0_17, %c0_18] : memref<1x16x16x128xf32, #tpu.memory_space<vmem>>, vector<1x16x16x128xf32>
    tpu.vector_store %arg7[%c0_15, %c0_16, %c0_17, %c0_18], %46 {strides = array<i32>} : memref<1x16x16x128xf32, #tpu.memory_space<vmem>>, vector<1x16x16x128xf32>,
    return
  }
  func.func @transform_0(%arg0: i32, %arg1: i32, %arg2: i32) -> (i32, i32, i32, i32) {
    %c0_i32 = arith.constant 0 : i32
    %c0_i32_0 = arith.constant 0 : i32
    %c0_i32_1 = arith.constant 0 : i32
    %c0_i32_2 = arith.constant 0 : i32
    return %arg1, %c0_i32, %c0_i32_0, %c0_i32_1 : i32, i32, i32, i32
  }
  func.func @transform_1(%arg0: i32, %arg1: i32, %arg2: i32) -> (i32, i32) {
    %c0_i32 = arith.constant 0 : i32
    %c0_i32_0 = arith.constant 0 : i32
    return %c0_i32, %arg0 : i32, i32
  }
  func.func @transform_2(%arg0: i32, %arg1: i32, %arg2: i32) -> (i32, i32) {
    %c0_i32 = arith.constant 0 : i32
    %c0_i32_0 = arith.constant 0 : i32
    return %c0_i32, %arg0 : i32, i32
  }
  func.func @transform_3(%arg0: i32, %arg1: i32, %arg2: i32) -> (i32, i32) {
    %c0_i32 = arith.constant 0 : i32
    %c0_i32_0 = arith.constant 0 : i32
    return %c0_i32, %arg0 : i32, i32
  }
  func.func @transform_4(%arg0: i32, %arg1: i32, %arg2: i32) -> (i32, i32, i32, i32) {
    %c0_i32 = arith.constant 0 : i32
    %c0_i32_0 = arith.constant 0 : i32
    return %arg1, %arg2, %c0_i32, %arg0 : i32, i32, i32, i32
  }
}

</mosaic_0001>

<bundles_post_ra>
// kernel: cnn_block_forward.3
= control target key start
LH: loop header
LB: loop body
LE: loop exit
PB: predicated region body
PF: predicated region fallthrough
CT: control target
= control target key end

     0   :  { %s4700_s15 = smov 0   ;;  %s4702_s16 = smov 0   ;;  %s6886_s0 = inlined_call_operand.vmem [shape: bf16[2,16,16,4], index: 0, kind: input, shape index: {}]   ;;  %s6887_s1 = inlined_call_operand.vmem [shape: bf16[36,128], index: 1, kind: input, shape index: {}]   ;;  %s6888_s2 = inlined_call_operand.vmem [shape: f32[1,128], index: 2, kind: input, shape index: {}]   ;;  %s6889_s3 = inlined_call_operand.vmem [shape: f32[1,128], index: 3, kind: input, shape index: {}]   ;;  %s6890_s4 = inlined_call_operand.vmem [shape: f32[2,16,16,128], index: 4, kind: output, shape index: {}]  }
   0x1   :  { %s4704_s17 = smov 0  }
   0x2 LB: > { %s29_s18 = sadd.s32 1, %s4660_s16  ;;  %p4159_p0 = scmp.ge.s32.totalorder %s4664_s17, 1  ;;  %s4664_s17 = sphi %s4704_s17, %s14_s17   ;;  %s4660_s16 = sphi %s4702_s16, %s6910_s16   ;;  %s4656_s15 = sphi %s4700_s15, %s6909_s15  }
   0x3   : > { %p31_p1 = scmp.ge.s32.totalorder %s29_s18, 2  ;;  %p210_p2 = scmp.lt.s32.totalorder %s4664_s17, 3 }
   0x5   : > { %s6912_s18 = smov (%p31_p1, %s29_s18), 0  ;;  %p211_p3 = pnand %p4159_p0, %p210_p2 }
   0x7   : > { %214 = sbr.rel (%p211_p3) target bundleno = 739 (0x2e3), region = 36 }
   0xc   : > { %vm288_vm0 = vcmask 27648   ;;  %vm291_vm1 = vcmask 24576   ;;  %v4666_v0 = vmov 0   ;;  %p254_p4 = scmp.lt.s32.totalorder %s4656_s15, 1  ;;  %vm1304_vm2 = vcmask 1042432   ;;  %s4667_s23 = smov 8  }
   0xd   : > { %289 = vst.msk [vmem:[#allocation2] sm:$0xf] %vm288_vm0, %v4666_v0  ;;  %290 = vst.msk [vmem:[#allocation2 + $0x4] sm:$0xf] %vm288_vm0, %v4666_v0  ;;  %vm1305_vm3 = vcmask 1046532   ;;  %s4668_s24 = smov 4  }
   0xe   : > { %292 = vst.msk [vmem:[#allocation2 + $0x8] sm:$0x1] %vm291_vm1, %v4666_v0  ;;  %295 = vst.msk [vmem:[#allocation2 + $0x14] sm:$0x1] %vm291_vm1, %v4666_v0  ;;  %s6914_s15 = smov (!%p254_p4, %s4656_s15), 1  ;;  %s4669_s25 = smov 12  }
   0xf   : > { %293 = vst.msk [vmem:[#allocation2 + $0xc] sm:$0xf] %vm288_vm0, %v4666_v0  ;;  %294 = vst.msk [vmem:[#allocation2 + $0x10] sm:$0xf] %vm288_vm0, %v4666_v0  ;;  %s4475_s19 = sshll.u32 %s6914_s15, 7  ;;  %s4670_s26 = smov 20  }
  0x10   : > { %296 = vst.msk [vmem:[#allocation2 + $0x18] sm:$0xf] %vm288_vm0, %v4666_v0  ;;  %297 = vst.msk [vmem:[#allocation2 + $0x1c] sm:$0xf] %vm288_vm0, %v4666_v0  ;;  %vm869_vm4 = vsmask.f32 3328  ;;  %s4782_s22 = scalar_lea.vmem %s6886_s0, %s4475_s19 }
  0x11   : > { %298 = vst.msk [vmem:[#allocation2 + $0x20] sm:$0x1] %vm291_vm1, %v4666_v0  ;;  %301 = vst.msk [vmem:[#allocation2 + $0x2c] sm:$0x1] %vm291_vm1, %v4666_v0  ;;  %vm870_vm5 = vsmask.f32 7440 }
  0x12   : > { %299 = vst.msk [vmem:[#allocation2 + $0x24] sm:$0xf] %vm288_vm0, %v4666_v0  ;;  %300 = vst.msk [vmem:[#allocation2 + $0x28] sm:$0xf] %vm288_vm0, %v4666_v0  ;;  %vm376_vm6 = vsmask.f32 256 }
  0x13   : > { %302 = vst.msk [vmem:[#allocation2 + $0x30] sm:$0xf] %vm288_vm0, %v4666_v0  ;;  %303 = vst.msk [vmem:[#allocation2 + $0x34] sm:$0xf] %vm288_vm0, %v4666_v0  ;;  %v360_v2 = vld [vmem:[%s4782_s22 + $0x40] sm:$0xf] }
  0x14   : > { %304 = vst.msk [vmem:[#allocation2 + $0x38] sm:$0x1] %vm291_vm1, %v4666_v0  ;;  %307 = vst.msk [vmem:[#allocation2 + $0x44] sm:$0x1] %vm291_vm1, %v4666_v0  ;;  %vm377_vm8 = vsmask.f32 4368 }
  0x15   : > { %305 = vst.msk [vmem:[#allocation2 + $0x3c] sm:$0xf] %vm288_vm0, %v4666_v0  ;;  %306 = vst.msk [vmem:[#allocation2 + $0x40] sm:$0xf] %vm288_vm0, %v4666_v0  ;;  %vm701_vm9 = vsmask.f32 7938 }
  0x16   : > { %308 = vst.msk [vmem:[#allocation2 + $0x48] sm:$0xf] %vm288_vm0, %v4666_v0  ;;  %309 = vst.msk [vmem:[#allocation2 + $0x4c] sm:$0xf] %vm288_vm0, %v4666_v0  ;;  %v821_v3 = vld [vmem:[#allocation2] sm:$0xf] }
  0x17   : > { %310 = vst.msk [vmem:[#allocation2 + $0x50] sm:$0x1] %vm291_vm1, %v4666_v0  ;;  %313 = vst.msk [vmem:[#allocation2 + $0x5c] sm:$0x1] %vm291_vm1, %v4666_v0  ;;  %v822_v4 = vld [vmem:[#allocation2 + $0x4] sm:$0xf] }
  0x18   : > { %311 = vst.msk [vmem:[#allocation2 + $0x54] sm:$0xf] %vm288_vm0, %v4666_v0  ;;  %312 = vst.msk [vmem:[#allocation2 + $0x58] sm:$0xf] %vm288_vm0, %v4666_v0  ;;  %v823_v5 = vld [vmem:[#allocation2 + $0x8] sm:$0x1] }
  0x19   : > { %314 = vst.msk [vmem:[#allocation2 + $0x60] sm:$0xf] %vm288_vm0, %v4666_v0  ;;  %315 = vst.msk [vmem:[#allocation2 + $0x64] sm:$0xf] %vm288_vm0, %v4666_v0  ;;  %v892_v6 = vshll.u32 %v823_v5, 16  ;;  %v4164_v7 = vrot.slane %v821_v3, 9 }
  0x1a   : > { %316 = vst.msk [vmem:[#allocation2 + $0x68] sm:$0x1] %vm291_vm1, %v4666_v0  ;;  %319 = vst.msk [vmem:[#allocation2 + $0x74] sm:$0x1] %vm291_vm1, %v4666_v0  ;;  %v1309_v8 = vrot.slane %v822_v4, 5  ;;  %v1312_v9 = vrot.slane %v823_v5, 5 }
  0x1b   : > { %317 = vst.msk [vmem:[#allocation2 + $0x6c] sm:$0xf] %vm288_vm0, %v4666_v0  ;;  %318 = vst.msk [vmem:[#allocation2 + $0x70] sm:$0xf] %vm288_vm0, %v4666_v0  ;;  %v873_v10 = vshrl.u32 %v821_v3, 16  ;;  %v876_v11 = vshll.u32 %v821_v3, 16 }
  0x1c   : > { %320 = vst.msk [vmem:[#allocation2 + $0x78] sm:$0xf] %vm288_vm0, %v4666_v0  ;;  %321 = vst.msk [vmem:[#allocation2 + $0x7c] sm:$0xf] %vm288_vm0, %v4666_v0  ;;  %v882_v12 = vshll.u32 %v822_v4, 16  ;;  %v886_v13 = vshrl.u32 %v822_v4, 16 }
  0x1d   : > { %322 = vst.msk [vmem:[#allocation2 + $0x80] sm:$0x1] %vm291_vm1, %v4666_v0  ;;  %325 = vst.msk [vmem:[#allocation2 + $0x8c] sm:$0x1] %vm291_vm1, %v4666_v0  ;;  %v361_v14 = vld [vmem:[%s4782_s22 + $0x44] sm:$0xf] }
  0x1e   : > { %323 = vst.msk [vmem:[#allocation2 + $0x84] sm:$0xf] %vm288_vm0, %v4666_v0  ;;  %324 = vst.msk [vmem:[#allocation2 + $0x88] sm:$0xf] %vm288_vm0, %v4666_v0  ;;  %v1311_v16 = vrot.slane %v1309_v8, 4  ;;  %v894_v17 = vrot.slane %v892_v6, 5 }
  0x1f   : > { %326 = vst.msk [vmem:[#allocation2 + $0x90] sm:$0xf] %vm288_vm0, %v4666_v0  ;;  %327 = vst.msk [vmem:[#allocation2 + $0x94] sm:$0xf] %vm288_vm0, %v4666_v0  ;;  %v516_v18 = vshrl.u32 %v360_v2, 16  ;;  %v875_v19 = vrot.slane %v873_v10, 4 }
  0x20   : > { %328 = vst.msk [vmem:[#allocation2 + $0x98] sm:$0x1] %vm291_vm1, %v4666_v0  ;;  %331 = vst.msk [vmem:[#allocation2 + $0xa4] sm:$0x1] %vm291_vm1, %v4666_v0  ;;  %v878_v20 = vrot.slane %v876_v11, 5  ;;  %v884_v21 = vrot.slane %v882_v12, 5 }
  0x21   : > { %329 = vst.msk [vmem:[#allocation2 + $0x9c] sm:$0xf] %vm288_vm0, %v4666_v0  ;;  %330 = vst.msk [vmem:[#allocation2 + $0xa0] sm:$0xf] %vm288_vm0, %v4666_v0  ;;  %v888_v22 = vrot.slane %v886_v13, 4  ;;  %v518_v25 = vrot.slane %v516_v18, 7 }
  0x22   : > { %332 = vst.msk [vmem:[#allocation2 + $0xa8] sm:$0xf] %vm288_vm0, %v4666_v0  ;;  %333 = vst.msk [vmem:[#allocation2 + $0xac] sm:$0xf] %vm288_vm0, %v4666_v0  ;;  %v344_v23 = vld [vmem:[%s4782_s22] sm:$0xf]  ;;  %v879_v30 = vor.u32 %v878_v20, %v875_v19 }
  0x23   : > { %334 = vst.msk [vmem:[#allocation2 + $0xb0] sm:$0x1] %vm291_vm1, %v4666_v0  ;;  %337 = vst.msk [vmem:[#allocation2 + $0xbc] sm:$0x1] %vm291_vm1, %v4666_v0  ;;  %v519_v26 = vshll.u32 %v360_v2, 16  ;;  %v524_v27 = vshrl.u32 %v361_v14, 16  ;;  %v889_v31 = vor.u32 %v888_v22, %v884_v21 }
  0x24   : > { %335 = vst.msk [vmem:[#allocation2 + $0xb4] sm:$0xf] %vm288_vm0, %v4666_v0  ;;  %336 = vst.msk [vmem:[#allocation2 + $0xb8] sm:$0xf] %vm288_vm0, %v4666_v0  ;;  %v345_v28 = vld [vmem:[%s4782_s22 + $0x4] sm:$0xf] }
  0x25   : > { %338 = vst.msk [vmem:[#allocation2 + $0xc0] sm:$0xf] %vm288_vm0, %v4666_v0  ;;  %339 = vst.msk [vmem:[#allocation2 + $0xc4] sm:$0xf] %vm288_vm0, %v4666_v0  ;;  %v527_v32 = vshll.u32 %v361_v14, 16  ;;  %v521_v36 = vor.u32 %v519_v26, %v518_v25  ;;  %v522_v37 = vrot.slane %v518_v25, 4 }
  0x26   : > { %340 = vst.msk [vmem:[#allocation2 + $0xc8] sm:$0x1] %vm291_vm1, %v4666_v0  ;;  %343 = vst.msk [vmem:[#allocation2 + $0xd4] sm:$0x1] %vm291_vm1, %v4666_v0  ;;  %v761_v34 = vld [vmem:[#allocation2 + $0x6c] sm:$0xf] }
  0x27   : > { %341 = vst.msk [vmem:[#allocation2 + $0xcc] sm:$0xf] %vm288_vm0, %v4666_v0  ;;  %342 = vst.msk [vmem:[#allocation2 + $0xd0] sm:$0xf] %vm288_vm0, %v4666_v0  ;;  %v4808_v38 = vrot.slane %v524_v27, 7  ;;  %v380_v39 = vshrl.u32 %v344_v23, 16 }
  0x28   : > { %vm4784_vm7 = vmor %vm1304_vm2, %vm1305_vm3  ;;  %v880_v40 = vrot.slane %v879_v30, 4  ;;  %v890_v41 = vrot.slane %v889_v31, 4  ;;  %v383_v43 = vshll.u32 %v344_v23, 16  ;;  %v388_v44 = vshrl.u32 %v345_v28, 16  ;;  %v362_v48 = vld [vmem:[%s4782_s22 + $0x48] sm:$0xf] }
  0x29   : > { %v1310_v15 = vsel %vm4784_vm7, %v4164_v7, %v1309_v8  ;;  %v1313_v24 = vsel %vm4784_vm7, %v1311_v16, %v1312_v9  ;;  %vm4798_vm10 = vmand %vm288_vm0, %vm701_vm9  ;;  %v529_v45 = vor.u32 %v527_v32, %v4808_v38  ;;  %v382_v47 = vrot.slane %v380_v39, 7  ;;  %v363_v49 = vld [vmem:[%s4782_s22 + $0x4c] sm:$0xf]  ;;  %v346_v55 = vld [vmem:[%s4782_s22 + $0x8] sm:$0xf]  ;;  %s4671_s27 = smov 16  }
  0x2a   : > { %v4340_v29 = vcombine.low %v1310_v15, %v1313_v24  ;;  %vm4804_vm11 = vmor %vm869_vm4, %vm870_vm5  ;;  %v762_v46 = vsel %vm4798_vm10, %v521_v36, %v761_v34  ;;  %v4826_v52 = vrot.slane %v388_v44, 7  ;;  %v391_v53 = vshll.u32 %v345_v28, 16  ;;  %v703_v54 = vld [vmem:[#allocation2 + $0xc] sm:$0xf]  ;;  %v358_v2 = vld [vmem:[%s4782_s22 + $0x38] sm:$0xf] }
  0x2b   : > { %vm4813_vm12 = vmor %vm376_vm6, %vm377_vm8  ;;  %v885_v50 = vsel %vm4804_vm11, %v880_v40, %v884_v21  ;;  %v895_v51 = vsel %vm4804_vm11, %v890_v41, %v894_v17  ;;  %763 = vst [vmem:[#allocation2 + $0x6c] sm:$0xf] %v762_v46  ;;  %v385_v58 = vor.u32 %v383_v43, %v382_v47  ;;  %v386_v59 = vrot.slane %v382_v47, 4  ;;  %v347_v60 = vld [vmem:[%s4782_s22 + $0xc] sm:$0xf]  ;;  %s4672_s28 = smov 24  }
  0x2c   : > { %2787 = vrot.lane.b32.xlu0 %v4340_v29, %s4667_s23  ;;  %v4324_v56 = vcombine.low %v885_v50, %v895_v51  ;;  %v530_v57 = vsel %vm4813_vm12, %v522_v37, %v529_v45  ;;  %v393_v61 = vor.u32 %v391_v53, %v4826_v52  ;;  %v533_v62 = vshrl.u32 %v362_v48, 16  ;;  %v359_v11 = vld [vmem:[%s4782_s22 + $0x3c] sm:$0xf]  ;;  %v768_v12 = vld [vmem:[#allocation2 + $0x78] sm:$0xf]  ;;  %vm4876_vm13 = vmand %vm291_vm1, %vm376_vm6  ;;  %s4673_s29 = smov 28  }
  0x2d   : > { %764 = vst.msk [vmem:[#allocation2 + $0x70] sm:$0xf] %vm288_vm0, %v530_v57  ;;  %v536_v63 = vshll.u32 %v362_v48, 16  ;;  %v541_v0 = vshrl.u32 %v363_v49, 16  ;;  %v704_v3 = vsel %vm4798_vm10, %v385_v58, %v703_v54  ;;  %v544_v4 = vshll.u32 %v363_v49, 16  ;;  %s4674_s30 = smov 32  }
  0x2e   : > { %v397_v5 = vshrl.u32 %v346_v55, 16  ;;  %v400_v6 = vshll.u32 %v346_v55, 16  ;;  %v394_v7 = vsel %vm4813_vm12, %v386_v59, %v393_v61  ;;  %705 = vst [vmem:[#allocation2 + $0xc] sm:$0xf] %v704_v3  ;;  %v535_v8 = vrot.slane %v533_v62, 7  ;;  %s4476_s19 = sshll.u32 %s6914_s15, 8 }
  0x2f   : > { %v4840_v9 = vrot.slane %v541_v0, 7  ;;  %v405_v10 = vshrl.u32 %v347_v60, 16  ;;  %706 = vst.msk [vmem:[#allocation2 + $0x10] sm:$0xf] %vm288_vm0, %v394_v7  ;;  %v408_v14 = vshll.u32 %v347_v60, 16  ;;  %v499_v15 = vshrl.u32 %v358_v2, 16 }
  0x30   : > { %2707 = vrot.lane.b32.xlu0 %v4324_v56, %s4668_s24  ;;  %v399_v13 = vrot.slane %v397_v5, 7  ;;  %v502_v16 = vshll.u32 %v358_v2, 16  ;;  %v538_v17 = vor.u32 %v536_v63, %v535_v8  ;;  %v539_v18 = vrot.slane %v535_v8, 4  ;;  %v712_v21 = vld [vmem:[#allocation2 + $0x18] sm:$0xf] }
  0x31   : > { %v546_v19 = vor.u32 %v544_v4, %v4840_v9  ;;  %v4845_v20 = vrot.slane %v405_v10, 7  ;;  %v501_v25 = vrot.slane %v499_v15, 7  ;;  %v507_v26 = vshrl.u32 %v359_v11, 16  ;;  %v754_v39 = vld [vmem:[#allocation2 + $0x60] sm:$0xf] }
  0x32   : > { %v4847_v22 = vld [vmem:[#allocation2 + $0x6c] sm:$0xf]  ;;  %v402_v23 = vor.u32 %v400_v6, %v399_v13  ;;  %v403_v24 = vrot.slane %v399_v13, 4  ;;  %v769_v30 = vsel %vm4798_vm10, %v538_v17, %v768_v12  ;;  %v531_v31 = vrot.slane %v4808_v38, 4  ;;  %v758_v38 = vld [vmem:[#allocation2 + $0x68] sm:$0x1] }
  0x33   : > { %v1664_v27 = vshrl.u32 %v4847_v22, 16  ;;  %v1667_v28 = vshll.u32 %v4847_v22, 16  ;;  %v547_v29 = vsel %vm4813_vm12, %v539_v18, %v546_v19  ;;  %770 = vst [vmem:[#allocation2 + $0x78] sm:$0xf] %v769_v30  ;;  %v410_v34 = vor.u32 %v408_v14, %v4845_v20  ;;  %v765_v44 = vld [vmem:[#allocation2 + $0x74] sm:$0x1] }
  0x34   : > { %v4856_v32 = vld [vmem:[#allocation2 + $0x70] sm:$0xf]  ;;  %771 = vst.msk [vmem:[#allocation2 + $0x7c] sm:$0xf] %vm288_vm0, %v547_v29  ;;  %v713_v36 = vsel %vm4798_vm10, %v402_v23, %v712_v21  ;;  %v504_v37 = vor.u32 %v502_v16, %v501_v25  ;;  %v505_v43 = vrot.slane %v501_v25, 4  ;;  %v509_v48 = vrot.slane %v507_v26, 7 }
  0x35   : > { %v1677_v40 = vshrl.u32 %v4856_v32, 16  ;;  %v4364_v41 = vcombine.low %v4847_v22, %v4856_v32  ;;  %714 = vst [vmem:[#allocation2 + $0x18] sm:$0xf] %v713_v36  ;;  %v1673_v45 = vshll.u32 %v4856_v32, 16  ;;  %v4866_v46 = vld [vmem:[#allocation2 + $0xc] sm:$0xf]  ;;  %v411_v47 = vsel %vm4813_vm12, %v403_v24, %v410_v34 }
  0x36   : > { %v510_v49 = vshll.u32 %v359_v11, 16  ;;  %v709_v50 = vld [vmem:[#allocation2 + $0x14] sm:$0x1]  ;;  %v4870_v51 = vld [vmem:[#allocation2 + $0x6c] sm:$0xf]  ;;  %v4883_v56 = vrot.slane %v1664_v27, 4  ;;  %v755_v59 = vsel %vm4798_vm10, %v504_v37, %v754_v39  ;;  %v766_v6 = vsel %vm4876_vm13, %v531_v31, %v765_v44 }
  0x37   : > { %v4872_v53 = vld [vmem:[#allocation2 + $0x70] sm:$0xf]  ;;  %v4880_v55 = vrot.slane %v1677_v40, 4  ;;  %2883 = vrot.lane.b32.xlu1 %v4364_v41, %s4669_s25  ;;  %v4885_v57 = vrot.slane %v1667_v28, 5  ;;  %715 = vst.msk [vmem:[#allocation2 + $0x1c] sm:$0xf] %vm288_vm0, %v411_v47 }
  0x38   : > { %v4887_v58 = vld [vmem:[#allocation2 + $0x10] sm:$0xf]  ;;  %v1472_v61 = vshrl.u32 %v4866_v46, 16  ;;  %v512_v62 = vor.u32 %v510_v49, %v509_v48  ;;  %v514_v63 = vrot.slane %v509_v48, 4  ;;  %756 = vst [vmem:[#allocation2 + $0x60] sm:$0xf] %v755_v59 }
  0x39   : > { %v4356_v60 = vcombine.low %v4866_v46, %v4887_v58  ;;  %v4895_v0 = vld [vmem:[#allocation2 + $0xc] sm:$0xf]  ;;  %v4897_v2 = vld [vmem:[#allocation2 + $0x10] sm:$0xf]  ;;  %v1475_v3 = vshll.u32 %v4866_v46, 16  ;;  %v395_v4 = vrot.slane %v4826_v52, 4 }
  0x3a   : > { %v1316_v5 = vrot.slane %v4897_v2, 5  ;;  %v1485_v7 = vshrl.u32 %v4887_v58, 16  ;;  %v513_v8 = vsel %vm4813_vm12, %v505_v43, %v512_v62  ;;  %v759_v10 = vsel %vm4876_vm13, %v514_v63, %v758_v38  ;;  %767 = vst [vmem:[#allocation2 + $0x74] sm:$0x1] %v766_v6  ;;  %v4911_v12 = vld [vmem:[#allocation2 + $0x78] sm:$0xf] }
  0x3b   : > { %2867 = vrot.lane.b32.xlu0 %v4356_v60, %s4669_s25  ;;  %v4165_v11 = vrot.slane %v4895_v0, 9  ;;  %v4913_v52 = vld [vmem:[#allocation2 + $0x7c] sm:$0xf]  ;;  %757 = vst.msk [vmem:[#allocation2 + $0x64] sm:$0xf] %vm288_vm0, %v513_v8  ;;  %v710_v13 = vsel %vm4876_vm13, %v395_v4, %v709_v50  ;;  %v4173_v14 = vrot.slane %v4870_v51, 9 }
  0x3c   : > { %760 = vst [vmem:[#allocation2 + $0x68] sm:$0x1] %v759_v10  ;;  %v1372_v15 = vrot.slane %v4872_v53, 5  ;;  %v4365_v17 = vcombine.low %v4911_v12, %v4913_v52  ;;  %v4923_v18 = vld [vmem:[#allocation2 + $0x18] sm:$0xf]  ;;  %v1318_v19 = vrot.slane %v1316_v5, 4 }
  0x3d   : > { %711 = vst [vmem:[#allocation2 + $0x14] sm:$0x1] %v710_v13  ;;  %v4228_v21 = vrot.slane %v4866_v46, 9  ;;  %v1496_v25 = vshrl.u32 %v4923_v18, 16  ;;  %v1499_v26 = vshll.u32 %v4923_v18, 16  ;;  %v1905_v28 = vrot.slane %v4887_v58, 5 }
  0x3e   : > { %2885 = vrot.lane.b32.xlu1 %v4365_v17, %s4669_s25  ;;  %v4931_v27 = vld [vmem:[#allocation2 + $0x1c] sm:$0xf]  ;;  %v4236_v29 = vrot.slane %v4847_v22, 9  ;;  %v1961_v30 = vrot.slane %v4856_v32, 5  ;;  %v1474_v31 = vrot.slane %v1472_v61, 4  ;;  %v1317_v37 = vsel %vm4784_vm7, %v4165_v11, %v1316_v5 }
  0x3f   : > { %v4357_v34 = vcombine.low %v4923_v18, %v4931_v27  ;;  %v845_v36 = vld [vmem:[#allocation2 + $0x60] sm:$0xf]  ;;  %v1374_v39 = vrot.slane %v1372_v15, 4  ;;  %v1477_v40 = vrot.slane %v1475_v3, 5  ;;  %v4940_v41 = vld [vmem:[#allocation2 + $0x18] sm:$0xf]  ;;  %v1373_v48 = vsel %vm4784_vm7, %v4173_v14, %v1372_v15 }
  0x40   : > { %v1509_v43 = vshrl.u32 %v4931_v27, 16  ;;  %v4172_v38 = vrot.slane %v845_v36, 9  ;;  %v1907_v44 = vrot.slane %v1905_v28, 4  ;;  %v1481_v22 = vshll.u32 %v4887_v58, 16  ;;  %v4944_v46 = vld [vmem:[#allocation2 + $0x1c] sm:$0xf] }
  0x41   : > { %2869 = vrot.lane.b32.xlu0 %v4357_v34, %s4669_s25  ;;  %v4947_v47 = vld [vmem:[#allocation2 + $0x74] sm:$0x1]  ;;  %v1906_v49 = vsel %vm4784_vm7, %v4228_v21, %v1905_v28  ;;  %v1963_v59 = vrot.slane %v1961_v30, 4  ;;  %v1065_v60 = vshrl.u32 %v845_v36, 16  ;;  %v4958_v3 = vsel %vm4784_vm7, %v4236_v29, %v1961_v30 }
  0x42   : > { %v4953_v50 = vld [vmem:[#allocation2 + $0x74] sm:$0x1]  ;;  %v846_v61 = vld [vmem:[#allocation2 + $0x64] sm:$0xf]  ;;  %v1375_v63 = vrot.slane %v4947_v47, 5  ;;  %v1478_v5 = vor.u32 %v1477_v40, %v1474_v31  ;;  %v1670_v13 = vor.u32 %v4885_v57, %v4883_v56  ;;  %v1068_v23 = vshll.u32 %v845_v36, 16 }
  0x43   : > { %v847_v62 = vld [vmem:[#allocation2 + $0x68] sm:$0x1]  ;;  %v1964_v4 = vrot.slane %v4953_v50, 5  ;;  %v1365_v6 = vrot.slane %v846_v61, 5  ;;  %v1067_v24 = vrot.slane %v1065_v60, 4  ;;  %v906_v58 = vshll.u32 %v4897_v2, 16 }
  0x44   : > { %v1368_v8 = vrot.slane %v847_v62, 5  ;;  %v826_v10 = vld [vmem:[#allocation2 + $0x14] sm:$0x1]  ;;  %v1376_v17 = vsel %vm4784_vm7, %v1374_v39, %v1375_v63  ;;  %vm3299_vm14 = vcmask 31744   ;;  %vm3348_vm15 = vcmask 64512  }
  0x45   : > { %v4182_v11 = vld [vmem:[#allocation2 + $0x14] sm:$0x1]  ;;  %v1319_v15 = vrot.slane %v826_v10, 5  ;;  %v1965_v28 = vsel %vm4784_vm7, %v1963_v59, %v1964_v4  ;;  %v1366_v29 = vsel %vm4784_vm7, %v4172_v38, %v1365_v6  ;;  %v1367_v30 = vrot.slane %v1365_v6, 4 }
  0x46   : > { %v1908_v21 = vrot.slane %v4182_v11, 5  ;;  %v4349_v31 = vcombine.low %v1373_v48, %v1376_v17  ;;  %v4396_v34 = vcombine.low %v4958_v3, %v1965_v28  ;;  %v1074_v4 = vshll.u32 %v846_v61, 16 }
  0x47   : > { %v1320_v40 = vsel %vm4784_vm7, %v1318_v19, %v1319_v15  ;;  %v1369_v39 = vsel %vm4784_vm7, %v1367_v30, %v1368_v8  ;;  %v1070_v38 = vrot.slane %v1068_v23, 5  ;;  %v1078_v6 = vshrl.u32 %v846_v61, 16 }
  0x48   : > { %v1909_v14 = vsel %vm4784_vm7, %v1907_v44, %v1908_v21  ;;  %v4341_v63 = vcombine.low %v1317_v37, %v1320_v40  ;;  %v4348_v16 = vcombine.low %v1366_v29, %v1369_v39  ;;  %v1084_v48 = vshll.u32 %v847_v62, 16  ;;  %v716_v29 = vld [vmem:[#allocation2 + $0x20] sm:$0x1] }
  0x49   : > { %v4388_v59 = vcombine.low %v1906_v49, %v1909_v14  ;;  %v1076_v3 = vrot.slane %v1074_v4, 5  ;;  %v1479_v17 = vrot.slane %v1478_v5, 4  ;;  %v1483_v19 = vrot.slane %v1481_v22, 5 }
  0x4a   : > { %2789 = vrot.lane.b32.xlu0 %v4341_v63, %s4667_s23  ;;  %v1487_v44 = vrot.slane %v1485_v7, 4  ;;  %2803 = vrot.lane.b32.xlu1 %v4348_v16, %s4667_s23  ;;  %v1071_v36 = vor.u32 %v1070_v38, %v1067_v24  ;;  %v1080_v60 = vrot.slane %v1078_v6, 4  ;;  %v1086_v8 = vrot.slane %v1084_v48, 5 }
  0x4b   : > { %v1491_v37 = vshll.u32 %v4182_v11, 16  ;;  %v1484_v49 = vsel %vm4804_vm11, %v1479_v17, %v1483_v19  ;;  %v897_v61 = vshrl.u32 %v4895_v0, 16  ;;  %v900_v62 = vshll.u32 %v4895_v0, 16 }
  0x4c   : > { %v1488_v23 = vor.u32 %v1487_v44, %v1483_v19  ;;  %v1072_v14 = vrot.slane %v1071_v36, 4  ;;  %v1081_v5 = vor.u32 %v1080_v60, %v1076_v3  ;;  %v910_v11 = vshrl.u32 %v4897_v2, 16 }
  0x4d   : > { %v1493_v22 = vrot.slane %v1491_v37, 5  ;;  %v899_v16 = vrot.slane %v897_v61, 4  ;;  %v902_v24 = vrot.slane %v900_v62, 5  ;;  %v908_v0 = vrot.slane %v906_v58, 5 }
  0x4e   : > { %3027 = vrot.lane.b32.xlu0 %v4388_v59, %s4670_s26  ;;  %v1489_v7 = vrot.slane %v1488_v23, 4  ;;  %2805 = vrot.lane.b32.xlu1 %v4349_v31, %s4667_s23  ;;  %v1077_v15 = vsel %vm4804_vm11, %v1072_v14, %v1076_v3  ;;  %v1082_v21 = vrot.slane %v1081_v5, 4  ;;  %v916_v28 = vshll.u32 %v826_v10, 16 }
  0x4f   : > { %v903_v40 = vor.u32 %v902_v24, %v899_v16  ;;  %v912_v39 = vrot.slane %v910_v11, 4  ;;  %v412_v63 = vrot.slane %v4845_v20, 4  ;;  %v1498_v31 = vrot.slane %v1496_v25, 4 }
  0x50   : > { %v1494_v30 = vsel %vm4804_vm11, %v1489_v7, %v1493_v22  ;;  %v1087_v59 = vsel %vm4804_vm11, %v1082_v21, %v1086_v8  ;;  %v918_v4 = vrot.slane %v916_v28, 5  ;;  %v1501_v20 = vrot.slane %v1499_v26, 5 }
  0x51   : > { %v4372_v2 = vcombine.low %v1484_v49, %v1494_v30  ;;  %v4332_v38 = vcombine.low %v1077_v15, %v1087_v59  ;;  %v904_v6 = vrot.slane %v903_v40, 4  ;;  %v913_v48 = vor.u32 %v912_v39, %v908_v0 }
  0x52   : > { %v717_v10 = vsel %vm4876_vm13, %v412_v63, %v716_v29  ;;  %3043 = vrot.lane.b32.xlu1 %v4396_v34, %s4670_s26  ;;  %v1505_v3 = vshll.u32 %v4931_v27, 16  ;;  %v1511_v17 = vrot.slane %v1509_v43, 4  ;;  %v1089_v19 = vshrl.u32 %v4870_v51, 16 }
  0x53   : > { %718 = vst [vmem:[#allocation2 + $0x20] sm:$0x1] %v717_v10  ;;  %2723 = vrot.lane.b32.xlu0 %v4332_v38, %s4668_s24  ;;  %v909_v25 = vsel %vm4804_vm11, %v904_v6, %v908_v0  ;;  %v914_v44 = vrot.slane %v913_v48, 4  ;;  %v1092_v36 = vshll.u32 %v4870_v51, 16  ;;  %v1098_v34 = vshll.u32 %v4872_v53, 16 }
  0x54   : > { %v1502_v60 = vor.u32 %v1501_v20, %v1498_v31  ;;  %v1507_v8 = vrot.slane %v1505_v3, 5  ;;  %v1091_v26 = vrot.slane %v1089_v19, 4  ;;  %v1102_v37 = vshrl.u32 %v4872_v53, 16  ;;  %v772_v38 = vld [vmem:[#allocation2 + $0x80] sm:$0x1] }
  0x55   : > { %v919_v43 = vsel %vm4804_vm11, %v914_v44, %v918_v4  ;;  %v1094_v49 = vrot.slane %v1092_v36, 5  ;;  %v1100_v23 = vrot.slane %v1098_v34, 5  ;;  %v1108_v61 = vshll.u32 %v4947_v47, 16  ;;  %v348_v6 = vld [vmem:[%s4782_s22 + $0x10] sm:$0xf] }
  0x56   : > { %v4325_v62 = vcombine.low %v909_v25, %v919_v43  ;;  %v1503_v14 = vrot.slane %v1502_v60, 4  ;;  %v1512_v5 = vor.u32 %v1511_v17, %v1507_v8  ;;  %v1104_v22 = vrot.slane %v1102_v37, 4  ;;  %v349_v17 = vld [vmem:[%s4782_s22 + $0x14] sm:$0xf] }
  0x57   : > { %2947 = vrot.lane.b32.xlu0 %v4372_v2, %s4671_s27  ;;  %v1095_v51 = vor.u32 %v1094_v49, %v1091_v26  ;;  %v1110_v58 = vrot.slane %v1108_v61, 5  ;;  %v4229_v7 = vrot.slane %v4923_v18, 9  ;;  %v1912_v53 = vrot.slane %v4931_v27, 5 }
  0x58   : > { %2709 = vrot.lane.b32.xlu1 %v4325_v62, %s4668_s24  ;;  %v1508_v16 = vsel %vm4804_vm11, %v1503_v14, %v1507_v8  ;;  %v1513_v24 = vrot.slane %v1512_v5, 4  ;;  %v1105_v47 = vor.u32 %v1104_v22, %v1100_v23  ;;  %v1671_v11 = vrot.slane %v1670_v13, 4  ;;  %v719_v5 = vld [vmem:[#allocation2 + $0x24] sm:$0xf] }
  0x59   : > { %v1096_v21 = vrot.slane %v1095_v51, 4  ;;  %v1913_v0 = vsel %vm4784_vm7, %v4229_v7, %v1912_v53  ;;  %v1914_v28 = vrot.slane %v1912_v53, 4  ;;  %v1675_v18 = vrot.slane %v1673_v45, 5 }
  0x5a   : > { %v4185_v15 = vld [vmem:[#allocation2 + $0x20] sm:$0x1]  ;;  %v1106_v29 = vrot.slane %v1105_v47, 4  ;;  %v1683_v40 = vshll.u32 %v4953_v50, 16  ;;  %v2068_v13 = vshrl.u32 %v4940_v41, 16  ;;  %v2071_v31 = vshll.u32 %v4940_v41, 16 }
  0x5b   : > { %v1515_v27 = vshll.u32 %v4185_v15, 16  ;;  %v1915_v30 = vrot.slane %v4185_v15, 5  ;;  %v1101_v39 = vsel %vm4804_vm11, %v1096_v21, %v1100_v23  ;;  %v1676_v56 = vsel %vm4804_vm11, %v1671_v11, %v1675_v18 }
  0x5c   : > { %v1680_v57 = vor.u32 %v4880_v55, %v1675_v18  ;;  %v1111_v32 = vsel %vm4804_vm11, %v1106_v29, %v1110_v58  ;;  %v1685_v59 = vrot.slane %v1683_v40, 5  ;;  %v2081_v48 = vshrl.u32 %v4944_v46, 16 }
  0x5d   : > { %v1517_v63 = vrot.slane %v1515_v27, 5  ;;  %v1916_v45 = vsel %vm4784_vm7, %v1914_v28, %v1915_v30  ;;  %v4333_v50 = vcombine.low %v1101_v39, %v1111_v32  ;;  %v548_v10 = vrot.slane %v4840_v9, 4  ;;  %v5079_v27 = vld [vmem:[#allocation2 + $0x7c] sm:$0xf] }
  0x5e   : > { %v4389_v2 = vcombine.low %v1913_v0, %v1916_v45  ;;  %v1681_v4 = vrot.slane %v1680_v57, 4  ;;  %v6901_v20 = vshrl.u32 %v4911_v12, 16  ;;  %v6902_v44 = vshll.u32 %v4911_v12, 16  ;;  %v5073_v0 = vld [vmem:[#allocation2 + $0x78] sm:$0xf] }
  0x5f   : > { %v1518_v55 = vsel %vm4804_vm11, %v1513_v24, %v1517_v63  ;;  %2725 = vrot.lane.b32.xlu1 %v4333_v50, %s4668_s24  ;;  %v1697_v34 = vshll.u32 %v4913_v52, 16  ;;  %v773_v8 = vsel %vm4876_vm13, %v548_v10, %v772_v38  ;;  %v6903_v9 = vshrl.u32 %v4913_v52, 16  ;;  %v364_v45 = vld [vmem:[%s4782_s22 + $0x50] sm:$0xf] }
  0x60   : > { %v1690_v3 = vrot.slane %v6901_v20, 4  ;;  %v4373_v19 = vcombine.low %v1508_v16, %v1518_v55  ;;  %v1686_v25 = vsel %vm4804_vm11, %v1681_v4, %v1685_v59  ;;  %v1693_v36 = vrot.slane %v6902_v44, 5  ;;  %774 = vst [vmem:[#allocation2 + $0x80] sm:$0x1] %v773_v8  ;;  %v5067_v16 = vld [vmem:[#allocation2 + $0x20] sm:$0x1] }
  0x61   : > { %v4380_v60 = vcombine.low %v1676_v56, %v1686_v25  ;;  %v1703_v26 = vrot.slane %v6903_v9, 4  ;;  %v414_v37 = vshrl.u32 %v348_v6, 16  ;;  %v5061_v49 = vrot.slane %v1697_v34, 5  ;;  %v723_v56 = vld [vmem:[#allocation2 + $0x2c] sm:$0x1] }
  0x62   : > { %2949 = vrot.lane.b32.xlu0 %v4373_v19, %s4671_s27  ;;  %v1694_v43 = vor.u32 %v1693_v36, %v1690_v3  ;;  %v417_v23 = vshll.u32 %v348_v6, 16  ;;  %v422_v61 = vshrl.u32 %v349_v17, 16  ;;  %v425_v14 = vshll.u32 %v349_v17, 16  ;;  %v365_v59 = vld [vmem:[%s4782_s22 + $0x54] sm:$0xf] }
  0x63   : > { %v416_v62 = vrot.slane %v414_v37, 7  ;;  %v4237_v22 = vrot.slane %v4911_v12, 9  ;;  %v1968_v51 = vrot.slane %v4913_v52, 5  ;;  %2963 = vrot.lane.b32.xlu1 %v4380_v60, %s4671_s27  ;;  %v1704_v7 = vor.u32 %v1703_v26, %v5061_v49 }
  0x64   : > { %v1695_v58 = vrot.slane %v1694_v43, 4  ;;  %v424_v53 = vrot.slane %v422_v61, 7  ;;  %v2070_v24 = vrot.slane %v2068_v13, 4  ;;  %v2073_v18 = vrot.slane %v2071_v31, 5 }
  0x65   : > { %v419_v47 = vor.u32 %v417_v23, %v416_v62  ;;  %v420_v11 = vrot.slane %v416_v62, 4  ;;  %v5071_v15 = vsel %vm4784_vm7, %v4237_v22, %v1968_v51  ;;  %v1970_v21 = vrot.slane %v1968_v51, 4  ;;  %v775_v23 = vld [vmem:[#allocation2 + $0x84] sm:$0xf] }
  0x66   : > { %3029 = vrot.lane.b32.xlu0 %v4389_v2, %s4670_s26  ;;  %v1700_v12 = vsel %vm4804_vm11, %v1695_v58, %v5061_v49  ;;  %v1705_v52 = vrot.slane %v1704_v7, 4  ;;  %v427_v28 = vor.u32 %v425_v14, %v424_v53  ;;  %v2077_v30 = vshll.u32 %v4944_v46, 16 }
  0x67   : > { %v720_v29 = vsel %vm4798_vm10, %v419_v47, %v719_v5  ;;  %v2083_v40 = vrot.slane %v2081_v48, 4  ;;  %v2087_v39 = vshll.u32 %v5067_v16, 16  ;;  %v2074_v13 = vor.u32 %v2073_v18, %v2070_v24  ;;  %v4209_v50 = vld [vmem:[#allocation2 + $0x80] sm:$0x1] }
  0x68   : > { %v428_v57 = vsel %vm4813_vm12, %v420_v11, %v427_v28  ;;  %721 = vst [vmem:[#allocation2 + $0x24] sm:$0xf] %v720_v29  ;;  %v2260_v63 = vshrl.u32 %v5073_v0, 16  ;;  %v2263_v32 = vshll.u32 %v5073_v0, 16  ;;  %v2079_v2 = vrot.slane %v2077_v30, 5 }
  0x69   : > { %722 = vst.msk [vmem:[#allocation2 + $0x28] sm:$0xf] %vm288_vm0, %v428_v57  ;;  %v2089_v4 = vrot.slane %v2087_v39, 5  ;;  %v2273_v31 = vshrl.u32 %v5079_v27, 16  ;;  %v4412_v38 = vcombine.low %v5073_v0, %v5079_v27  ;;  %v6904_v6 = vcombine.low %v4940_v41, %v4944_v46  ;;  %v5134_v29 = vld [vmem:[#allocation2 + $0x18] sm:$0xf] }
  0x6a   : > { %v1707_v55 = vshll.u32 %v4209_v50, 16  ;;  %v1971_v48 = vrot.slane %v4209_v50, 5  ;;  %v2075_v10 = vrot.slane %v2074_v13, 4  ;;  %v429_v20 = vrot.slane %v424_v53, 4  ;;  %v5139_v57 = vld [vmem:[#allocation2 + $0x80] sm:$0x1] }
  0x6b   : > { %3107 = vrot.lane.b32.xlu0 %v6904_v6, %s4672_s28  ;;  %v2084_v3 = vor.u32 %v2083_v40, %v2079_v2  ;;  %v550_v17 = vshrl.u32 %v364_v45, 16  ;;  %v553_v19 = vshll.u32 %v364_v45, 16  ;;  %v558_v25 = vshrl.u32 %v365_v59, 16 }
  0x6c   : > { %v1709_v44 = vrot.slane %v1707_v55, 5  ;;  %v1972_v36 = vsel %vm4784_vm7, %v1970_v21, %v1971_v48  ;;  %v2080_v34 = vsel %vm4804_vm11, %v2075_v10, %v2079_v2  ;;  %v724_v60 = vsel %vm4876_vm13, %v429_v20, %v723_v56 }
  0x6d   : > { %v4397_v8 = vcombine.low %v5071_v15, %v1972_v36  ;;  %v2085_v9 = vrot.slane %v2084_v3, 4  ;;  %725 = vst [vmem:[#allocation2 + $0x2c] sm:$0x1] %v724_v60  ;;  %v552_v26 = vrot.slane %v550_v17, 7  ;;  %v5106_v37 = vrot.slane %v558_v25, 7 }
  0x6e   : > { %v1710_v43 = vsel %vm4804_vm11, %v1705_v52, %v1709_v44  ;;  %v561_v49 = vshll.u32 %v365_v59, 16  ;;  %v4292_v61 = vrot.slane %v4940_v41, 9  ;;  %v2501_v62 = vrot.slane %v4944_v46, 5  ;;  %v5155_v3 = vld [vmem:[#allocation2 + $0x1c] sm:$0xf] }
  0x6f   : > { %v4381_v14 = vcombine.low %v1700_v12, %v1710_v43  ;;  %v5112_v5 = vld [vmem:[#allocation2 + $0x24] sm:$0xf]  ;;  %v2090_v22 = vsel %vm4804_vm11, %v2085_v9, %v2089_v4  ;;  %v555_v51 = vor.u32 %v553_v19, %v552_v26  ;;  %v556_v58 = vrot.slane %v552_v26, 4 }
  0x70   : > { %v5116_v7 = vld [vmem:[#allocation2 + $0x28] sm:$0xf]  ;;  %v2092_v53 = vshrl.u32 %v5112_v5, 16  ;;  %v2095_v24 = vshll.u32 %v5112_v5, 16  ;;  %v4420_v47 = vcombine.low %v2080_v34, %v2090_v22  ;;  %v563_v11 = vor.u32 %v561_v49, %v5106_v37  ;;  %v5162_v34 = vld [vmem:[#allocation2 + $0x20] sm:$0x1] }
  0x71   : > { %2965 = vrot.lane.b32.xlu1 %v4381_v14, %s4671_s27  ;;  %v2105_v41 = vshrl.u32 %v5116_v7, 16  ;;  %v4405_v46 = vcombine.low %v5112_v5, %v5116_v7  ;;  %v2101_v15 = vshll.u32 %v5116_v7, 16  ;;  %v776_v21 = vsel %vm4798_vm10, %v555_v51, %v775_v23 }
  0x72   : > { %v2094_v12 = vrot.slane %v2092_v53, 4  ;;  %v2097_v52 = vrot.slane %v2095_v24, 5  ;;  %v564_v28 = vsel %vm4813_vm12, %v556_v58, %v563_v11  ;;  %777 = vst [vmem:[#allocation2 + $0x84] sm:$0xf] %v776_v21  ;;  %v5132_v18 = vsel %vm4784_vm7, %v4292_v61, %v2501_v62  ;;  %v779_v24 = vld [vmem:[#allocation2 + $0x8c] sm:$0x1] }
  0x73   : > { %3109 = vrot.lane.b32.xlu0 %v4405_v46, %s4672_s28  ;;  %v2103_v30 = vrot.slane %v2101_v15, 5  ;;  %v2107_v40 = vrot.slane %v2105_v41, 4  ;;  %778 = vst.msk [vmem:[#allocation2 + $0x88] sm:$0xf] %vm288_vm0, %v564_v28  ;;  %v2503_v39 = vrot.slane %v2501_v62, 4  ;;  %v2504_v56 = vrot.slane %v5067_v16, 5 }
  0x74   : > { %v5141_v13 = vld [vmem:[#allocation2 + $0x2c] sm:$0x1]  ;;  %v2098_v45 = vor.u32 %v2097_v52, %v2094_v12  ;;  %v2262_v59 = vrot.slane %v2260_v63, 4  ;;  %v2265_v50 = vrot.slane %v2263_v32, 5  ;;  %v2269_v2 = vshll.u32 %v5079_v27, 16 }
  0x75   : > { %3045 = vrot.lane.b32.xlu1 %v4397_v8, %s4670_s26  ;;  %v2108_v4 = vor.u32 %v2107_v40, %v2103_v30  ;;  %v2111_v6 = vshll.u32 %v5141_v13, 16  ;;  %v2505_v16 = vsel %vm4784_vm7, %v2503_v39, %v2504_v56  ;;  %v2275_v55 = vrot.slane %v2273_v31, 4 }
  0x76   : > { %v2099_v48 = vrot.slane %v2098_v45, 4  ;;  %v4436_v10 = vcombine.low %v5132_v18, %v2505_v16  ;;  %v2266_v63 = vor.u32 %v2265_v50, %v2262_v59  ;;  %v2271_v20 = vrot.slane %v2269_v2, 5 }
  0x77   : > { %3187 = vrot.lane.b32.xlu0 %v4420_v47, %s4673_s29  ;;  %v2109_v32 = vrot.slane %v2108_v4, 4  ;;  %v2113_v17 = vrot.slane %v2111_v6, 5  ;;  %v2279_v19 = vshll.u32 %v5139_v57, 16  ;;  %v921_v25 = vshrl.u32 %v5134_v29, 16  ;;  %v5197_v6 = vld [vmem:[#allocation2 + $0x24] sm:$0xf] }
  0x78   : > { %v2104_v44 = vsel %vm4804_vm11, %v2099_v48, %v2103_v30  ;;  %v2267_v31 = vrot.slane %v2266_v63, 4  ;;  %v2276_v36 = vor.u32 %v2275_v55, %v2271_v20  ;;  %v924_v60 = vshll.u32 %v5134_v29, 16 }
  0x79   : > { %3123 = vrot.lane.b32.xlu1 %v4412_v38, %s4672_s28  ;;  %v2114_v8 = vsel %vm4804_vm11, %v2109_v32, %v2113_v17  ;;  %v5171_v9 = vld [vmem:[#allocation2 + $0x84] sm:$0xf]  ;;  %v2281_v26 = vrot.slane %v2279_v19, 5  ;;  %v923_v43 = vrot.slane %v921_v25, 4  ;;  %v930_v49 = vshll.u32 %v5155_v3, 16 }
  0x7a   : > { %v4421_v23 = vcombine.low %v2104_v44, %v2114_v8  ;;  %v5174_v61 = vld [vmem:[#allocation2 + $0x88] sm:$0xf]  ;;  %v2284_v62 = vshrl.u32 %v5171_v9, 16  ;;  %v2287_v14 = vshll.u32 %v5171_v9, 16  ;;  %v2272_v22 = vsel %vm4804_vm11, %v2267_v31, %v2271_v20 }
  0x7b   : > { %v2297_v38 = vshrl.u32 %v5174_v61, 16  ;;  %v4413_v51 = vcombine.low %v5171_v9, %v5174_v61  ;;  %v2277_v58 = vrot.slane %v2276_v36, 4  ;;  %v926_v53 = vrot.slane %v924_v60, 5  ;;  %v5209_v19 = vld [vmem:[#allocation2 + $0x28] sm:$0xf] }
  0x7c   : > { %3189 = vrot.lane.b32.xlu0 %v4421_v23, %s4673_s29  ;;  %v932_v47 = vrot.slane %v930_v49, 5  ;;  %v934_v11 = vshrl.u32 %v5155_v3, 16  ;;  %v940_v41 = vshll.u32 %v5162_v34, 16  ;;  %v565_v46 = vrot.slane %v5106_v37, 4  ;;  %v5220_v36 = vld [vmem:[#allocation2 + $0x2c] sm:$0x1] }
  0x7d   : > { %3125 = vrot.lane.b32.xlu1 %v4413_v51, %s4672_s28  ;;  %v2282_v15 = vsel %vm4804_vm11, %v2277_v58, %v2281_v26  ;;  %v927_v21 = vor.u32 %v926_v53, %v923_v43  ;;  %v2286_v12 = vrot.slane %v2284_v62, 4  ;;  %v2289_v52 = vrot.slane %v2287_v14, 5  ;;  %v5222_v60 = vld [vmem:[#allocation2 + $0x78] sm:$0xf]  ;;  %v5224_v49 = vld [vmem:[#allocation2 + $0x7c] sm:$0xf] }
  0x7e   : > { %v4428_v28 = vcombine.low %v2272_v22, %v2282_v15  ;;  %v936_v18 = vrot.slane %v934_v11, 4  ;;  %v942_v30 = vrot.slane %v940_v41, 5  ;;  %v780_v40 = vsel %vm4876_vm13, %v565_v46, %v779_v24  ;;  %v5238_v46 = vld [vmem:[#allocation2 + $0x80] sm:$0x1] }
  0x7f   : > { %v928_v39 = vrot.slane %v927_v21, 4  ;;  %781 = vst [vmem:[#allocation2 + $0x8c] sm:$0x1] %v780_v40  ;;  %v2290_v56 = vor.u32 %v2289_v52, %v2286_v12  ;;  %v2293_v45 = vshll.u32 %v5174_v61, 16  ;;  %v2299_v37 = vrot.slane %v2297_v38, 4 }
  0x80   : > { %3267 = vrot.lane.b32.xlu0 %v4436_v10, %s4674_s30  ;;  %v937_v59 = vor.u32 %v936_v18, %v932_v47  ;;  %v4293_v50 = vrot.slane %v5112_v5, 9  ;;  %v2508_v2 = vrot.slane %v5116_v7, 5  ;;  %v2511_v4 = vrot.slane %v5141_v13, 5 }
  0x81   : > { %3203 = vrot.lane.b32.xlu1 %v4428_v28, %s4673_s29  ;;  %v933_v16 = vsel %vm4804_vm11, %v928_v39, %v932_v47  ;;  %v2291_v55 = vrot.slane %v2290_v56, 4  ;;  %v2295_v48 = vrot.slane %v2293_v45, 5  ;;  %v4300_v63 = vrot.slane %v5073_v0, 9 }
  0x82   : > { %v938_v20 = vrot.slane %v937_v59, 4  ;;  %v2509_v10 = vsel %vm4784_vm7, %v4293_v50, %v2508_v2  ;;  %v2510_v5 = vrot.slane %v2508_v2, 4  ;;  %v2557_v7 = vrot.slane %v5079_v27, 5 }
  0x83   : > { %v2296_v13 = vsel %vm4804_vm11, %v2291_v55, %v2295_v48  ;;  %v2300_v32 = vor.u32 %v2299_v37, %v2295_v48  ;;  %v2560_v17 = vrot.slane %v5139_v57, 5  ;;  %v945_v25 = vshrl.u32 %v5197_v6, 16 }
  0x84   : > { %v943_v0 = vsel %vm4804_vm11, %v938_v20, %v942_v30  ;;  %v2512_v44 = vsel %vm4784_vm7, %v2510_v5, %v2511_v4  ;;  %v5218_v31 = vsel %vm4784_vm7, %v4300_v63, %v2557_v7  ;;  %v2559_v27 = vrot.slane %v2557_v7, 4 }
  0x85   : > { %v4326_v57 = vcombine.low %v933_v16, %v943_v0  ;;  %v2301_v8 = vrot.slane %v2300_v32, 4  ;;  %v4437_v26 = vcombine.low %v2509_v10, %v2512_v44  ;;  %v947_v43 = vrot.slane %v945_v25, 4 }
  0x86   : > { %v5226_v23 = vld [vmem:[#allocation2 + $0x8c] sm:$0x1]  ;;  %v2561_v62 = vsel %vm4784_vm7, %v2559_v27, %v2560_v17  ;;  %v948_v14 = vshll.u32 %v5197_v6, 16  ;;  %v954_v22 = vshll.u32 %v5209_v19, 16  ;;  %v958_v38 = vshrl.u32 %v5209_v19, 16 }
  0x87   : > { %2711 = vrot.lane.b32.xlu0 %v4326_v57, %s4668_s24  ;;  %v2303_v51 = vshll.u32 %v5226_v23, 16  ;;  %v4444_v58 = vcombine.low %v5218_v31, %v2561_v62  ;;  %v964_v53 = vshll.u32 %v5220_v36, 16  ;;  %v1113_v24 = vshrl.u32 %v5222_v60, 16 }
  0x88   : > { %v950_v47 = vrot.slane %v948_v14, 5  ;;  %v956_v11 = vrot.slane %v954_v22, 5  ;;  %v960_v41 = vrot.slane %v958_v38, 4  ;;  %v1116_v15 = vshll.u32 %v5222_v60, 16  ;;  %v5280_v22 = vld [vmem:[#allocation2 + $0x8c] sm:$0x1] }
  0x89   : > { %v2305_v21 = vrot.slane %v2303_v51, 5  ;;  %v966_v12 = vrot.slane %v964_v53, 5  ;;  %v1115_v52 = vrot.slane %v1113_v24, 4  ;;  %v1122_v28 = vshll.u32 %v5224_v49, 16  ;;  %v5283_v38 = vld [vmem:[#allocation2 + $0x24] sm:$0xf] }
  0x8a   : > { %v951_v18 = vor.u32 %v950_v47, %v947_v43  ;;  %v961_v30 = vor.u32 %v960_v41, %v956_v11  ;;  %v1118_v40 = vrot.slane %v1116_v15, 5  ;;  %v1126_v39 = vshrl.u32 %v5224_v49, 16  ;;  %v5288_v47 = vld [vmem:[#allocation2 + $0x28] sm:$0xf] }
  0x8b   : > { %v2306_v56 = vsel %vm4804_vm11, %v2301_v8, %v2305_v21  ;;  %3269 = vrot.lane.b32.xlu0 %v4437_v26, %s4674_s30  ;;  %v1124_v45 = vrot.slane %v1122_v28, 5  ;;  %v1132_v37 = vshll.u32 %v5238_v46, 16  ;;  %v4166_v59 = vrot.slane %v5134_v29, 9  ;;  %v5270_v26 = vld [vmem:[#allocation2 + $0x88] sm:$0xf] }
  0x8c   : > { %v4429_v50 = vcombine.low %v2296_v13, %v2306_v56  ;;  %v952_v2 = vrot.slane %v951_v18, 4  ;;  %v962_v4 = vrot.slane %v961_v30, 4  ;;  %v1119_v16 = vor.u32 %v1118_v40, %v1115_v52  ;;  %v350_v30 = vld [vmem:[%s4782_s22 + $0x18] sm:$0xf] }
  0x8d   : > { %v1128_v55 = vrot.slane %v1126_v39, 4  ;;  %v1134_v48 = vrot.slane %v1132_v37, 5  ;;  %v1323_v63 = vrot.slane %v5155_v3, 5  ;;  %v1326_v20 = vrot.slane %v5162_v34, 5  ;;  %v5258_v3 = vld [vmem:[#allocation2 + $0x84] sm:$0xf] }
  0x8e   : > { %3205 = vrot.lane.b32.xlu1 %v4429_v50, %s4673_s29  ;;  %v957_v10 = vsel %vm4804_vm11, %v952_v2, %v956_v11  ;;  %v967_v5 = vsel %vm4804_vm11, %v962_v4, %v966_v12  ;;  %v1120_v7 = vrot.slane %v1119_v16, 4  ;;  %v4301_v29 = vrot.slane %v5171_v9, 9  ;;  %v351_v37 = vld [vmem:[%s4782_s22 + $0x1c] sm:$0xf] }
  0x8f   : > { %v4327_v13 = vcombine.low %v957_v10, %v967_v5  ;;  %v1129_v32 = vor.u32 %v1128_v55, %v1124_v45  ;;  %v1324_v17 = vsel %vm4784_vm7, %v4166_v59, %v1323_v63  ;;  %v1325_v25 = vrot.slane %v1323_v63, 4 }
  0x90   : > { %v1125_v34 = vsel %vm4804_vm11, %v1120_v7, %v1124_v45  ;;  %v2564_v0 = vrot.slane %v5174_v61, 5  ;;  %v2567_v44 = vrot.slane %v5226_v23, 5  ;;  %v4167_v31 = vrot.slane %v5197_v6, 9 }
  0x91   : > { %2713 = vrot.lane.b32.xlu0 %v4327_v13, %s4668_s24  ;;  %v1130_v9 = vrot.slane %v1129_v32, 4  ;;  %v1327_v27 = vsel %vm4784_vm7, %v1325_v25, %v1326_v20  ;;  %v1330_v57 = vrot.slane %v5209_v19, 5  ;;  %v1333_v8 = vrot.slane %v5220_v36, 5 }
  0x92   : > { %3283 = vrot.lane.b32.xlu1 %v4444_v58, %s4674_s30  ;;  %v4342_v43 = vcombine.low %v1324_v17, %v1327_v27  ;;  %v2565_v61 = vsel %vm4784_vm7, %v4301_v29, %v2564_v0  ;;  %v2566_v23 = vrot.slane %v2564_v0, 4  ;;  %v1137_v6 = vshrl.u32 %v5258_v3, 16  ;;  %v5319_v27 = vld [vmem:[#allocation2 + $0x2c] sm:$0x1] }
  0x93   : > { %v1135_v62 = vsel %vm4804_vm11, %v1130_v9, %v1134_v48  ;;  %v1331_v14 = vsel %vm4784_vm7, %v4167_v31, %v1330_v57  ;;  %v1332_v19 = vrot.slane %v1330_v57, 4  ;;  %v1140_v36 = vshll.u32 %v5258_v3, 16 }
  0x94   : > { %v4334_v51 = vcombine.low %v1125_v34, %v1135_v62  ;;  %v2568_v58 = vsel %vm4784_vm7, %v2566_v23, %v2567_v44  ;;  %v1139_v53 = vrot.slane %v1137_v6, 4  ;;  %v1146_v24 = vshll.u32 %v5270_v26, 16 }
  0x95   : > { %2791 = vrot.lane.b32.xlu0 %v4342_v43, %s4667_s23  ;;  %v4445_v11 = vcombine.low %v2565_v61, %v2568_v58  ;;  %v1334_v41 = vsel %vm4784_vm7, %v1332_v19, %v1333_v8  ;;  %v1142_v15 = vrot.slane %v1140_v36, 5  ;;  %v1150_v21 = vshrl.u32 %v5270_v26, 16 }
  0x96   : > { %2727 = vrot.lane.b32.xlu1 %v4334_v51, %s4668_s24  ;;  %v4343_v12 = vcombine.low %v1331_v14, %v1334_v41  ;;  %v1148_v52 = vrot.slane %v1146_v24, 5  ;;  %v1156_v28 = vshll.u32 %v5280_v22, 16  ;;  %v1520_v18 = vshrl.u32 %v5283_v38, 16  ;;  %v366_v14 = vld [vmem:[%s4782_s22 + $0x58] sm:$0xf] }
  0x97   : > { %v1143_v40 = vor.u32 %v1142_v15, %v1139_v53  ;;  %v1152_v39 = vrot.slane %v1150_v21, 4  ;;  %v1523_v56 = vshll.u32 %v5283_v38, 16  ;;  %v1533_v45 = vshrl.u32 %v5288_v47, 16  ;;  %v5334_v53 = vld [vmem:[#allocation2 + $0x88] sm:$0xf] }
  0x98   : > { %v1158_v59 = vrot.slane %v1156_v28, 5  ;;  %v4358_v50 = vcombine.low %v5283_v38, %v5288_v47  ;;  %v4174_v2 = vrot.slane %v5222_v60, 9  ;;  %v1379_v4 = vrot.slane %v5224_v49, 5  ;;  %v367_v41 = vld [vmem:[%s4782_s22 + $0x5c] sm:$0xf] }
  0x99   : > { %2793 = vrot.lane.b32.xlu0 %v4343_v12, %s4667_s23  ;;  %v1144_v16 = vrot.slane %v1143_v40, 4  ;;  %v1153_v55 = vor.u32 %v1152_v39, %v1148_v52  ;;  %v1382_v48 = vrot.slane %v5238_v46, 5  ;;  %v431_v63 = vshrl.u32 %v350_v30, 16  ;;  %v726_v46 = vld [vmem:[#allocation2 + $0x30] sm:$0xf] }
  0x9a   : > { %3285 = vrot.lane.b32.xlu1 %v4445_v11, %s4674_s30  ;;  %v1380_v20 = vsel %vm4784_vm7, %v4174_v2, %v1379_v4  ;;  %v1381_v10 = vrot.slane %v1379_v4, 4  ;;  %v434_v5 = vshll.u32 %v350_v30, 16  ;;  %v439_v7 = vshrl.u32 %v351_v37, 16  ;;  %v730_v28 = vld [vmem:[#allocation2 + $0x38] sm:$0x1] }
  0x9b   : > { %v1149_v60 = vsel %vm4804_vm11, %v1144_v16, %v1148_v52  ;;  %v1154_v29 = vrot.slane %v1153_v55, 4  ;;  %v433_v49 = vrot.slane %v431_v63, 7  ;;  %v442_v13 = vshll.u32 %v351_v37, 16 }
  0x9c   : > { %v1383_v32 = vsel %vm4784_vm7, %v1381_v10, %v1382_v48  ;;  %v441_v17 = vrot.slane %v439_v7, 7  ;;  %v4175_v25 = vrot.slane %v5258_v3, 9  ;;  %v1386_v34 = vrot.slane %v5270_v26, 5  ;;  %v5323_v3 = vld [vmem:[#allocation2 + $0x84] sm:$0xf] }
  0x9d   : > { %v1159_v0 = vsel %vm4804_vm11, %v1154_v29, %v1158_v59  ;;  %2871 = vrot.lane.b32.xlu0 %v4358_v50, %s4669_s25  ;;  %v4350_v44 = vcombine.low %v1380_v20, %v1383_v32  ;;  %v436_v31 = vor.u32 %v434_v5, %v433_v49  ;;  %v437_v9 = vrot.slane %v433_v49, 4  ;;  %v782_v20 = vld [vmem:[#allocation2 + $0x90] sm:$0xf] }
  0x9e   : > { %v4335_v57 = vcombine.low %v1149_v60, %v1159_v0  ;;  %v444_v8 = vor.u32 %v442_v13, %v441_v17  ;;  %v1387_v43 = vsel %vm4784_vm7, %v4175_v25, %v1386_v34  ;;  %v1388_v61 = vrot.slane %v1386_v34, 4  ;;  %v5344_v50 = vpop.permute.xlu0 %2787 }
  0x9f   : > { %v727_v26 = vsel %vm4798_vm10, %v436_v31, %v726_v46  ;;  %v1389_v23 = vrot.slane %v5280_v22, 5  ;;  %v1522_v6 = vrot.slane %v1520_v18, 4  ;;  %v1525_v62 = vrot.slane %v1523_v56, 5 }
  0xa0   : > { %2729 = vrot.lane.b32.xlu1 %v4335_v57, %s4668_s24  ;;  %v445_v19 = vsel %vm4813_vm12, %v437_v9, %v444_v8  ;;  %728 = vst [vmem:[#allocation2 + $0x30] sm:$0xf] %v727_v26  ;;  %v1529_v36 = vshll.u32 %v5288_v47, 16  ;;  %v1535_v51 = vrot.slane %v1533_v45, 4  ;;  %v1539_v58 = vshll.u32 %v5319_v27, 16 }
  0xa1   : > { %729 = vst.msk [vmem:[#allocation2 + $0x34] sm:$0xf] %vm288_vm0, %v445_v19  ;;  %v1390_v22 = vsel %vm4784_vm7, %v1388_v61, %v1389_v23  ;;  %v1526_v24 = vor.u32 %v1525_v62, %v1522_v6  ;;  %v1712_v11 = vshrl.u32 %v5323_v3, 16  ;;  %v1715_v52 = vshll.u32 %v5323_v3, 16 }
  0xa2   : > { %v4351_v15 = vcombine.low %v1387_v43, %v1390_v22  ;;  %v1531_v21 = vrot.slane %v1529_v36, 5  ;;  %v1541_v12 = vrot.slane %v1539_v58, 5  ;;  %v1725_v30 = vshrl.u32 %v5334_v53, 16  ;;  %v5370_v43 = vld [vmem:[#allocation2 + $0x8c] sm:$0x1]  ;;  %v5372_v61 = vpop.permute.xlu0 %2707 }
  0xa3   : > { %v1527_v18 = vrot.slane %v1526_v24, 4  ;;  %v446_v40 = vrot.slane %v441_v17, 4  ;;  %v567_v39 = vshrl.u32 %v366_v14, 16  ;;  %v570_v45 = vshll.u32 %v366_v14, 16 }
  0xa4   : > { %2807 = vrot.lane.b32.xlu1 %v4350_v44, %s4667_s23  ;;  %v1536_v56 = vor.u32 %v1535_v51, %v1531_v21  ;;  %v575_v37 = vshrl.u32 %v367_v41, 16  ;;  %v578_v59 = vshll.u32 %v367_v41, 16  ;;  %v4366_v4 = vcombine.low %v5323_v3, %v5334_v53 }
  0xa5   : > { %v1532_v2 = vsel %vm4804_vm11, %v1527_v18, %v1531_v21  ;;  %v731_v16 = vsel %vm4876_vm13, %v446_v40, %v730_v28  ;;  %v569_v55 = vrot.slane %v567_v39, 7  ;;  %v4230_v10 = vrot.slane %v5283_v38, 9 }
  0xa6   : > { %v1537_v48 = vrot.slane %v1536_v56, 4  ;;  %732 = vst [vmem:[#allocation2 + $0x38] sm:$0x1] %v731_v16  ;;  %v5352_v63 = vrot.slane %v575_v37, 7  ;;  %v1919_v5 = vrot.slane %v5288_v47, 5  ;;  %v1714_v49 = vrot.slane %v1712_v11, 4 }
  0xa7   : > { %v5356_v7 = vld [vmem:[#allocation2 + $0x30] sm:$0xf]  ;;  %v572_v60 = vor.u32 %v570_v45, %v569_v55  ;;  %v573_v29 = vrot.slane %v569_v55, 4  ;;  %v1717_v13 = vrot.slane %v1715_v52, 5  ;;  %v1922_v44 = vrot.slane %v5319_v27, 5 }
  0xa8   : > { %v4190_v32 = vld [vmem:[#allocation2 + $0x34] sm:$0xf]  ;;  %v1544_v17 = vshrl.u32 %v5356_v7, 16  ;;  %v1547_v46 = vshll.u32 %v5356_v7, 16  ;;  %2809 = vrot.lane.b32.xlu1 %v4351_v15, %s4667_s23  ;;  %v1542_v25 = vsel %vm4804_vm11, %v1537_v48, %v1541_v12  ;;  %v580_v38 = vor.u32 %v578_v59, %v5352_v63  ;;  %v786_v52 = vld [vmem:[#allocation2 + $0x98] sm:$0x1] }
  0xa9   : > { %v1557_v34 = vshrl.u32 %v4190_v32, 16  ;;  %v4359_v47 = vcombine.low %v5356_v7, %v4190_v32  ;;  %v1553_v0 = vshll.u32 %v4190_v32, 16  ;;  %v783_v8 = vsel %vm4798_vm10, %v572_v60, %v782_v20  ;;  %v5388_v56 = vld [vmem:[#allocation2 + $0x30] sm:$0xf] }
  0xaa   : > { %v1546_v31 = vrot.slane %v1544_v17, 4  ;;  %v1549_v9 = vrot.slane %v1547_v46, 5  ;;  %v581_v57 = vsel %vm4813_vm12, %v573_v29, %v580_v38  ;;  %v4374_v26 = vcombine.low %v1532_v2, %v1542_v25  ;;  %784 = vst [vmem:[#allocation2 + $0x90] sm:$0xf] %v783_v8  ;;  %v5411_v17 = vld [vmem:[#allocation2 + $0x34] sm:$0xf]  ;;  %v5413_v46 = vpop.permute.xlu1 %2883 }
  0xab   : > { %2873 = vrot.lane.b32.xlu0 %v4359_v47, %s4669_s25  ;;  %v1555_v23 = vrot.slane %v1553_v0, 5  ;;  %v1559_v6 = vrot.slane %v1557_v34, 4  ;;  %785 = vst.msk [vmem:[#allocation2 + $0x94] sm:$0xf] %vm288_vm0, %v581_v57  ;;  %v1921_v27 = vrot.slane %v1919_v5, 4  ;;  %v5379_v14 = vsel %vm4784_vm7, %v4230_v10, %v1919_v5 }
  0xac   : > { %2887 = vrot.lane.b32.xlu1 %v4366_v4, %s4669_s25  ;;  %v1550_v62 = vor.u32 %v1549_v9, %v1546_v31  ;;  %v1718_v19 = vor.u32 %v1717_v13, %v1714_v49  ;;  %v1721_v36 = vshll.u32 %v5334_v53, 16  ;;  %v1727_v24 = vrot.slane %v1725_v30, 4  ;;  %v352_v57 = vld [vmem:[%s4782_s22 + $0x20] sm:$0xf] }
  0xad   : > { %v4191_v51 = vld [vmem:[#allocation2 + $0x38] sm:$0x1]  ;;  %v1560_v58 = vor.u32 %v1559_v6, %v1555_v23  ;;  %v1923_v22 = vsel %vm4784_vm7, %v1921_v27, %v1922_v44  ;;  %v1731_v11 = vshll.u32 %v5370_v43, 16  ;;  %v4231_v12 = vrot.slane %v5356_v7, 9  ;;  %v5393_v2 = vpop.permute.xlu0 %2867  ;;  %v353_v27 = vld [vmem:[%s4782_s22 + $0x24] sm:$0xf] }
  0xae   : > { %v1551_v41 = vrot.slane %v1550_v62, 4  ;;  %v1563_v15 = vshll.u32 %v4191_v51, 16  ;;  %v1719_v21 = vrot.slane %v1718_v19, 4  ;;  %v4390_v18 = vcombine.low %v5379_v14, %v1923_v22 }
  0xaf   : > { %2951 = vrot.lane.b32.xlu0 %v4374_v26, %s4671_s27  ;;  %v1561_v28 = vrot.slane %v1560_v58, 4  ;;  %v1723_v40 = vrot.slane %v1721_v36, 5  ;;  %v1926_v39 = vrot.slane %v4190_v32, 5  ;;  %v1929_v37 = vrot.slane %v4191_v51, 5 }
  0xb0   : > { %v1556_v30 = vsel %vm4804_vm11, %v1551_v41, %v1555_v23  ;;  %v1565_v45 = vrot.slane %v1563_v15, 5  ;;  %v582_v59 = vrot.slane %v5352_v63, 4  ;;  %v1733_v55 = vrot.slane %v1731_v11, 5 }
  0xb1   : > { %v1724_v4 = vsel %vm4804_vm11, %v1719_v21, %v1723_v40  ;;  %v1728_v16 = vor.u32 %v1727_v24, %v1723_v40  ;;  %v1928_v48 = vrot.slane %v1926_v39, 4  ;;  %v5399_v10 = vld [vmem:[#allocation2 + $0x90] sm:$0xf]  ;;  %v1927_v7 = vsel %vm4784_vm7, %v4231_v12, %v1926_v39 }
  0xb2   : > { %v1566_v20 = vsel %vm4804_vm11, %v1561_v28, %v1565_v45  ;;  %v5401_v5 = vld [vmem:[#allocation2 + $0x94] sm:$0xf]  ;;  %v787_v63 = vsel %vm4876_vm13, %v582_v59, %v786_v52  ;;  %v2116_v60 = vshrl.u32 %v5388_v56, 16  ;;  %v1736_v49 = vshrl.u32 %v5399_v10, 16  ;;  %v5436_v52 = vpop.permute.xlu1 %2885 }
  0xb3   : > { %v4375_v29 = vcombine.low %v1556_v30, %v1566_v20  ;;  %v1739_v13 = vshll.u32 %v5399_v10, 16  ;;  %v1749_v32 = vshrl.u32 %v5401_v5, 16  ;;  %788 = vst [vmem:[#allocation2 + $0x98] sm:$0x1] %v787_v63  ;;  %v4367_v25 = vcombine.low %v5399_v10, %v5401_v5  ;;  %v5428_v62 = vpop.permute.xlu0 %2869  ;;  %v5452_v63 = vld [vmem:[#allocation2 + $0x38] sm:$0x1] }
  0xb4   : > { %v1729_v38 = vrot.slane %v1728_v16, 4  ;;  %v1930_v34 = vsel %vm4784_vm7, %v1928_v48, %v1929_v37  ;;  %v1745_v47 = vshll.u32 %v5401_v5, 16  ;;  %v1738_v0 = vrot.slane %v1736_v49, 4  ;;  %v733_v37 = vld [vmem:[#allocation2 + $0x3c] sm:$0xf] }
  0xb5   : > { %2953 = vrot.lane.b32.xlu0 %v4375_v29, %s4671_s27  ;;  %v1741_v44 = vrot.slane %v1739_v13, 5  ;;  %v1751_v31 = vrot.slane %v1749_v32, 4  ;;  %v2119_v9 = vshll.u32 %v5388_v56, 16  ;;  %2889 = vrot.lane.b32.xlu1 %v4367_v25, %s4669_s25  ;;  %v4391_v26 = vcombine.low %v1927_v7, %v1930_v34  ;;  %v5460_v25 = vld [vmem:[#allocation2 + $0x90] sm:$0xf] }
  0xb6   : > { %v1734_v8 = vsel %vm4804_vm11, %v1729_v38, %v1733_v55  ;;  %v1747_v23 = vrot.slane %v1745_v47, 5  ;;  %v2129_v6 = vshrl.u32 %v5411_v17, 16  ;;  %v4238_v36 = vrot.slane %v5323_v3, 9 }
  0xb7   : > { %v4382_v14 = vcombine.low %v1724_v4, %v1734_v8  ;;  %v1742_v19 = vor.u32 %v1741_v44, %v1738_v0  ;;  %v1975_v51 = vrot.slane %v5334_v53, 5  ;;  %v1978_v22 = vrot.slane %v5370_v43, 5  ;;  %v5467_v0 = vld [vmem:[#allocation2 + $0x94] sm:$0xf] }
  0xb8   : > { %v1752_v58 = vor.u32 %v1751_v31, %v1747_v23  ;;  %v448_v24 = vshrl.u32 %v352_v57, 16  ;;  %v451_v11 = vshll.u32 %v352_v57, 16  ;;  %v4406_v15 = vcombine.low %v5388_v56, %v5411_v17 }
  0xb9   : > { %3031 = vrot.lane.b32.xlu0 %v4390_v18, %s4670_s26  ;;  %v1743_v41 = vrot.slane %v1742_v19, 4  ;;  %v1977_v21 = vrot.slane %v1975_v51, 4  ;;  %v456_v12 = vshrl.u32 %v353_v27, 16  ;;  %2967 = vrot.lane.b32.xlu1 %v4382_v14, %s4671_s27  ;;  %v5441_v53 = vsel %vm4784_vm7, %v4238_v36, %v1975_v51  ;;  %v369_v19 = vld [vmem:[%s4782_s22 + $0x64] sm:$0xf] }
  0xba   : > { %v4215_v3 = vld [vmem:[#allocation2 + $0x98] sm:$0x1]  ;;  %v450_v43 = vrot.slane %v448_v24, 7  ;;  %v459_v28 = vshll.u32 %v353_v27, 16  ;;  %v4239_v40 = vrot.slane %v5399_v10, 9  ;;  %v1753_v39 = vrot.slane %v1752_v58, 4 }
  0xbb   : > { %v1748_v18 = vsel %vm4804_vm11, %v1743_v41, %v1747_v23  ;;  %v1755_v30 = vshll.u32 %v4215_v3, 16  ;;  %v458_v45 = vrot.slane %v456_v12, 7  ;;  %v1979_v59 = vsel %vm4784_vm7, %v1977_v21, %v1978_v22  ;;  %v737_v24 = vld [vmem:[#allocation2 + $0x44] sm:$0x1] }
  0xbc   : > { %v453_v4 = vor.u32 %v451_v11, %v450_v43  ;;  %v454_v16 = vrot.slane %v450_v43, 4  ;;  %v1982_v55 = vrot.slane %v5401_v5, 5  ;;  %v5449_v48 = vpop.permute.xlu0 %2789  ;;  %v1985_v7 = vrot.slane %v4215_v3, 5  ;;  %v5469_v44 = vpop.permute.xlu1 %2803 }
  0xbd   : > { %3033 = vrot.lane.b32.xlu0 %v4391_v26, %s4670_s26  ;;  %v1757_v20 = vrot.slane %v1755_v30, 5  ;;  %v461_v10 = vor.u32 %v459_v28, %v458_v45  ;;  %v2118_v29 = vrot.slane %v2116_v60, 4  ;;  %v2121_v5 = vrot.slane %v2119_v9, 5  ;;  %v368_v26 = vld [vmem:[%s4782_s22 + $0x60] sm:$0xf] }
  0xbe   : > { %v734_v49 = vsel %vm4798_vm10, %v453_v4, %v733_v37  ;;  %v5458_v13 = vsel %vm4784_vm7, %v4239_v40, %v1982_v55  ;;  %v1984_v32 = vrot.slane %v1982_v55, 4  ;;  %v2125_v60 = vshll.u32 %v5411_v17, 16  ;;  %v4610_v30 = vld [vmem:[#allocation2] sm:$0xf]  ;;  %v4611_v37 = vld [vmem:[#allocation2 + $0x4] sm:$0xf] }
  0xbf   : > { %v1758_v38 = vsel %vm4804_vm11, %v1753_v39, %v1757_v20  ;;  %v462_v34 = vsel %vm4813_vm12, %v454_v16, %v461_v10  ;;  %735 = vst [vmem:[#allocation2 + $0x3c] sm:$0xf] %v734_v49  ;;  %v2131_v47 = vrot.slane %v2129_v6, 4  ;;  %v2122_v57 = vor.u32 %v2121_v5, %v2118_v29 }
  0xc0   : > { %v4383_v31 = vcombine.low %v1748_v18, %v1758_v38  ;;  %736 = vst.msk [vmem:[#allocation2 + $0x40] sm:$0xf] %vm288_vm0, %v462_v34  ;;  %v1986_v9 = vsel %vm4784_vm7, %v1984_v32, %v1985_v7  ;;  %v2135_v8 = vshll.u32 %v5452_v63, 16  ;;  %v4398_v23 = vcombine.low %v5441_v53, %v1979_v59  ;;  %v5484_v11 = vpop.permute.xlu0 %3027  ;;  %v5492_v4 = vpop.permute.xlu1 %2805  ;;  %v789_v32 = vld [vmem:[#allocation2 + $0x9c] sm:$0xf] }
  0xc1   : > { %3111 = vrot.lane.b32.xlu0 %v4406_v15, %s4672_s28  ;;  %v4399_v6 = vcombine.low %v5458_v13, %v1986_v9  ;;  %v2127_v27 = vrot.slane %v2125_v60, 5  ;;  %v2308_v14 = vshrl.u32 %v5460_v25, 16  ;;  %v2123_v36 = vrot.slane %v2122_v57, 4 }
  0xc2   : > { %2969 = vrot.lane.b32.xlu1 %v4383_v31, %s4671_s27  ;;  %v2137_v51 = vrot.slane %v2135_v8, 5  ;;  %v2311_v58 = vshll.u32 %v5460_v25, 16  ;;  %v2321_v22 = vshrl.u32 %v5467_v0, 16  ;;  %v463_v15 = vrot.slane %v458_v45, 4 }
  0xc3   : > { %v2132_v41 = vor.u32 %v2131_v47, %v2127_v27  ;;  %v584_v21 = vshrl.u32 %v368_v26, 16  ;;  %v587_v12 = vshll.u32 %v368_v26, 16  ;;  %v2128_v3 = vsel %vm4804_vm11, %v2123_v36, %v2127_v27  ;;  %v5522_v27 = vld [vmem:[#allocation2 + $0x98] sm:$0x1] }
  0xc4   : > { %v4414_v53 = vcombine.low %v5460_v25, %v5467_v0  ;;  %v592_v43 = vshrl.u32 %v369_v19, 16  ;;  %v595_v28 = vshll.u32 %v369_v19, 16  ;;  %v738_v18 = vsel %vm4876_vm13, %v463_v15, %v737_v24 }
  0xc5   : > { %v2133_v40 = vrot.slane %v2132_v41, 4  ;;  %v586_v39 = vrot.slane %v584_v21, 7  ;;  %v4308_v59 = vcombine.low %v4610_v30, %v4611_v37  ;;  %739 = vst [vmem:[#allocation2 + $0x44] sm:$0x1] %v738_v18  ;;  %v4294_v55 = vrot.slane %v5388_v56, 9 }
  0xc6   : > { %3047 = vrot.lane.b32.xlu1 %v4398_v23, %s4670_s26  ;;  %v5495_v45 = vld [vmem:[#allocation2 + $0x3c] sm:$0xf]  ;;  %v5497_v16 = vrot.slane %v592_v43, 7  ;;  %v2515_v20 = vrot.slane %v5411_v17, 5  ;;  %v5511_v17 = vpop.permute.xlu0 %2723  ;;  %v2518_v24 = vrot.slane %v5452_v63, 5  ;;  %v2310_v15 = vrot.slane %v2308_v14, 4 }
  0xc7   : > { %v5501_v10 = vld [vmem:[#allocation2 + $0x40] sm:$0xf]  ;;  %v2140_v7 = vshrl.u32 %v5495_v45, 16  ;;  %v2143_v29 = vshll.u32 %v5495_v45, 16  ;;  %v2138_v49 = vsel %vm4804_vm11, %v2133_v40, %v2137_v51  ;;  %v589_v13 = vor.u32 %v587_v12, %v586_v39 }
  0xc8   : > { %v2153_v5 = vshrl.u32 %v5501_v10, 16  ;;  %v4407_v38 = vcombine.low %v5495_v45, %v5501_v10  ;;  %v4422_v34 = vcombine.low %v2128_v3, %v2138_v49  ;;  %v2149_v56 = vshll.u32 %v5501_v10, 16 }
  0xc9   : > { %v2142_v60 = vrot.slane %v2140_v7, 4  ;;  %v2145_v47 = vrot.slane %v2143_v29, 5  ;;  %v590_v31 = vrot.slane %v586_v39, 4  ;;  %v597_v9 = vor.u32 %v595_v28, %v5497_v16 }
  0xca   : > { %3113 = vrot.lane.b32.xlu0 %v4407_v38, %s4672_s28  ;;  %3049 = vrot.lane.b32.xlu1 %v4399_v6, %s4670_s26  ;;  %v2151_v57 = vrot.slane %v2149_v56, 5  ;;  %v2155_v8 = vrot.slane %v2153_v5, 4  ;;  %v790_v26 = vsel %vm4798_vm10, %v589_v13, %v789_v32  ;;  %v5520_v23 = vsel %vm4784_vm7, %v4294_v55, %v2515_v20  ;;  %v5527_v6 = vpop.permute.xlu1 %3043  ;;  %v5541_v30 = vpop.permute.xlu0 %2947  ;;  %v5562_v56 = vld [vmem:[#allocation2 + $0x38] sm:$0x1] }
  0xcb   : > { %v2146_v19 = vor.u32 %v2145_v47, %v2142_v60  ;;  %v598_v36 = vsel %vm4813_vm12, %v590_v31, %v597_v9  ;;  %791 = vst [vmem:[#allocation2 + $0x9c] sm:$0xf] %v790_v26  ;;  %v2517_v51 = vrot.slane %v2515_v20, 4  ;;  %v2313_v21 = vrot.slane %v2311_v58, 5  ;;  %v5539_v58 = vld [vmem:[#allocation2 + $0x30] sm:$0xf] }
  0xcc   : > { %v2156_v41 = vor.u32 %v2155_v8, %v2151_v57  ;;  %792 = vst.msk [vmem:[#allocation2 + $0xa0] sm:$0xf] %vm288_vm0, %v598_v36  ;;  %v2317_v12 = vshll.u32 %v5467_v0, 16  ;;  %v5531_v3 = vld [vmem:[#allocation2 + $0x44] sm:$0x1]  ;;  %v2323_v40 = vrot.slane %v2321_v22, 4  ;;  %v5545_v37 = vsel %vm3299_vm14, %v4308_v59, %v5372_v61 }
  0xcd   : > { %v2147_v43 = vrot.slane %v2146_v19, 4  ;;  %v2519_v28 = vsel %vm4784_vm7, %v2517_v51, %v2518_v24  ;;  %v2327_v18 = vshll.u32 %v5522_v27, 16  ;;  %v2159_v39 = vshll.u32 %v5531_v3, 16  ;;  %v5547_v22 = vld [vmem:[#allocation2 + $0x34] sm:$0xf] }
  0xce   : > { %3191 = vrot.lane.b32.xlu0 %v4422_v34, %s4673_s29  ;;  %3127 = vrot.lane.b32.xlu1 %v4414_v53, %s4672_s28  ;;  %v2157_v63 = vrot.slane %v2156_v41, 4  ;;  %v2314_v14 = vor.u32 %v2313_v21, %v2310_v15  ;;  %v2319_v55 = vrot.slane %v2317_v12, 5  ;;  %v4438_v53 = vcombine.low %v5520_v23, %v2519_v28  ;;  %v5554_v38 = vpop.permute.xlu1 %2709 }
  0xcf   : > { %v2152_v20 = vsel %vm4804_vm11, %v2147_v43, %v2151_v57  ;;  %v2161_v7 = vrot.slane %v2159_v39, 5  ;;  %v2329_v13 = vrot.slane %v2327_v18, 5  ;;  %v969_v32 = vshrl.u32 %v5539_v58, 16  ;;  %v793_v43 = vld [vmem:[#allocation2 + $0xa4] sm:$0x1] }
  0xd0   : > { %v2315_v29 = vrot.slane %v2314_v14, 4  ;;  %v2324_v49 = vor.u32 %v2323_v40, %v2319_v55  ;;  %v972_v5 = vshll.u32 %v5539_v58, 16  ;;  %v978_v60 = vshll.u32 %v5547_v22, 16 }
  0xd1   : > { %v2162_v61 = vsel %vm4804_vm11, %v2157_v63, %v2161_v7  ;;  %v982_v47 = vshrl.u32 %v5547_v22, 16  ;;  %v971_v36 = vrot.slane %v969_v32, 4  ;;  %v988_v12 = vshll.u32 %v5562_v56, 16 }
  0xd2   : > { %v5558_v59 = vld [vmem:[#allocation2 + $0x9c] sm:$0xf]  ;;  %v2320_v34 = vsel %vm4804_vm11, %v2315_v29, %v2319_v55  ;;  %v4423_v31 = vcombine.low %v2152_v20, %v2162_v61  ;;  %v2325_v26 = vrot.slane %v2324_v49, 4  ;;  %v974_v51 = vrot.slane %v972_v5, 5  ;;  %v5582_v7 = vpop.permute.xlu1 %2725 }
  0xd3   : > { %v5566_v9 = vld [vmem:[#allocation2 + $0xa0] sm:$0xf]  ;;  %v2332_v57 = vshrl.u32 %v5558_v59, 16  ;;  %v2335_v8 = vshll.u32 %v5558_v59, 16  ;;  %v980_v15 = vrot.slane %v978_v60, 5  ;;  %v984_v21 = vrot.slane %v982_v47, 4 }
  0xd4   : > { %v2345_v23 = vshrl.u32 %v5566_v9, 16  ;;  %v4415_v19 = vcombine.low %v5558_v59, %v5566_v9  ;;  %v5573_v24 = vpop.permute.xlu0 %2949  ;;  %3193 = vrot.lane.b32.xlu0 %v4423_v31, %s4673_s29  ;;  %v2330_v41 = vsel %vm4804_vm11, %v2325_v26, %v2329_v13  ;;  %v975_v40 = vor.u32 %v974_v51, %v971_v36 }
  0xd5   : > { %v4430_v28 = vcombine.low %v2320_v34, %v2330_v41  ;;  %v599_v18 = vrot.slane %v5497_v16, 4  ;;  %v2334_v63 = vrot.slane %v2332_v57, 4  ;;  %v985_v39 = vor.u32 %v984_v21, %v980_v15  ;;  %v5599_v57 = vld [vmem:[#allocation2 + $0x3c] sm:$0xf] }
  0xd6   : > { %3129 = vrot.lane.b32.xlu1 %v4415_v19, %s4672_s28  ;;  %v990_v14 = vrot.slane %v988_v12, 5  ;;  %v2337_v55 = vrot.slane %v2335_v8, 5  ;;  %v2341_v20 = vshll.u32 %v5566_v9, 16  ;;  %v976_v29 = vrot.slane %v975_v40, 4  ;;  %v5606_v19 = vld [vmem:[#allocation2 + $0x40] sm:$0xf] }
  0xd7   : > { %v794_v49 = vsel %vm4876_vm13, %v599_v18, %v793_v43  ;;  %v2347_v13 = vrot.slane %v2345_v23, 4  ;;  %v4295_v32 = vrot.slane %v5495_v45, 9  ;;  %v986_v5 = vrot.slane %v985_v39, 4  ;;  %v5619_v43 = vpop.permute.xlu1 %2963  ;;  %v5627_v39 = vld [vmem:[#allocation2 + $0x90] sm:$0xf] }
  0xd8   : > { %3271 = vrot.lane.b32.xlu0 %v4438_v53, %s4674_s30  ;;  %795 = vst [vmem:[#allocation2 + $0xa4] sm:$0x1] %v794_v49  ;;  %v2338_v16 = vor.u32 %v2337_v55, %v2334_v63  ;;  %v5588_v61 = vrot.slane %v2341_v20, 5  ;;  %v2522_v34 = vrot.slane %v5501_v10, 5  ;;  %v5591_v60 = vpop.permute.xlu0 %3029  ;;  %v981_v47 = vsel %vm4804_vm11, %v976_v29, %v980_v15  ;;  %v5634_v29 = vld [vmem:[#allocation2 + $0x94] sm:$0xf] }
  0xd9   : > { %v2525_v31 = vrot.slane %v5531_v3, 5  ;;  %v4302_v45 = vrot.slane %v5460_v25, 9  ;;  %v2571_v53 = vrot.slane %v5467_v0, 5  ;;  %v991_v8 = vsel %vm4804_vm11, %v986_v5, %v990_v14  ;;  %v5612_v3 = vld [vmem:[#allocation2 + $0x44] sm:$0x1] }
  0xda   : > { %3207 = vrot.lane.b32.xlu1 %v4430_v28, %s4673_s29  ;;  %v2339_v26 = vrot.slane %v2338_v16, 4  ;;  %v2348_v10 = vor.u32 %v2347_v13, %v5588_v61  ;;  %v2523_v23 = vsel %vm4784_vm7, %v4295_v32, %v2522_v34  ;;  %v4328_v36 = vcombine.low %v981_v47, %v991_v8  ;;  %v5636_v49 = vld [vmem:[#allocation2 + $0x98] sm:$0x1] }
  0xdb   : > { %v2524_v51 = vrot.slane %v2522_v34, 4  ;;  %v5610_v25 = vsel %vm4784_vm7, %v4302_v45, %v2571_v53  ;;  %v2573_v0 = vrot.slane %v2571_v53, 4  ;;  %v2574_v21 = vrot.slane %v5522_v27, 5 }
  0xdc   : > { %v2344_v41 = vsel %vm4804_vm11, %v2339_v26, %v5588_v61  ;;  %v2349_v15 = vrot.slane %v2348_v10, 4  ;;  %v993_v12 = vshrl.u32 %v5599_v57, 16  ;;  %2715 = vrot.lane.b32.xlu0 %v4328_v36, %s4668_s24  ;;  %v996_v40 = vshll.u32 %v5599_v57, 16 }
  0xdd   : > { %v2526_v28 = vsel %vm4784_vm7, %v2524_v51, %v2525_v31  ;;  %v1002_v18 = vshll.u32 %v5606_v19, 16  ;;  %v1006_v63 = vshrl.u32 %v5606_v19, 16  ;;  %v5631_v27 = vsel %vm4784_vm7, %v2573_v0, %v2574_v21  ;;  %v5638_v13 = vpop.permute.xlu0 %3107 }
  0xde   : > { %v4439_v14 = vcombine.low %v2523_v23, %v2526_v28  ;;  %v995_v55 = vrot.slane %v993_v12, 4  ;;  %v1012_v20 = vshll.u32 %v5612_v3, 16  ;;  %v4446_v5 = vcombine.low %v5610_v25, %v5631_v27 }
  0xdf   : > { %v5640_v32 = vld [vmem:[#allocation2 + $0xa4] sm:$0x1]  ;;  %v998_v16 = vrot.slane %v996_v40, 5  ;;  %v1004_v61 = vrot.slane %v1002_v18, 5  ;;  %v1008_v34 = vrot.slane %v1006_v63, 4  ;;  %v1161_v45 = vshrl.u32 %v5627_v39, 16 }
  0xe0   : > { %v2351_v47 = vshll.u32 %v5640_v32, 16  ;;  %v1014_v31 = vrot.slane %v1012_v20, 5  ;;  %v1164_v53 = vshll.u32 %v5627_v39, 16  ;;  %3273 = vrot.lane.b32.xlu0 %v4439_v14, %s4674_s30  ;;  %v1170_v10 = vshll.u32 %v5634_v29, 16 }
  0xe1   : > { %v999_v8 = vor.u32 %v998_v16, %v995_v55  ;;  %v1009_v26 = vor.u32 %v1008_v34, %v1004_v61  ;;  %v1174_v23 = vshrl.u32 %v5634_v29, 16  ;;  %v1163_v51 = vrot.slane %v1161_v45, 4 }
  0xe2   : > { %v2353_v36 = vrot.slane %v2351_v47, 5  ;;  %v1166_v25 = vrot.slane %v1164_v53, 5  ;;  %v1180_v0 = vshll.u32 %v5636_v49, 16  ;;  %v1172_v40 = vrot.slane %v1170_v10, 5 }
  0xe3   : > { %v5651_v21 = vpop.permute.xlu1 %2965  ;;  %v1000_v12 = vrot.slane %v999_v8, 4  ;;  %v1010_v28 = vrot.slane %v1009_v26, 4  ;;  %v1176_v18 = vrot.slane %v1174_v23, 4  ;;  %v4168_v55 = vrot.slane %v5539_v58, 9 }
  0xe4   : > { %v2354_v63 = vsel %vm4804_vm11, %v2349_v15, %v2353_v36  ;;  %v1167_v14 = vor.u32 %v1166_v25, %v1163_v51  ;;  %v1182_v27 = vrot.slane %v1180_v0, 5  ;;  %v1337_v26 = vrot.slane %v5547_v22, 5  ;;  %v5683_v25 = vld [vmem:[#allocation2 + $0x9c] sm:$0xf] }
  0xe5   : > { %v5656_v20 = vpop.permute.xlu0 %3109  ;;  %v4431_v16 = vcombine.low %v2344_v41, %v2354_v63  ;;  %v1005_v34 = vsel %vm4804_vm11, %v1000_v12, %v1004_v61  ;;  %v1015_v47 = vsel %vm4804_vm11, %v1010_v28, %v1014_v31  ;;  %v1177_v45 = vor.u32 %v1176_v18, %v1172_v40 }
  0xe6   : > { %v4329_v53 = vcombine.low %v1005_v34, %v1015_v47  ;;  %v1168_v8 = vrot.slane %v1167_v14, 4  ;;  %v1340_v15 = vrot.slane %v5562_v56, 5  ;;  %v4303_v58 = vrot.slane %v5558_v59, 9  ;;  %v4612_v14 = vld [vmem:[#allocation2 + $0x60] sm:$0xf] }
  0xe7   : > { %3209 = vrot.lane.b32.xlu1 %v4431_v16, %s4673_s29  ;;  %v1178_v10 = vrot.slane %v1177_v45, 4  ;;  %v2578_v41 = vrot.slane %v5566_v9, 5  ;;  %v2581_v23 = vrot.slane %v5640_v32, 5  ;;  %v5668_v61 = vpop.permute.xlu1 %3045  ;;  %v1338_v22 = vsel %vm4784_vm7, %v4168_v55, %v1337_v26 }
  0xe8   : > { %2717 = vrot.lane.b32.xlu0 %v4329_v53, %s4668_s24  ;;  %v1173_v31 = vsel %vm4804_vm11, %v1168_v8, %v1172_v40  ;;  %v1339_v56 = vrot.slane %v1337_v26, 4  ;;  %v3350_v59 = vsel %vm3348_vm15, %v5545_v37, %v5344_v50  ;;  %v4169_v51 = vrot.slane %v5599_v57, 9  ;;  %v5690_v40 = vld [vmem:[#allocation2 + $0xa0] sm:$0xf]  ;;  %v5692_v50 = vld [vmem:[#allocation2 + $0xa4] sm:$0x1] }
  0xe9   : > { %v5675_v36 = vpop.permute.xlu0 %3187  ;;  %v1183_v9 = vsel %vm4804_vm11, %v1178_v10, %v1182_v27  ;;  %v2580_v32 = vrot.slane %v2578_v41, 4  ;;  %vm3381_vm1 = vcmask 97280   ;;  %v2579_v12 = vsel %vm4784_vm7, %v4303_v58, %v2578_v41  ;;  %v4613_v27 = vld [vmem:[#allocation2 + $0x64] sm:$0xf]  ;;  %v4614_v58 = vld [vmem:[#allocation2 + $0xc] sm:$0xf] }
  0xea   : > { %v1341_v0 = vsel %vm4784_vm7, %v1339_v56, %v1340_v15  ;;  %v1344_v28 = vrot.slane %v5606_v19, 5  ;;  %v4336_v37 = vcombine.low %v1173_v31, %v1183_v9  ;;  %v1347_v63 = vrot.slane %v5612_v3, 5  ;;  %v4615_v41 = vld [vmem:[#allocation2 + $0x10] sm:$0xf]  ;;  %v5712_v31 = vld [vmem:[#allocation2 + $0x3c] sm:$0xf] }
  0xeb   : > { %3287 = vrot.lane.b32.xlu1 %v4446_v5, %s4674_s30  ;;  %v4344_v18 = vcombine.low %v1338_v22, %v1341_v0  ;;  %v2582_v57 = vsel %vm4784_vm7, %v2580_v32, %v2581_v23  ;;  %v4316_v55 = vcombine.low %v4612_v14, %v4613_v27  ;;  %v1185_v34 = vshrl.u32 %v5683_v25, 16  ;;  %v5706_v3 = vpop.permute.xlu1 %3123 }
  0xec   : > { %v1345_v16 = vsel %vm4784_vm7, %v4169_v51, %v1344_v28  ;;  %v1346_v19 = vrot.slane %v1344_v28, 4  ;;  %v1188_v5 = vshll.u32 %v5683_v25, 16  ;;  %v1194_v47 = vshll.u32 %v5690_v40, 16  ;;  %v5715_v51 = vld [vmem:[#allocation2 + $0x40] sm:$0xf] }
  0xed   : > { %2795 = vrot.lane.b32.xlu0 %v4344_v18, %s4667_s23  ;;  %v1198_v45 = vshrl.u32 %v5690_v40, 16  ;;  %v1204_v53 = vshll.u32 %v5692_v50, 16  ;;  %v4447_v26 = vcombine.low %v2579_v12, %v2582_v57  ;;  %v1187_v10 = vrot.slane %v1185_v34, 4 }
  0xee   : > { %v5708_v8 = vpop.permute.xlu0 %3189  ;;  %v1348_v15 = vsel %vm4784_vm7, %v1346_v19, %v1347_v63  ;;  %v4309_v23 = vcombine.low %v4614_v58, %v4615_v41  ;;  %v1190_v56 = vrot.slane %v1188_v5, 5  ;;  %v1196_v9 = vrot.slane %v1194_v47, 5  ;;  %v355_v5 = vld [vmem:[%s4782_s22 + $0x2c] sm:$0xf] }
  0xef   : > { %2731 = vrot.lane.b32.xlu1 %v4336_v37, %s4668_s24  ;;  %v4345_v22 = vcombine.low %v1345_v16, %v1348_v15  ;;  %v1200_v32 = vrot.slane %v1198_v45, 4  ;;  %v5719_v0 = vsel %vm3381_vm1, %v3350_v59, %v5393_v2  ;;  %v1206_v18 = vrot.slane %v1204_v53, 5  ;;  %v354_v59 = vld [vmem:[%s4782_s22 + $0x28] sm:$0xf] }
  0xf0   : > { %v1191_v12 = vor.u32 %v1190_v56, %v1187_v10  ;;  %v3305_v37 = vsel %vm3299_vm14, %v4309_v23, %v5554_v38  ;;  %v3326_v57 = vsel %vm3299_vm14, %v4316_v55, %v5511_v17  ;;  %v4360_v63 = vcombine.low %v5712_v31, %v5715_v51  ;;  %v5737_v17 = vpop.permute.xlu1 %3125  ;;  %v4616_v23 = vld [vmem:[#allocation2 + $0x6c] sm:$0xf] }
  0xf1   : > { %2797 = vrot.lane.b32.xlu0 %v4345_v22, %s4667_s23  ;;  %v1201_v28 = vor.u32 %v1200_v32, %v1196_v9  ;;  %v4176_v14 = vrot.slane %v5627_v39, 9  ;;  %v1393_v2 = vrot.slane %v5634_v29, 5  ;;  %v1568_v34 = vshrl.u32 %v5712_v31, 16  ;;  %v4617_v22 = vld [vmem:[#allocation2 + $0x70] sm:$0xf] }
  0xf2   : > { %v5731_v27 = vpop.permute.xlu0 %3267  ;;  %v1192_v16 = vrot.slane %v1191_v12, 4  ;;  %v1396_v38 = vrot.slane %v5636_v49, 5  ;;  %v3352_v55 = vsel %vm3348_vm15, %v3305_v37, %v5449_v48  ;;  %v1571_v39 = vshll.u32 %v5712_v31, 16 }
  0xf3   : > { %3289 = vrot.lane.b32.xlu1 %v4447_v26, %s4674_s30  ;;  %v1202_v19 = vrot.slane %v1201_v28, 4  ;;  %v1394_v29 = vsel %vm4784_vm7, %v4176_v14, %v1393_v2  ;;  %v1395_v47 = vrot.slane %v1393_v2, 4  ;;  %v465_v49 = vshrl.u32 %v354_v59, 16  ;;  %v740_v28 = vld [vmem:[#allocation2 + $0x48] sm:$0xf] }
  0xf4   : > { %v1197_v45 = vsel %vm4804_vm11, %v1192_v16, %v1196_v9  ;;  %v468_v26 = vshll.u32 %v354_v59, 16  ;;  %v1581_v10 = vshrl.u32 %v5715_v51, 16  ;;  %v473_v58 = vshrl.u32 %v355_v5, 16 }
  0xf5   : > { %v1207_v53 = vsel %vm4804_vm11, %v1202_v19, %v1206_v18  ;;  %2875 = vrot.lane.b32.xlu0 %v4360_v63, %s4669_s25  ;;  %v1397_v48 = vsel %vm4784_vm7, %v1395_v47, %v1396_v38  ;;  %v4317_v56 = vcombine.low %v4616_v23, %v4617_v22  ;;  %v467_v32 = vrot.slane %v465_v49, 7  ;;  %v5760_v19 = vpop.permute.xlu1 %3203  ;;  %v5778_v49 = vld [vmem:[#allocation2 + $0x9c] sm:$0xf] }
  0xf6   : > { %v4337_v15 = vcombine.low %v1197_v45, %v1207_v53  ;;  %v4352_v41 = vcombine.low %v1394_v29, %v1397_v48  ;;  %v476_v9 = vshll.u32 %v355_v5, 16  ;;  %v475_v12 = vrot.slane %v473_v58, 7  ;;  %v5766_v29 = vld [vmem:[#allocation2 + $0x44] sm:$0x1] }
  0xf7   : > { %v4177_v18 = vrot.slane %v5683_v25, 9  ;;  %v1400_v37 = vrot.slane %v5690_v40, 5  ;;  %v1403_v63 = vrot.slane %v5692_v50, 5  ;;  %v3366_v2 = vsel %vm3348_vm15, %v3326_v57, %v5469_v44 }
  0xf8   : > { %2733 = vrot.lane.b32.xlu1 %v4337_v15, %s4668_s24  ;;  %vm3414_vm2 = vcmask 130048   ;;  %v470_v59 = vor.u32 %v468_v26, %v467_v32  ;;  %v471_v16 = vrot.slane %v467_v32, 4  ;;  %v3385_v38 = vsel %vm3381_vm1, %v3352_v55, %v5428_v62  ;;  %v5787_v15 = vld [vmem:[#allocation2 + $0xa0] sm:$0xf]  ;;  %v371_v32 = vld [vmem:[%s4782_s22 + $0x6c] sm:$0xf] }
  0xf9   : > { %v5756_v14 = vpop.permute.xlu0 %2711  ;;  %v478_v5 = vor.u32 %v476_v9, %v475_v12  ;;  %v1401_v25 = vsel %vm4784_vm7, %v4177_v18, %v1400_v37  ;;  %v1402_v40 = vrot.slane %v1400_v37, 4  ;;  %v3329_v50 = vsel %vm3299_vm14, %v4317_v56, %v5582_v7  ;;  %v744_v56 = vld [vmem:[#allocation2 + $0x50] sm:$0x1] }
  0xfa   : > { %v741_v44 = vsel %vm4798_vm10, %v470_v59, %v740_v28  ;;  %v1570_v57 = vrot.slane %v1568_v34, 4  ;;  %v1573_v47 = vrot.slane %v1571_v39, 5  ;;  %v1577_v45 = vshll.u32 %v5715_v51, 16 }
  0xfb   : > { %v479_v62 = vsel %vm4813_vm12, %v471_v16, %v478_v5  ;;  %742 = vst [vmem:[#allocation2 + $0x48] sm:$0xf] %v741_v44  ;;  %v1404_v55 = vsel %vm4784_vm7, %v1402_v40, %v1403_v63  ;;  %v1583_v53 = vrot.slane %v1581_v10, 4  ;;  %v5783_v7 = vsel %vm3414_vm2, %v5719_v0, %v5541_v30  ;;  %v370_v30 = vld [vmem:[%s4782_s22 + $0x68] sm:$0xf] }
  0xfc   : > { %2811 = vrot.lane.b32.xlu1 %v4352_v41, %s4667_s23  ;;  %743 = vst.msk [vmem:[#allocation2 + $0x4c] sm:$0xf] %vm288_vm0, %v479_v62  ;;  %v4353_v34 = vcombine.low %v1401_v25, %v1404_v55  ;;  %v1574_v39 = vor.u32 %v1573_v47, %v1570_v57  ;;  %v1587_v26 = vshll.u32 %v5766_v29, 16  ;;  %v3418_v48 = vsel %vm3414_vm2, %v3385_v38, %v5573_v24 }
  0xfd   : > { %v5793_v10 = vsel %vm3348_vm15, %v3329_v50, %v5492_v4  ;;  %vm3447_vm3 = vcmask 162816   ;;  %v1579_v58 = vrot.slane %v1577_v45, 5  ;;  %v5796_v0 = vpop.permute.xlu0 %3269  ;;  %v5804_v23 = vsel %vm3381_vm1, %v3366_v2, %v5413_v46 }
  0xfe   : > { %v5800_v41 = vsel %vm3447_vm3, %v3418_v48, %v5591_v60  ;;  %v1575_v22 = vrot.slane %v1574_v39, 4  ;;  %v1760_v24 = vshrl.u32 %v5778_v49, 16  ;;  %v1589_v28 = vrot.slane %v1587_v26, 5  ;;  %v796_v48 = vld [vmem:[#allocation2 + $0xa8] sm:$0xf] }
  0xff   : > { %v1584_v9 = vor.u32 %v1583_v53, %v1579_v58  ;;  %v4368_v18 = vcombine.low %v5778_v49, %v5787_v15  ;;  %v480_v60 = vrot.slane %v475_v12, 4  ;;  %v1763_v46 = vshll.u32 %v5778_v49, 16 }
 0x100   : > { %v5808_v4 = vpop.permute.xlu1 %3205  ;;  %2813 = vrot.lane.b32.xlu1 %v4353_v34, %s4667_s23  ;;  %v1580_v37 = vsel %vm4804_vm11, %v1575_v22, %v1579_v58  ;;  %v1773_v63 = vshrl.u32 %v5787_v15, 16  ;;  %v601_v2 = vshrl.u32 %v370_v30, 16  ;;  %v604_v38 = vshll.u32 %v370_v30, 16 }
 0x101   : > { %v1585_v59 = vrot.slane %v1584_v9, 4  ;;  %v745_v16 = vsel %vm4876_vm13, %v480_v60, %v744_v56  ;;  %v609_v5 = vshrl.u32 %v371_v32, 16  ;;  %vm3480_vm4 = vcmask 195584  }
 0x102   : > { %v5819_v25 = vld [vmem:[#allocation2 + $0x48] sm:$0xf]  ;;  %746 = vst [vmem:[#allocation2 + $0x50] sm:$0x1] %v745_v16  ;;  %v603_v40 = vrot.slane %v601_v2, 7  ;;  %v612_v12 = vshll.u32 %v371_v32, 16 }
 0x103   : > { %v4232_v50 = vrot.slane %v5712_v31, 9  ;;  %v5824_v57 = vld [vmem:[#allocation2 + $0x4c] sm:$0xf]  ;;  %v1592_v47 = vshrl.u32 %v5819_v25, 16  ;;  %v1595_v62 = vshll.u32 %v5819_v25, 16  ;;  %v1590_v55 = vsel %vm4804_vm11, %v1585_v59, %v1589_v28  ;;  %v5833_v53 = vpop.permute.xlu0 %2713 }
 0x104   : > { %v5822_v44 = vpop.permute.xlu1 %3283  ;;  %2891 = vrot.lane.b32.xlu1 %v4368_v18, %s4669_s25  ;;  %v5831_v45 = vrot.slane %v609_v5, 7  ;;  %v1605_v34 = vshrl.u32 %v5824_v57, 16  ;;  %v4361_v31 = vcombine.low %v5819_v25, %v5824_v57  ;;  %v4376_v39 = vcombine.low %v1580_v37, %v1590_v55  ;;  %v5847_v16 = vld [vmem:[#allocation2 + $0xa4] sm:$0x1] }
 0x105   : > { %v1601_v26 = vshll.u32 %v5824_v57, 16  ;;  %v1594_v58 = vrot.slane %v1592_v47, 4  ;;  %v1597_v30 = vrot.slane %v1595_v62, 5  ;;  %v606_v22 = vor.u32 %v604_v38, %v603_v40 }
 0x106   : > { %v607_v56 = vrot.slane %v603_v40, 4  ;;  %2877 = vrot.lane.b32.xlu0 %v4361_v31, %s4669_s25  ;;  %v1607_v9 = vrot.slane %v1605_v34, 4  ;;  %v614_v28 = vor.u32 %v612_v12, %v5831_v45  ;;  %v1933_v18 = vrot.slane %v5715_v51, 5 }
 0x107   : > { %v1603_v32 = vrot.slane %v1601_v26, 5  ;;  %v1598_v2 = vor.u32 %v1597_v30, %v1594_v58  ;;  %v797_v37 = vsel %vm4798_vm10, %v606_v22, %v796_v48  ;;  %v1936_v59 = vrot.slane %v5766_v29, 5  ;;  %v5857_v31 = vpop.permute.xlu0 %2791 }
 0x108   : > { %v5842_v60 = vpop.permute.xlu1 %2727  ;;  %v1762_v38 = vrot.slane %v1760_v24, 4  ;;  %v615_v40 = vsel %vm4813_vm12, %v607_v56, %v614_v28  ;;  %798 = vst [vmem:[#allocation2 + $0xa8] sm:$0xf] %v797_v37  ;;  %v5853_v12 = vsel %vm4784_vm7, %v4232_v50, %v1933_v18  ;;  %v1935_v51 = vrot.slane %v1933_v18, 4 }
 0x109   : > { %v1608_v5 = vor.u32 %v1607_v9, %v1603_v32  ;;  %v4197_v47 = vld [vmem:[#allocation2 + $0x50] sm:$0x1]  ;;  %v1599_v62 = vrot.slane %v1598_v2, 4  ;;  %799 = vst.msk [vmem:[#allocation2 + $0xac] sm:$0xf] %vm288_vm0, %v615_v40  ;;  %v1765_v55 = vrot.slane %v1763_v46, 5  ;;  %v3432_v58 = vsel %vm3414_vm2, %v5804_v23, %v5619_v43 }
 0x10a   : > { %v1769_v29 = vshll.u32 %v5787_v15, 16  ;;  %v1775_v34 = vrot.slane %v1773_v63, 4  ;;  %2955 = vrot.lane.b32.xlu0 %v4376_v39, %s4671_s27  ;;  %v1611_v26 = vshll.u32 %v4197_v47, 16  ;;  %v1937_v48 = vsel %vm4784_vm7, %v1935_v51, %v1936_v59 }
 0x10b   : > { %v1609_v24 = vrot.slane %v1608_v5, 4  ;;  %v1779_v50 = vshll.u32 %v5847_v16, 16  ;;  %v3449_v46 = vsel %vm3447_vm3, %v5783_v7, %v5484_v11  ;;  %v1766_v63 = vor.u32 %v1765_v55, %v1762_v38  ;;  %v5886_v5 = vpop.permute.xlu0 %2793 }
 0x10c   : > { %v1771_v30 = vrot.slane %v1769_v29, 5  ;;  %v3482_v39 = vsel %vm3480_vm4, %v3449_v46, %v5638_v13  ;;  %v3401_v22 = vsel %vm3381_vm1, %v5793_v10, %v5436_v52  ;;  %v1604_v56 = vsel %vm4804_vm11, %v1599_v62, %v1603_v32  ;;  %v5876_v28 = vpop.permute.xlu1 %3285  ;;  %v800_v52 = vld [vmem:[#allocation2 + $0xb0] sm:$0x1] }
 0x10d   : > { %v1613_v9 = vrot.slane %v1611_v26, 5  ;;  %v4392_v43 = vcombine.low %v5853_v12, %v1937_v48  ;;  %v1767_v23 = vrot.slane %v1766_v63, 4  ;;  %v1781_v11 = vrot.slane %v1779_v50, 5  ;;  %v4595_v29 = vld [vmem:[%s6887_s1 + $0x10] ss:$0 sps:$4 sm:$0x33]  }
 0x10e   : > { %v1776_v18 = vor.u32 %v1775_v34, %v1771_v30  ;;  %v4233_v13 = vrot.slane %v5819_v25, 9  ;;  %v1940_v2 = vrot.slane %v5824_v57, 5  ;;  %v1943_v37 = vrot.slane %v4197_v47, 5 }
 0x10f   : > { %v1614_v7 = vsel %vm4804_vm11, %v1609_v24, %v1613_v9  ;;  %v5883_v59 = vld [vmem:[#allocation2 + $0xa8] sm:$0xf]  ;;  %vm3513_vm5 = vcmask 228352   ;;  %v616_v38 = vrot.slane %v5831_v45, 4  ;;  %v1772_v25 = vsel %vm4804_vm11, %v1767_v23, %v1771_v30  ;;  %v5917_v23 = vld [vmem:[#allocation2 + $0x4c] sm:$0xf] }
 0x110   : > { %v4377_v10 = vcombine.low %v1604_v56, %v1614_v7  ;;  %v1777_v32 = vrot.slane %v1776_v18, 4  ;;  %v5888_v40 = vld [vmem:[#allocation2 + $0xac] sm:$0xf]  ;;  %v1784_v12 = vshrl.u32 %v5883_v59, 16  ;;  %v1787_v51 = vshll.u32 %v5883_v59, 16 }
 0x111   : > { %v1942_v57 = vrot.slane %v1940_v2, 4  ;;  %v1797_v47 = vshrl.u32 %v5888_v40, 16  ;;  %v4369_v62 = vcombine.low %v5883_v59, %v5888_v40  ;;  %v801_v55 = vsel %vm4876_vm13, %v616_v38, %v800_v52  ;;  %v5915_v9 = vld [vmem:[#allocation2 + $0x48] sm:$0xf] }
 0x112   : > { %2957 = vrot.lane.b32.xlu0 %v4377_v10, %s4671_s27  ;;  %v1782_v45 = vsel %vm4804_vm11, %v1777_v32, %v1781_v11  ;;  %v1941_v34 = vsel %vm4784_vm7, %v4233_v13, %v1940_v2  ;;  %802 = vst [vmem:[#allocation2 + $0xb0] sm:$0x1] %v801_v55  ;;  %v1786_v26 = vrot.slane %v1784_v12, 4  ;;  %v1789_v48 = vrot.slane %v1787_v51, 5  ;;  %v5909_v50 = vpop.permute.xlu1 %2729 }
 0x113   : > { %v1944_v24 = vsel %vm4784_vm7, %v1942_v57, %v1943_v37  ;;  %v3434_v46 = vsel %vm3414_vm2, %v3401_v22, %v5651_v21  ;;  %2893 = vrot.lane.b32.xlu1 %v4369_v62, %s4669_s25  ;;  %v4384_v63 = vcombine.low %v1772_v25, %v1782_v45  ;;  %v1793_v30 = vshll.u32 %v5888_v40, 16  ;;  %v356_v22 = vld [vmem:[%s4782_s22 + $0x30] sm:$0xf]  ;;  %v747_v25 = vld [vmem:[#allocation2 + $0x54] sm:$0xf] }
 0x114   : > { %v1799_v56 = vrot.slane %v1797_v47, 4  ;;  %v5922_v18 = vsel %vm3480_vm4, %v5800_v41, %v5656_v20  ;;  %v5926_v11 = vsel %vm3447_vm3, %v3434_v46, %v5668_v61  ;;  %v1790_v21 = vor.u32 %v1789_v48, %v1786_v26  ;;  %v4597_v20 = vld [vmem:[%s6887_s1 + $0x8] sm:$0xff]   ;;  %v5940_v61 = vpop.permute.xlu0 %2871 }
 0x115   : > { %vm3632_vm6 = vcmask 1041408   ;;  %v3515_v7 = vsel %vm3513_vm5, %v3482_v39, %v5675_v36  ;;  %v3465_v13 = vsel %vm3447_vm3, %v3432_v58, %v5527_v6  ;;  %v4393_v2 = vcombine.low %v1941_v34, %v1944_v24  ;;  %v357_v6 = vld [vmem:[%s4782_s22 + $0x34] sm:$0xf] }
 0x116   : > { %3035 = vrot.lane.b32.xlu0 %v4392_v43, %s4670_s26  ;;  %v5934_v37 = vrot.slane %v1793_v30, 5  ;;  %4540 = vmatprep.subr.msk.bf16.mxu0 %vm3632_vm6, %v4595_v29  ;;  %v2164_v41 = vshrl.u32 %v5915_v9, 16  ;;  %v2167_v43 = vshll.u32 %v5915_v9, 16  ;;  %v2177_v36 = vshrl.u32 %v5917_v23, 16  ;;  %v5955_v57 = vpop.permute.xlu1 %2807 }
 0x117   : > { %v1989_v39 = vrot.slane %v5787_v15, 5  ;;  %4541 = vmatprep.subr.msk.bf16.mxu1 %vm3632_vm6, %v4595_v29  ;;  %2971 = vrot.lane.b32.xlu1 %v4384_v63, %s4671_s27  ;;  %v1791_v58 = vrot.slane %v1790_v21, 4  ;;  %v3634_v10 = vsel %vm3632_vm6, %v4595_v29, 0  ;;  %v482_v32 = vshrl.u32 %v356_v22, 16 }
 0x118   : > { %v1800_v52 = vor.u32 %v1799_v56, %v5934_v37  ;;  %v4408_v38 = vcombine.low %v5915_v9, %v5917_v23  ;;  %v4240_v12 = vrot.slane %v5778_v49, 9  ;;  %v1992_v51 = vrot.slane %v5847_v16, 5  ;;  %4497 = vmatpush3.bf16.msra.mxu0 %v3634_v10  ;;  %4537 = vmatpush3.bf16.msra.mxu1 %v3634_v10  ;;  %v4599_v49 = vld [vmem:[%s6887_s1] sm:$0xff]  }
 0x119   : > { %v485_v15 = vshll.u32 %v356_v22, 16  ;;  %v4221_v47 = vld [vmem:[#allocation2 + $0xb0] sm:$0x1]  ;;  %v1991_v62 = vrot.slane %v1989_v39, 4  ;;  %4498 = vmatprep.subr.bf16.mxu0 %v4597_v20  ;;  %v484_v45 = vrot.slane %v482_v32, 7  ;;  %v490_v55 = vshrl.u32 %v357_v6, 16  ;;  %4535 = vmatprep.subr.bf16.mxu1 %v4597_v20 }
 0x11a   : > { %3037 = vrot.lane.b32.xlu0 %v4393_v2, %s4670_s26  ;;  %v493_v29 = vshll.u32 %v357_v6, 16  ;;  %v1801_v34 = vrot.slane %v1800_v52, 4  ;;  %v1803_v24 = vshll.u32 %v4221_v47, 16  ;;  %vm3546_vm8 = vcmask 261120   ;;  %v5990_v32 = vld [vmem:[#allocation2 + $0xa8] sm:$0xf] }
 0x11b   : > { %vm3599_vm9 = vcmask 293888   ;;  %v1796_v16 = vsel %vm4804_vm11, %v1791_v58, %v5934_v37  ;;  %v487_v26 = vor.u32 %v485_v15, %v484_v45  ;;  %v488_v48 = vrot.slane %v484_v45, 4 }
 0x11c   : > { %v492_v46 = vrot.slane %v490_v55, 7  ;;  %v1805_v30 = vrot.slane %v1803_v24, 5  ;;  %v3548_v56 = vsel %vm3546_vm8, %v3515_v7, %v5731_v27  ;;  %v4241_v21 = vrot.slane %v5883_v59, 9  ;;  %4499 = vmatpush3.bf16.msra.mxu0 %v4597_v20  ;;  %4538 = vmatpush3.bf16.msra.mxu1 %v4597_v20  ;;  %v5982_v7 = vld [vmem:[#allocation2 + $0x50] sm:$0x1] }
 0x11d   : > { %v5964_v63 = vpop.permute.xlu0 %2873  ;;  %v1996_v22 = vrot.slane %v5888_v40, 5  ;;  %v3498_v2 = vsel %vm3480_vm4, %v3465_v13, %v5706_v3  ;;  %v748_v6 = vsel %vm4798_vm10, %v487_v26, %v747_v25  ;;  %4502 = vmatprep.mubr.msk.bf16.mxu0 %vm3599_vm9, %v3548_v56  ;;  %v1999_v58 = vrot.slane %v4221_v47, 5  ;;  %4500 = vmatprep.subr.bf16.mxu0 %v4599_v49  ;;  %v5984_v13 = vpop.permute.xlu1 %2809  ;;  %v373_v55 = vld [vmem:[%s4782_s22 + $0x74] sm:$0xf] }
 0x11e   : > { %3115 = vrot.lane.b32.xlu0 %v4408_v38, %s4672_s28  ;;  %v495_v37 = vor.u32 %v493_v29, %v492_v46  ;;  %v1806_v27 = vsel %vm4804_vm11, %v1801_v34, %v1805_v30  ;;  %v1990_v59 = vsel %vm4784_vm7, %v4240_v12, %v1989_v39  ;;  %v1993_v40 = vsel %vm4784_vm7, %v1991_v62, %v1992_v51 }
 0x11f   : > { %749 = vst [vmem:[#allocation2 + $0x54] sm:$0xf] %v748_v6  ;;  %v1998_v3 = vrot.slane %v1996_v22, 4  ;;  %4536 = vmatprep.subr.bf16.mxu1 %v4599_v49  ;;  %v4385_v20 = vcombine.low %v1796_v16, %v1806_v27  ;;  %v1997_v10 = vsel %vm4784_vm7, %v4241_v21, %v1996_v22  ;;  %v2166_v39 = vrot.slane %v2164_v41, 4  ;;  %v372_v41 = vld [vmem:[%s4782_s22 + $0x70] sm:$0xf] }
 0x120   : > { %v496_v52 = vsel %vm4813_vm12, %v488_v48, %v495_v37  ;;  %v2169_v51 = vrot.slane %v2167_v43, 5  ;;  %v2173_v15 = vshll.u32 %v5917_v23, 16  ;;  %v2179_v25 = vrot.slane %v2177_v36, 4  ;;  %4501 = vmatpush3.bf16.msra.mxu0 %v4599_v49  ;;  %4539 = vmatpush3.bf16.msra.mxu1 %v4599_v49  ;;  %v751_v16 = vld [vmem:[#allocation2 + $0x5c] sm:$0x1] }
 0x121   : > { %v5992_v38 = vpop.permute.xlu0 %2951  ;;  %750 = vst.msk [vmem:[#allocation2 + $0x58] sm:$0xf] %vm288_vm0, %v496_v52  ;;  %v2000_v12 = vsel %vm4784_vm7, %v1998_v3, %v1999_v58  ;;  %2973 = vrot.lane.b32.xlu1 %v4385_v20, %s4671_s27  ;;  %v3517_v47 = vsel %vm3513_vm5, %v5922_v18, %v5708_v8  ;;  %v4400_v62 = vcombine.low %v1990_v59, %v1993_v40  ;;  %v2183_v43 = vshll.u32 %v5982_v7, 16  ;;  %v6028_v40 = vld [vmem:[#allocation2 + $0xac] sm:$0xf] }
 0x122   : > { %v3531_v45 = vsel %vm3513_vm5, %v3498_v2, %v5760_v19  ;;  %v4401_v29 = vcombine.low %v1997_v10, %v2000_v12  ;;  %v2170_v34 = vor.u32 %v2169_v51, %v2166_v39  ;;  %v2175_v24 = vrot.slane %v2173_v15, 5  ;;  %v6015_v19 = vpop.permute.xlu1 %2887  ;;  %v803_v12 = vld [vmem:[#allocation2 + $0xb4] sm:$0xf] }
 0x123   : > { %v2356_v36 = vshrl.u32 %v5990_v32, 16  ;;  %v2185_v49 = vrot.slane %v2183_v43, 5  ;;  %v3550_v26 = vsel %vm3546_vm8, %v3517_v47, %v5796_v0  ;;  %v497_v48 = vrot.slane %v492_v46, 4 }
 0x124   : > { %v618_v30 = vshrl.u32 %v372_v41, 16  ;;  %v2171_v8 = vrot.slane %v2170_v34, 4  ;;  %v2180_v18 = vor.u32 %v2179_v25, %v2175_v24  ;;  %v621_v56 = vshll.u32 %v372_v41, 16  ;;  %4503 = vmatmul.mubr.msk.bf16.vlgmr.msra.gmra.mxu0 %vm3599_vm9, %v3550_v26 }
 0x125   : > { %v626_v21 = vshrl.u32 %v373_v55, 16  ;;  %3051 = vrot.lane.b32.xlu1 %v4400_v62, %s4670_s26  ;;  %v752_v2 = vsel %vm4876_vm13, %v497_v48, %v751_v16  ;;  %v629_v6 = vshll.u32 %v373_v55, 16  ;;  %v3564_v0 = vsel %vm3546_vm8, %v3531_v45, %v5822_v44 }
 0x126   : > { %v6018_v22 = vld [vmem:[#allocation2 + $0x54] sm:$0xf]  ;;  %v620_v37 = vrot.slane %v618_v30, 7  ;;  %v2181_v59 = vrot.slane %v2180_v18, 4  ;;  %v2359_v3 = vshll.u32 %v5990_v32, 16  ;;  %4518 = vmatprep.mubr.msk.bf16.mxu1 %vm3599_vm9, %v3564_v0  ;;  %v2176_v52 = vsel %vm4804_vm11, %v2171_v8, %v2175_v24 }
 0x127   : > { %v6024_v46 = vpop.permute.xlu0 %2953  ;;  %v2188_v58 = vshrl.u32 %v6018_v22, 16  ;;  %v2191_v27 = vshll.u32 %v6018_v22, 16  ;;  %753 = vst [vmem:[#allocation2 + $0x5c] sm:$0x1] %v752_v2  ;;  %v6036_v39 = vrot.slane %v626_v21, 7  ;;  %v4416_v47 = vcombine.low %v5990_v32, %v6028_v40 }
 0x128   : > { %v6032_v20 = vld [vmem:[#allocation2 + $0x58] sm:$0xf]  ;;  %v623_v44 = vor.u32 %v621_v56, %v620_v37  ;;  %v624_v10 = vrot.slane %v620_v37, 4  ;;  %v2186_v25 = vsel %vm4804_vm11, %v2181_v59, %v2185_v49  ;;  %v2369_v34 = vshrl.u32 %v6028_v40, 16  ;;  %v6052_v49 = vpop.permute.xlu1 %2889  ;;  %v6065_v2 = vld [vmem:[#allocation2 + $0xb0] sm:$0x1] }
 0x129   : > { %v2201_v51 = vshrl.u32 %v6032_v20, 16  ;;  %v4409_v15 = vcombine.low %v6018_v22, %v6032_v20  ;;  %v2190_v41 = vrot.slane %v2188_v58, 4  ;;  %3053 = vrot.lane.b32.xlu1 %v4401_v29, %s4670_s26  ;;  %v2193_v62 = vrot.slane %v2191_v27, 5 }
 0x12a   : > { %v2197_v45 = vshll.u32 %v6032_v20, 16  ;;  %v631_v43 = vor.u32 %v629_v6, %v6036_v39  ;;  %v4424_v55 = vcombine.low %v2176_v52, %v2186_v25  ;;  %v804_v16 = vsel %vm4798_vm10, %v623_v44, %v803_v12 }
 0x12b   : > { %3117 = vrot.lane.b32.xlu0 %v4409_v15, %s4672_s28  ;;  %v2203_v24 = vrot.slane %v2201_v51, 4  ;;  %v6054_v29 = vpop.permute.xlu0 %3031  ;;  %v2194_v26 = vor.u32 %v2193_v62, %v2190_v41  ;;  %805 = vst [vmem:[#allocation2 + $0xb4] sm:$0xf] %v804_v16  ;;  %v4296_v8 = vrot.slane %v5915_v9, 9  ;;  %v3500_v18 = vsel %vm3480_vm4, %v5926_v11, %v5737_v17 }
 0x12c   : > { %v2199_v48 = vrot.slane %v2197_v45, 5  ;;  %v632_v30 = vsel %vm4813_vm12, %v624_v10, %v631_v43  ;;  %v2529_v56 = vrot.slane %v5917_v23, 5  ;;  %v2532_v21 = vrot.slane %v5982_v7, 5  ;;  %v6077_v10 = vld [vmem:[#allocation2 + $0x48] sm:$0xf]  ;;  %v6084_v25 = vpop.permute.xlu1 %2967 }
 0x12d   : > { %806 = vst.msk [vmem:[#allocation2 + $0xb8] sm:$0xf] %vm288_vm0, %v632_v30  ;;  %v2358_v37 = vrot.slane %v2356_v36, 4  ;;  %3131 = vrot.lane.b32.xlu1 %v4416_v47, %s4672_s28  ;;  %v2195_v0 = vrot.slane %v2194_v26, 4  ;;  %v2361_v9 = vrot.slane %v2359_v3, 5  ;;  %v2365_v27 = vshll.u32 %v6028_v40, 16 }
 0x12e   : > { %v6068_v6 = vld [vmem:[#allocation2 + $0x5c] sm:$0x1]  ;;  %v2204_v58 = vor.u32 %v2203_v24, %v2199_v48  ;;  %v2530_v23 = vsel %vm4784_vm7, %v4296_v8, %v2529_v56  ;;  %v2531_v11 = vrot.slane %v2529_v56, 4  ;;  %v2371_v7 = vrot.slane %v2369_v34, 4  ;;  %v6090_v43 = vld [vmem:[#allocation2 + $0x4c] sm:$0xf] }
 0x12f   : > { %3195 = vrot.lane.b32.xlu0 %v4424_v55, %s4673_s29  ;;  %v2207_v17 = vshll.u32 %v6068_v6, 16  ;;  %v3533_v36 = vsel %vm3513_vm5, %v3500_v18, %v5808_v4  ;;  %v2362_v52 = vor.u32 %v2361_v9, %v2358_v37  ;;  %v2367_v44 = vrot.slane %v2365_v27, 5  ;;  %v6086_v41 = vpop.permute.xlu0 %3033  ;;  %v6092_v55 = vld [vmem:[#allocation2 + $0x50] sm:$0x1] }
 0x130   : > { %v2205_v59 = vrot.slane %v2204_v58, 4  ;;  %v2200_v3 = vsel %vm4804_vm11, %v2195_v0, %v2199_v48  ;;  %v2533_v51 = vsel %vm4784_vm7, %v2531_v11, %v2532_v21  ;;  %v2375_v15 = vshll.u32 %v6065_v2, 16  ;;  %v807_v11 = vld [vmem:[#allocation2 + $0xbc] sm:$0x1] }
 0x131   : > { %v2209_v12 = vrot.slane %v2207_v17, 5  ;;  %v4440_v47 = vcombine.low %v2530_v23, %v2533_v51  ;;  %v2363_v4 = vrot.slane %v2362_v52, 4  ;;  %v2372_v62 = vor.u32 %v2371_v7, %v2367_v44  ;;  %v4618_v7 = vld [vmem:[#allocation2 + $0x18] sm:$0xf] }
 0x132   : > { %v3566_v45 = vsel %vm3546_vm8, %v3533_v36, %v5876_v28  ;;  %v6096_v24 = vld [vmem:[#allocation2 + $0xb4] sm:$0xf]  ;;  %v2377_v16 = vrot.slane %v2375_v15, 5  ;;  %v1017_v26 = vshrl.u32 %v6077_v10, 16  ;;  %v1020_v48 = vshll.u32 %v6077_v10, 16 }
 0x133   : > { %v2210_v34 = vsel %vm4804_vm11, %v2205_v59, %v2209_v12  ;;  %4519 = vmatmul.mubr.msk.bf16.vlgmr.msra.gmra.mxu1 %vm3599_vm9, %v3566_v45  ;;  %v2380_v28 = vshrl.u32 %v6096_v24, 16  ;;  %v2383_v18 = vshll.u32 %v6096_v24, 16  ;;  %v2368_v56 = vsel %vm4804_vm11, %v2363_v4, %v2367_v44  ;;  %v4619_v36 = vld [vmem:[#allocation2 + $0x1c] sm:$0xf]  ;;  %v6120_v51 = vpop.permute.xlu0 %3111 }
 0x134   : > { %v4425_v30 = vcombine.low %v2200_v3, %v2210_v34  ;;  %v6101_v8 = vld [vmem:[#allocation2 + $0xb8] sm:$0xf]  ;;  %v2373_v0 = vrot.slane %v2372_v62, 4  ;;  %v1019_v58 = vrot.slane %v1017_v26, 4  ;;  %v1022_v9 = vrot.slane %v1020_v48, 5  ;;  %v6118_v12 = vpop.permute.xlu1 %2969 }
 0x135   : > { %v2393_v21 = vshrl.u32 %v6101_v8, 16  ;;  %v4417_v37 = vcombine.low %v6096_v24, %v6101_v8  ;;  %v1026_v27 = vshll.u32 %v6090_v43, 16  ;;  %v1030_v17 = vshrl.u32 %v6090_v43, 16  ;;  %v4620_v34 = vld [vmem:[#allocation2 + $0x24] sm:$0xf] }
 0x136   : > { %3197 = vrot.lane.b32.xlu0 %v4425_v30, %s4673_s29  ;;  %v1036_v23 = vshll.u32 %v6092_v55, 16  ;;  %v4310_v59 = vcombine.low %v4618_v7, %v4619_v36  ;;  %v2378_v52 = vsel %vm4804_vm11, %v2373_v0, %v2377_v16  ;;  %v633_v44 = vrot.slane %v6036_v39, 4  ;;  %v4621_v26 = vld [vmem:[#allocation2 + $0x28] sm:$0xf] }
 0x137   : > { %3133 = vrot.lane.b32.xlu1 %v4417_v37, %s4672_s28  ;;  %v2382_v3 = vrot.slane %v2380_v28, 4  ;;  %v4432_v15 = vcombine.low %v2368_v56, %v2378_v52  ;;  %v1023_v4 = vor.u32 %v1022_v9, %v1019_v58  ;;  %v1028_v62 = vrot.slane %v1026_v27, 5  ;;  %v4622_v56 = vld [vmem:[#allocation2 + $0x78] sm:$0xf]  ;;  %v4623_v58 = vld [vmem:[#allocation2 + $0x7c] sm:$0xf] }
 0x138   : > { %v1032_v45 = vrot.slane %v1030_v17, 4  ;;  %v4311_v48 = vcombine.low %v4620_v34, %v4621_v26  ;;  %v808_v30 = vsel %vm4876_vm13, %v633_v44, %v807_v11  ;;  %v2385_v37 = vrot.slane %v2383_v18, 5  ;;  %v6155_v26 = vld [vmem:[#allocation2 + $0x58] sm:$0xf] }
 0x139   : > { %v2389_v16 = vshll.u32 %v6101_v8, 16  ;;  %v1024_v39 = vrot.slane %v1023_v4, 4  ;;  %v1038_v0 = vrot.slane %v1036_v23, 5  ;;  %809 = vst [vmem:[#allocation2 + $0xbc] sm:$0x1] %v808_v30  ;;  %v2395_v7 = vrot.slane %v2393_v21, 4 }
 0x13a   : > { %3275 = vrot.lane.b32.xlu0 %v4440_v47, %s4674_s30  ;;  %v1033_v28 = vor.u32 %v1032_v45, %v1028_v62  ;;  %v4318_v9 = vcombine.low %v4622_v56, %v4623_v58  ;;  %v2386_v27 = vor.u32 %v2385_v37, %v2382_v3  ;;  %v4297_v36 = vrot.slane %v6018_v22, 9  ;;  %v6144_v45 = vld [vmem:[#allocation2 + $0x54] sm:$0xf]  ;;  %v6165_v37 = vld [vmem:[#allocation2 + $0x5c] sm:$0x1] }
 0x13b   : > { %3211 = vrot.lane.b32.xlu1 %v4432_v15, %s4673_s29  ;;  %v2391_v17 = vrot.slane %v2389_v16, 5  ;;  %v1029_v18 = vsel %vm4804_vm11, %v1024_v39, %v1028_v62  ;;  %v2536_v47 = vrot.slane %v6032_v20, 5  ;;  %v2539_v52 = vrot.slane %v6068_v6, 5  ;;  %v6135_v15 = vpop.permute.xlu1 %3047 }
 0x13c   : > { %v1034_v11 = vrot.slane %v1033_v28, 4  ;;  %v3308_v21 = vsel %vm3299_vm14, %v4310_v59, %v5756_v14  ;;  %v2387_v23 = vrot.slane %v2386_v27, 4  ;;  %v4304_v4 = vrot.slane %v5990_v32, 9  ;;  %v6137_v3 = vpop.permute.xlu0 %3113 }
 0x13d   : > { %v2396_v44 = vor.u32 %v2395_v7, %v2391_v17  ;;  %v2537_v62 = vsel %vm4784_vm7, %v4297_v36, %v2536_v47  ;;  %v2538_v20 = vrot.slane %v2536_v47, 4  ;;  %v2585_v6 = vrot.slane %v6028_v40, 5 }
 0x13e   : > { %v1039_v22 = vsel %vm4804_vm11, %v1034_v11, %v1038_v0  ;;  %v6148_v14 = vsel %vm3299_vm14, %v4311_v48, %v5833_v53  ;;  %v6152_v32 = vsel %vm3299_vm14, %v4318_v9, %v5842_v60  ;;  %v2588_v34 = vrot.slane %v6065_v2, 5  ;;  %v6167_v60 = vld [vmem:[#allocation2 + $0xa8] sm:$0xf]  ;;  %v6179_v9 = vld [vmem:[#allocation2 + $0xac] sm:$0xf] }
 0x13f   : > { %v4330_v59 = vcombine.low %v1029_v18, %v1039_v22  ;;  %v6159_v30 = vsel %vm3348_vm15, %v3308_v21, %v5857_v31  ;;  %v2392_v40 = vsel %vm4804_vm11, %v2387_v23, %v2391_v17  ;;  %v2540_v53 = vsel %vm4784_vm7, %v2538_v20, %v2539_v52  ;;  %v6184_v11 = vpop.permute.xlu1 %3049 }
 0x140   : > { %v2587_v48 = vrot.slane %v2585_v6, 4  ;;  %v6170_v2 = vld [vmem:[#allocation2 + $0xbc] sm:$0x1]  ;;  %v2397_v16 = vrot.slane %v2396_v44, 4  ;;  %v4441_v39 = vcombine.low %v2537_v62, %v2540_v53  ;;  %v1041_v31 = vshrl.u32 %v6144_v45, 16  ;;  %6905 = vst [vmem:[#allocation3_spill] sm:$0xff] %v6184_v11  ;;  %v6186_v47 = vpop.permute.xlu0 %3191 }
 0x141   : > { %2719 = vrot.lane.b32.xlu0 %v4330_v59, %s4668_s24  ;;  %v1044_v28 = vshll.u32 %v6144_v45, 16  ;;  %v2399_v0 = vshll.u32 %v6170_v2, 16  ;;  %v2586_v7 = vsel %vm4784_vm7, %v4304_v4, %v2585_v6  ;;  %v1050_v56 = vshll.u32 %v6155_v26, 16  ;;  %6906 = vst [vmem:[#allocation4_spill] sm:$0xff] %v6186_v47  ;;  %v6190_v62 = vld [vmem:[#allocation2 + $0xb0] sm:$0x1] }
 0x142   : > { %v1054_v58 = vshrl.u32 %v6155_v26, 16  ;;  %v2589_v27 = vsel %vm4784_vm7, %v2587_v48, %v2588_v34  ;;  %v1043_v17 = vrot.slane %v1041_v31, 4  ;;  %v1060_v18 = vshll.u32 %v6165_v37, 16  ;;  %v4625_v47 = vld [vmem:[#allocation2 + $0x88] sm:$0xf] }
 0x143   : > { %v1046_v36 = vrot.slane %v1044_v28, 5  ;;  %v2401_v52 = vrot.slane %v2399_v0, 5  ;;  %v1052_v21 = vrot.slane %v1050_v56, 5  ;;  %v1209_v44 = vshrl.u32 %v6167_v60, 16 }
 0x144   : > { %v1056_v23 = vrot.slane %v1054_v58, 4  ;;  %v1062_v22 = vrot.slane %v1060_v18, 5  ;;  %v1212_v20 = vshll.u32 %v6167_v60, 16  ;;  %v1218_v6 = vshll.u32 %v6179_v9, 16  ;;  %v4624_v18 = vld [vmem:[#allocation2 + $0x84] sm:$0xf] }
 0x145   : > { %3277 = vrot.lane.b32.xlu0 %v4441_v39, %s4674_s30  ;;  %v1047_v4 = vor.u32 %v1046_v36, %v1043_v17  ;;  %v2402_v59 = vsel %vm4804_vm11, %v2397_v16, %v2401_v52  ;;  %v1211_v53 = vrot.slane %v1209_v44, 4  ;;  %v1222_v48 = vshrl.u32 %v6179_v9, 16 }
 0x146   : > { %v1057_v34 = vor.u32 %v1056_v23, %v1052_v21  ;;  %v4433_v31 = vcombine.low %v2392_v40, %v2402_v59  ;;  %v1214_v0 = vrot.slane %v1212_v20, 5  ;;  %v1220_v56 = vrot.slane %v1218_v6, 5  ;;  %v6202_v40 = vpop.permute.xlu1 %3127  ;;  %v6204_v44 = vpop.permute.xlu0 %3193 }
 0x147   : > { %v1048_v28 = vrot.slane %v1047_v4, 4  ;;  %v1354_v39 = vrot.slane %v6092_v55, 5  ;;  %v1224_v17 = vrot.slane %v1222_v48, 4  ;;  %v1228_v36 = vshll.u32 %v6190_v62, 16 }
 0x148   : > { %v1058_v58 = vrot.slane %v1057_v34, 4  ;;  %3213 = vrot.lane.b32.xlu1 %v4433_v31, %s4673_s29  ;;  %v4319_v11 = vcombine.low %v4624_v18, %v4625_v47  ;;  %v4448_v16 = vcombine.low %v2586_v7, %v2589_v27  ;;  %v1215_v23 = vor.u32 %v1214_v0, %v1211_v53 }
 0x149   : > { %v1053_v52 = vsel %vm4804_vm11, %v1048_v28, %v1052_v21  ;;  %v1225_v4 = vor.u32 %v1224_v17, %v1220_v56  ;;  %v1230_v20 = vrot.slane %v1228_v36, 5  ;;  %v4170_v6 = vrot.slane %v6077_v10, 9 }
 0x14a   : > { %v1063_v55 = vsel %vm4804_vm11, %v1058_v58, %v1062_v22  ;;  %v1216_v34 = vrot.slane %v1215_v23, 4  ;;  %v1351_v47 = vrot.slane %v6090_v43, 5  ;;  %v4305_v7 = vrot.slane %v6096_v24, 9  ;;  %v6237_v58 = vld [vmem:[#allocation2 + $0xbc] sm:$0x1]  ;;  %v6239_v17 = vpop.permute.xlu1 %3129  ;;  %v6241_v36 = vpop.permute.xlu0 %3271 }
 0x14b   : > { %v4331_v59 = vcombine.low %v1053_v52, %v1063_v55  ;;  %v3356_v27 = vsel %vm3348_vm15, %v6148_v14, %v5886_v5  ;;  %v1226_v21 = vrot.slane %v1225_v4, 4  ;;  %v2592_v53 = vrot.slane %v6101_v8, 5  ;;  %v6224_v5 = vld [vmem:[#allocation2 + $0xb4] sm:$0xf] }
 0x14c   : > { %v2595_v48 = vrot.slane %v6170_v2, 5  ;;  %v3335_v22 = vsel %vm3299_vm14, %v4319_v11, %v5909_v50  ;;  %3291 = vrot.lane.b32.xlu1 %v4448_v16, %s4674_s30  ;;  %v1221_v10 = vsel %vm4804_vm11, %v1216_v34, %v1220_v56  ;;  %v1352_v43 = vsel %vm4784_vm7, %v4170_v6, %v1351_v47  ;;  %v6231_v11 = vld [vmem:[#allocation2 + $0xb8] sm:$0xf]  ;;  %v6251_v55 = vld [vmem:[#allocation2 + $0x54] sm:$0xf] }
 0x14d   : > { %2721 = vrot.lane.b32.xlu0 %v4331_v59, %s4668_s24  ;;  %v1353_v24 = vrot.slane %v1351_v47, 4  ;;  %v1231_v8 = vsel %vm4804_vm11, %v1226_v21, %v1230_v20  ;;  %v2593_v14 = vsel %vm4784_vm7, %v4305_v7, %v2592_v53  ;;  %v2594_v50 = vrot.slane %v2592_v53, 4  ;;  %v6256_v34 = vld [vmem:[#allocation2 + $0x58] sm:$0xf] }
 0x14e   : > { %v4171_v2 = vrot.slane %v6144_v45, 9  ;;  %v4338_v31 = vcombine.low %v1221_v10, %v1231_v8  ;;  %v1358_v0 = vrot.slane %v6155_v26, 5  ;;  %v1361_v56 = vrot.slane %v6165_v37, 5 }
 0x14f   : > { %v1355_v28 = vsel %vm4784_vm7, %v1353_v24, %v1354_v39  ;;  %v2596_v45 = vsel %vm4784_vm7, %v2594_v50, %v2595_v48  ;;  %v1233_v16 = vshrl.u32 %v6224_v5, 16  ;;  %v1236_v52 = vshll.u32 %v6224_v5, 16 }
 0x150   : > { %v4346_v18 = vcombine.low %v1352_v43, %v1355_v28  ;;  %2735 = vrot.lane.b32.xlu1 %v4338_v31, %s4668_s24  ;;  %v4449_v39 = vcombine.low %v2593_v14, %v2596_v45  ;;  %v1359_v26 = vsel %vm4784_vm7, %v4171_v2, %v1358_v0  ;;  %v1360_v37 = vrot.slane %v1358_v0, 4  ;;  %v6291_v0 = vld [vmem:[#allocation2 + $0x64] sm:$0xf] }
 0x151   : > { %v1242_v23 = vshll.u32 %v6231_v11, 16  ;;  %v1235_v4 = vrot.slane %v1233_v16, 4  ;;  %v1238_v20 = vrot.slane %v1236_v52, 5  ;;  %v1246_v6 = vshrl.u32 %v6231_v11, 16 }
 0x152   : > { %2799 = vrot.lane.b32.xlu0 %v4346_v18, %s4667_s23  ;;  %v1252_v59 = vshll.u32 %v6237_v58, 16  ;;  %v3387_v47 = vsel %vm3381_vm1, %v6159_v30, %v5940_v61  ;;  %v3370_v7 = vsel %vm3348_vm15, %v6152_v32, %v5955_v57  ;;  %v1362_v21 = vsel %vm4784_vm7, %v1360_v37, %v1361_v56  ;;  %v6274_v32 = vpop.permute.xlu1 %3207  ;;  %v6276_v30 = vpop.permute.xlu0 %2715 }
 0x153   : > { %v1244_v53 = vrot.slane %v1242_v23, 5  ;;  %v1410_v48 = vrot.slane %v6190_v62, 5  ;;  %v4347_v10 = vcombine.low %v1359_v26, %v1362_v21  ;;  %v1239_v43 = vor.u32 %v1238_v20, %v1235_v4  ;;  %v6309_v23 = vld [vmem:[#allocation2 + $0x5c] sm:$0x1] }
 0x154   : > { %v1248_v24 = vrot.slane %v1246_v6, 4  ;;  %v3389_v8 = vsel %vm3381_vm1, %v3356_v27, %v5964_v63  ;;  %v3372_v14 = vsel %vm3348_vm15, %v3335_v22, %v5984_v13  ;;  %3293 = vrot.lane.b32.xlu1 %v4449_v39, %s4674_s30  ;;  %v1254_v61 = vrot.slane %v1252_v59, 5  ;;  %v6281_v27 = vld [vmem:[#allocation2 + $0x60] sm:$0xf] }
 0x155   : > { %v4362_v57 = vcombine.low %v6251_v55, %v6256_v34  ;;  %v1240_v62 = vrot.slane %v1239_v43, 4  ;;  %v4178_v2 = vrot.slane %v6167_v60, 9  ;;  %v1407_v63 = vrot.slane %v6179_v9, 5 }
 0x156   : > { %2801 = vrot.lane.b32.xlu0 %v4347_v10, %s4667_s23  ;;  %v1249_v50 = vor.u32 %v1248_v24, %v1244_v53  ;;  %v3420_v13 = vsel %vm3414_vm2, %v3387_v47, %v5992_v38  ;;  %v6287_v22 = vsel %vm3381_vm1, %v3370_v7, %v6015_v19  ;;  %v1616_v31 = vshrl.u32 %v6251_v55, 16  ;;  %v6315_v59 = vpop.permute.xlu0 %3273 }
 0x157   : > { %v1619_v28 = vshll.u32 %v6251_v55, 16  ;;  %v1245_v60 = vsel %vm4804_vm11, %v1240_v62, %v1244_v53  ;;  %v1629_v9 = vshrl.u32 %v6256_v34, 16  ;;  %v1409_v18 = vrot.slane %v1407_v63, 4 }
 0x158   : > { %v1250_v56 = vrot.slane %v1249_v50, 4  ;;  %v1408_v38 = vsel %vm4784_vm7, %v4178_v2, %v1407_v63  ;;  %v1640_v45 = vshrl.u32 %v6281_v27, 16  ;;  %v4179_v19 = vrot.slane %v6224_v5, 9  ;;  %v6335_v2 = vld [vmem:[#allocation2 + $0x68] sm:$0x1] }
 0x159   : > { %v1414_v16 = vrot.slane %v6231_v11, 5  ;;  %v1411_v39 = vsel %vm4784_vm7, %v1409_v18, %v1410_v48  ;;  %v4363_v26 = vcombine.low %v6281_v27, %v6291_v0  ;;  %v1417_v37 = vrot.slane %v6237_v58, 5  ;;  %v6313_v6 = vpop.permute.xlu1 %3209  ;;  %v6320_v58 = vld [vmem:[#allocation2 + $0xb4] sm:$0xf] }
 0x15a   : > { %v1255_v52 = vsel %vm4804_vm11, %v1250_v56, %v1254_v61  ;;  %2879 = vrot.lane.b32.xlu0 %v4362_v57, %s4669_s25  ;;  %v1643_v5 = vshll.u32 %v6281_v27, 16  ;;  %v1653_v11 = vshrl.u32 %v6291_v0, 16  ;;  %v1618_v7 = vrot.slane %v1616_v31, 4 }
 0x15b   : > { %v4339_v4 = vcombine.low %v1245_v60, %v1255_v52  ;;  %v1416_v20 = vrot.slane %v1414_v16, 4  ;;  %v1415_v47 = vsel %vm4784_vm7, %v4179_v19, %v1414_v16  ;;  %v1621_v21 = vrot.slane %v1619_v28, 5  ;;  %v375_v60 = vld [vmem:[%s4782_s22 + $0x7c] sm:$0xf]  ;;  %v6352_v52 = vpop.permute.xlu0 %2717 }
 0x15c   : > { %v1625_v53 = vshll.u32 %v6256_v34, 16  ;;  %v4354_v48 = vcombine.low %v1408_v38, %v1411_v39  ;;  %v1631_v43 = vrot.slane %v1629_v9, 4  ;;  %v1635_v24 = vshll.u32 %v6309_v23, 16  ;;  %v6345_v9 = vld [vmem:[#allocation2 + $0xb8] sm:$0xf] }
 0x15d   : > { %2737 = vrot.lane.b32.xlu1 %v4339_v4, %s4668_s24  ;;  %v1418_v10 = vsel %vm4784_vm7, %v1416_v20, %v1417_v37  ;;  %v6328_v61 = vsel %vm3414_vm2, %v3389_v8, %v6024_v46  ;;  %v6332_v57 = vsel %vm3381_vm1, %v3372_v14, %v6052_v49  ;;  %v1622_v62 = vor.u32 %v1621_v21, %v1618_v7  ;;  %v374_v8 = vld [vmem:[%s4782_s22 + $0x78] sm:$0xf]  ;;  %v6350_v16 = vpop.permute.xlu1 %3287  ;;  %s6715_s22 = scalar_lea.vmem %s6890_s4, %s4476_s19 }
 0x15e   : > { %2881 = vrot.lane.b32.xlu0 %v4363_v26, %s4669_s25  ;;  %v1627_v50 = vrot.slane %v1625_v53, 5  ;;  %v6339_v63 = vsel %vm3447_vm3, %v3420_v13, %v6054_v29  ;;  %v4355_v31 = vcombine.low %v1415_v47, %v1418_v10  ;;  %v1808_v28 = vshrl.u32 %v6320_v58, 16 }
 0x15f   : > { %v1811_v46 = vshll.u32 %v6320_v58, 16  ;;  %v1623_v56 = vrot.slane %v1622_v62, 4  ;;  %v1637_v14 = vrot.slane %v1635_v24, 5  ;;  %v1642_v18 = vrot.slane %v1640_v45, 4  ;;  %v810_v62 = vld [vmem:[#allocation2 + $0xc0] sm:$0xf] }
 0x160   : > { %v1632_v49 = vor.u32 %v1631_v43, %v1627_v50  ;;  %v1645_v38 = vrot.slane %v1643_v5, 5  ;;  %v1649_v19 = vshll.u32 %v6291_v0, 16  ;;  %v1655_v29 = vrot.slane %v1653_v11, 4 }
 0x161   : > { %2815 = vrot.lane.b32.xlu1 %v4354_v48, %s4667_s23  ;;  %v1659_v13 = vshll.u32 %v6335_v2, 16  ;;  %v1628_v39 = vsel %vm4804_vm11, %v1623_v56, %v1627_v50  ;;  %v635_v37 = vshrl.u32 %v374_v8, 16  ;;  %v638_v4 = vshll.u32 %v374_v8, 16 }
 0x162   : > { %v1633_v26 = vrot.slane %v1632_v49, 4  ;;  %v4370_v45 = vcombine.low %v6320_v58, %v6345_v9  ;;  %v1646_v20 = vor.u32 %v1645_v38, %v1642_v18  ;;  %v1651_v5 = vrot.slane %v1649_v19, 5  ;;  %v6367_v38 = vpop.permute.xlu1 %2731  ;;  %v6369_v19 = vpop.permute.xlu0 %2795 }
 0x163   : > { %v643_v47 = vshrl.u32 %v375_v60, 16  ;;  %v1661_v7 = vrot.slane %v1659_v13, 5  ;;  %v637_v21 = vrot.slane %v635_v37, 7  ;;  %v646_v53 = vshll.u32 %v375_v60, 16 }
 0x164   : > { %v1638_v11 = vsel %vm4804_vm11, %v1633_v26, %v1637_v14  ;;  %v1647_v10 = vrot.slane %v1646_v20, 4  ;;  %v1656_v43 = vor.u32 %v1655_v29, %v1651_v5  ;;  %v1821_v50 = vshrl.u32 %v6345_v9, 16 }
 0x165   : > { %2817 = vrot.lane.b32.xlu1 %v4355_v31, %s4667_s23  ;;  %v4378_v48 = vcombine.low %v1628_v39, %v1638_v11  ;;  %v645_v24 = vrot.slane %v643_v47, 7  ;;  %v640_v8 = vor.u32 %v638_v4, %v637_v21  ;;  %v641_v56 = vrot.slane %v637_v21, 4  ;;  %v6374_v39 = vld [vmem:[#allocation2 + $0xbc] sm:$0x1] }
 0x166   : > { %v4234_v49 = vrot.slane %v6251_v55, 9  ;;  %v1652_v14 = vsel %vm4804_vm11, %v1647_v10, %v1651_v5  ;;  %v1657_v18 = vrot.slane %v1656_v43, 4  ;;  %v1947_v31 = vrot.slane %v6256_v34, 5  ;;  %v6401_v10 = vpop.permute.xlu1 %3289  ;;  %v6403_v43 = vpop.permute.xlu0 %2797 }
 0x167   : > { %2959 = vrot.lane.b32.xlu0 %v4378_v48, %s4671_s27  ;;  %v648_v60 = vor.u32 %v646_v53, %v645_v24  ;;  %v811_v29 = vsel %vm4798_vm10, %v640_v8, %v810_v62  ;;  %v1950_v13 = vrot.slane %v6309_v23, 5  ;;  %v1810_v55 = vrot.slane %v1808_v28, 4  ;;  %v6416_v8 = vld [vmem:[#allocation2 + $0x60] sm:$0xf] }
 0x168   : > { %v1813_v26 = vrot.slane %v1811_v46, 5  ;;  %v1662_v37 = vsel %vm4804_vm11, %v1657_v18, %v1661_v7  ;;  %812 = vst [vmem:[#allocation2 + $0xc0] sm:$0xf] %v811_v29  ;;  %v1948_v4 = vsel %vm4784_vm7, %v4234_v49, %v1947_v31  ;;  %v1949_v33 = vrot.slane %v1947_v31, 4  ;;  %v6908_v49 = vld [vmem:[#allocation4_spill] sm:$0xff] }
 0x169   : > { %2895 = vrot.lane.b32.xlu1 %v4370_v45, %s4669_s25  ;;  %v649_v34 = vsel %vm4813_vm12, %v641_v56, %v648_v60  ;;  %v4379_v20 = vcombine.low %v1652_v14, %v1662_v37  ;;  %v1817_v28 = vshll.u32 %v6345_v9, 16  ;;  %v1823_v46 = vrot.slane %v1821_v50, 4  ;;  %v6427_v18 = vld [vmem:[#allocation2 + $0x64] sm:$0xf] }
 0x16a   : > { %813 = vst.msk [vmem:[#allocation2 + $0xc4] sm:$0xf] %vm288_vm0, %v649_v34  ;;  %v1814_v23 = vor.u32 %v1813_v26, %v1810_v55  ;;  %v3436_v45 = vsel %vm3414_vm2, %v6287_v22, %v6084_v25  ;;  %v3455_v42 = vsel %vm3447_vm3, %v6328_v61, %v6086_v41  ;;  %v1951_v5 = vsel %vm4784_vm7, %v1949_v33, %v1950_v13  ;;  %v814_v25 = vld [vmem:[#allocation2 + $0xc8] sm:$0x1] }
 0x16b   : > { %v1827_v47 = vshll.u32 %v6374_v39, 16  ;;  %v3438_v11 = vsel %vm3414_vm2, %v6332_v57, %v6118_v12  ;;  %2961 = vrot.lane.b32.xlu0 %v4379_v20, %s4671_s27  ;;  %v4394_v7 = vcombine.low %v1948_v4, %v1951_v5  ;;  %v1819_v21 = vrot.slane %v1817_v28, 5  ;;  %v6447_v28 = vpop.permute.xlu0 %2875 }
 0x16c   : > { %v4235_v53 = vrot.slane %v6281_v27, 9  ;;  %v1815_v22 = vrot.slane %v1814_v23, 4  ;;  %v1954_v48 = vrot.slane %v6291_v0, 5  ;;  %v1957_v41 = vrot.slane %v6335_v2, 5  ;;  %v6445_v23 = vpop.permute.xlu1 %2733 }
 0x16d   : > { %v650_v61 = vrot.slane %v645_v24, 4  ;;  %v3486_v12 = vsel %vm3480_vm4, %v6339_v63, %v6120_v51  ;;  %v3469_v57 = vsel %vm3447_vm3, %v3436_v45, %v6135_v15  ;;  %v1824_v62 = vor.u32 %v1823_v46, %v1819_v21  ;;  %v6907_v51 = vld [vmem:[#allocation3_spill] sm:$0xff] }
 0x16e   : > { %v1829_v27 = vrot.slane %v1827_v47, 5  ;;  %v3488_v50 = vsel %vm3480_vm4, %v3455_v42, %v6137_v3  ;;  %v1955_v0 = vsel %vm4784_vm7, %v4235_v53, %v1954_v48  ;;  %v1956_v2 = vrot.slane %v1954_v48, 4  ;;  %v6457_v53 = vld [vmem:[#allocation2 + $0x6c] sm:$0xf] }
 0x16f   : > { %v815_v24 = vsel %vm4876_vm13, %v650_v61, %v814_v25  ;;  %v6418_v56 = vld [vmem:[#allocation2 + $0xc0] sm:$0xf]  ;;  %v3471_v63 = vsel %vm3447_vm3, %v3438_v11, %v6907_v51  ;;  %3039 = vrot.lane.b32.xlu0 %v4394_v7, %s4670_s26  ;;  %v1825_v15 = vrot.slane %v1824_v62, 4  ;;  %v3519_v3 = vsel %vm3513_vm5, %v3486_v12, %v6908_v49  ;;  %v6459_v25 = vld [vmem:[#allocation2 + $0x70] sm:$0xf] }
 0x170   : > { %v3502_v14 = vsel %vm3480_vm4, %v3469_v57, %v6202_v40  ;;  %816 = vst [vmem:[#allocation2 + $0xc8] sm:$0x1] %v815_v24  ;;  %v1832_v60 = vshrl.u32 %v6418_v56, 16  ;;  %v1835_v31 = vshll.u32 %v6418_v56, 16  ;;  %v1820_v29 = vsel %vm4804_vm11, %v1815_v22, %v1819_v21  ;;  %v6479_v24 = vld [vmem:[#allocation2 + $0x68] sm:$0x1]  ;;  %v6481_v51 = vpop.permute.xlu1 %2811 }
 0x171   : > { %v6429_v54 = vld [vmem:[#allocation2 + $0xc4] sm:$0xf]  ;;  %v1958_v13 = vsel %vm4784_vm7, %v1956_v2, %v1957_v41  ;;  %v1830_v26 = vsel %vm4804_vm11, %v1825_v15, %v1829_v27  ;;  %v4410_v20 = vcombine.low %v6416_v8, %v6427_v18  ;;  %v2003_v42 = vrot.slane %v6345_v9, 5 }
 0x172   : > { %v1845_v55 = vshrl.u32 %v6429_v54, 16  ;;  %v4371_v40 = vcombine.low %v6418_v56, %v6429_v54  ;;  %v4395_v37 = vcombine.low %v1955_v0, %v1958_v13  ;;  %v1834_v34 = vrot.slane %v1832_v60, 4 }
 0x173   : > { %v1837_v4 = vrot.slane %v1835_v31, 5  ;;  %v1841_v33 = vshll.u32 %v6429_v54, 16  ;;  %v4386_v46 = vcombine.low %v1820_v29, %v1830_v26  ;;  %v3552_v5 = vsel %vm3546_vm8, %v3519_v3, %v6241_v36 }
 0x174   : > { %2897 = vrot.lane.b32.xlu1 %v4371_v40, %s4669_s25  ;;  %3041 = vrot.lane.b32.xlu0 %v4395_v37, %s4670_s26  ;;  %v1847_v45 = vrot.slane %v1845_v55, 4  ;;  %v3521_v7 = vsel %vm3513_vm5, %v3488_v50, %v6204_v44  ;;  %v4242_v21 = vrot.slane %v6320_v58, 9  ;;  %v3504_v22 = vsel %vm3480_vm4, %v3471_v63, %v6239_v17 }
 0x175   : > { %v1838_v47 = vor.u32 %v1837_v4, %v1834_v34  ;;  %v1843_v11 = vrot.slane %v1841_v33, 5  ;;  %4506 = vmatprep.mubr.msk.bf16.mxu0 %vm3599_vm9, %v3552_v5  ;;  %v2212_v9 = vshrl.u32 %v6416_v8, 16  ;;  %v2215_v36 = vshll.u32 %v6416_v8, 16 }
 0x176   : > { %v2225_v48 = vshrl.u32 %v6427_v18, 16  ;;  %v2005_v12 = vrot.slane %v2003_v42, 4  ;;  %v2006_v58 = vrot.slane %v6374_v39, 5  ;;  %v3535_v17 = vsel %vm3513_vm5, %v3502_v14, %v6274_v32 }
 0x177   : > { %v4227_v41 = vld [vmem:[#allocation2 + $0xc8] sm:$0x1]  ;;  %v1839_v61 = vrot.slane %v1838_v47, 4  ;;  %v1848_v44 = vor.u32 %v1847_v45, %v1843_v11  ;;  %v4411_v62 = vcombine.low %v6457_v53, %v6459_v25  ;;  %v2010_v27 = vrot.slane %v6429_v54, 5  ;;  %v6504_v45 = vld [vmem:[#allocation2 + $0x74] sm:$0x1] }
 0x178   : > { %2975 = vrot.lane.b32.xlu1 %v4386_v46, %s4671_s27  ;;  %v1851_v57 = vshll.u32 %v4227_v41, 16  ;;  %3119 = vrot.lane.b32.xlu0 %v4410_v20, %s4672_s28  ;;  %v2004_v0 = vsel %vm4784_vm7, %v4242_v21, %v2003_v42  ;;  %v2236_v2 = vshrl.u32 %v6457_v53, 16  ;;  %v4243_v39 = vrot.slane %v6418_v56, 9  ;;  %v6483_v63 = vpop.permute.xlu0 %2877 }
 0x179   : > { %v1849_v50 = vrot.slane %v1848_v44, 4  ;;  %v1844_v32 = vsel %vm4804_vm11, %v1839_v61, %v1843_v11  ;;  %v2012_v49 = vrot.slane %v2010_v27, 4  ;;  %v2013_v3 = vrot.slane %v4227_v41, 5  ;;  %v6507_v11 = vld [vmem:[#allocation2 + $0xc0] sm:$0xf] }
 0x17a   : > { %v1853_v15 = vrot.slane %v1851_v57, 5  ;;  %v2007_v14 = vsel %vm4784_vm7, %v2005_v12, %v2006_v58  ;;  %v2214_v54 = vrot.slane %v2212_v9, 4  ;;  %v2217_v60 = vrot.slane %v2215_v36, 5  ;;  %v6511_v9 = vpop.permute.xlu1 %2813 }
 0x17b   : > { %v2221_v31 = vshll.u32 %v6427_v18, 16  ;;  %v2239_v29 = vshll.u32 %v6457_v53, 16  ;;  %v2227_v13 = vrot.slane %v2225_v48, 4  ;;  %v2231_v55 = vshll.u32 %v6479_v24, 16  ;;  %v6515_v48 = vld [vmem:[#allocation2 + $0xc4] sm:$0xf] }
 0x17c   : > { %v1854_v56 = vsel %vm4804_vm11, %v1849_v50, %v1853_v15  ;;  %3121 = vrot.lane.b32.xlu0 %v4411_v62, %s4672_s28  ;;  %v2249_v26 = vshrl.u32 %v6459_v25, 16  ;;  %v2218_v37 = vor.u32 %v2217_v60, %v2214_v54  ;;  %v4402_v4 = vcombine.low %v2004_v0, %v2007_v14  ;;  %v6513_v36 = vpop.permute.xlu0 %2955 }
 0x17d   : > { %v4387_v40 = vcombine.low %v1844_v32, %v1854_v56  ;;  %v2223_v34 = vrot.slane %v2221_v31, 5  ;;  %v2011_v33 = vsel %vm4784_vm7, %v4243_v39, %v2010_v27  ;;  %v2014_v20 = vsel %vm4784_vm7, %v2012_v49, %v2013_v3  ;;  %v6535_v3 = vld [vmem:[#allocation2 + $0xd0] sm:$0xf]  ;;  %v6541_v56 = vld [vmem:[#allocation2 + $0xc8] sm:$0x1] }
 0x17e   : > { %v6502_v46 = vsel %vm3513_vm5, %v3504_v22, %v6313_v6  ;;  %v2219_v42 = vrot.slane %v2218_v37, 4  ;;  %v2233_v47 = vrot.slane %v2231_v55, 5  ;;  %v3554_v21 = vsel %vm3546_vm8, %v3521_v7, %v6315_v59 }
 0x17f   : > { %2977 = vrot.lane.b32.xlu1 %v4387_v40, %s4671_s27  ;;  %v2228_v5 = vor.u32 %v2227_v13, %v2223_v34  ;;  %v3568_v6 = vsel %vm3546_vm8, %v3535_v17, %v6350_v16  ;;  %v2238_v22 = vrot.slane %v2236_v2, 4  ;;  %v2241_v41 = vrot.slane %v2239_v29, 5  ;;  %4507 = vmatmul.mubr.msk.bf16.gmra.mxu0 %vm3599_vm9, %v3554_v21  ;;  %v6526_v17 = vld [vmem:[#allocation2 + $0xcc] sm:$0xf]  ;;  %v6543_v29 = vpop.permute.xlu1 %2891 }
 0x180   : > { %v2245_v61 = vshll.u32 %v6459_v25, 16  ;;  %v2224_v44 = vsel %vm4804_vm11, %v2219_v42, %v2223_v34  ;;  %v2251_v59 = vrot.slane %v2249_v26, 4  ;;  %v2255_v7 = vshll.u32 %v6504_v45, 16  ;;  %4522 = vmatprep.mubr.msk.bf16.mxu1 %vm3599_vm9, %v3568_v6 }
 0x181   : > { %v2229_v12 = vrot.slane %v2228_v5, 4  ;;  %v4403_v58 = vcombine.low %v2011_v33, %v2014_v20  ;;  %v2404_v57 = vshrl.u32 %v6507_v11, 16  ;;  %v2242_v62 = vor.u32 %v2241_v41, %v2238_v22 }
 0x182   : > { %v2247_v16 = vrot.slane %v2245_v61, 5  ;;  %v2407_v50 = vshll.u32 %v6507_v11, 16  ;;  %v2417_v0 = vshrl.u32 %v6515_v48, 16  ;;  %v4418_v2 = vcombine.low %v6507_v11, %v6515_v48 }
 0x183   : > { %3055 = vrot.lane.b32.xlu1 %v4402_v4, %s4670_s26  ;;  %v2234_v27 = vsel %vm4804_vm11, %v2229_v12, %v2233_v47  ;;  %v2243_v32 = vrot.slane %v2242_v62, 4  ;;  %v2257_v49 = vrot.slane %v2255_v7, 5  ;;  %v2428_v14 = vshrl.u32 %v6526_v17, 16 }
 0x184   : > { %v4426_v39 = vcombine.low %v2224_v44, %v2234_v27  ;;  %v2252_v15 = vor.u32 %v2251_v59, %v2247_v16  ;;  %v4298_v54 = vrot.slane %v6416_v8, 9  ;;  %v2543_v60 = vrot.slane %v6427_v18, 5  ;;  %v6545_v13 = vpop.permute.xlu0 %2957 }
 0x185   : > { %v2546_v31 = vrot.slane %v6479_v24, 5  ;;  %v2248_v55 = vsel %vm4804_vm11, %v2243_v32, %v2247_v16  ;;  %v2431_v26 = vshll.u32 %v6526_v17, 16  ;;  %v2406_v37 = vrot.slane %v2404_v57, 4  ;;  %v4291_v57 = vld [vmem:[#allocation2 + $0xd4] sm:$0x1]  ;;  %v6571_v62 = vpop.permute.xlu1 %2893 }
 0x186   : > { %3199 = vrot.lane.b32.xlu0 %v4426_v39, %s4673_s29  ;;  %v2253_v40 = vrot.slane %v2252_v15, 4  ;;  %v2441_v8 = vshrl.u32 %v6535_v3, 16  ;;  %v2544_v18 = vsel %vm4784_vm7, %v4298_v54, %v2543_v60  ;;  %v2545_v24 = vrot.slane %v2543_v60, 4 }
 0x187   : > { %3057 = vrot.lane.b32.xlu1 %v4403_v58, %s4670_s26  ;;  %v2409_v34 = vrot.slane %v2407_v50, 5  ;;  %v2413_v33 = vshll.u32 %v6515_v48, 16  ;;  %v2419_v20 = vrot.slane %v2417_v0, 4  ;;  %v2423_v42 = vshll.u32 %v6541_v56, 16 }
 0x188   : > { %v2258_v4 = vsel %vm4804_vm11, %v2253_v40, %v2257_v49  ;;  %v4419_v47 = vcombine.low %v6526_v17, %v6535_v3  ;;  %v2547_v21 = vsel %vm4784_vm7, %v2545_v24, %v2546_v31  ;;  %v3570_v44 = vsel %vm3546_vm8, %v6502_v46, %v6401_v10  ;;  %v6573_v16 = vpop.permute.xlu0 %3035 }
 0x189   : > { %v4427_v5 = vcombine.low %v2248_v55, %v2258_v4  ;;  %v2410_v6 = vor.u32 %v2409_v34, %v2406_v37  ;;  %v4442_v22 = vcombine.low %v2544_v18, %v2547_v21  ;;  %v2415_v41 = vrot.slane %v2413_v33, 5  ;;  %4523 = vmatmul.mubr.msk.bf16.gmra.mxu1 %vm3599_vm9, %v3570_v44 }
 0x18a   : > { %v2425_v61 = vrot.slane %v2423_v42, 5  ;;  %v4299_v59 = vrot.slane %v6457_v53, 9  ;;  %v2550_v7 = vrot.slane %v6459_v25, 5  ;;  %v2553_v58 = vrot.slane %v6504_v45, 5 }
 0x18b   : > { %3135 = vrot.lane.b32.xlu1 %v4418_v2, %s4672_s28  ;;  %3201 = vrot.lane.b32.xlu0 %v4427_v5, %s4673_s29  ;;  %v2411_v12 = vrot.slane %v2410_v6, 4  ;;  %v2420_v27 = vor.u32 %v2419_v20, %v2415_v41  ;;  %v2430_v50 = vrot.slane %v2428_v14, 4  ;;  %v2433_v0 = vrot.slane %v2431_v26, 5 }
 0x18c   : > { %v2437_v10 = vshll.u32 %v6535_v3, 16  ;;  %v2551_v53 = vsel %vm4784_vm7, %v4299_v59, %v2550_v7  ;;  %v2552_v25 = vrot.slane %v2550_v7, 4  ;;  %v2443_v45 = vrot.slane %v2441_v8, 4  ;;  %v6589_v8 = vpop.permute.xlu1 %2971  ;;  %v3038_v18 = vpop.permute.xlu0 %3037  ;;  %v4627_v59 = vld [vmem:[#allocation2 + $0x34] sm:$0xf] }
 0x18d   : > { %v2416_v46 = vsel %vm4804_vm11, %v2411_v12, %v2415_v41  ;;  %v2421_v2 = vrot.slane %v2420_v27, 4  ;;  %v2434_v39 = vor.u32 %v2433_v0, %v2430_v50  ;;  %v2447_v15 = vshll.u32 %v4291_v57, 16  ;;  %v4626_v12 = vld [vmem:[#allocation2 + $0x30] sm:$0xf] }
 0x18e   : > { %v2439_v32 = vrot.slane %v2437_v10, 5  ;;  %v2554_v49 = vsel %vm4784_vm7, %v2552_v25, %v2553_v58  ;;  %v4306_v14 = vrot.slane %v6507_v11, 9  ;;  %v2599_v37 = vrot.slane %v6515_v48, 5  ;;  %v4628_v25 = vld [vmem:[#allocation2 + $0x3c] sm:$0xf] }
 0x18f   : > { %3137 = vrot.lane.b32.xlu1 %v4419_v47, %s4672_s28  ;;  %3279 = vrot.lane.b32.xlu0 %v4442_v22, %s4674_s30  ;;  %v2426_v54 = vsel %vm4804_vm11, %v2421_v2, %v2425_v61  ;;  %v4443_v60 = vcombine.low %v2551_v53, %v2554_v49  ;;  %v2435_v31 = vrot.slane %v2434_v39, 4  ;;  %v2449_v26 = vrot.slane %v2447_v15, 5 }
 0x190   : > { %v2444_v55 = vor.u32 %v2443_v45, %v2439_v32  ;;  %v4434_v40 = vcombine.low %v2416_v46, %v2426_v54  ;;  %v2602_v4 = vrot.slane %v6541_v56, 5  ;;  %v2600_v11 = vsel %vm4784_vm7, %v4306_v14, %v2599_v37  ;;  %v3116_v41 = vpop.permute.xlu0 %3115  ;;  %v4629_v45 = vld [vmem:[#allocation2 + $0x40] sm:$0xf]  ;;  %v4630_v54 = vld [vmem:[#allocation2 + $0x90] sm:$0xf] }
 0x191   : > { %v2440_v24 = vsel %vm4804_vm11, %v2435_v31, %v2439_v32  ;;  %v2601_v33 = vrot.slane %v2599_v37, 4  ;;  %v4307_v20 = vrot.slane %v6526_v17, 9  ;;  %v2606_v42 = vrot.slane %v6535_v3, 5 }
 0x192   : > { %v2445_v34 = vrot.slane %v2444_v55, 4  ;;  %v2609_v5 = vrot.slane %v4291_v57, 5  ;;  %v4312_v7 = vcombine.low %v4626_v12, %v4627_v59  ;;  %v4313_v2 = vcombine.low %v4628_v25, %v4629_v45 }
 0x193   : > { %3215 = vrot.lane.b32.xlu1 %v4434_v40, %s4673_s29  ;;  %3281 = vrot.lane.b32.xlu0 %v4443_v60, %s4674_s30  ;;  %v2603_v56 = vsel %vm4784_vm7, %v2601_v33, %v2602_v4  ;;  %v2608_v21 = vrot.slane %v2606_v42, 4  ;;  %v6605_v22 = vpop.permute.xlu1 %2973  ;;  %v2607_v35 = vsel %vm4784_vm7, %v4307_v20, %v2606_v42  ;;  %v4631_v60 = vld [vmem:[#allocation2 + $0x94] sm:$0xf]  ;;  %v4632_v4 = vld [vmem:[#allocation2 + $0x9c] sm:$0xf] }
 0x194   : > { %v2450_v48 = vsel %vm4804_vm11, %v2445_v34, %v2449_v26  ;;  %v4450_v6 = vcombine.low %v2600_v11, %v2603_v56  ;;  %v3314_v27 = vsel %vm3299_vm14, %v4312_v7, %v6276_v30  ;;  %v4320_v31 = vcombine.low %v4630_v54, %v4631_v60  ;;  %v4633_v11 = vld [vmem:[#allocation2 + $0xa0] sm:$0xf] }
 0x195   : > { %v4435_v47 = vcombine.low %v2440_v24, %v2450_v48  ;;  %v2610_v17 = vsel %vm4784_vm7, %v2608_v21, %v2609_v5  ;;  %v3358_v50 = vsel %vm3348_vm15, %v3314_v27, %v6369_v19  ;;  %v4321_v33 = vcombine.low %v4632_v4, %v4633_v11  ;;  %v6697_v27 = vld [vmem:[%s6888_s2] ss:$0 sm:$0xff]  ;;  %v4634_v11 = vld [vmem:[#allocation2 + $0x48] sm:$0xf] }
 0x196   : > { %v4451_v3 = vcombine.low %v2607_v35, %v2610_v17  ;;  %v3391_v1 = vsel %vm3381_vm1, %v3358_v50, %v6447_v28  ;;  %v3317_v28 = vsel %vm3299_vm14, %v4313_v2, %v6352_v52 }
 0x197   : > { %3217 = vrot.lane.b32.xlu1 %v4435_v47, %s4673_s29  ;;  %v3052_v61 = vpop.permute.xlu1 %3051  ;;  %v3424_v10 = vsel %vm3414_vm2, %v3391_v1, %v6513_v36  ;;  %v3360_v15 = vsel %vm3348_vm15, %v3317_v28, %v6403_v43  ;;  %v6702_v1 = vld [vmem:[%s6889_s3] ss:$0 sm:$0xff] }
 0x198   : > { %v3457_v53 = vsel %vm3447_vm3, %v3424_v10, %v6573_v16  ;;  %v3393_v16 = vsel %vm3381_vm1, %v3360_v15, %v6483_v63  ;;  %v3338_v63 = vsel %vm3299_vm14, %v4320_v31, %v6367_v38 }
 0x199   : > { %v3490_v39 = vsel %vm3480_vm4, %v3457_v53, %v3116_v41  ;;  %v3426_v14 = vsel %vm3414_vm2, %v3393_v16, %v6545_v13  ;;  %v3374_v13 = vsel %vm3348_vm15, %v3338_v63, %v6481_v51 }
 0x19a   : > { %v3459_v55 = vsel %vm3447_vm3, %v3426_v14, %v3038_v18  ;;  %v3407_v24 = vsel %vm3381_vm1, %v3374_v13, %v6543_v29  ;;  %v3341_v29 = vsel %vm3299_vm14, %v4321_v33, %v6445_v23  ;;  %v4635_v33 = vld [vmem:[#allocation2 + $0x4c] sm:$0xf] }
 0x19b   : > { %3295 = vrot.lane.b32.xlu1 %v4450_v6, %s4674_s30  ;;  %v3054_v57 = vpop.permute.xlu1 %3053  ;;  %v3440_v34 = vsel %vm3414_vm2, %v3407_v24, %v6589_v8  ;;  %v3376_v8 = vsel %vm3348_vm15, %v3341_v29, %v6511_v9 }
 0x19c   : > { %v3473_v48 = vsel %vm3447_vm3, %v3440_v34, %v3052_v61  ;;  %v3409_v47 = vsel %vm3381_vm1, %v3376_v8, %v6571_v62 }
 0x19d   : > { %v3118_v44 = vpop.permute.xlu0 %3117  ;;  %v3442_v21 = vsel %vm3414_vm2, %v3409_v47, %v6605_v22 }
 0x19e   : > { %v3492_v52 = vsel %vm3480_vm4, %v3459_v55, %v3118_v44  ;;  %v3475_v41 = vsel %vm3447_vm3, %v3442_v21, %v3054_v57 }
 0x19f   : > { %3297 = vrot.lane.b32.xlu1 %v4451_v3, %s4674_s30  ;;  %v3132_v46 = vpop.permute.xlu1 %3131 }
 0x1a0   : > { %v3506_v20 = vsel %vm3480_vm4, %v3473_v48, %v3132_v46  ;;  %v4314_v48 = vcombine.low %v4634_v11, %v4635_v33 }
 0x1a1   : > { %v3196_v58 = vpop.permute.xlu0 %3195 }
 0x1a2   : > { %v3523_v30 = vsel %vm3513_vm5, %v3490_v39, %v3196_v58 }
 0x1a8   : > { %v3198_v0 = vpop.permute.xlu0 %3197 }
 0x1a9   : > { %v3134_v36 = vpop.permute.xlu1 %3133  ;;  %v3525_v26 = vsel %vm3513_vm5, %v3492_v52, %v3198_v0 }
 0x1aa   : > { %v3508_v35 = vsel %vm3480_vm4, %v3475_v41, %v3134_v36 }
 0x1ac   : > { %v3276_v32 = vpop.permute.xlu0 %3275 }
 0x1ad   : > { %v3556_v19 = vsel %vm3546_vm8, %v3523_v30, %v3276_v32  ;;  %v3212_v40 = vpop.permute.xlu1 %3211 }
 0x1ae   : > { %4510 = vmatprep.mubr.msk.bf16.mxu0 %vm3599_vm9, %v3556_v19  ;;  %v3539_v38 = vsel %vm3513_vm5, %v3506_v20, %v3212_v40  ;;  %v4636_v20 = vld [vmem:[#allocation2 + $0x54] sm:$0xf] }
 0x1b3   : > { %v6633_v49 = vpop.permute.xlu0 %2719 }
 0x1b7   : > { %v3278_v37 = vpop.permute.xlu0 %3277 }
 0x1b8   : > { %v3558_v43 = vsel %vm3546_vm8, %v3525_v26, %v3278_v37 }
 0x1b9   : > { %4511 = vmatmul.mubr.msk.bf16.gmra.mxu0 %vm3599_vm9, %v3558_v43 }
 0x1ba   : > { %v3214_v18 = vpop.permute.xlu1 %3213 }
 0x1bb   : > { %v3541_v23 = vsel %vm3513_vm5, %v3508_v35, %v3214_v18 }
 0x1be   : > { %v3292_v42 = vpop.permute.xlu1 %3291 }
 0x1bf   : > { %v6653_v5 = vpop.permute.xlu0 %2721  ;;  %v3572_v51 = vsel %vm3546_vm8, %v3539_v38, %v3292_v42  ;;  %v4637_v38 = vld [vmem:[#allocation2 + $0x58] sm:$0xf] }
 0x1c0   : > { %4526 = vmatprep.mubr.msk.bf16.mxu1 %vm3599_vm9, %v3572_v51  ;;  %v4315_v42 = vcombine.low %v4636_v20, %v4637_v38 }
 0x1c2   : > { %v6663_v56 = vpop.permute.xlu1 %2735 }
 0x1c4   : > { %v6667_v6 = vpop.permute.xlu0 %2799 }
 0x1c6   : > { %v3294_v17 = vpop.permute.xlu1 %3293 }
 0x1c7   : > { %v3574_v3 = vsel %vm3546_vm8, %v3541_v23, %v3294_v17 }
 0x1c8   : > { %v6673_v9 = vpop.permute.xlu0 %2801  ;;  %4527 = vmatmul.mubr.msk.bf16.gmra.mxu1 %vm3599_vm9, %v3574_v3  ;;  %v3320_v3 = vsel %vm3299_vm14, %v4314_v48, %v6633_v49 }
 0x1cc   : > { %v6676_v62 = vpop.permute.xlu0 %2879 }
 0x1cf   : > { %v6678_v61 = vpop.permute.xlu1 %2737 }
 0x1d0   : > { %v6680_v22 = vpop.permute.xlu0 %2881 }
 0x1d3   : > { %v6682_v44 = vpop.permute.xlu1 %2815 }
 0x1d7   : > { %v6686_v59 = vpop.permute.xlu1 %2817 }
 0x1d9   : > { %v6684_v12 = vpop.permute.xlu0 %2959 }
 0x1db   : > { %v6690_v58 = vpop.permute.xlu1 %2895 }
 0x1dd   : > { %v6688_v7 = vpop.permute.xlu0 %2961 }
 0x1e1   : > { %v6692_v57 = vpop.permute.xlu0 %3039 }
 0x1e4   : > { %v4504_v50 = vpop.f32.mrf.mxu0 }
 0x1e5   : > { %v3806_v46 = vmul.f32 %v4504_v50, %v6697_v27 }
 0x1e6   : > { %v6704_v0 = vpop.permute.xlu1 %2897  ;;  %v6706_v10 = vpop.permute.xlu0 %3041 }
 0x1e7   : > { %v3670_v53 = vpop.f32.mrf.mxu0  ;;  %v3845_v25 = vadd.f32 %v6702_v1, %v3806_v46 }
 0x1e8   : > { %v3804_v45 = vmul.f32 %v6697_v27, %v3670_v53  ;;  %v3323_v53 = vsel %vm3299_vm14, %v4315_v42, %v6653_v5 }
 0x1e9   : > { %v4505_v2 = vpop.f32.mrf.mxu0  ;;  %vm3877_vm0 = vcmp.ge.f32.partialorder %v3845_v25, 0.0  ;;  %v3909_v39 = vmul.f32 0.1, %v3845_v25 }
 0x1ea   : > { %v3843_v30 = vadd.f32 %v6702_v1, %v3804_v45  ;;  %v3807_v32 = vmul.f32 %v4505_v2, %v6697_v27  ;;  %v6719_v19 = vpop.permute.xlu1 %2975  ;;  %v6721_v36 = vpop.permute.xlu0 %3119 }
 0x1eb   : > { %v3673_v28 = vpop.f32.mrf.mxu0  ;;  %v3941_v15 = vsel %vm3877_vm0, %v3845_v25, %v3909_v39  ;;  %v3362_v25 = vsel %vm3348_vm15, %v3320_v3, %v6667_v6 }
 0x1ec   : > { %vm3875_vm7 = vcmp.ge.f32.partialorder %v3843_v30, 0.0  ;;  %v3907_v16 = vmul.f32 0.1, %v3843_v30  ;;  %v3846_v14 = vadd.f32 %v6702_v1, %v3807_v32  ;;  %3973 = vst [vmem:[%s6715_s22 + $0x10] sm:$0xff] %v3941_v15  ;;  %v3805_v54 = vmul.f32 %v6697_v27, %v3673_v28 }
 0x1ed   : > { %v3395_v2 = vsel %vm3381_vm1, %v3362_v25, %v6676_v62  ;;  %v3364_v62 = vsel %vm3348_vm15, %v3323_v53, %v6673_v9  ;;  %v4639_v9 = vld [vmem:[#allocation2 + $0xac] sm:$0xf] }
 0x1ee   : > { %v3939_v60 = vsel %vm3875_vm7, %v3843_v30, %v3907_v16  ;;  %vm3878_vm10 = vcmp.ge.f32.partialorder %v3846_v14, 0.0  ;;  %v3910_v31 = vmul.f32 0.1, %v3846_v14  ;;  %v3844_v55 = vadd.f32 %v6702_v1, %v3805_v54  ;;  %v3122_v37 = vpop.permute.xlu0 %3121 }
 0x1ef   : > { %3971 = vst [vmem:[%s6715_s22] sm:$0xff] %v3939_v60  ;;  %v3428_v28 = vsel %vm3414_vm2, %v3395_v2, %v6684_v12 }
 0x1f0   : > { %v3942_v40 = vsel %vm3878_vm10, %v3846_v14, %v3910_v31  ;;  %vm3876_vm11 = vcmp.ge.f32.partialorder %v3844_v55, 0.0  ;;  %v3908_v26 = vmul.f32 0.1, %v3844_v55  ;;  %v3461_v5 = vsel %vm3447_vm3, %v3428_v28, %v6692_v57 }
 0x1f1   : > { %v6728_v52 = vpop.permute.xlu1 %2977  ;;  %3974 = vst [vmem:[%s6715_s22 + $0x18] sm:$0xff] %v3942_v40  ;;  %v3494_v16 = vsel %vm3480_vm4, %v3461_v5, %v6721_v36  ;;  %v3397_v14 = vsel %vm3381_vm1, %v3364_v62, %v6680_v22  ;;  %v4638_v40 = vld [vmem:[#allocation2 + $0xa8] sm:$0xf] }
 0x1f2   : > { %v3940_v43 = vsel %vm3876_vm11, %v3844_v55, %v3908_v26  ;;  %v3430_v57 = vsel %vm3414_vm2, %v3397_v14, %v6688_v7  ;;  %v4322_v26 = vcombine.low %v4638_v40, %v4639_v9 }
 0x1f3   : > { %v4520_v63 = vpop.f32.mrf.mxu1  ;;  %3972 = vst [vmem:[%s6715_s22 + $0x8] sm:$0xff] %v3940_v43  ;;  %v3463_v36 = vsel %vm3447_vm3, %v3430_v57, %v6706_v10 }
 0x1f4   : > { %v3822_v13 = vmul.f32 %v4520_v63, %v6697_v27  ;;  %v3496_v22 = vsel %vm3480_vm4, %v3463_v36, %v3122_v37  ;;  %v3344_v7 = vsel %vm3299_vm14, %v4322_v26, %v6663_v56 }
 0x1f5   : > { %v6733_v24 = vpop.permute.xlu1 %3055  ;;  %v3734_v18 = vpop.f32.mrf.mxu1  ;;  %v3378_v10 = vsel %vm3348_vm15, %v3344_v7, %v6682_v44 }
 0x1f6   : > { %v3861_v34 = vadd.f32 %v6702_v1, %v3822_v13  ;;  %v3820_v4 = vmul.f32 %v6697_v27, %v3734_v18  ;;  %v3411_v37 = vsel %vm3381_vm1, %v3378_v10, %v6690_v58 }
 0x1f7   : > { %v4521_v51 = vpop.f32.mrf.mxu1  ;;  %v3444_v48 = vsel %vm3414_vm2, %v3411_v37, %v6719_v19 }
 0x1f8   : > { %v3200_v29 = vpop.permute.xlu0 %3199  ;;  %vm3893_vm12 = vcmp.ge.f32.partialorder %v3861_v34, 0.0  ;;  %v3925_v8 = vmul.f32 0.1, %v3861_v34  ;;  %v3859_v47 = vadd.f32 %v6702_v1, %v3820_v4  ;;  %v3823_v21 = vmul.f32 %v4521_v51, %v6697_v27  ;;  %v4641_v4 = vld [vmem:[#allocation2 + $0xb8] sm:$0xf] }
 0x1f9   : > { %v6739_v41 = vpop.permute.xlu1 %3057  ;;  %v3737_v35 = vpop.f32.mrf.mxu1  ;;  %v3527_v54 = vsel %vm3513_vm5, %v3494_v16, %v3200_v29  ;;  %v3477_v56 = vsel %vm3447_vm3, %v3444_v48, %v6733_v24 }
 0x1fa   : > { %v3957_v23 = vsel %vm3893_vm12, %v3861_v34, %v3925_v8  ;;  %vm3891_vm13 = vcmp.ge.f32.partialorder %v3859_v47, 0.0  ;;  %v3923_v17 = vmul.f32 0.1, %v3859_v47  ;;  %v3862_v50 = vadd.f32 %v6702_v1, %v3823_v21  ;;  %v4640_v34 = vld [vmem:[#allocation2 + $0xb4] sm:$0xf] }
 0x1fb   : > { %3989 = vst [vmem:[%s6715_s22 + $0x90] sm:$0xff] %v3957_v23  ;;  %v3821_v46 = vmul.f32 %v6697_v27, %v3737_v35  ;;  %v4323_v11 = vcombine.low %v4640_v34, %v4641_v4 }
 0x1fc   : > { %v3955_v45 = vsel %vm3891_vm13, %v3859_v47, %v3923_v17  ;;  %vm3894_vm6 = vcmp.ge.f32.partialorder %v3862_v50, 0.0  ;;  %v3926_v49 = vmul.f32 0.1, %v3862_v50 }
 0x1fd   : > { %v3136_v39 = vpop.permute.xlu1 %3135  ;;  %v3202_v30 = vpop.permute.xlu0 %3201  ;;  %3987 = vst [vmem:[%s6715_s22 + $0x80] sm:$0xff] %v3955_v45  ;;  %v3860_v32 = vadd.f32 %v6702_v1, %v3821_v46  ;;  %v3347_v20 = vsel %vm3299_vm14, %v4323_v11, %v6678_v61 }
 0x1fe   : > { %v3958_v6 = vsel %vm3894_vm6, %v3862_v50, %v3926_v49  ;;  %v3529_v43 = vsel %vm3513_vm5, %v3496_v22, %v3202_v30  ;;  %v3380_v38 = vsel %vm3348_vm15, %v3347_v20, %v6686_v59  ;;  %v3510_v42 = vsel %vm3480_vm4, %v3477_v56, %v3136_v39 }
 0x1ff   : > { %vm3892_vm0 = vcmp.ge.f32.partialorder %v3860_v32, 0.0  ;;  %v3924_v15 = vmul.f32 0.1, %v3860_v32  ;;  %3990 = vst [vmem:[%s6715_s22 + $0x98] sm:$0xff] %v3958_v6  ;;  %v3413_v44 = vsel %vm3381_vm1, %v3380_v38, %v6704_v0 }
 0x200   : > { %v3446_v19 = vsel %vm3414_vm2, %v3413_v44, %v6728_v52 }
 0x201   : > { %v3138_v60 = vpop.permute.xlu1 %3137  ;;  %v3280_v12 = vpop.permute.xlu0 %3279  ;;  %v3956_v31 = vsel %vm3892_vm0, %v3860_v32, %v3924_v15  ;;  %v3479_v61 = vsel %vm3447_vm3, %v3446_v19, %v6739_v41 }
 0x202   : > { %v3560_v55 = vsel %vm3546_vm8, %v3527_v54, %v3280_v12  ;;  %3988 = vst [vmem:[%s6715_s22 + $0x88] sm:$0xff] %v3956_v31  ;;  %v3512_v59 = vsel %vm3480_vm4, %v3479_v61, %v3138_v60 }
 0x203   : > { %4514 = vmatprep.mubr.msk.bf16.mxu0 %vm3599_vm9, %v3560_v55 }
 0x205   : > { %v3216_v63 = vpop.permute.xlu1 %3215  ;;  %v3282_v13 = vpop.permute.xlu0 %3281 }
 0x206   : > { %v3562_v18 = vsel %vm3546_vm8, %v3529_v43, %v3282_v13  ;;  %v3543_v58 = vsel %vm3513_vm5, %v3510_v42, %v3216_v63 }
 0x207   : > { %4515 = vmatmul.mubr.msk.bf16.gmra.mxu0 %vm3599_vm9, %v3562_v18 }
 0x209   : > { %v3218_v33 = vpop.permute.xlu1 %3217 }
 0x20a   : > { %v3545_v24 = vsel %vm3513_vm5, %v3512_v59, %v3218_v33 }
 0x20d   : > { %v3296_v51 = vpop.permute.xlu1 %3295 }
 0x20e   : > { %v3576_v29 = vsel %vm3546_vm8, %v3543_v58, %v3296_v51 }
 0x20f   : > { %4530 = vmatprep.mubr.msk.bf16.mxu1 %vm3599_vm9, %v3576_v29 }
 0x211   : > { %v3298_v8 = vpop.permute.xlu1 %3297 }
 0x212   : > { %v3578_v0 = vsel %vm3546_vm8, %v3545_v24, %v3298_v8 }
 0x213   : > { %4531 = vmatmul.mubr.msk.bf16.gmra.mxu1 %vm3599_vm9, %v3578_v0 }
 0x23f   : > { %v4508_v47 = vpop.f32.mrf.mxu0 }
 0x240   : > { %v3810_v52 = vmul.f32 %v4508_v47, %v6697_v27 }
 0x241   : > { %v3686_v21 = vpop.f32.mrf.mxu0 }
 0x242   : > { %v3849_v35 = vadd.f32 %v6702_v1, %v3810_v52  ;;  %v3808_v41 = vmul.f32 %v6697_v27, %v3686_v21 }
 0x243   : > { %v4509_v23 = vpop.f32.mrf.mxu0 }
 0x244   : > { %vm3881_vm14 = vcmp.ge.f32.partialorder %v3849_v35, 0.0  ;;  %v3913_v17 = vmul.f32 0.1, %v3849_v35  ;;  %v3847_v3 = vadd.f32 %v6702_v1, %v3808_v41  ;;  %v3811_v50 = vmul.f32 %v4509_v23, %v6697_v27 }
 0x245   : > { %v3689_v46 = vpop.f32.mrf.mxu0 }
 0x246   : > { %v3945_v53 = vsel %vm3881_vm14, %v3849_v35, %v3913_v17  ;;  %vm3879_vm15 = vcmp.ge.f32.partialorder %v3847_v3, 0.0  ;;  %v3911_v25 = vmul.f32 0.1, %v3847_v3  ;;  %v3850_v45 = vadd.f32 %v6702_v1, %v3811_v50 }
 0x247   : > { %3977 = vst [vmem:[%s6715_s22 + $0x30] sm:$0xff] %v3945_v53  ;;  %v3809_v2 = vmul.f32 %v6697_v27, %v3689_v46 }
 0x248   : > { %v3943_v39 = vsel %vm3879_vm15, %v3847_v3, %v3911_v25  ;;  %vm3882_vm1 = vcmp.ge.f32.partialorder %v3850_v45, 0.0  ;;  %v3914_v30 = vmul.f32 0.1, %v3850_v45 }
 0x249   : > { %3975 = vst [vmem:[%s6715_s22 + $0x20] sm:$0xff] %v3943_v39  ;;  %v3848_v49 = vadd.f32 %v6702_v1, %v3809_v2  ;;  %v4524_v5 = vpop.f32.mrf.mxu1 }
 0x24a   : > { %v3946_v32 = vsel %vm3882_vm1, %v3850_v45, %v3914_v30  ;;  %v3826_v6 = vmul.f32 %v4524_v5, %v6697_v27 }
 0x24b   : > { %3978 = vst [vmem:[%s6715_s22 + $0x38] sm:$0xff] %v3946_v32  ;;  %vm3880_vm2 = vcmp.ge.f32.partialorder %v3848_v49, 0.0  ;;  %v3912_v28 = vmul.f32 0.1, %v3848_v49  ;;  %v3750_v62 = vpop.f32.mrf.mxu1 }
 0x24c   : > { %v3865_v16 = vadd.f32 %v6702_v1, %v3826_v6  ;;  %v3824_v14 = vmul.f32 %v6697_v27, %v3750_v62 }
 0x24d   : > { %v3944_v15 = vsel %vm3880_vm2, %v3848_v49, %v3912_v28  ;;  %v4525_v54 = vpop.f32.mrf.mxu1 }
 0x24e   : > { %3976 = vst [vmem:[%s6715_s22 + $0x28] sm:$0xff] %v3944_v15  ;;  %vm3897_vm3 = vcmp.ge.f32.partialorder %v3865_v16, 0.0  ;;  %v3929_v60 = vmul.f32 0.1, %v3865_v16  ;;  %v3863_v12 = vadd.f32 %v6702_v1, %v3824_v14  ;;  %v3827_v31 = vmul.f32 %v4525_v54, %v6697_v27 }
 0x24f   : > { %v3753_v57 = vpop.f32.mrf.mxu1 }
 0x250   : > { %v3961_v55 = vsel %vm3897_vm3, %v3865_v16, %v3929_v60  ;;  %vm3895_vm4 = vcmp.ge.f32.partialorder %v3863_v12, 0.0  ;;  %v3927_v40 = vmul.f32 0.1, %v3863_v12  ;;  %v3866_v9 = vadd.f32 %v6702_v1, %v3827_v31 }
 0x251   : > { %3993 = vst [vmem:[%s6715_s22 + $0xb0] sm:$0xff] %v3961_v55  ;;  %v3825_v26 = vmul.f32 %v6697_v27, %v3753_v57 }
 0x252   : > { %v3959_v36 = vsel %vm3895_vm4, %v3863_v12, %v3927_v40  ;;  %vm3898_vm5 = vcmp.ge.f32.partialorder %v3866_v9, 0.0  ;;  %v3930_v22 = vmul.f32 0.1, %v3866_v9 }
 0x253   : > { %3991 = vst [vmem:[%s6715_s22 + $0xa0] sm:$0xff] %v3959_v36  ;;  %v3864_v43 = vadd.f32 %v6702_v1, %v3825_v26 }
 0x254   : > { %v3962_v63 = vsel %vm3898_vm5, %v3866_v9, %v3930_v22 }
 0x255   : > { %3994 = vst [vmem:[%s6715_s22 + $0xb8] sm:$0xff] %v3962_v63  ;;  %vm3896_vm8 = vcmp.ge.f32.partialorder %v3864_v43, 0.0  ;;  %v3928_v13 = vmul.f32 0.1, %v3864_v43 }
 0x257   : > { %v3960_v18 = vsel %vm3896_vm8, %v3864_v43, %v3928_v13 }
 0x258   : > { %3992 = vst [vmem:[%s6715_s22 + $0xa8] sm:$0xff] %v3960_v18 }
 0x279   : > { %v4512_v7 = vpop.f32.mrf.mxu0 }
 0x27a   : > { %v3814_v34 = vmul.f32 %v4512_v7, %v6697_v27 }
 0x27b   : > { %v3702_v4 = vpop.f32.mrf.mxu0 }
 0x27c   : > { %v3853_v11 = vadd.f32 %v6702_v1, %v3814_v34  ;;  %v3812_v10 = vmul.f32 %v6697_v27, %v3702_v4 }
 0x27d   : > { %v4513_v37 = vpop.f32.mrf.mxu0 }
 0x27e   : > { %vm3885_vm9 = vcmp.ge.f32.partialorder %v3853_v11, 0.0  ;;  %v3917_v33 = vmul.f32 0.1, %v3853_v11  ;;  %v3851_v48 = vadd.f32 %v6702_v1, %v3812_v10  ;;  %v3815_v20 = vmul.f32 %v4513_v37, %v6697_v27 }
 0x27f   : > { %v3705_v56 = vpop.f32.mrf.mxu0 }
 0x280   : > { %v3949_v38 = vsel %vm3885_vm9, %v3853_v11, %v3917_v33  ;;  %vm3883_vm7 = vcmp.ge.f32.partialorder %v3851_v48, 0.0  ;;  %v3915_v42 = vmul.f32 0.1, %v3851_v48  ;;  %v3854_v44 = vadd.f32 %v6702_v1, %v3815_v20 }
 0x281   : > { %3981 = vst [vmem:[%s6715_s22 + $0x50] sm:$0xff] %v3949_v38  ;;  %v3813_v58 = vmul.f32 %v6697_v27, %v3705_v56 }
 0x282   : > { %v3947_v51 = vsel %vm3883_vm7, %v3851_v48, %v3915_v42  ;;  %vm3886_vm10 = vcmp.ge.f32.partialorder %v3854_v44, 0.0  ;;  %v3918_v19 = vmul.f32 0.1, %v3854_v44 }
 0x283   : > { %3979 = vst [vmem:[%s6715_s22 + $0x40] sm:$0xff] %v3947_v51  ;;  %v3852_v29 = vadd.f32 %v6702_v1, %v3813_v58 }
 0x284   : > { %v3950_v61 = vsel %vm3886_vm10, %v3854_v44, %v3918_v19 }
 0x285   : > { %3982 = vst [vmem:[%s6715_s22 + $0x58] sm:$0xff] %v3950_v61  ;;  %vm3884_vm11 = vcmp.ge.f32.partialorder %v3852_v29, 0.0  ;;  %v3916_v59 = vmul.f32 0.1, %v3852_v29 }
 0x287   : > { %v3948_v24 = vsel %vm3884_vm11, %v3852_v29, %v3916_v59 }
 0x288   : > { %3980 = vst [vmem:[%s6715_s22 + $0x48] sm:$0xff] %v3948_v24  ;;  %v4528_v8 = vpop.f32.mrf.mxu1 }
 0x289   : > { %v3830_v0 = vmul.f32 %v4528_v8, %v6697_v27 }
 0x28a   : > { %v3766_v47 = vpop.f32.mrf.mxu1 }
 0x28b   : > { %v3869_v52 = vadd.f32 %v6702_v1, %v3830_v0  ;;  %v3828_v21 = vmul.f32 %v6697_v27, %v3766_v47 }
 0x28c   : > { %v4529_v35 = vpop.f32.mrf.mxu1 }
 0x28d   : > { %vm3901_vm12 = vcmp.ge.f32.partialorder %v3869_v52, 0.0  ;;  %v3933_v41 = vmul.f32 0.1, %v3869_v52  ;;  %v3867_v23 = vadd.f32 %v6702_v1, %v3828_v21  ;;  %v3831_v17 = vmul.f32 %v4529_v35, %v6697_v27 }
 0x28e   : > { %v3769_v3 = vpop.f32.mrf.mxu1 }
 0x28f   : > { %v3965_v50 = vsel %vm3901_vm12, %v3869_v52, %v3933_v41  ;;  %vm3899_vm13 = vcmp.ge.f32.partialorder %v3867_v23, 0.0  ;;  %v3931_v46 = vmul.f32 0.1, %v3867_v23  ;;  %v3870_v53 = vadd.f32 %v6702_v1, %v3831_v17 }
 0x290   : > { %3997 = vst [vmem:[%s6715_s22 + $0xd0] sm:$0xff] %v3965_v50  ;;  %v3829_v25 = vmul.f32 %v6697_v27, %v3769_v3 }
 0x291   : > { %v3963_v45 = vsel %vm3899_vm13, %v3867_v23, %v3931_v46  ;;  %vm3902_vm6 = vcmp.ge.f32.partialorder %v3870_v53, 0.0  ;;  %v3934_v2 = vmul.f32 0.1, %v3870_v53 }
 0x292   : > { %3995 = vst [vmem:[%s6715_s22 + $0xc0] sm:$0xff] %v3963_v45  ;;  %v3868_v39 = vadd.f32 %v6702_v1, %v3829_v25 }
 0x293   : > { %v3966_v30 = vsel %vm3902_vm6, %v3870_v53, %v3934_v2 }
 0x294   : > { %3998 = vst [vmem:[%s6715_s22 + $0xd8] sm:$0xff] %v3966_v30  ;;  %vm3900_vm0 = vcmp.ge.f32.partialorder %v3868_v39, 0.0  ;;  %v3932_v49 = vmul.f32 0.1, %v3868_v39 }
 0x296   : > { %v3964_v32 = vsel %vm3900_vm0, %v3868_v39, %v3932_v49 }
 0x297   : > { %3996 = vst [vmem:[%s6715_s22 + $0xc8] sm:$0xff] %v3964_v32 }
 0x2c7   : > { %v4516_v28 = vpop.f32.mrf.mxu0 }
 0x2c8   : > { %v3818_v5 = vmul.f32 %v4516_v28, %v6697_v27 }
 0x2c9   : > { %v3718_v6 = vpop.f32.mrf.mxu0 }
 0x2ca   : > { %v3857_v15 = vadd.f32 %v6702_v1, %v3818_v5  ;;  %v3816_v62 = vmul.f32 %v6697_v27, %v3718_v6 }
 0x2cb   : > { %v4517_v16 = vpop.f32.mrf.mxu0 }
 0x2cc   : > { %vm3889_vm14 = vcmp.ge.f32.partialorder %v3857_v15, 0.0  ;;  %v3921_v14 = vmul.f32 0.1, %v3857_v15  ;;  %v3855_v54 = vadd.f32 %v6702_v1, %v3816_v62  ;;  %v3819_v60 = vmul.f32 %v4517_v16, %v6697_v27 }
 0x2cd   : > { %v3721_v12 = vpop.f32.mrf.mxu0 }
 0x2ce   : > { %v3953_v31 = vsel %vm3889_vm14, %v3857_v15, %v3921_v14  ;;  %vm3887_vm15 = vcmp.ge.f32.partialorder %v3855_v54, 0.0  ;;  %v3919_v57 = vmul.f32 0.1, %v3855_v54  ;;  %v3858_v55 = vadd.f32 %v6702_v1, %v3819_v60 }
 0x2cf   : > { %3985 = vst [vmem:[%s6715_s22 + $0x70] sm:$0xff] %v3953_v31  ;;  %v3817_v40 = vmul.f32 %v6697_v27, %v3721_v12 }
 0x2d0   : > { %v3951_v9 = vsel %vm3887_vm15, %v3855_v54, %v3919_v57  ;;  %vm3890_vm1 = vcmp.ge.f32.partialorder %v3858_v55, 0.0  ;;  %v3922_v26 = vmul.f32 0.1, %v3858_v55 }
 0x2d1   : > { %3983 = vst [vmem:[%s6715_s22 + $0x60] sm:$0xff] %v3951_v9  ;;  %v3856_v36 = vadd.f32 %v6702_v1, %v3817_v40 }
 0x2d2   : > { %v3954_v22 = vsel %vm3890_vm1, %v3858_v55, %v3922_v26 }
 0x2d3   : > { %3986 = vst [vmem:[%s6715_s22 + $0x78] sm:$0xff] %v3954_v22  ;;  %vm3888_vm2 = vcmp.ge.f32.partialorder %v3856_v36, 0.0  ;;  %v3920_v43 = vmul.f32 0.1, %v3856_v36  ;;  %v4532_v63 = vpop.f32.mrf.mxu1 }
 0x2d4   : > { %v3834_v13 = vmul.f32 %v4532_v63, %v6697_v27 }
 0x2d5   : > { %v3952_v18 = vsel %vm3888_vm2, %v3856_v36, %v3920_v43  ;;  %v3782_v7 = vpop.f32.mrf.mxu1 }
 0x2d6   : > { %3984 = vst [vmem:[%s6715_s22 + $0x68] sm:$0xff] %v3952_v18  ;;  %v3873_v34 = vadd.f32 %v6702_v1, %v3834_v13  ;;  %v3832_v4 = vmul.f32 %v6697_v27, %v3782_v7 }
 0x2d7   : > { %v4533_v11 = vpop.f32.mrf.mxu1 }
 0x2d8   : > { %vm3905_vm3 = vcmp.ge.f32.partialorder %v3873_v34, 0.0  ;;  %v3937_v10 = vmul.f32 0.1, %v3873_v34  ;;  %v3871_v37 = vadd.f32 %v6702_v1, %v3832_v4  ;;  %v3835_v33 = vmul.f32 %v4533_v11, %v6697_v27 }
 0x2d9   : > { %v3785_v48 = vpop.f32.mrf.mxu1 }
 0x2da   : > { %v3969_v20 = vsel %vm3905_vm3, %v3873_v34, %v3937_v10  ;;  %vm3903_vm4 = vcmp.ge.f32.partialorder %v3871_v37, 0.0  ;;  %v3935_v56 = vmul.f32 0.1, %v3871_v37  ;;  %v3874_v38 = vadd.f32 %v6702_v1, %v3835_v33 }
 0x2db   : > { %4001 = vst [vmem:[%s6715_s22 + $0xf0] sm:$0xff] %v3969_v20  ;;  %v3833_v42 = vmul.f32 %v6697_v27, %v3785_v48 }
 0x2dc   : > { %v3967_v44 = vsel %vm3903_vm4, %v3871_v37, %v3935_v56  ;;  %vm3906_vm5 = vcmp.ge.f32.partialorder %v3874_v38, 0.0  ;;  %v3938_v58 = vmul.f32 0.1, %v3874_v38 }
 0x2dd   : > { %3999 = vst [vmem:[%s6715_s22 + $0xe0] sm:$0xff] %v3967_v44  ;;  %v3872_v51 = vadd.f32 %v6702_v1, %v3833_v42 }
 0x2de   : > { %v3970_v19 = vsel %vm3906_vm5, %v3874_v38, %v3938_v58 }
 0x2df   : > { %4002 = vst [vmem:[%s6715_s22 + $0xf8] sm:$0xff] %v3970_v19  ;;  %vm3904_vm8 = vcmp.ge.f32.partialorder %v3872_v51, 0.0  ;;  %v3936_v29 = vmul.f32 0.1, %v3872_v51 }
 0x2e1   : > { %v3968_v61 = vsel %vm3904_vm8, %v3872_v51, %v3936_v29 }
 0x2e2   : > { %4000 = vst [vmem:[%s6715_s22 + $0xe8] sm:$0xff] %v3968_v61 }
 0x2e3 PF: > { %s14_s17 = sadd.s32 1, %s4664_s17   ;;  %s6909_s15 = smov %s4660_s16 }
 0x2e4   : > { %p11_p5 = scmp.ge.s32.totalorder %s14_s17, 4   ;;  %s6910_s16 = smov %s6912_s18 }
 0x2e6   :  { %13 = sbr.rel (!%p11_p5) target bundleno = 2 (0x2), region = 83 }

// kernel: cnn_block_forward.2
= control target key start
LH: loop header
LB: loop body
LE: loop exit
PB: predicated region body
PF: predicated region fallthrough
CT: control target
= control target key end

     0   :  { %s4487_s12 = smov 0   ;;  %s4489_s13 = smov 0   ;;  %s6630_s0 = inlined_call_operand.vmem [shape: bf16[2,16,16,4], index: 0, kind: input, shape index: {}]   ;;  %s6631_s1 = inlined_call_operand.vmem [shape: bf16[36,128], index: 1, kind: input, shape index: {}]   ;;  %s6632_s2 = inlined_call_operand.vmem [shape: f32[1,128], index: 2, kind: output, shape index: {0}]   ;;  %s6633_s3 = inlined_call_operand.vmem [shape: f32[1,128], index: 3, kind: output, shape index: {1}]  }
   0x1   :  { %s4491_s14 = smov 0  }
   0x2 LB: > { %s29_s15 = sadd.s32 1, %s4451_s13  ;;  %p3952_p0 = scmp.ge.s32.totalorder %s4455_s14, 1  ;;  %s4455_s14 = sphi %s4491_s14, %s14_s14   ;;  %s4451_s13 = sphi %s4489_s13, %s6656_s13   ;;  %s4447_s12 = sphi %s4487_s12, %s6655_s12  }
   0x3   : > { %p31_p1 = scmp.ge.s32.totalorder %s29_s15, 2  ;;  %p168_p2 = scmp.lt.s32.totalorder %s4455_s14, 3 }
   0x5   : > { %s6658_s15 = smov (%p31_p1, %s29_s15), 0  ;;  %p169_p3 = pnand %p3952_p0, %p168_p2 }
   0x7   : > { %172 = sbr.rel (%p169_p3) target bundleno = 808 (0x328), region = 28 }
   0xc   : > { %vm217_vm0 = vcmask 27648   ;;  %vm220_vm1 = vcmask 24576   ;;  %v4457_v0 = vmov 0   ;;  %p197_p4 = scmp.lt.s32.totalorder %s4447_s12, 1  ;;  %vm1233_vm2 = vcmask 1042432   ;;  %s4458_s21 = smov 8  }
   0xd   : > { %218 = vst.msk [vmem:[#allocation2] sm:$0xf] %vm217_vm0, %v4457_v0  ;;  %219 = vst.msk [vmem:[#allocation2 + $0x4] sm:$0xf] %vm217_vm0, %v4457_v0  ;;  %vm1234_vm3 = vcmask 1046532   ;;  %s4459_s22 = smov 4  }
   0xe   : > { %221 = vst.msk [vmem:[#allocation2 + $0x8] sm:$0x1] %vm220_vm1, %v4457_v0  ;;  %224 = vst.msk [vmem:[#allocation2 + $0x14] sm:$0x1] %vm220_vm1, %v4457_v0  ;;  %s198_s16 = scalar_select %p197_p4, %s4447_s12, 1  ;;  %vm3228_vm14 = vcmask 31744  }
   0xf   : > { %222 = vst.msk [vmem:[#allocation2 + $0xc] sm:$0xf] %vm217_vm0, %v4457_v0  ;;  %223 = vst.msk [vmem:[#allocation2 + $0x10] sm:$0xf] %vm217_vm0, %v4457_v0  ;;  %vm798_vm4 = vsmask.f32 3328 }
  0x10   : > { %225 = vst.msk [vmem:[#allocation2 + $0x18] sm:$0xf] %vm217_vm0, %v4457_v0  ;;  %226 = vst.msk [vmem:[#allocation2 + $0x1c] sm:$0xf] %vm217_vm0, %v4457_v0  ;;  %s4267_s17 = sshll.u32 %s198_s16, 7  ;;  %s4460_s23 = smov 12  }
  0x11   : > { %227 = vst.msk [vmem:[#allocation2 + $0x20] sm:$0x1] %vm220_vm1, %v4457_v0  ;;  %230 = vst.msk [vmem:[#allocation2 + $0x2c] sm:$0x1] %vm220_vm1, %v4457_v0  ;;  %vm799_vm5 = vsmask.f32 7440  ;;  %s4566_s20 = scalar_lea.vmem %s6630_s0, %s4267_s17 }
  0x12   : > { %228 = vst.msk [vmem:[#allocation2 + $0x24] sm:$0xf] %vm217_vm0, %v4457_v0  ;;  %229 = vst.msk [vmem:[#allocation2 + $0x28] sm:$0xf] %vm217_vm0, %v4457_v0  ;;  %vm305_vm6 = vsmask.f32 256 }
  0x13   : > { %231 = vst.msk [vmem:[#allocation2 + $0x30] sm:$0xf] %vm217_vm0, %v4457_v0  ;;  %232 = vst.msk [vmem:[#allocation2 + $0x34] sm:$0xf] %vm217_vm0, %v4457_v0  ;;  %v289_v2 = vld [vmem:[%s4566_s20 + $0x40] sm:$0xf] }
  0x14   : > { %233 = vst.msk [vmem:[#allocation2 + $0x38] sm:$0x1] %vm220_vm1, %v4457_v0  ;;  %236 = vst.msk [vmem:[#allocation2 + $0x44] sm:$0x1] %vm220_vm1, %v4457_v0  ;;  %vm306_vm8 = vsmask.f32 4368 }
  0x15   : > { %234 = vst.msk [vmem:[#allocation2 + $0x3c] sm:$0xf] %vm217_vm0, %v4457_v0  ;;  %235 = vst.msk [vmem:[#allocation2 + $0x40] sm:$0xf] %vm217_vm0, %v4457_v0  ;;  %vm630_vm9 = vsmask.f32 7938 }
  0x16   : > { %237 = vst.msk [vmem:[#allocation2 + $0x48] sm:$0xf] %vm217_vm0, %v4457_v0  ;;  %238 = vst.msk [vmem:[#allocation2 + $0x4c] sm:$0xf] %vm217_vm0, %v4457_v0  ;;  %v750_v3 = vld [vmem:[#allocation2] sm:$0xf] }
  0x17   : > { %239 = vst.msk [vmem:[#allocation2 + $0x50] sm:$0x1] %vm220_vm1, %v4457_v0  ;;  %242 = vst.msk [vmem:[#allocation2 + $0x5c] sm:$0x1] %vm220_vm1, %v4457_v0  ;;  %v751_v4 = vld [vmem:[#allocation2 + $0x4] sm:$0xf] }
  0x18   : > { %240 = vst.msk [vmem:[#allocation2 + $0x54] sm:$0xf] %vm217_vm0, %v4457_v0  ;;  %241 = vst.msk [vmem:[#allocation2 + $0x58] sm:$0xf] %vm217_vm0, %v4457_v0  ;;  %v752_v5 = vld [vmem:[#allocation2 + $0x8] sm:$0x1] }
  0x19   : > { %243 = vst.msk [vmem:[#allocation2 + $0x60] sm:$0xf] %vm217_vm0, %v4457_v0  ;;  %244 = vst.msk [vmem:[#allocation2 + $0x64] sm:$0xf] %vm217_vm0, %v4457_v0  ;;  %v821_v6 = vshll.u32 %v752_v5, 16  ;;  %v3955_v7 = vrot.slane %v750_v3, 9 }
  0x1a   : > { %245 = vst.msk [vmem:[#allocation2 + $0x68] sm:$0x1] %vm220_vm1, %v4457_v0  ;;  %248 = vst.msk [vmem:[#allocation2 + $0x74] sm:$0x1] %vm220_vm1, %v4457_v0  ;;  %v1238_v8 = vrot.slane %v751_v4, 5  ;;  %v1241_v9 = vrot.slane %v752_v5, 5 }
  0x1b   : > { %246 = vst.msk [vmem:[#allocation2 + $0x6c] sm:$0xf] %vm217_vm0, %v4457_v0  ;;  %247 = vst.msk [vmem:[#allocation2 + $0x70] sm:$0xf] %vm217_vm0, %v4457_v0  ;;  %v802_v10 = vshrl.u32 %v750_v3, 16  ;;  %v805_v11 = vshll.u32 %v750_v3, 16 }
  0x1c   : > { %249 = vst.msk [vmem:[#allocation2 + $0x78] sm:$0xf] %vm217_vm0, %v4457_v0  ;;  %250 = vst.msk [vmem:[#allocation2 + $0x7c] sm:$0xf] %vm217_vm0, %v4457_v0  ;;  %v811_v12 = vshll.u32 %v751_v4, 16  ;;  %v815_v13 = vshrl.u32 %v751_v4, 16 }
  0x1d   : > { %251 = vst.msk [vmem:[#allocation2 + $0x80] sm:$0x1] %vm220_vm1, %v4457_v0  ;;  %254 = vst.msk [vmem:[#allocation2 + $0x8c] sm:$0x1] %vm220_vm1, %v4457_v0  ;;  %v290_v14 = vld [vmem:[%s4566_s20 + $0x44] sm:$0xf] }
  0x1e   : > { %252 = vst.msk [vmem:[#allocation2 + $0x84] sm:$0xf] %vm217_vm0, %v4457_v0  ;;  %253 = vst.msk [vmem:[#allocation2 + $0x88] sm:$0xf] %vm217_vm0, %v4457_v0  ;;  %v1240_v16 = vrot.slane %v1238_v8, 4  ;;  %v823_v17 = vrot.slane %v821_v6, 5 }
  0x1f   : > { %255 = vst.msk [vmem:[#allocation2 + $0x90] sm:$0xf] %vm217_vm0, %v4457_v0  ;;  %256 = vst.msk [vmem:[#allocation2 + $0x94] sm:$0xf] %vm217_vm0, %v4457_v0  ;;  %v445_v18 = vshrl.u32 %v289_v2, 16  ;;  %v804_v19 = vrot.slane %v802_v10, 4 }
  0x20   : > { %257 = vst.msk [vmem:[#allocation2 + $0x98] sm:$0x1] %vm220_vm1, %v4457_v0  ;;  %260 = vst.msk [vmem:[#allocation2 + $0xa4] sm:$0x1] %vm220_vm1, %v4457_v0  ;;  %v807_v20 = vrot.slane %v805_v11, 5  ;;  %v813_v21 = vrot.slane %v811_v12, 5 }
  0x21   : > { %258 = vst.msk [vmem:[#allocation2 + $0x9c] sm:$0xf] %vm217_vm0, %v4457_v0  ;;  %259 = vst.msk [vmem:[#allocation2 + $0xa0] sm:$0xf] %vm217_vm0, %v4457_v0  ;;  %v817_v22 = vrot.slane %v815_v13, 4  ;;  %v447_v25 = vrot.slane %v445_v18, 7 }
  0x22   : > { %261 = vst.msk [vmem:[#allocation2 + $0xa8] sm:$0xf] %vm217_vm0, %v4457_v0  ;;  %262 = vst.msk [vmem:[#allocation2 + $0xac] sm:$0xf] %vm217_vm0, %v4457_v0  ;;  %v273_v23 = vld [vmem:[%s4566_s20] sm:$0xf]  ;;  %v808_v30 = vor.u32 %v807_v20, %v804_v19 }
  0x23   : > { %263 = vst.msk [vmem:[#allocation2 + $0xb0] sm:$0x1] %vm220_vm1, %v4457_v0  ;;  %266 = vst.msk [vmem:[#allocation2 + $0xbc] sm:$0x1] %vm220_vm1, %v4457_v0  ;;  %v448_v26 = vshll.u32 %v289_v2, 16  ;;  %v453_v27 = vshrl.u32 %v290_v14, 16  ;;  %v818_v31 = vor.u32 %v817_v22, %v813_v21 }
  0x24   : > { %264 = vst.msk [vmem:[#allocation2 + $0xb4] sm:$0xf] %vm217_vm0, %v4457_v0  ;;  %265 = vst.msk [vmem:[#allocation2 + $0xb8] sm:$0xf] %vm217_vm0, %v4457_v0  ;;  %v274_v28 = vld [vmem:[%s4566_s20 + $0x4] sm:$0xf] }
  0x25   : > { %267 = vst.msk [vmem:[#allocation2 + $0xc0] sm:$0xf] %vm217_vm0, %v4457_v0  ;;  %268 = vst.msk [vmem:[#allocation2 + $0xc4] sm:$0xf] %vm217_vm0, %v4457_v0  ;;  %v456_v32 = vshll.u32 %v290_v14, 16  ;;  %v450_v36 = vor.u32 %v448_v26, %v447_v25  ;;  %v451_v37 = vrot.slane %v447_v25, 4 }
  0x26   : > { %269 = vst.msk [vmem:[#allocation2 + $0xc8] sm:$0x1] %vm220_vm1, %v4457_v0  ;;  %272 = vst.msk [vmem:[#allocation2 + $0xd4] sm:$0x1] %vm220_vm1, %v4457_v0  ;;  %v690_v34 = vld [vmem:[#allocation2 + $0x6c] sm:$0xf] }
  0x27   : > { %270 = vst.msk [vmem:[#allocation2 + $0xcc] sm:$0xf] %vm217_vm0, %v4457_v0  ;;  %271 = vst.msk [vmem:[#allocation2 + $0xd0] sm:$0xf] %vm217_vm0, %v4457_v0  ;;  %v4592_v38 = vrot.slane %v453_v27, 7  ;;  %v309_v39 = vshrl.u32 %v273_v23, 16 }
  0x28   : > { %vm4568_vm7 = vmor %vm1233_vm2, %vm1234_vm3  ;;  %v809_v40 = vrot.slane %v808_v30, 4  ;;  %v819_v41 = vrot.slane %v818_v31, 4  ;;  %v312_v43 = vshll.u32 %v273_v23, 16  ;;  %v317_v44 = vshrl.u32 %v274_v28, 16  ;;  %v291_v48 = vld [vmem:[%s4566_s20 + $0x48] sm:$0xf] }
  0x29   : > { %v1239_v15 = vsel %vm4568_vm7, %v3955_v7, %v1238_v8  ;;  %v1242_v24 = vsel %vm4568_vm7, %v1240_v16, %v1241_v9  ;;  %vm4582_vm10 = vmand %vm217_vm0, %vm630_vm9  ;;  %v458_v45 = vor.u32 %v456_v32, %v4592_v38  ;;  %v311_v47 = vrot.slane %v309_v39, 7  ;;  %v292_v49 = vld [vmem:[%s4566_s20 + $0x4c] sm:$0xf]  ;;  %v275_v55 = vld [vmem:[%s4566_s20 + $0x8] sm:$0xf]  ;;  %s4461_s24 = smov 20  }
  0x2a   : > { %v4131_v29 = vcombine.low %v1239_v15, %v1242_v24  ;;  %vm4588_vm11 = vmor %vm798_vm4, %vm799_vm5  ;;  %v691_v46 = vsel %vm4582_vm10, %v450_v36, %v690_v34  ;;  %v4610_v52 = vrot.slane %v317_v44, 7  ;;  %v320_v53 = vshll.u32 %v274_v28, 16  ;;  %v632_v54 = vld [vmem:[#allocation2 + $0xc] sm:$0xf]  ;;  %v287_v2 = vld [vmem:[%s4566_s20 + $0x38] sm:$0xf] }
  0x2b   : > { %vm4597_vm12 = vmor %vm305_vm6, %vm306_vm8  ;;  %v814_v50 = vsel %vm4588_vm11, %v809_v40, %v813_v21  ;;  %v824_v51 = vsel %vm4588_vm11, %v819_v41, %v823_v17  ;;  %692 = vst [vmem:[#allocation2 + $0x6c] sm:$0xf] %v691_v46  ;;  %v314_v58 = vor.u32 %v312_v43, %v311_v47  ;;  %v315_v59 = vrot.slane %v311_v47, 4  ;;  %v276_v60 = vld [vmem:[%s4566_s20 + $0xc] sm:$0xf]  ;;  %s4462_s25 = smov 16  }
  0x2c   : > { %2716 = vrot.lane.b32.xlu0 %v4131_v29, %s4458_s21  ;;  %v4115_v56 = vcombine.low %v814_v50, %v824_v51  ;;  %v459_v57 = vsel %vm4597_vm12, %v451_v37, %v458_v45  ;;  %v322_v61 = vor.u32 %v320_v53, %v4610_v52  ;;  %v462_v62 = vshrl.u32 %v291_v48, 16  ;;  %v288_v11 = vld [vmem:[%s4566_s20 + $0x3c] sm:$0xf]  ;;  %v697_v12 = vld [vmem:[#allocation2 + $0x78] sm:$0xf]  ;;  %vm4660_vm13 = vmand %vm220_vm1, %vm305_vm6  ;;  %s4463_s26 = smov 24  }
  0x2d   : > { %693 = vst.msk [vmem:[#allocation2 + $0x70] sm:$0xf] %vm217_vm0, %v459_v57  ;;  %v465_v63 = vshll.u32 %v291_v48, 16  ;;  %v470_v0 = vshrl.u32 %v292_v49, 16  ;;  %v633_v3 = vsel %vm4582_vm10, %v314_v58, %v632_v54  ;;  %v473_v4 = vshll.u32 %v292_v49, 16  ;;  %s4464_s27 = smov 28  }
  0x2e   : > { %v326_v5 = vshrl.u32 %v275_v55, 16  ;;  %v329_v6 = vshll.u32 %v275_v55, 16  ;;  %v323_v7 = vsel %vm4597_vm12, %v315_v59, %v322_v61  ;;  %634 = vst [vmem:[#allocation2 + $0xc] sm:$0xf] %v633_v3  ;;  %v464_v8 = vrot.slane %v462_v62, 7  ;;  %s4465_s28 = smov 32  }
  0x2f   : > { %v4624_v9 = vrot.slane %v470_v0, 7  ;;  %v334_v10 = vshrl.u32 %v276_v60, 16  ;;  %635 = vst.msk [vmem:[#allocation2 + $0x10] sm:$0xf] %vm217_vm0, %v323_v7  ;;  %v337_v14 = vshll.u32 %v276_v60, 16  ;;  %v428_v15 = vshrl.u32 %v287_v2, 16 }
  0x30   : > { %2636 = vrot.lane.b32.xlu0 %v4115_v56, %s4459_s22  ;;  %v328_v13 = vrot.slane %v326_v5, 7  ;;  %v431_v16 = vshll.u32 %v287_v2, 16  ;;  %v467_v17 = vor.u32 %v465_v63, %v464_v8  ;;  %v468_v18 = vrot.slane %v464_v8, 4  ;;  %v641_v21 = vld [vmem:[#allocation2 + $0x18] sm:$0xf]  ;;  %p3726_p5 = scmp.eq.s32.totalorder %s4447_s12, 0 }
  0x31   : > { %v475_v19 = vor.u32 %v473_v4, %v4624_v9  ;;  %v4629_v20 = vrot.slane %v334_v10, 7  ;;  %v430_v25 = vrot.slane %v428_v15, 7  ;;  %v436_v26 = vshrl.u32 %v288_v11, 16  ;;  %v683_v39 = vld [vmem:[#allocation2 + $0x60] sm:$0xf] }
  0x32   : > { %v4631_v22 = vld [vmem:[#allocation2 + $0x6c] sm:$0xf]  ;;  %v331_v23 = vor.u32 %v329_v6, %v328_v13  ;;  %v332_v24 = vrot.slane %v328_v13, 4  ;;  %v698_v30 = vsel %vm4582_vm10, %v467_v17, %v697_v12  ;;  %v460_v31 = vrot.slane %v4592_v38, 4  ;;  %v687_v38 = vld [vmem:[#allocation2 + $0x68] sm:$0x1] }
  0x33   : > { %v1593_v27 = vshrl.u32 %v4631_v22, 16  ;;  %v1596_v28 = vshll.u32 %v4631_v22, 16  ;;  %v476_v29 = vsel %vm4597_vm12, %v468_v18, %v475_v19  ;;  %699 = vst [vmem:[#allocation2 + $0x78] sm:$0xf] %v698_v30  ;;  %v339_v34 = vor.u32 %v337_v14, %v4629_v20  ;;  %v694_v44 = vld [vmem:[#allocation2 + $0x74] sm:$0x1] }
  0x34   : > { %v4640_v32 = vld [vmem:[#allocation2 + $0x70] sm:$0xf]  ;;  %700 = vst.msk [vmem:[#allocation2 + $0x7c] sm:$0xf] %vm217_vm0, %v476_v29  ;;  %v642_v36 = vsel %vm4582_vm10, %v331_v23, %v641_v21  ;;  %v433_v37 = vor.u32 %v431_v16, %v430_v25  ;;  %v434_v43 = vrot.slane %v430_v25, 4  ;;  %v438_v48 = vrot.slane %v436_v26, 7 }
  0x35   : > { %v1606_v40 = vshrl.u32 %v4640_v32, 16  ;;  %v4155_v41 = vcombine.low %v4631_v22, %v4640_v32  ;;  %643 = vst [vmem:[#allocation2 + $0x18] sm:$0xf] %v642_v36  ;;  %v1602_v45 = vshll.u32 %v4640_v32, 16  ;;  %v4650_v46 = vld [vmem:[#allocation2 + $0xc] sm:$0xf]  ;;  %v340_v47 = vsel %vm4597_vm12, %v332_v24, %v339_v34 }
  0x36   : > { %v439_v49 = vshll.u32 %v288_v11, 16  ;;  %v638_v50 = vld [vmem:[#allocation2 + $0x14] sm:$0x1]  ;;  %v4654_v51 = vld [vmem:[#allocation2 + $0x6c] sm:$0xf]  ;;  %v4667_v56 = vrot.slane %v1593_v27, 4  ;;  %v684_v59 = vsel %vm4582_vm10, %v433_v37, %v683_v39  ;;  %v695_v6 = vsel %vm4660_vm13, %v460_v31, %v694_v44 }
  0x37   : > { %v4656_v53 = vld [vmem:[#allocation2 + $0x70] sm:$0xf]  ;;  %v4664_v55 = vrot.slane %v1606_v40, 4  ;;  %2812 = vrot.lane.b32.xlu1 %v4155_v41, %s4460_s23  ;;  %v4669_v57 = vrot.slane %v1596_v28, 5  ;;  %644 = vst.msk [vmem:[#allocation2 + $0x1c] sm:$0xf] %vm217_vm0, %v340_v47 }
  0x38   : > { %v4671_v58 = vld [vmem:[#allocation2 + $0x10] sm:$0xf]  ;;  %v1401_v61 = vshrl.u32 %v4650_v46, 16  ;;  %v441_v62 = vor.u32 %v439_v49, %v438_v48  ;;  %v443_v63 = vrot.slane %v438_v48, 4  ;;  %685 = vst [vmem:[#allocation2 + $0x60] sm:$0xf] %v684_v59 }
  0x39   : > { %v4147_v60 = vcombine.low %v4650_v46, %v4671_v58  ;;  %v4679_v0 = vld [vmem:[#allocation2 + $0xc] sm:$0xf]  ;;  %v4681_v2 = vld [vmem:[#allocation2 + $0x10] sm:$0xf]  ;;  %v1404_v3 = vshll.u32 %v4650_v46, 16  ;;  %v324_v4 = vrot.slane %v4610_v52, 4 }
  0x3a   : > { %v1245_v5 = vrot.slane %v4681_v2, 5  ;;  %v1414_v7 = vshrl.u32 %v4671_v58, 16  ;;  %v442_v8 = vsel %vm4597_vm12, %v434_v43, %v441_v62  ;;  %v688_v10 = vsel %vm4660_vm13, %v443_v63, %v687_v38  ;;  %696 = vst [vmem:[#allocation2 + $0x74] sm:$0x1] %v695_v6  ;;  %v4695_v12 = vld [vmem:[#allocation2 + $0x78] sm:$0xf] }
  0x3b   : > { %2796 = vrot.lane.b32.xlu0 %v4147_v60, %s4460_s23  ;;  %v3956_v11 = vrot.slane %v4679_v0, 9  ;;  %v4697_v52 = vld [vmem:[#allocation2 + $0x7c] sm:$0xf]  ;;  %686 = vst.msk [vmem:[#allocation2 + $0x64] sm:$0xf] %vm217_vm0, %v442_v8  ;;  %v639_v13 = vsel %vm4660_vm13, %v324_v4, %v638_v50  ;;  %v3964_v14 = vrot.slane %v4654_v51, 9 }
  0x3c   : > { %689 = vst [vmem:[#allocation2 + $0x68] sm:$0x1] %v688_v10  ;;  %v1301_v15 = vrot.slane %v4656_v53, 5  ;;  %v4156_v17 = vcombine.low %v4695_v12, %v4697_v52  ;;  %v4707_v18 = vld [vmem:[#allocation2 + $0x18] sm:$0xf]  ;;  %v1247_v19 = vrot.slane %v1245_v5, 4 }
  0x3d   : > { %640 = vst [vmem:[#allocation2 + $0x14] sm:$0x1] %v639_v13  ;;  %v4019_v21 = vrot.slane %v4650_v46, 9  ;;  %v1425_v25 = vshrl.u32 %v4707_v18, 16  ;;  %v1428_v26 = vshll.u32 %v4707_v18, 16  ;;  %v1834_v28 = vrot.slane %v4671_v58, 5 }
  0x3e   : > { %2814 = vrot.lane.b32.xlu1 %v4156_v17, %s4460_s23  ;;  %v4715_v27 = vld [vmem:[#allocation2 + $0x1c] sm:$0xf]  ;;  %v4027_v29 = vrot.slane %v4631_v22, 9  ;;  %v1890_v30 = vrot.slane %v4640_v32, 5  ;;  %v1403_v31 = vrot.slane %v1401_v61, 4  ;;  %v1246_v37 = vsel %vm4568_vm7, %v3956_v11, %v1245_v5 }
  0x3f   : > { %v4148_v34 = vcombine.low %v4707_v18, %v4715_v27  ;;  %v774_v36 = vld [vmem:[#allocation2 + $0x60] sm:$0xf]  ;;  %v1303_v39 = vrot.slane %v1301_v15, 4  ;;  %v1406_v40 = vrot.slane %v1404_v3, 5  ;;  %v4724_v41 = vld [vmem:[#allocation2 + $0x18] sm:$0xf]  ;;  %v1302_v48 = vsel %vm4568_vm7, %v3964_v14, %v1301_v15 }
  0x40   : > { %v1438_v43 = vshrl.u32 %v4715_v27, 16  ;;  %v3963_v38 = vrot.slane %v774_v36, 9  ;;  %v1836_v44 = vrot.slane %v1834_v28, 4  ;;  %v1410_v22 = vshll.u32 %v4671_v58, 16  ;;  %v4728_v46 = vld [vmem:[#allocation2 + $0x1c] sm:$0xf] }
  0x41   : > { %2798 = vrot.lane.b32.xlu0 %v4148_v34, %s4460_s23  ;;  %v4731_v47 = vld [vmem:[#allocation2 + $0x74] sm:$0x1]  ;;  %v1835_v49 = vsel %vm4568_vm7, %v4019_v21, %v1834_v28  ;;  %v1892_v59 = vrot.slane %v1890_v30, 4  ;;  %v994_v60 = vshrl.u32 %v774_v36, 16  ;;  %v4742_v3 = vsel %vm4568_vm7, %v4027_v29, %v1890_v30 }
  0x42   : > { %v4737_v50 = vld [vmem:[#allocation2 + $0x74] sm:$0x1]  ;;  %v775_v61 = vld [vmem:[#allocation2 + $0x64] sm:$0xf]  ;;  %v1304_v63 = vrot.slane %v4731_v47, 5  ;;  %v1407_v5 = vor.u32 %v1406_v40, %v1403_v31  ;;  %v1599_v13 = vor.u32 %v4669_v57, %v4667_v56  ;;  %v997_v23 = vshll.u32 %v774_v36, 16 }
  0x43   : > { %v776_v62 = vld [vmem:[#allocation2 + $0x68] sm:$0x1]  ;;  %v1893_v4 = vrot.slane %v4737_v50, 5  ;;  %v1294_v6 = vrot.slane %v775_v61, 5  ;;  %v996_v24 = vrot.slane %v994_v60, 4  ;;  %v835_v58 = vshll.u32 %v4681_v2, 16 }
  0x44   : > { %v1297_v8 = vrot.slane %v776_v62, 5  ;;  %v755_v10 = vld [vmem:[#allocation2 + $0x14] sm:$0x1]  ;;  %v1305_v17 = vsel %vm4568_vm7, %v1303_v39, %v1304_v63  ;;  %vm3277_vm15 = vcmask 64512   ;;  %vm3310_vm1 = vcmask 97280  }
  0x45   : > { %v3973_v11 = vld [vmem:[#allocation2 + $0x14] sm:$0x1]  ;;  %v1248_v15 = vrot.slane %v755_v10, 5  ;;  %v1894_v28 = vsel %vm4568_vm7, %v1892_v59, %v1893_v4  ;;  %v1295_v29 = vsel %vm4568_vm7, %v3963_v38, %v1294_v6  ;;  %v1296_v30 = vrot.slane %v1294_v6, 4 }
  0x46   : > { %v1837_v21 = vrot.slane %v3973_v11, 5  ;;  %v4140_v31 = vcombine.low %v1302_v48, %v1305_v17  ;;  %v4187_v34 = vcombine.low %v4742_v3, %v1894_v28  ;;  %v1003_v4 = vshll.u32 %v775_v61, 16 }
  0x47   : > { %v1249_v40 = vsel %vm4568_vm7, %v1247_v19, %v1248_v15  ;;  %v1298_v39 = vsel %vm4568_vm7, %v1296_v30, %v1297_v8  ;;  %v999_v38 = vrot.slane %v997_v23, 5  ;;  %v1007_v6 = vshrl.u32 %v775_v61, 16 }
  0x48   : > { %v1838_v14 = vsel %vm4568_vm7, %v1836_v44, %v1837_v21  ;;  %v4132_v63 = vcombine.low %v1246_v37, %v1249_v40  ;;  %v4139_v16 = vcombine.low %v1295_v29, %v1298_v39  ;;  %v1013_v48 = vshll.u32 %v776_v62, 16  ;;  %v645_v29 = vld [vmem:[#allocation2 + $0x20] sm:$0x1] }
  0x49   : > { %v4179_v59 = vcombine.low %v1835_v49, %v1838_v14  ;;  %v1005_v3 = vrot.slane %v1003_v4, 5  ;;  %v1408_v17 = vrot.slane %v1407_v5, 4  ;;  %v1412_v19 = vrot.slane %v1410_v22, 5 }
  0x4a   : > { %2718 = vrot.lane.b32.xlu0 %v4132_v63, %s4458_s21  ;;  %v1416_v44 = vrot.slane %v1414_v7, 4  ;;  %2732 = vrot.lane.b32.xlu1 %v4139_v16, %s4458_s21  ;;  %v1000_v36 = vor.u32 %v999_v38, %v996_v24  ;;  %v1009_v60 = vrot.slane %v1007_v6, 4  ;;  %v1015_v8 = vrot.slane %v1013_v48, 5 }
  0x4b   : > { %v1420_v37 = vshll.u32 %v3973_v11, 16  ;;  %v1413_v49 = vsel %vm4588_vm11, %v1408_v17, %v1412_v19  ;;  %v826_v61 = vshrl.u32 %v4679_v0, 16  ;;  %v829_v62 = vshll.u32 %v4679_v0, 16 }
  0x4c   : > { %v1417_v23 = vor.u32 %v1416_v44, %v1412_v19  ;;  %v1001_v14 = vrot.slane %v1000_v36, 4  ;;  %v1010_v5 = vor.u32 %v1009_v60, %v1005_v3  ;;  %v839_v11 = vshrl.u32 %v4681_v2, 16 }
  0x4d   : > { %v1422_v22 = vrot.slane %v1420_v37, 5  ;;  %v828_v16 = vrot.slane %v826_v61, 4  ;;  %v831_v24 = vrot.slane %v829_v62, 5  ;;  %v837_v0 = vrot.slane %v835_v58, 5 }
  0x4e   : > { %2956 = vrot.lane.b32.xlu0 %v4179_v59, %s4461_s24  ;;  %v1418_v7 = vrot.slane %v1417_v23, 4  ;;  %2734 = vrot.lane.b32.xlu1 %v4140_v31, %s4458_s21  ;;  %v1006_v15 = vsel %vm4588_vm11, %v1001_v14, %v1005_v3  ;;  %v1011_v21 = vrot.slane %v1010_v5, 4  ;;  %v845_v28 = vshll.u32 %v755_v10, 16 }
  0x4f   : > { %v832_v40 = vor.u32 %v831_v24, %v828_v16  ;;  %v841_v39 = vrot.slane %v839_v11, 4  ;;  %v341_v63 = vrot.slane %v4629_v20, 4  ;;  %v1427_v31 = vrot.slane %v1425_v25, 4 }
  0x50   : > { %v1423_v30 = vsel %vm4588_vm11, %v1418_v7, %v1422_v22  ;;  %v1016_v59 = vsel %vm4588_vm11, %v1011_v21, %v1015_v8  ;;  %v847_v4 = vrot.slane %v845_v28, 5  ;;  %v1430_v20 = vrot.slane %v1428_v26, 5 }
  0x51   : > { %v4163_v2 = vcombine.low %v1413_v49, %v1423_v30  ;;  %v4123_v38 = vcombine.low %v1006_v15, %v1016_v59  ;;  %v833_v6 = vrot.slane %v832_v40, 4  ;;  %v842_v48 = vor.u32 %v841_v39, %v837_v0 }
  0x52   : > { %v646_v10 = vsel %vm4660_vm13, %v341_v63, %v645_v29  ;;  %2972 = vrot.lane.b32.xlu1 %v4187_v34, %s4461_s24  ;;  %v1434_v3 = vshll.u32 %v4715_v27, 16  ;;  %v1440_v17 = vrot.slane %v1438_v43, 4  ;;  %v1018_v19 = vshrl.u32 %v4654_v51, 16 }
  0x53   : > { %647 = vst [vmem:[#allocation2 + $0x20] sm:$0x1] %v646_v10  ;;  %2652 = vrot.lane.b32.xlu0 %v4123_v38, %s4459_s22  ;;  %v838_v25 = vsel %vm4588_vm11, %v833_v6, %v837_v0  ;;  %v843_v44 = vrot.slane %v842_v48, 4  ;;  %v1021_v36 = vshll.u32 %v4654_v51, 16  ;;  %v1027_v34 = vshll.u32 %v4656_v53, 16 }
  0x54   : > { %v1431_v60 = vor.u32 %v1430_v20, %v1427_v31  ;;  %v1436_v8 = vrot.slane %v1434_v3, 5  ;;  %v1020_v26 = vrot.slane %v1018_v19, 4  ;;  %v1031_v37 = vshrl.u32 %v4656_v53, 16  ;;  %v701_v38 = vld [vmem:[#allocation2 + $0x80] sm:$0x1] }
  0x55   : > { %v848_v43 = vsel %vm4588_vm11, %v843_v44, %v847_v4  ;;  %v1023_v49 = vrot.slane %v1021_v36, 5  ;;  %v1029_v23 = vrot.slane %v1027_v34, 5  ;;  %v1037_v61 = vshll.u32 %v4731_v47, 16  ;;  %v277_v6 = vld [vmem:[%s4566_s20 + $0x10] sm:$0xf] }
  0x56   : > { %v4116_v62 = vcombine.low %v838_v25, %v848_v43  ;;  %v1432_v14 = vrot.slane %v1431_v60, 4  ;;  %v1441_v5 = vor.u32 %v1440_v17, %v1436_v8  ;;  %v1033_v22 = vrot.slane %v1031_v37, 4  ;;  %v278_v17 = vld [vmem:[%s4566_s20 + $0x14] sm:$0xf] }
  0x57   : > { %2876 = vrot.lane.b32.xlu0 %v4163_v2, %s4462_s25  ;;  %v1024_v51 = vor.u32 %v1023_v49, %v1020_v26  ;;  %v1039_v58 = vrot.slane %v1037_v61, 5  ;;  %v4020_v7 = vrot.slane %v4707_v18, 9  ;;  %v1841_v53 = vrot.slane %v4715_v27, 5 }
  0x58   : > { %2638 = vrot.lane.b32.xlu1 %v4116_v62, %s4459_s22  ;;  %v1437_v16 = vsel %vm4588_vm11, %v1432_v14, %v1436_v8  ;;  %v1442_v24 = vrot.slane %v1441_v5, 4  ;;  %v1034_v47 = vor.u32 %v1033_v22, %v1029_v23  ;;  %v1600_v11 = vrot.slane %v1599_v13, 4  ;;  %v648_v5 = vld [vmem:[#allocation2 + $0x24] sm:$0xf] }
  0x59   : > { %v1025_v21 = vrot.slane %v1024_v51, 4  ;;  %v1842_v0 = vsel %vm4568_vm7, %v4020_v7, %v1841_v53  ;;  %v1843_v28 = vrot.slane %v1841_v53, 4  ;;  %v1604_v18 = vrot.slane %v1602_v45, 5 }
  0x5a   : > { %v3976_v15 = vld [vmem:[#allocation2 + $0x20] sm:$0x1]  ;;  %v1035_v29 = vrot.slane %v1034_v47, 4  ;;  %v1612_v40 = vshll.u32 %v4737_v50, 16  ;;  %v1997_v13 = vshrl.u32 %v4724_v41, 16  ;;  %v2000_v31 = vshll.u32 %v4724_v41, 16 }
  0x5b   : > { %v1444_v27 = vshll.u32 %v3976_v15, 16  ;;  %v1844_v30 = vrot.slane %v3976_v15, 5  ;;  %v1030_v39 = vsel %vm4588_vm11, %v1025_v21, %v1029_v23  ;;  %v1605_v56 = vsel %vm4588_vm11, %v1600_v11, %v1604_v18 }
  0x5c   : > { %v1609_v57 = vor.u32 %v4664_v55, %v1604_v18  ;;  %v1040_v32 = vsel %vm4588_vm11, %v1035_v29, %v1039_v58  ;;  %v1614_v59 = vrot.slane %v1612_v40, 5  ;;  %v2010_v48 = vshrl.u32 %v4728_v46, 16 }
  0x5d   : > { %v1446_v63 = vrot.slane %v1444_v27, 5  ;;  %v1845_v45 = vsel %vm4568_vm7, %v1843_v28, %v1844_v30  ;;  %v4124_v50 = vcombine.low %v1030_v39, %v1040_v32  ;;  %v477_v10 = vrot.slane %v4624_v9, 4  ;;  %v4863_v27 = vld [vmem:[#allocation2 + $0x7c] sm:$0xf] }
  0x5e   : > { %v4180_v2 = vcombine.low %v1842_v0, %v1845_v45  ;;  %v1610_v4 = vrot.slane %v1609_v57, 4  ;;  %v6645_v20 = vshrl.u32 %v4695_v12, 16  ;;  %v6646_v44 = vshll.u32 %v4695_v12, 16  ;;  %v4857_v0 = vld [vmem:[#allocation2 + $0x78] sm:$0xf] }
  0x5f   : > { %v1447_v55 = vsel %vm4588_vm11, %v1442_v24, %v1446_v63  ;;  %2654 = vrot.lane.b32.xlu1 %v4124_v50, %s4459_s22  ;;  %v1626_v34 = vshll.u32 %v4697_v52, 16  ;;  %v702_v8 = vsel %vm4660_vm13, %v477_v10, %v701_v38  ;;  %v6647_v9 = vshrl.u32 %v4697_v52, 16  ;;  %v293_v45 = vld [vmem:[%s4566_s20 + $0x50] sm:$0xf] }
  0x60   : > { %v1619_v3 = vrot.slane %v6645_v20, 4  ;;  %v4164_v19 = vcombine.low %v1437_v16, %v1447_v55  ;;  %v1615_v25 = vsel %vm4588_vm11, %v1610_v4, %v1614_v59  ;;  %v1622_v36 = vrot.slane %v6646_v44, 5  ;;  %703 = vst [vmem:[#allocation2 + $0x80] sm:$0x1] %v702_v8  ;;  %v4851_v16 = vld [vmem:[#allocation2 + $0x20] sm:$0x1] }
  0x61   : > { %v4171_v60 = vcombine.low %v1605_v56, %v1615_v25  ;;  %v1632_v26 = vrot.slane %v6647_v9, 4  ;;  %v343_v37 = vshrl.u32 %v277_v6, 16  ;;  %v4845_v49 = vrot.slane %v1626_v34, 5  ;;  %v652_v56 = vld [vmem:[#allocation2 + $0x2c] sm:$0x1] }
  0x62   : > { %2878 = vrot.lane.b32.xlu0 %v4164_v19, %s4462_s25  ;;  %v1623_v43 = vor.u32 %v1622_v36, %v1619_v3  ;;  %v346_v23 = vshll.u32 %v277_v6, 16  ;;  %v351_v61 = vshrl.u32 %v278_v17, 16  ;;  %v354_v14 = vshll.u32 %v278_v17, 16  ;;  %v294_v59 = vld [vmem:[%s4566_s20 + $0x54] sm:$0xf] }
  0x63   : > { %v345_v62 = vrot.slane %v343_v37, 7  ;;  %v4028_v22 = vrot.slane %v4695_v12, 9  ;;  %v1897_v51 = vrot.slane %v4697_v52, 5  ;;  %2892 = vrot.lane.b32.xlu1 %v4171_v60, %s4462_s25  ;;  %v1633_v7 = vor.u32 %v1632_v26, %v4845_v49 }
  0x64   : > { %v1624_v58 = vrot.slane %v1623_v43, 4  ;;  %v353_v53 = vrot.slane %v351_v61, 7  ;;  %v1999_v24 = vrot.slane %v1997_v13, 4  ;;  %v2002_v18 = vrot.slane %v2000_v31, 5 }
  0x65   : > { %v348_v47 = vor.u32 %v346_v23, %v345_v62  ;;  %v349_v11 = vrot.slane %v345_v62, 4  ;;  %v4855_v15 = vsel %vm4568_vm7, %v4028_v22, %v1897_v51  ;;  %v1899_v21 = vrot.slane %v1897_v51, 4  ;;  %v704_v23 = vld [vmem:[#allocation2 + $0x84] sm:$0xf] }
  0x66   : > { %2958 = vrot.lane.b32.xlu0 %v4180_v2, %s4461_s24  ;;  %v1629_v12 = vsel %vm4588_vm11, %v1624_v58, %v4845_v49  ;;  %v1634_v52 = vrot.slane %v1633_v7, 4  ;;  %v356_v28 = vor.u32 %v354_v14, %v353_v53  ;;  %v2006_v30 = vshll.u32 %v4728_v46, 16 }
  0x67   : > { %v649_v29 = vsel %vm4582_vm10, %v348_v47, %v648_v5  ;;  %v2012_v40 = vrot.slane %v2010_v48, 4  ;;  %v2016_v39 = vshll.u32 %v4851_v16, 16  ;;  %v2003_v13 = vor.u32 %v2002_v18, %v1999_v24  ;;  %v4000_v50 = vld [vmem:[#allocation2 + $0x80] sm:$0x1] }
  0x68   : > { %v357_v57 = vsel %vm4597_vm12, %v349_v11, %v356_v28  ;;  %650 = vst [vmem:[#allocation2 + $0x24] sm:$0xf] %v649_v29  ;;  %v2189_v63 = vshrl.u32 %v4857_v0, 16  ;;  %v2192_v32 = vshll.u32 %v4857_v0, 16  ;;  %v2008_v2 = vrot.slane %v2006_v30, 5 }
  0x69   : > { %651 = vst.msk [vmem:[#allocation2 + $0x28] sm:$0xf] %vm217_vm0, %v357_v57  ;;  %v2018_v4 = vrot.slane %v2016_v39, 5  ;;  %v2202_v31 = vshrl.u32 %v4863_v27, 16  ;;  %v4203_v38 = vcombine.low %v4857_v0, %v4863_v27  ;;  %v6648_v6 = vcombine.low %v4724_v41, %v4728_v46  ;;  %v4918_v29 = vld [vmem:[#allocation2 + $0x18] sm:$0xf] }
  0x6a   : > { %v1636_v55 = vshll.u32 %v4000_v50, 16  ;;  %v1900_v48 = vrot.slane %v4000_v50, 5  ;;  %v2004_v10 = vrot.slane %v2003_v13, 4  ;;  %v358_v20 = vrot.slane %v353_v53, 4  ;;  %v4923_v57 = vld [vmem:[#allocation2 + $0x80] sm:$0x1] }
  0x6b   : > { %3036 = vrot.lane.b32.xlu0 %v6648_v6, %s4463_s26  ;;  %v2013_v3 = vor.u32 %v2012_v40, %v2008_v2  ;;  %v479_v17 = vshrl.u32 %v293_v45, 16  ;;  %v482_v19 = vshll.u32 %v293_v45, 16  ;;  %v487_v25 = vshrl.u32 %v294_v59, 16 }
  0x6c   : > { %v1638_v44 = vrot.slane %v1636_v55, 5  ;;  %v1901_v36 = vsel %vm4568_vm7, %v1899_v21, %v1900_v48  ;;  %v2009_v34 = vsel %vm4588_vm11, %v2004_v10, %v2008_v2  ;;  %v653_v60 = vsel %vm4660_vm13, %v358_v20, %v652_v56 }
  0x6d   : > { %v4188_v8 = vcombine.low %v4855_v15, %v1901_v36  ;;  %v2014_v9 = vrot.slane %v2013_v3, 4  ;;  %654 = vst [vmem:[#allocation2 + $0x2c] sm:$0x1] %v653_v60  ;;  %v481_v26 = vrot.slane %v479_v17, 7  ;;  %v4890_v37 = vrot.slane %v487_v25, 7 }
  0x6e   : > { %v1639_v43 = vsel %vm4588_vm11, %v1634_v52, %v1638_v44  ;;  %v490_v49 = vshll.u32 %v294_v59, 16  ;;  %v4083_v61 = vrot.slane %v4724_v41, 9  ;;  %v2430_v62 = vrot.slane %v4728_v46, 5  ;;  %v4939_v3 = vld [vmem:[#allocation2 + $0x1c] sm:$0xf] }
  0x6f   : > { %v4172_v14 = vcombine.low %v1629_v12, %v1639_v43  ;;  %v4896_v5 = vld [vmem:[#allocation2 + $0x24] sm:$0xf]  ;;  %v2019_v22 = vsel %vm4588_vm11, %v2014_v9, %v2018_v4  ;;  %v484_v51 = vor.u32 %v482_v19, %v481_v26  ;;  %v485_v58 = vrot.slane %v481_v26, 4 }
  0x70   : > { %v4900_v7 = vld [vmem:[#allocation2 + $0x28] sm:$0xf]  ;;  %v2021_v53 = vshrl.u32 %v4896_v5, 16  ;;  %v2024_v24 = vshll.u32 %v4896_v5, 16  ;;  %v4211_v47 = vcombine.low %v2009_v34, %v2019_v22  ;;  %v492_v11 = vor.u32 %v490_v49, %v4890_v37  ;;  %v4946_v34 = vld [vmem:[#allocation2 + $0x20] sm:$0x1] }
  0x71   : > { %2894 = vrot.lane.b32.xlu1 %v4172_v14, %s4462_s25  ;;  %v2034_v41 = vshrl.u32 %v4900_v7, 16  ;;  %v4196_v46 = vcombine.low %v4896_v5, %v4900_v7  ;;  %v2030_v15 = vshll.u32 %v4900_v7, 16  ;;  %v705_v21 = vsel %vm4582_vm10, %v484_v51, %v704_v23 }
  0x72   : > { %v2023_v12 = vrot.slane %v2021_v53, 4  ;;  %v2026_v52 = vrot.slane %v2024_v24, 5  ;;  %v493_v28 = vsel %vm4597_vm12, %v485_v58, %v492_v11  ;;  %706 = vst [vmem:[#allocation2 + $0x84] sm:$0xf] %v705_v21  ;;  %v4916_v18 = vsel %vm4568_vm7, %v4083_v61, %v2430_v62  ;;  %v708_v24 = vld [vmem:[#allocation2 + $0x8c] sm:$0x1] }
  0x73   : > { %3038 = vrot.lane.b32.xlu0 %v4196_v46, %s4463_s26  ;;  %v2032_v30 = vrot.slane %v2030_v15, 5  ;;  %v2036_v40 = vrot.slane %v2034_v41, 4  ;;  %707 = vst.msk [vmem:[#allocation2 + $0x88] sm:$0xf] %vm217_vm0, %v493_v28  ;;  %v2432_v39 = vrot.slane %v2430_v62, 4  ;;  %v2433_v56 = vrot.slane %v4851_v16, 5 }
  0x74   : > { %v4925_v13 = vld [vmem:[#allocation2 + $0x2c] sm:$0x1]  ;;  %v2027_v45 = vor.u32 %v2026_v52, %v2023_v12  ;;  %v2191_v59 = vrot.slane %v2189_v63, 4  ;;  %v2194_v50 = vrot.slane %v2192_v32, 5  ;;  %v2198_v2 = vshll.u32 %v4863_v27, 16 }
  0x75   : > { %2974 = vrot.lane.b32.xlu1 %v4188_v8, %s4461_s24  ;;  %v2037_v4 = vor.u32 %v2036_v40, %v2032_v30  ;;  %v2040_v6 = vshll.u32 %v4925_v13, 16  ;;  %v2434_v16 = vsel %vm4568_vm7, %v2432_v39, %v2433_v56  ;;  %v2204_v55 = vrot.slane %v2202_v31, 4 }
  0x76   : > { %v2028_v48 = vrot.slane %v2027_v45, 4  ;;  %v4227_v10 = vcombine.low %v4916_v18, %v2434_v16  ;;  %v2195_v63 = vor.u32 %v2194_v50, %v2191_v59  ;;  %v2200_v20 = vrot.slane %v2198_v2, 5 }
  0x77   : > { %3116 = vrot.lane.b32.xlu0 %v4211_v47, %s4464_s27  ;;  %v2038_v32 = vrot.slane %v2037_v4, 4  ;;  %v2042_v17 = vrot.slane %v2040_v6, 5  ;;  %v2208_v19 = vshll.u32 %v4923_v57, 16  ;;  %v850_v25 = vshrl.u32 %v4918_v29, 16  ;;  %v4981_v6 = vld [vmem:[#allocation2 + $0x24] sm:$0xf] }
  0x78   : > { %v2033_v44 = vsel %vm4588_vm11, %v2028_v48, %v2032_v30  ;;  %v2196_v31 = vrot.slane %v2195_v63, 4  ;;  %v2205_v36 = vor.u32 %v2204_v55, %v2200_v20  ;;  %v853_v60 = vshll.u32 %v4918_v29, 16 }
  0x79   : > { %3052 = vrot.lane.b32.xlu1 %v4203_v38, %s4463_s26  ;;  %v2043_v8 = vsel %vm4588_vm11, %v2038_v32, %v2042_v17  ;;  %v4955_v9 = vld [vmem:[#allocation2 + $0x84] sm:$0xf]  ;;  %v2210_v26 = vrot.slane %v2208_v19, 5  ;;  %v852_v43 = vrot.slane %v850_v25, 4  ;;  %v859_v49 = vshll.u32 %v4939_v3, 16 }
  0x7a   : > { %v4212_v23 = vcombine.low %v2033_v44, %v2043_v8  ;;  %v4958_v61 = vld [vmem:[#allocation2 + $0x88] sm:$0xf]  ;;  %v2213_v62 = vshrl.u32 %v4955_v9, 16  ;;  %v2216_v14 = vshll.u32 %v4955_v9, 16  ;;  %v2201_v22 = vsel %vm4588_vm11, %v2196_v31, %v2200_v20 }
  0x7b   : > { %v2226_v38 = vshrl.u32 %v4958_v61, 16  ;;  %v4204_v51 = vcombine.low %v4955_v9, %v4958_v61  ;;  %v2206_v58 = vrot.slane %v2205_v36, 4  ;;  %v855_v53 = vrot.slane %v853_v60, 5  ;;  %v4993_v19 = vld [vmem:[#allocation2 + $0x28] sm:$0xf] }
  0x7c   : > { %3118 = vrot.lane.b32.xlu0 %v4212_v23, %s4464_s27  ;;  %v861_v47 = vrot.slane %v859_v49, 5  ;;  %v863_v11 = vshrl.u32 %v4939_v3, 16  ;;  %v869_v41 = vshll.u32 %v4946_v34, 16  ;;  %v494_v46 = vrot.slane %v4890_v37, 4  ;;  %v5004_v36 = vld [vmem:[#allocation2 + $0x2c] sm:$0x1] }
  0x7d   : > { %3054 = vrot.lane.b32.xlu1 %v4204_v51, %s4463_s26  ;;  %v2211_v15 = vsel %vm4588_vm11, %v2206_v58, %v2210_v26  ;;  %v856_v21 = vor.u32 %v855_v53, %v852_v43  ;;  %v2215_v12 = vrot.slane %v2213_v62, 4  ;;  %v2218_v52 = vrot.slane %v2216_v14, 5  ;;  %v5006_v60 = vld [vmem:[#allocation2 + $0x78] sm:$0xf]  ;;  %v5008_v49 = vld [vmem:[#allocation2 + $0x7c] sm:$0xf] }
  0x7e   : > { %v4219_v28 = vcombine.low %v2201_v22, %v2211_v15  ;;  %v865_v18 = vrot.slane %v863_v11, 4  ;;  %v871_v30 = vrot.slane %v869_v41, 5  ;;  %v709_v40 = vsel %vm4660_vm13, %v494_v46, %v708_v24  ;;  %v5022_v46 = vld [vmem:[#allocation2 + $0x80] sm:$0x1] }
  0x7f   : > { %v857_v39 = vrot.slane %v856_v21, 4  ;;  %710 = vst [vmem:[#allocation2 + $0x8c] sm:$0x1] %v709_v40  ;;  %v2219_v56 = vor.u32 %v2218_v52, %v2215_v12  ;;  %v2222_v45 = vshll.u32 %v4958_v61, 16  ;;  %v2228_v37 = vrot.slane %v2226_v38, 4 }
  0x80   : > { %3196 = vrot.lane.b32.xlu0 %v4227_v10, %s4465_s28  ;;  %v866_v59 = vor.u32 %v865_v18, %v861_v47  ;;  %v4084_v50 = vrot.slane %v4896_v5, 9  ;;  %v2437_v2 = vrot.slane %v4900_v7, 5  ;;  %v2440_v4 = vrot.slane %v4925_v13, 5 }
  0x81   : > { %3132 = vrot.lane.b32.xlu1 %v4219_v28, %s4464_s27  ;;  %v862_v16 = vsel %vm4588_vm11, %v857_v39, %v861_v47  ;;  %v2220_v55 = vrot.slane %v2219_v56, 4  ;;  %v2224_v48 = vrot.slane %v2222_v45, 5  ;;  %v4091_v63 = vrot.slane %v4857_v0, 9 }
  0x82   : > { %v867_v20 = vrot.slane %v866_v59, 4  ;;  %v2438_v10 = vsel %vm4568_vm7, %v4084_v50, %v2437_v2  ;;  %v2439_v5 = vrot.slane %v2437_v2, 4  ;;  %v2486_v7 = vrot.slane %v4863_v27, 5 }
  0x83   : > { %v2225_v13 = vsel %vm4588_vm11, %v2220_v55, %v2224_v48  ;;  %v2229_v32 = vor.u32 %v2228_v37, %v2224_v48  ;;  %v2489_v17 = vrot.slane %v4923_v57, 5  ;;  %v874_v25 = vshrl.u32 %v4981_v6, 16 }
  0x84   : > { %v872_v0 = vsel %vm4588_vm11, %v867_v20, %v871_v30  ;;  %v2441_v44 = vsel %vm4568_vm7, %v2439_v5, %v2440_v4  ;;  %v5002_v31 = vsel %vm4568_vm7, %v4091_v63, %v2486_v7  ;;  %v2488_v27 = vrot.slane %v2486_v7, 4 }
  0x85   : > { %v4117_v57 = vcombine.low %v862_v16, %v872_v0  ;;  %v2230_v8 = vrot.slane %v2229_v32, 4  ;;  %v4228_v26 = vcombine.low %v2438_v10, %v2441_v44  ;;  %v876_v43 = vrot.slane %v874_v25, 4 }
  0x86   : > { %v5010_v23 = vld [vmem:[#allocation2 + $0x8c] sm:$0x1]  ;;  %v2490_v62 = vsel %vm4568_vm7, %v2488_v27, %v2489_v17  ;;  %v877_v14 = vshll.u32 %v4981_v6, 16  ;;  %v883_v22 = vshll.u32 %v4993_v19, 16  ;;  %v887_v38 = vshrl.u32 %v4993_v19, 16 }
  0x87   : > { %2640 = vrot.lane.b32.xlu0 %v4117_v57, %s4459_s22  ;;  %v2232_v51 = vshll.u32 %v5010_v23, 16  ;;  %v4235_v58 = vcombine.low %v5002_v31, %v2490_v62  ;;  %v893_v53 = vshll.u32 %v5004_v36, 16  ;;  %v1042_v24 = vshrl.u32 %v5006_v60, 16 }
  0x88   : > { %v879_v47 = vrot.slane %v877_v14, 5  ;;  %v885_v11 = vrot.slane %v883_v22, 5  ;;  %v889_v41 = vrot.slane %v887_v38, 4  ;;  %v1045_v15 = vshll.u32 %v5006_v60, 16  ;;  %v5064_v22 = vld [vmem:[#allocation2 + $0x8c] sm:$0x1] }
  0x89   : > { %v2234_v21 = vrot.slane %v2232_v51, 5  ;;  %v895_v12 = vrot.slane %v893_v53, 5  ;;  %v1044_v52 = vrot.slane %v1042_v24, 4  ;;  %v1051_v28 = vshll.u32 %v5008_v49, 16  ;;  %v5067_v38 = vld [vmem:[#allocation2 + $0x24] sm:$0xf] }
  0x8a   : > { %v880_v18 = vor.u32 %v879_v47, %v876_v43  ;;  %v890_v30 = vor.u32 %v889_v41, %v885_v11  ;;  %v1047_v40 = vrot.slane %v1045_v15, 5  ;;  %v1055_v39 = vshrl.u32 %v5008_v49, 16  ;;  %v5072_v47 = vld [vmem:[#allocation2 + $0x28] sm:$0xf] }
  0x8b   : > { %v2235_v56 = vsel %vm4588_vm11, %v2230_v8, %v2234_v21  ;;  %3198 = vrot.lane.b32.xlu0 %v4228_v26, %s4465_s28  ;;  %v1053_v45 = vrot.slane %v1051_v28, 5  ;;  %v1061_v37 = vshll.u32 %v5022_v46, 16  ;;  %v3957_v59 = vrot.slane %v4918_v29, 9  ;;  %v5054_v26 = vld [vmem:[#allocation2 + $0x88] sm:$0xf] }
  0x8c   : > { %v4220_v50 = vcombine.low %v2225_v13, %v2235_v56  ;;  %v881_v2 = vrot.slane %v880_v18, 4  ;;  %v891_v4 = vrot.slane %v890_v30, 4  ;;  %v1048_v16 = vor.u32 %v1047_v40, %v1044_v52  ;;  %v279_v30 = vld [vmem:[%s4566_s20 + $0x18] sm:$0xf] }
  0x8d   : > { %v1057_v55 = vrot.slane %v1055_v39, 4  ;;  %v1063_v48 = vrot.slane %v1061_v37, 5  ;;  %v1252_v63 = vrot.slane %v4939_v3, 5  ;;  %v1255_v20 = vrot.slane %v4946_v34, 5  ;;  %v5042_v3 = vld [vmem:[#allocation2 + $0x84] sm:$0xf] }
  0x8e   : > { %3134 = vrot.lane.b32.xlu1 %v4220_v50, %s4464_s27  ;;  %v886_v10 = vsel %vm4588_vm11, %v881_v2, %v885_v11  ;;  %v896_v5 = vsel %vm4588_vm11, %v891_v4, %v895_v12  ;;  %v1049_v7 = vrot.slane %v1048_v16, 4  ;;  %v4092_v29 = vrot.slane %v4955_v9, 9  ;;  %v280_v37 = vld [vmem:[%s4566_s20 + $0x1c] sm:$0xf] }
  0x8f   : > { %v4118_v13 = vcombine.low %v886_v10, %v896_v5  ;;  %v1058_v32 = vor.u32 %v1057_v55, %v1053_v45  ;;  %v1253_v17 = vsel %vm4568_vm7, %v3957_v59, %v1252_v63  ;;  %v1254_v25 = vrot.slane %v1252_v63, 4 }
  0x90   : > { %v1054_v34 = vsel %vm4588_vm11, %v1049_v7, %v1053_v45  ;;  %v2493_v0 = vrot.slane %v4958_v61, 5  ;;  %v2496_v44 = vrot.slane %v5010_v23, 5  ;;  %v3958_v31 = vrot.slane %v4981_v6, 9 }
  0x91   : > { %2642 = vrot.lane.b32.xlu0 %v4118_v13, %s4459_s22  ;;  %v1059_v9 = vrot.slane %v1058_v32, 4  ;;  %v1256_v27 = vsel %vm4568_vm7, %v1254_v25, %v1255_v20  ;;  %v1259_v57 = vrot.slane %v4993_v19, 5  ;;  %v1262_v8 = vrot.slane %v5004_v36, 5 }
  0x92   : > { %3212 = vrot.lane.b32.xlu1 %v4235_v58, %s4465_s28  ;;  %v4133_v43 = vcombine.low %v1253_v17, %v1256_v27  ;;  %v2494_v61 = vsel %vm4568_vm7, %v4092_v29, %v2493_v0  ;;  %v2495_v23 = vrot.slane %v2493_v0, 4  ;;  %v1066_v6 = vshrl.u32 %v5042_v3, 16  ;;  %v5103_v27 = vld [vmem:[#allocation2 + $0x2c] sm:$0x1] }
  0x93   : > { %v1064_v62 = vsel %vm4588_vm11, %v1059_v9, %v1063_v48  ;;  %v1260_v14 = vsel %vm4568_vm7, %v3958_v31, %v1259_v57  ;;  %v1261_v19 = vrot.slane %v1259_v57, 4  ;;  %v1069_v36 = vshll.u32 %v5042_v3, 16 }
  0x94   : > { %v4125_v51 = vcombine.low %v1054_v34, %v1064_v62  ;;  %v2497_v58 = vsel %vm4568_vm7, %v2495_v23, %v2496_v44  ;;  %v1068_v53 = vrot.slane %v1066_v6, 4  ;;  %v1075_v24 = vshll.u32 %v5054_v26, 16 }
  0x95   : > { %2720 = vrot.lane.b32.xlu0 %v4133_v43, %s4458_s21  ;;  %v4236_v11 = vcombine.low %v2494_v61, %v2497_v58  ;;  %v1263_v41 = vsel %vm4568_vm7, %v1261_v19, %v1262_v8  ;;  %v1071_v15 = vrot.slane %v1069_v36, 5  ;;  %v1079_v21 = vshrl.u32 %v5054_v26, 16 }
  0x96   : > { %2656 = vrot.lane.b32.xlu1 %v4125_v51, %s4459_s22  ;;  %v4134_v12 = vcombine.low %v1260_v14, %v1263_v41  ;;  %v1077_v52 = vrot.slane %v1075_v24, 5  ;;  %v1085_v28 = vshll.u32 %v5064_v22, 16  ;;  %v1449_v18 = vshrl.u32 %v5067_v38, 16  ;;  %v295_v14 = vld [vmem:[%s4566_s20 + $0x58] sm:$0xf] }
  0x97   : > { %v1072_v40 = vor.u32 %v1071_v15, %v1068_v53  ;;  %v1081_v39 = vrot.slane %v1079_v21, 4  ;;  %v1452_v56 = vshll.u32 %v5067_v38, 16  ;;  %v1462_v45 = vshrl.u32 %v5072_v47, 16  ;;  %v5118_v53 = vld [vmem:[#allocation2 + $0x88] sm:$0xf] }
  0x98   : > { %v1087_v59 = vrot.slane %v1085_v28, 5  ;;  %v4149_v50 = vcombine.low %v5067_v38, %v5072_v47  ;;  %v3965_v2 = vrot.slane %v5006_v60, 9  ;;  %v1308_v4 = vrot.slane %v5008_v49, 5  ;;  %v296_v41 = vld [vmem:[%s4566_s20 + $0x5c] sm:$0xf] }
  0x99   : > { %2722 = vrot.lane.b32.xlu0 %v4134_v12, %s4458_s21  ;;  %v1073_v16 = vrot.slane %v1072_v40, 4  ;;  %v1082_v55 = vor.u32 %v1081_v39, %v1077_v52  ;;  %v1311_v48 = vrot.slane %v5022_v46, 5  ;;  %v360_v63 = vshrl.u32 %v279_v30, 16  ;;  %v655_v46 = vld [vmem:[#allocation2 + $0x30] sm:$0xf] }
  0x9a   : > { %3214 = vrot.lane.b32.xlu1 %v4236_v11, %s4465_s28  ;;  %v1309_v20 = vsel %vm4568_vm7, %v3965_v2, %v1308_v4  ;;  %v1310_v10 = vrot.slane %v1308_v4, 4  ;;  %v363_v5 = vshll.u32 %v279_v30, 16  ;;  %v368_v7 = vshrl.u32 %v280_v37, 16  ;;  %v659_v28 = vld [vmem:[#allocation2 + $0x38] sm:$0x1] }
  0x9b   : > { %v1078_v60 = vsel %vm4588_vm11, %v1073_v16, %v1077_v52  ;;  %v1083_v29 = vrot.slane %v1082_v55, 4  ;;  %v362_v49 = vrot.slane %v360_v63, 7  ;;  %v371_v13 = vshll.u32 %v280_v37, 16 }
  0x9c   : > { %v1312_v32 = vsel %vm4568_vm7, %v1310_v10, %v1311_v48  ;;  %v370_v17 = vrot.slane %v368_v7, 7  ;;  %v3966_v25 = vrot.slane %v5042_v3, 9  ;;  %v1315_v34 = vrot.slane %v5054_v26, 5  ;;  %v5107_v3 = vld [vmem:[#allocation2 + $0x84] sm:$0xf] }
  0x9d   : > { %v1088_v0 = vsel %vm4588_vm11, %v1083_v29, %v1087_v59  ;;  %2800 = vrot.lane.b32.xlu0 %v4149_v50, %s4460_s23  ;;  %v4141_v44 = vcombine.low %v1309_v20, %v1312_v32  ;;  %v365_v31 = vor.u32 %v363_v5, %v362_v49  ;;  %v366_v9 = vrot.slane %v362_v49, 4  ;;  %v711_v20 = vld [vmem:[#allocation2 + $0x90] sm:$0xf] }
  0x9e   : > { %v4126_v57 = vcombine.low %v1078_v60, %v1088_v0  ;;  %v373_v8 = vor.u32 %v371_v13, %v370_v17  ;;  %v1316_v43 = vsel %vm4568_vm7, %v3966_v25, %v1315_v34  ;;  %v1317_v61 = vrot.slane %v1315_v34, 4  ;;  %v5128_v50 = vpop.permute.xlu0 %2716 }
  0x9f   : > { %v656_v26 = vsel %vm4582_vm10, %v365_v31, %v655_v46  ;;  %v1318_v23 = vrot.slane %v5064_v22, 5  ;;  %v1451_v6 = vrot.slane %v1449_v18, 4  ;;  %v1454_v62 = vrot.slane %v1452_v56, 5 }
  0xa0   : > { %2658 = vrot.lane.b32.xlu1 %v4126_v57, %s4459_s22  ;;  %v374_v19 = vsel %vm4597_vm12, %v366_v9, %v373_v8  ;;  %657 = vst [vmem:[#allocation2 + $0x30] sm:$0xf] %v656_v26  ;;  %v1458_v36 = vshll.u32 %v5072_v47, 16  ;;  %v1464_v51 = vrot.slane %v1462_v45, 4  ;;  %v1468_v58 = vshll.u32 %v5103_v27, 16 }
  0xa1   : > { %658 = vst.msk [vmem:[#allocation2 + $0x34] sm:$0xf] %vm217_vm0, %v374_v19  ;;  %v1319_v22 = vsel %vm4568_vm7, %v1317_v61, %v1318_v23  ;;  %v1455_v24 = vor.u32 %v1454_v62, %v1451_v6  ;;  %v1641_v11 = vshrl.u32 %v5107_v3, 16  ;;  %v1644_v52 = vshll.u32 %v5107_v3, 16 }
  0xa2   : > { %v4142_v15 = vcombine.low %v1316_v43, %v1319_v22  ;;  %v1460_v21 = vrot.slane %v1458_v36, 5  ;;  %v1470_v12 = vrot.slane %v1468_v58, 5  ;;  %v1654_v30 = vshrl.u32 %v5118_v53, 16  ;;  %v5154_v43 = vld [vmem:[#allocation2 + $0x8c] sm:$0x1]  ;;  %v5156_v61 = vpop.permute.xlu0 %2636 }
  0xa3   : > { %v1456_v18 = vrot.slane %v1455_v24, 4  ;;  %v375_v40 = vrot.slane %v370_v17, 4  ;;  %v496_v39 = vshrl.u32 %v295_v14, 16  ;;  %v499_v45 = vshll.u32 %v295_v14, 16 }
  0xa4   : > { %2736 = vrot.lane.b32.xlu1 %v4141_v44, %s4458_s21  ;;  %v1465_v56 = vor.u32 %v1464_v51, %v1460_v21  ;;  %v504_v37 = vshrl.u32 %v296_v41, 16  ;;  %v507_v59 = vshll.u32 %v296_v41, 16  ;;  %v4157_v4 = vcombine.low %v5107_v3, %v5118_v53 }
  0xa5   : > { %v1461_v2 = vsel %vm4588_vm11, %v1456_v18, %v1460_v21  ;;  %v660_v16 = vsel %vm4660_vm13, %v375_v40, %v659_v28  ;;  %v498_v55 = vrot.slane %v496_v39, 7  ;;  %v4021_v10 = vrot.slane %v5067_v38, 9 }
  0xa6   : > { %v1466_v48 = vrot.slane %v1465_v56, 4  ;;  %661 = vst [vmem:[#allocation2 + $0x38] sm:$0x1] %v660_v16  ;;  %v5136_v63 = vrot.slane %v504_v37, 7  ;;  %v1848_v5 = vrot.slane %v5072_v47, 5  ;;  %v1643_v49 = vrot.slane %v1641_v11, 4 }
  0xa7   : > { %v5140_v7 = vld [vmem:[#allocation2 + $0x30] sm:$0xf]  ;;  %v501_v60 = vor.u32 %v499_v45, %v498_v55  ;;  %v502_v29 = vrot.slane %v498_v55, 4  ;;  %v1646_v13 = vrot.slane %v1644_v52, 5  ;;  %v1851_v44 = vrot.slane %v5103_v27, 5 }
  0xa8   : > { %v3981_v32 = vld [vmem:[#allocation2 + $0x34] sm:$0xf]  ;;  %v1473_v17 = vshrl.u32 %v5140_v7, 16  ;;  %v1476_v46 = vshll.u32 %v5140_v7, 16  ;;  %2738 = vrot.lane.b32.xlu1 %v4142_v15, %s4458_s21  ;;  %v1471_v25 = vsel %vm4588_vm11, %v1466_v48, %v1470_v12  ;;  %v509_v38 = vor.u32 %v507_v59, %v5136_v63  ;;  %v715_v52 = vld [vmem:[#allocation2 + $0x98] sm:$0x1] }
  0xa9   : > { %v1486_v34 = vshrl.u32 %v3981_v32, 16  ;;  %v4150_v47 = vcombine.low %v5140_v7, %v3981_v32  ;;  %v1482_v0 = vshll.u32 %v3981_v32, 16  ;;  %v712_v8 = vsel %vm4582_vm10, %v501_v60, %v711_v20  ;;  %v5172_v56 = vld [vmem:[#allocation2 + $0x30] sm:$0xf] }
  0xaa   : > { %v1475_v31 = vrot.slane %v1473_v17, 4  ;;  %v1478_v9 = vrot.slane %v1476_v46, 5  ;;  %v510_v57 = vsel %vm4597_vm12, %v502_v29, %v509_v38  ;;  %v4165_v26 = vcombine.low %v1461_v2, %v1471_v25  ;;  %713 = vst [vmem:[#allocation2 + $0x90] sm:$0xf] %v712_v8  ;;  %v5195_v17 = vld [vmem:[#allocation2 + $0x34] sm:$0xf]  ;;  %v5197_v46 = vpop.permute.xlu1 %2812 }
  0xab   : > { %2802 = vrot.lane.b32.xlu0 %v4150_v47, %s4460_s23  ;;  %v1484_v23 = vrot.slane %v1482_v0, 5  ;;  %v1488_v6 = vrot.slane %v1486_v34, 4  ;;  %714 = vst.msk [vmem:[#allocation2 + $0x94] sm:$0xf] %vm217_vm0, %v510_v57  ;;  %v1850_v27 = vrot.slane %v1848_v5, 4  ;;  %v5163_v14 = vsel %vm4568_vm7, %v4021_v10, %v1848_v5 }
  0xac   : > { %2816 = vrot.lane.b32.xlu1 %v4157_v4, %s4460_s23  ;;  %v1479_v62 = vor.u32 %v1478_v9, %v1475_v31  ;;  %v1647_v19 = vor.u32 %v1646_v13, %v1643_v49  ;;  %v1650_v36 = vshll.u32 %v5118_v53, 16  ;;  %v1656_v24 = vrot.slane %v1654_v30, 4  ;;  %v281_v57 = vld [vmem:[%s4566_s20 + $0x20] sm:$0xf] }
  0xad   : > { %v3982_v51 = vld [vmem:[#allocation2 + $0x38] sm:$0x1]  ;;  %v1489_v58 = vor.u32 %v1488_v6, %v1484_v23  ;;  %v1852_v22 = vsel %vm4568_vm7, %v1850_v27, %v1851_v44  ;;  %v1660_v11 = vshll.u32 %v5154_v43, 16  ;;  %v4022_v12 = vrot.slane %v5140_v7, 9  ;;  %v5177_v2 = vpop.permute.xlu0 %2796  ;;  %v282_v27 = vld [vmem:[%s4566_s20 + $0x24] sm:$0xf] }
  0xae   : > { %v1480_v41 = vrot.slane %v1479_v62, 4  ;;  %v1492_v15 = vshll.u32 %v3982_v51, 16  ;;  %v1648_v21 = vrot.slane %v1647_v19, 4  ;;  %v4181_v18 = vcombine.low %v5163_v14, %v1852_v22 }
  0xaf   : > { %2880 = vrot.lane.b32.xlu0 %v4165_v26, %s4462_s25  ;;  %v1490_v28 = vrot.slane %v1489_v58, 4  ;;  %v1652_v40 = vrot.slane %v1650_v36, 5  ;;  %v1855_v39 = vrot.slane %v3981_v32, 5  ;;  %v1858_v37 = vrot.slane %v3982_v51, 5 }
  0xb0   : > { %v1485_v30 = vsel %vm4588_vm11, %v1480_v41, %v1484_v23  ;;  %v1494_v45 = vrot.slane %v1492_v15, 5  ;;  %v511_v59 = vrot.slane %v5136_v63, 4  ;;  %v1662_v55 = vrot.slane %v1660_v11, 5 }
  0xb1   : > { %v1653_v4 = vsel %vm4588_vm11, %v1648_v21, %v1652_v40  ;;  %v1657_v16 = vor.u32 %v1656_v24, %v1652_v40  ;;  %v1857_v48 = vrot.slane %v1855_v39, 4  ;;  %v5183_v10 = vld [vmem:[#allocation2 + $0x90] sm:$0xf]  ;;  %v1856_v7 = vsel %vm4568_vm7, %v4022_v12, %v1855_v39 }
  0xb2   : > { %v1495_v20 = vsel %vm4588_vm11, %v1490_v28, %v1494_v45  ;;  %v5185_v5 = vld [vmem:[#allocation2 + $0x94] sm:$0xf]  ;;  %v716_v63 = vsel %vm4660_vm13, %v511_v59, %v715_v52  ;;  %v2045_v60 = vshrl.u32 %v5172_v56, 16  ;;  %v1665_v49 = vshrl.u32 %v5183_v10, 16  ;;  %v5220_v52 = vpop.permute.xlu1 %2814 }
  0xb3   : > { %v4166_v29 = vcombine.low %v1485_v30, %v1495_v20  ;;  %v1668_v13 = vshll.u32 %v5183_v10, 16  ;;  %v1678_v32 = vshrl.u32 %v5185_v5, 16  ;;  %717 = vst [vmem:[#allocation2 + $0x98] sm:$0x1] %v716_v63  ;;  %v4158_v25 = vcombine.low %v5183_v10, %v5185_v5  ;;  %v5212_v62 = vpop.permute.xlu0 %2798  ;;  %v5236_v63 = vld [vmem:[#allocation2 + $0x38] sm:$0x1] }
  0xb4   : > { %v1658_v38 = vrot.slane %v1657_v16, 4  ;;  %v1859_v34 = vsel %vm4568_vm7, %v1857_v48, %v1858_v37  ;;  %v1674_v47 = vshll.u32 %v5185_v5, 16  ;;  %v1667_v0 = vrot.slane %v1665_v49, 4  ;;  %v662_v37 = vld [vmem:[#allocation2 + $0x3c] sm:$0xf] }
  0xb5   : > { %2882 = vrot.lane.b32.xlu0 %v4166_v29, %s4462_s25  ;;  %v1670_v44 = vrot.slane %v1668_v13, 5  ;;  %v1680_v31 = vrot.slane %v1678_v32, 4  ;;  %v2048_v9 = vshll.u32 %v5172_v56, 16  ;;  %2818 = vrot.lane.b32.xlu1 %v4158_v25, %s4460_s23  ;;  %v4182_v26 = vcombine.low %v1856_v7, %v1859_v34  ;;  %v5244_v25 = vld [vmem:[#allocation2 + $0x90] sm:$0xf] }
  0xb6   : > { %v1663_v8 = vsel %vm4588_vm11, %v1658_v38, %v1662_v55  ;;  %v1676_v23 = vrot.slane %v1674_v47, 5  ;;  %v2058_v6 = vshrl.u32 %v5195_v17, 16  ;;  %v4029_v36 = vrot.slane %v5107_v3, 9 }
  0xb7   : > { %v4173_v14 = vcombine.low %v1653_v4, %v1663_v8  ;;  %v1671_v19 = vor.u32 %v1670_v44, %v1667_v0  ;;  %v1904_v51 = vrot.slane %v5118_v53, 5  ;;  %v1907_v22 = vrot.slane %v5154_v43, 5  ;;  %v5251_v0 = vld [vmem:[#allocation2 + $0x94] sm:$0xf] }
  0xb8   : > { %v1681_v58 = vor.u32 %v1680_v31, %v1676_v23  ;;  %v377_v24 = vshrl.u32 %v281_v57, 16  ;;  %v380_v11 = vshll.u32 %v281_v57, 16  ;;  %v4197_v15 = vcombine.low %v5172_v56, %v5195_v17 }
  0xb9   : > { %2960 = vrot.lane.b32.xlu0 %v4181_v18, %s4461_s24  ;;  %v1672_v41 = vrot.slane %v1671_v19, 4  ;;  %v1906_v21 = vrot.slane %v1904_v51, 4  ;;  %v385_v12 = vshrl.u32 %v282_v27, 16  ;;  %2896 = vrot.lane.b32.xlu1 %v4173_v14, %s4462_s25  ;;  %v5225_v53 = vsel %vm4568_vm7, %v4029_v36, %v1904_v51  ;;  %v298_v19 = vld [vmem:[%s4566_s20 + $0x64] sm:$0xf] }
  0xba   : > { %v4006_v3 = vld [vmem:[#allocation2 + $0x98] sm:$0x1]  ;;  %v379_v43 = vrot.slane %v377_v24, 7  ;;  %v388_v28 = vshll.u32 %v282_v27, 16  ;;  %v4030_v40 = vrot.slane %v5183_v10, 9  ;;  %v1682_v39 = vrot.slane %v1681_v58, 4 }
  0xbb   : > { %v1677_v18 = vsel %vm4588_vm11, %v1672_v41, %v1676_v23  ;;  %v1684_v30 = vshll.u32 %v4006_v3, 16  ;;  %v387_v45 = vrot.slane %v385_v12, 7  ;;  %v1908_v59 = vsel %vm4568_vm7, %v1906_v21, %v1907_v22  ;;  %v666_v24 = vld [vmem:[#allocation2 + $0x44] sm:$0x1] }
  0xbc   : > { %v382_v4 = vor.u32 %v380_v11, %v379_v43  ;;  %v383_v16 = vrot.slane %v379_v43, 4  ;;  %v1911_v55 = vrot.slane %v5185_v5, 5  ;;  %v5233_v48 = vpop.permute.xlu0 %2718  ;;  %v1914_v7 = vrot.slane %v4006_v3, 5  ;;  %v5253_v44 = vpop.permute.xlu1 %2732 }
  0xbd   : > { %2962 = vrot.lane.b32.xlu0 %v4182_v26, %s4461_s24  ;;  %v1686_v20 = vrot.slane %v1684_v30, 5  ;;  %v390_v10 = vor.u32 %v388_v28, %v387_v45  ;;  %v2047_v29 = vrot.slane %v2045_v60, 4  ;;  %v2050_v5 = vrot.slane %v2048_v9, 5  ;;  %v297_v26 = vld [vmem:[%s4566_s20 + $0x60] sm:$0xf] }
  0xbe   : > { %v663_v49 = vsel %vm4582_vm10, %v382_v4, %v662_v37  ;;  %v5242_v13 = vsel %vm4568_vm7, %v4030_v40, %v1911_v55  ;;  %v1913_v32 = vrot.slane %v1911_v55, 4  ;;  %v2054_v60 = vshll.u32 %v5195_v17, 16  ;;  %v4403_v30 = vld [vmem:[#allocation2] sm:$0xf]  ;;  %v4404_v37 = vld [vmem:[#allocation2 + $0x4] sm:$0xf] }
  0xbf   : > { %v1687_v38 = vsel %vm4588_vm11, %v1682_v39, %v1686_v20  ;;  %v391_v34 = vsel %vm4597_vm12, %v383_v16, %v390_v10  ;;  %664 = vst [vmem:[#allocation2 + $0x3c] sm:$0xf] %v663_v49  ;;  %v2060_v47 = vrot.slane %v2058_v6, 4  ;;  %v2051_v57 = vor.u32 %v2050_v5, %v2047_v29 }
  0xc0   : > { %v4174_v31 = vcombine.low %v1677_v18, %v1687_v38  ;;  %665 = vst.msk [vmem:[#allocation2 + $0x40] sm:$0xf] %vm217_vm0, %v391_v34  ;;  %v1915_v9 = vsel %vm4568_vm7, %v1913_v32, %v1914_v7  ;;  %v2064_v8 = vshll.u32 %v5236_v63, 16  ;;  %v4189_v23 = vcombine.low %v5225_v53, %v1908_v59  ;;  %v5268_v11 = vpop.permute.xlu0 %2956  ;;  %v5276_v4 = vpop.permute.xlu1 %2734  ;;  %v718_v32 = vld [vmem:[#allocation2 + $0x9c] sm:$0xf] }
  0xc1   : > { %3040 = vrot.lane.b32.xlu0 %v4197_v15, %s4463_s26  ;;  %v4190_v6 = vcombine.low %v5242_v13, %v1915_v9  ;;  %v2056_v27 = vrot.slane %v2054_v60, 5  ;;  %v2237_v14 = vshrl.u32 %v5244_v25, 16  ;;  %v2052_v36 = vrot.slane %v2051_v57, 4 }
  0xc2   : > { %2898 = vrot.lane.b32.xlu1 %v4174_v31, %s4462_s25  ;;  %v2066_v51 = vrot.slane %v2064_v8, 5  ;;  %v2240_v58 = vshll.u32 %v5244_v25, 16  ;;  %v2250_v22 = vshrl.u32 %v5251_v0, 16  ;;  %v392_v15 = vrot.slane %v387_v45, 4 }
  0xc3   : > { %v2061_v41 = vor.u32 %v2060_v47, %v2056_v27  ;;  %v513_v21 = vshrl.u32 %v297_v26, 16  ;;  %v516_v12 = vshll.u32 %v297_v26, 16  ;;  %v2057_v3 = vsel %vm4588_vm11, %v2052_v36, %v2056_v27  ;;  %v5306_v27 = vld [vmem:[#allocation2 + $0x98] sm:$0x1] }
  0xc4   : > { %v4205_v53 = vcombine.low %v5244_v25, %v5251_v0  ;;  %v521_v43 = vshrl.u32 %v298_v19, 16  ;;  %v524_v28 = vshll.u32 %v298_v19, 16  ;;  %v667_v18 = vsel %vm4660_vm13, %v392_v15, %v666_v24 }
  0xc5   : > { %v2062_v40 = vrot.slane %v2061_v41, 4  ;;  %v515_v39 = vrot.slane %v513_v21, 7  ;;  %v4099_v59 = vcombine.low %v4403_v30, %v4404_v37  ;;  %668 = vst [vmem:[#allocation2 + $0x44] sm:$0x1] %v667_v18  ;;  %v4085_v55 = vrot.slane %v5172_v56, 9 }
  0xc6   : > { %2976 = vrot.lane.b32.xlu1 %v4189_v23, %s4461_s24  ;;  %v5279_v45 = vld [vmem:[#allocation2 + $0x3c] sm:$0xf]  ;;  %v5281_v16 = vrot.slane %v521_v43, 7  ;;  %v2444_v20 = vrot.slane %v5195_v17, 5  ;;  %v5295_v17 = vpop.permute.xlu0 %2652  ;;  %v2447_v24 = vrot.slane %v5236_v63, 5  ;;  %v2239_v15 = vrot.slane %v2237_v14, 4 }
  0xc7   : > { %v5285_v10 = vld [vmem:[#allocation2 + $0x40] sm:$0xf]  ;;  %v2069_v7 = vshrl.u32 %v5279_v45, 16  ;;  %v2072_v29 = vshll.u32 %v5279_v45, 16  ;;  %v2067_v49 = vsel %vm4588_vm11, %v2062_v40, %v2066_v51  ;;  %v518_v13 = vor.u32 %v516_v12, %v515_v39 }
  0xc8   : > { %v2082_v5 = vshrl.u32 %v5285_v10, 16  ;;  %v4198_v38 = vcombine.low %v5279_v45, %v5285_v10  ;;  %v4213_v34 = vcombine.low %v2057_v3, %v2067_v49  ;;  %v2078_v56 = vshll.u32 %v5285_v10, 16 }
  0xc9   : > { %v2071_v60 = vrot.slane %v2069_v7, 4  ;;  %v2074_v47 = vrot.slane %v2072_v29, 5  ;;  %v519_v31 = vrot.slane %v515_v39, 4  ;;  %v526_v9 = vor.u32 %v524_v28, %v5281_v16 }
  0xca   : > { %3042 = vrot.lane.b32.xlu0 %v4198_v38, %s4463_s26  ;;  %2978 = vrot.lane.b32.xlu1 %v4190_v6, %s4461_s24  ;;  %v2080_v57 = vrot.slane %v2078_v56, 5  ;;  %v2084_v8 = vrot.slane %v2082_v5, 4  ;;  %v719_v26 = vsel %vm4582_vm10, %v518_v13, %v718_v32  ;;  %v5304_v23 = vsel %vm4568_vm7, %v4085_v55, %v2444_v20  ;;  %v5311_v6 = vpop.permute.xlu1 %2972  ;;  %v5325_v30 = vpop.permute.xlu0 %2876  ;;  %v5346_v56 = vld [vmem:[#allocation2 + $0x38] sm:$0x1] }
  0xcb   : > { %v2075_v19 = vor.u32 %v2074_v47, %v2071_v60  ;;  %v527_v36 = vsel %vm4597_vm12, %v519_v31, %v526_v9  ;;  %720 = vst [vmem:[#allocation2 + $0x9c] sm:$0xf] %v719_v26  ;;  %v2446_v51 = vrot.slane %v2444_v20, 4  ;;  %v2242_v21 = vrot.slane %v2240_v58, 5  ;;  %v5323_v58 = vld [vmem:[#allocation2 + $0x30] sm:$0xf] }
  0xcc   : > { %v2085_v41 = vor.u32 %v2084_v8, %v2080_v57  ;;  %721 = vst.msk [vmem:[#allocation2 + $0xa0] sm:$0xf] %vm217_vm0, %v527_v36  ;;  %v2246_v12 = vshll.u32 %v5251_v0, 16  ;;  %v5315_v3 = vld [vmem:[#allocation2 + $0x44] sm:$0x1]  ;;  %v2252_v40 = vrot.slane %v2250_v22, 4  ;;  %v5329_v37 = vsel %vm3228_vm14, %v4099_v59, %v5156_v61 }
  0xcd   : > { %v2076_v43 = vrot.slane %v2075_v19, 4  ;;  %v2448_v28 = vsel %vm4568_vm7, %v2446_v51, %v2447_v24  ;;  %v2256_v18 = vshll.u32 %v5306_v27, 16  ;;  %v2088_v39 = vshll.u32 %v5315_v3, 16  ;;  %v5331_v22 = vld [vmem:[#allocation2 + $0x34] sm:$0xf] }
  0xce   : > { %3120 = vrot.lane.b32.xlu0 %v4213_v34, %s4464_s27  ;;  %3056 = vrot.lane.b32.xlu1 %v4205_v53, %s4463_s26  ;;  %v2086_v63 = vrot.slane %v2085_v41, 4  ;;  %v2243_v14 = vor.u32 %v2242_v21, %v2239_v15  ;;  %v2248_v55 = vrot.slane %v2246_v12, 5  ;;  %v4229_v53 = vcombine.low %v5304_v23, %v2448_v28  ;;  %v5338_v38 = vpop.permute.xlu1 %2638 }
  0xcf   : > { %v2081_v20 = vsel %vm4588_vm11, %v2076_v43, %v2080_v57  ;;  %v2090_v7 = vrot.slane %v2088_v39, 5  ;;  %v2258_v13 = vrot.slane %v2256_v18, 5  ;;  %v898_v32 = vshrl.u32 %v5323_v58, 16  ;;  %v722_v43 = vld [vmem:[#allocation2 + $0xa4] sm:$0x1] }
  0xd0   : > { %v2244_v29 = vrot.slane %v2243_v14, 4  ;;  %v2253_v49 = vor.u32 %v2252_v40, %v2248_v55  ;;  %v901_v5 = vshll.u32 %v5323_v58, 16  ;;  %v907_v60 = vshll.u32 %v5331_v22, 16 }
  0xd1   : > { %v2091_v61 = vsel %vm4588_vm11, %v2086_v63, %v2090_v7  ;;  %v911_v47 = vshrl.u32 %v5331_v22, 16  ;;  %v900_v36 = vrot.slane %v898_v32, 4  ;;  %v917_v12 = vshll.u32 %v5346_v56, 16 }
  0xd2   : > { %v5342_v59 = vld [vmem:[#allocation2 + $0x9c] sm:$0xf]  ;;  %v2249_v34 = vsel %vm4588_vm11, %v2244_v29, %v2248_v55  ;;  %v4214_v31 = vcombine.low %v2081_v20, %v2091_v61  ;;  %v2254_v26 = vrot.slane %v2253_v49, 4  ;;  %v903_v51 = vrot.slane %v901_v5, 5  ;;  %v5366_v7 = vpop.permute.xlu1 %2654 }
  0xd3   : > { %v5350_v9 = vld [vmem:[#allocation2 + $0xa0] sm:$0xf]  ;;  %v2261_v57 = vshrl.u32 %v5342_v59, 16  ;;  %v2264_v8 = vshll.u32 %v5342_v59, 16  ;;  %v909_v15 = vrot.slane %v907_v60, 5  ;;  %v913_v21 = vrot.slane %v911_v47, 4 }
  0xd4   : > { %v2274_v23 = vshrl.u32 %v5350_v9, 16  ;;  %v4206_v19 = vcombine.low %v5342_v59, %v5350_v9  ;;  %v5357_v24 = vpop.permute.xlu0 %2878  ;;  %3122 = vrot.lane.b32.xlu0 %v4214_v31, %s4464_s27  ;;  %v2259_v41 = vsel %vm4588_vm11, %v2254_v26, %v2258_v13  ;;  %v904_v40 = vor.u32 %v903_v51, %v900_v36 }
  0xd5   : > { %v4221_v28 = vcombine.low %v2249_v34, %v2259_v41  ;;  %v528_v18 = vrot.slane %v5281_v16, 4  ;;  %v2263_v63 = vrot.slane %v2261_v57, 4  ;;  %v914_v39 = vor.u32 %v913_v21, %v909_v15  ;;  %v5383_v57 = vld [vmem:[#allocation2 + $0x3c] sm:$0xf] }
  0xd6   : > { %3058 = vrot.lane.b32.xlu1 %v4206_v19, %s4463_s26  ;;  %v919_v14 = vrot.slane %v917_v12, 5  ;;  %v2266_v55 = vrot.slane %v2264_v8, 5  ;;  %v2270_v20 = vshll.u32 %v5350_v9, 16  ;;  %v905_v29 = vrot.slane %v904_v40, 4  ;;  %v5390_v19 = vld [vmem:[#allocation2 + $0x40] sm:$0xf] }
  0xd7   : > { %v723_v49 = vsel %vm4660_vm13, %v528_v18, %v722_v43  ;;  %v2276_v13 = vrot.slane %v2274_v23, 4  ;;  %v4086_v32 = vrot.slane %v5279_v45, 9  ;;  %v915_v5 = vrot.slane %v914_v39, 4  ;;  %v5403_v43 = vpop.permute.xlu1 %2892  ;;  %v5411_v39 = vld [vmem:[#allocation2 + $0x90] sm:$0xf] }
  0xd8   : > { %3200 = vrot.lane.b32.xlu0 %v4229_v53, %s4465_s28  ;;  %724 = vst [vmem:[#allocation2 + $0xa4] sm:$0x1] %v723_v49  ;;  %v2267_v16 = vor.u32 %v2266_v55, %v2263_v63  ;;  %v5372_v61 = vrot.slane %v2270_v20, 5  ;;  %v2451_v34 = vrot.slane %v5285_v10, 5  ;;  %v5375_v60 = vpop.permute.xlu0 %2958  ;;  %v910_v47 = vsel %vm4588_vm11, %v905_v29, %v909_v15  ;;  %v5418_v29 = vld [vmem:[#allocation2 + $0x94] sm:$0xf] }
  0xd9   : > { %v2454_v31 = vrot.slane %v5315_v3, 5  ;;  %v4093_v45 = vrot.slane %v5244_v25, 9  ;;  %v2500_v53 = vrot.slane %v5251_v0, 5  ;;  %v920_v8 = vsel %vm4588_vm11, %v915_v5, %v919_v14  ;;  %v5396_v3 = vld [vmem:[#allocation2 + $0x44] sm:$0x1] }
  0xda   : > { %3136 = vrot.lane.b32.xlu1 %v4221_v28, %s4464_s27  ;;  %v2268_v26 = vrot.slane %v2267_v16, 4  ;;  %v2277_v10 = vor.u32 %v2276_v13, %v5372_v61  ;;  %v2452_v23 = vsel %vm4568_vm7, %v4086_v32, %v2451_v34  ;;  %v4119_v36 = vcombine.low %v910_v47, %v920_v8  ;;  %v5420_v49 = vld [vmem:[#allocation2 + $0x98] sm:$0x1] }
  0xdb   : > { %v2453_v51 = vrot.slane %v2451_v34, 4  ;;  %v5394_v25 = vsel %vm4568_vm7, %v4093_v45, %v2500_v53  ;;  %v2502_v0 = vrot.slane %v2500_v53, 4  ;;  %v2503_v21 = vrot.slane %v5306_v27, 5 }
  0xdc   : > { %v2273_v41 = vsel %vm4588_vm11, %v2268_v26, %v5372_v61  ;;  %v2278_v15 = vrot.slane %v2277_v10, 4  ;;  %v922_v12 = vshrl.u32 %v5383_v57, 16  ;;  %2644 = vrot.lane.b32.xlu0 %v4119_v36, %s4459_s22  ;;  %v925_v40 = vshll.u32 %v5383_v57, 16 }
  0xdd   : > { %v2455_v28 = vsel %vm4568_vm7, %v2453_v51, %v2454_v31  ;;  %v931_v18 = vshll.u32 %v5390_v19, 16  ;;  %v935_v63 = vshrl.u32 %v5390_v19, 16  ;;  %v5415_v27 = vsel %vm4568_vm7, %v2502_v0, %v2503_v21  ;;  %v5422_v13 = vpop.permute.xlu0 %3036 }
  0xde   : > { %v4230_v14 = vcombine.low %v2452_v23, %v2455_v28  ;;  %v924_v55 = vrot.slane %v922_v12, 4  ;;  %v941_v20 = vshll.u32 %v5396_v3, 16  ;;  %v4237_v5 = vcombine.low %v5394_v25, %v5415_v27 }
  0xdf   : > { %v5424_v32 = vld [vmem:[#allocation2 + $0xa4] sm:$0x1]  ;;  %v927_v16 = vrot.slane %v925_v40, 5  ;;  %v933_v61 = vrot.slane %v931_v18, 5  ;;  %v937_v34 = vrot.slane %v935_v63, 4  ;;  %v1090_v45 = vshrl.u32 %v5411_v39, 16 }
  0xe0   : > { %v2280_v47 = vshll.u32 %v5424_v32, 16  ;;  %v943_v31 = vrot.slane %v941_v20, 5  ;;  %v1093_v53 = vshll.u32 %v5411_v39, 16  ;;  %3202 = vrot.lane.b32.xlu0 %v4230_v14, %s4465_s28  ;;  %v1099_v10 = vshll.u32 %v5418_v29, 16 }
  0xe1   : > { %v928_v8 = vor.u32 %v927_v16, %v924_v55  ;;  %v938_v26 = vor.u32 %v937_v34, %v933_v61  ;;  %v1103_v23 = vshrl.u32 %v5418_v29, 16  ;;  %v1092_v51 = vrot.slane %v1090_v45, 4 }
  0xe2   : > { %v2282_v36 = vrot.slane %v2280_v47, 5  ;;  %v1095_v25 = vrot.slane %v1093_v53, 5  ;;  %v1109_v0 = vshll.u32 %v5420_v49, 16  ;;  %v1101_v40 = vrot.slane %v1099_v10, 5 }
  0xe3   : > { %v5435_v21 = vpop.permute.xlu1 %2894  ;;  %v929_v12 = vrot.slane %v928_v8, 4  ;;  %v939_v28 = vrot.slane %v938_v26, 4  ;;  %v1105_v18 = vrot.slane %v1103_v23, 4  ;;  %v3959_v55 = vrot.slane %v5323_v58, 9 }
  0xe4   : > { %v2283_v63 = vsel %vm4588_vm11, %v2278_v15, %v2282_v36  ;;  %v1096_v14 = vor.u32 %v1095_v25, %v1092_v51  ;;  %v1111_v27 = vrot.slane %v1109_v0, 5  ;;  %v1266_v26 = vrot.slane %v5331_v22, 5  ;;  %v5467_v25 = vld [vmem:[#allocation2 + $0x9c] sm:$0xf] }
  0xe5   : > { %v5440_v20 = vpop.permute.xlu0 %3038  ;;  %v4222_v16 = vcombine.low %v2273_v41, %v2283_v63  ;;  %v934_v34 = vsel %vm4588_vm11, %v929_v12, %v933_v61  ;;  %v944_v47 = vsel %vm4588_vm11, %v939_v28, %v943_v31  ;;  %v1106_v45 = vor.u32 %v1105_v18, %v1101_v40 }
  0xe6   : > { %v4120_v53 = vcombine.low %v934_v34, %v944_v47  ;;  %v1097_v8 = vrot.slane %v1096_v14, 4  ;;  %v1269_v15 = vrot.slane %v5346_v56, 5  ;;  %v4094_v58 = vrot.slane %v5342_v59, 9  ;;  %v4405_v14 = vld [vmem:[#allocation2 + $0x60] sm:$0xf] }
  0xe7   : > { %3138 = vrot.lane.b32.xlu1 %v4222_v16, %s4464_s27  ;;  %v1107_v10 = vrot.slane %v1106_v45, 4  ;;  %v2507_v41 = vrot.slane %v5350_v9, 5  ;;  %v2510_v23 = vrot.slane %v5424_v32, 5  ;;  %v5452_v61 = vpop.permute.xlu1 %2974  ;;  %v1267_v22 = vsel %vm4568_vm7, %v3959_v55, %v1266_v26 }
  0xe8   : > { %2646 = vrot.lane.b32.xlu0 %v4120_v53, %s4459_s22  ;;  %v1102_v31 = vsel %vm4588_vm11, %v1097_v8, %v1101_v40  ;;  %v1268_v56 = vrot.slane %v1266_v26, 4  ;;  %v3279_v59 = vsel %vm3277_vm15, %v5329_v37, %v5128_v50  ;;  %v3960_v51 = vrot.slane %v5383_v57, 9  ;;  %v5474_v40 = vld [vmem:[#allocation2 + $0xa0] sm:$0xf]  ;;  %v5476_v50 = vld [vmem:[#allocation2 + $0xa4] sm:$0x1] }
  0xe9   : > { %v5459_v36 = vpop.permute.xlu0 %3116  ;;  %v1112_v9 = vsel %vm4588_vm11, %v1107_v10, %v1111_v27  ;;  %v2509_v32 = vrot.slane %v2507_v41, 4  ;;  %v2508_v12 = vsel %vm4568_vm7, %v4094_v58, %v2507_v41  ;;  %v1273_v28 = vrot.slane %v5390_v19, 5  ;;  %v4406_v27 = vld [vmem:[#allocation2 + $0x64] sm:$0xf]  ;;  %v4407_v58 = vld [vmem:[#allocation2 + $0xc] sm:$0xf] }
  0xea   : > { %v1270_v0 = vsel %vm4568_vm7, %v1268_v56, %v1269_v15  ;;  %v4127_v37 = vcombine.low %v1102_v31, %v1112_v9  ;;  %v1276_v63 = vrot.slane %v5396_v3, 5  ;;  %v4107_v55 = vcombine.low %v4405_v14, %v4406_v27  ;;  %v4408_v41 = vld [vmem:[#allocation2 + $0x10] sm:$0xf]  ;;  %v5496_v31 = vld [vmem:[#allocation2 + $0x3c] sm:$0xf] }
  0xeb   : > { %3216 = vrot.lane.b32.xlu1 %v4237_v5, %s4465_s28  ;;  %v4135_v18 = vcombine.low %v1267_v22, %v1270_v0  ;;  %v2511_v57 = vsel %vm4568_vm7, %v2509_v32, %v2510_v23  ;;  %v1274_v16 = vsel %vm4568_vm7, %v3960_v51, %v1273_v28  ;;  %v1275_v19 = vrot.slane %v1273_v28, 4  ;;  %v5490_v3 = vpop.permute.xlu1 %3052  ;;  %v5499_v51 = vld [vmem:[#allocation2 + $0x40] sm:$0xf] }
  0xec   : > { %v1114_v34 = vshrl.u32 %v5467_v25, 16  ;;  %v1117_v5 = vshll.u32 %v5467_v25, 16  ;;  %v1123_v47 = vshll.u32 %v5474_v40, 16  ;;  %v1127_v45 = vshrl.u32 %v5474_v40, 16 }
  0xed   : > { %2724 = vrot.lane.b32.xlu0 %v4135_v18, %s4458_s21  ;;  %v1133_v53 = vshll.u32 %v5476_v50, 16  ;;  %v4238_v26 = vcombine.low %v2508_v12, %v2511_v57  ;;  %v1277_v15 = vsel %vm4568_vm7, %v1275_v19, %v1276_v63  ;;  %v4100_v23 = vcombine.low %v4407_v58, %v4408_v41 }
  0xee   : > { %v5492_v8 = vpop.permute.xlu0 %3118  ;;  %v1116_v10 = vrot.slane %v1114_v34, 4  ;;  %v4136_v22 = vcombine.low %v1274_v16, %v1277_v15  ;;  %v1119_v56 = vrot.slane %v1117_v5, 5  ;;  %v1125_v9 = vrot.slane %v1123_v47, 5  ;;  %v284_v5 = vld [vmem:[%s4566_s20 + $0x2c] sm:$0xf] }
  0xef   : > { %2660 = vrot.lane.b32.xlu1 %v4127_v37, %s4459_s22  ;;  %v1129_v32 = vrot.slane %v1127_v45, 4  ;;  %v5503_v0 = vsel %vm3310_vm1, %v3279_v59, %v5177_v2  ;;  %v1135_v18 = vrot.slane %v1133_v53, 5  ;;  %v3234_v37 = vsel %vm3228_vm14, %v4100_v23, %v5338_v38  ;;  %v283_v59 = vld [vmem:[%s4566_s20 + $0x28] sm:$0xf]  ;;  %v4409_v23 = vld [vmem:[#allocation2 + $0x6c] sm:$0xf] }
  0xf0   : > { %v1120_v12 = vor.u32 %v1119_v56, %v1116_v10  ;;  %v3255_v57 = vsel %vm3228_vm14, %v4107_v55, %v5295_v17  ;;  %v4151_v63 = vcombine.low %v5496_v31, %v5499_v51  ;;  %v3967_v14 = vrot.slane %v5411_v39, 9  ;;  %v5521_v17 = vpop.permute.xlu1 %3054 }
  0xf1   : > { %2726 = vrot.lane.b32.xlu0 %v4136_v22, %s4458_s21  ;;  %v1130_v28 = vor.u32 %v1129_v32, %v1125_v9  ;;  %v1322_v2 = vrot.slane %v5418_v29, 5  ;;  %v1497_v34 = vshrl.u32 %v5496_v31, 16  ;;  %v1325_v38 = vrot.slane %v5420_v49, 5  ;;  %v4410_v22 = vld [vmem:[#allocation2 + $0x70] sm:$0xf] }
  0xf2   : > { %v5515_v27 = vpop.permute.xlu0 %3196  ;;  %v1121_v16 = vrot.slane %v1120_v12, 4  ;;  %v3281_v55 = vsel %vm3277_vm15, %v3234_v37, %v5233_v48  ;;  %v1500_v39 = vshll.u32 %v5496_v31, 16  ;;  %v394_v49 = vshrl.u32 %v283_v59, 16 }
  0xf3   : > { %3218 = vrot.lane.b32.xlu1 %v4238_v26, %s4465_s28  ;;  %v1131_v19 = vrot.slane %v1130_v28, 4  ;;  %v1323_v29 = vsel %vm4568_vm7, %v3967_v14, %v1322_v2  ;;  %v1324_v47 = vrot.slane %v1322_v2, 4  ;;  %v397_v26 = vshll.u32 %v283_v59, 16  ;;  %v669_v28 = vld [vmem:[#allocation2 + $0x48] sm:$0xf] }
  0xf4   : > { %v1126_v45 = vsel %vm4588_vm11, %v1121_v16, %v1125_v9  ;;  %v1510_v10 = vshrl.u32 %v5499_v51, 16  ;;  %v402_v58 = vshrl.u32 %v284_v5, 16  ;;  %v4108_v56 = vcombine.low %v4409_v23, %v4410_v22 }
  0xf5   : > { %v1136_v53 = vsel %vm4588_vm11, %v1131_v19, %v1135_v18  ;;  %2804 = vrot.lane.b32.xlu0 %v4151_v63, %s4460_s23  ;;  %v1326_v48 = vsel %vm4568_vm7, %v1324_v47, %v1325_v38  ;;  %v396_v32 = vrot.slane %v394_v49, 7  ;;  %v405_v9 = vshll.u32 %v284_v5, 16  ;;  %v5544_v19 = vpop.permute.xlu1 %3132  ;;  %v5562_v49 = vld [vmem:[#allocation2 + $0x9c] sm:$0xf] }
  0xf6   : > { %v4128_v15 = vcombine.low %v1126_v45, %v1136_v53  ;;  %v4143_v41 = vcombine.low %v1323_v29, %v1326_v48  ;;  %v404_v12 = vrot.slane %v402_v58, 7  ;;  %v3968_v18 = vrot.slane %v5467_v25, 9  ;;  %v5550_v29 = vld [vmem:[#allocation2 + $0x44] sm:$0x1] }
  0xf7   : > { %v1329_v37 = vrot.slane %v5474_v40, 5  ;;  %v1332_v63 = vrot.slane %v5476_v50, 5  ;;  %v3295_v2 = vsel %vm3277_vm15, %v3255_v57, %v5253_v44  ;;  %vm3343_vm2 = vcmask 130048  }
  0xf8   : > { %2662 = vrot.lane.b32.xlu1 %v4128_v15, %s4459_s22  ;;  %v399_v59 = vor.u32 %v397_v26, %v396_v32  ;;  %v400_v16 = vrot.slane %v396_v32, 4  ;;  %v3314_v38 = vsel %vm3310_vm1, %v3281_v55, %v5212_v62  ;;  %v407_v5 = vor.u32 %v405_v9, %v404_v12  ;;  %v5571_v15 = vld [vmem:[#allocation2 + $0xa0] sm:$0xf]  ;;  %v300_v32 = vld [vmem:[%s4566_s20 + $0x6c] sm:$0xf] }
  0xf9   : > { %v5540_v14 = vpop.permute.xlu0 %2640  ;;  %v1330_v25 = vsel %vm4568_vm7, %v3968_v18, %v1329_v37  ;;  %v1331_v40 = vrot.slane %v1329_v37, 4  ;;  %v3258_v50 = vsel %vm3228_vm14, %v4108_v56, %v5366_v7  ;;  %v1499_v57 = vrot.slane %v1497_v34, 4  ;;  %v673_v56 = vld [vmem:[#allocation2 + $0x50] sm:$0x1] }
  0xfa   : > { %v670_v44 = vsel %vm4582_vm10, %v399_v59, %v669_v28  ;;  %v1502_v47 = vrot.slane %v1500_v39, 5  ;;  %v408_v62 = vsel %vm4597_vm12, %v400_v16, %v407_v5  ;;  %v1506_v45 = vshll.u32 %v5499_v51, 16 }
  0xfb   : > { %671 = vst [vmem:[#allocation2 + $0x48] sm:$0xf] %v670_v44  ;;  %v1333_v55 = vsel %vm4568_vm7, %v1331_v40, %v1332_v63  ;;  %v1512_v53 = vrot.slane %v1510_v10, 4  ;;  %v5567_v7 = vsel %vm3343_vm2, %v5503_v0, %v5325_v30  ;;  %672 = vst.msk [vmem:[#allocation2 + $0x4c] sm:$0xf] %vm217_vm0, %v408_v62  ;;  %v1516_v26 = vshll.u32 %v5550_v29, 16 }
  0xfc   : > { %2740 = vrot.lane.b32.xlu1 %v4143_v41, %s4458_s21  ;;  %v4144_v34 = vcombine.low %v1330_v25, %v1333_v55  ;;  %v1503_v39 = vor.u32 %v1502_v47, %v1499_v57  ;;  %v3347_v48 = vsel %vm3343_vm2, %v3314_v38, %v5357_v24  ;;  %v5577_v10 = vsel %vm3277_vm15, %v3258_v50, %v5276_v4  ;;  %v299_v30 = vld [vmem:[%s4566_s20 + $0x68] sm:$0xf] }
  0xfd   : > { %vm3376_vm3 = vcmask 162816   ;;  %v1508_v58 = vrot.slane %v1506_v45, 5  ;;  %v5580_v0 = vpop.permute.xlu0 %3198  ;;  %v5588_v23 = vsel %vm3310_vm1, %v3295_v2, %v5197_v46  ;;  %v1689_v24 = vshrl.u32 %v5562_v49, 16 }
  0xfe   : > { %v5584_v41 = vsel %vm3376_vm3, %v3347_v48, %v5375_v60  ;;  %v1504_v22 = vrot.slane %v1503_v39, 4  ;;  %v1518_v28 = vrot.slane %v1516_v26, 5  ;;  %v4159_v18 = vcombine.low %v5562_v49, %v5571_v15  ;;  %v725_v48 = vld [vmem:[#allocation2 + $0xa8] sm:$0xf] }
  0xff   : > { %v1513_v9 = vor.u32 %v1512_v53, %v1508_v58  ;;  %v409_v60 = vrot.slane %v404_v12, 4  ;;  %v1692_v46 = vshll.u32 %v5562_v49, 16  ;;  %v1702_v63 = vshrl.u32 %v5571_v15, 16 }
 0x100   : > { %v5592_v4 = vpop.permute.xlu1 %3134  ;;  %2742 = vrot.lane.b32.xlu1 %v4144_v34, %s4458_s21  ;;  %v1509_v37 = vsel %vm4588_vm11, %v1504_v22, %v1508_v58  ;;  %v530_v2 = vshrl.u32 %v299_v30, 16  ;;  %v533_v38 = vshll.u32 %v299_v30, 16  ;;  %v538_v5 = vshrl.u32 %v300_v32, 16 }
 0x101   : > { %v1514_v59 = vrot.slane %v1513_v9, 4  ;;  %v674_v16 = vsel %vm4660_vm13, %v409_v60, %v673_v56  ;;  %vm3409_vm4 = vcmask 195584   ;;  %v541_v12 = vshll.u32 %v300_v32, 16 }
 0x102   : > { %v5603_v25 = vld [vmem:[#allocation2 + $0x48] sm:$0xf]  ;;  %675 = vst [vmem:[#allocation2 + $0x50] sm:$0x1] %v674_v16  ;;  %v532_v40 = vrot.slane %v530_v2, 7  ;;  %v4023_v50 = vrot.slane %v5496_v31, 9 }
 0x103   : > { %v5608_v57 = vld [vmem:[#allocation2 + $0x4c] sm:$0xf]  ;;  %v1521_v47 = vshrl.u32 %v5603_v25, 16  ;;  %v1524_v62 = vshll.u32 %v5603_v25, 16  ;;  %v1519_v55 = vsel %vm4588_vm11, %v1514_v59, %v1518_v28  ;;  %v5615_v45 = vrot.slane %v538_v5, 7  ;;  %v5617_v53 = vpop.permute.xlu0 %2642 }
 0x104   : > { %v5606_v44 = vpop.permute.xlu1 %3212  ;;  %2820 = vrot.lane.b32.xlu1 %v4159_v18, %s4460_s23  ;;  %v1534_v34 = vshrl.u32 %v5608_v57, 16  ;;  %v4152_v31 = vcombine.low %v5603_v25, %v5608_v57  ;;  %v4167_v39 = vcombine.low %v1509_v37, %v1519_v55  ;;  %v1530_v26 = vshll.u32 %v5608_v57, 16  ;;  %v5631_v16 = vld [vmem:[#allocation2 + $0xa4] sm:$0x1] }
 0x105   : > { %v1523_v58 = vrot.slane %v1521_v47, 4  ;;  %v1526_v30 = vrot.slane %v1524_v62, 5  ;;  %v535_v22 = vor.u32 %v533_v38, %v532_v40  ;;  %v536_v56 = vrot.slane %v532_v40, 4 }
 0x106   : > { %2806 = vrot.lane.b32.xlu0 %v4152_v31, %s4460_s23  ;;  %v1532_v32 = vrot.slane %v1530_v26, 5  ;;  %v1536_v9 = vrot.slane %v1534_v34, 4  ;;  %v543_v28 = vor.u32 %v541_v12, %v5615_v45  ;;  %v1862_v18 = vrot.slane %v5499_v51, 5 }
 0x107   : > { %v1527_v2 = vor.u32 %v1526_v30, %v1523_v58  ;;  %v726_v37 = vsel %vm4582_vm10, %v535_v22, %v725_v48  ;;  %v1865_v59 = vrot.slane %v5550_v29, 5  ;;  %v1691_v38 = vrot.slane %v1689_v24, 4  ;;  %v5641_v31 = vpop.permute.xlu0 %2720 }
 0x108   : > { %v5626_v60 = vpop.permute.xlu1 %2656  ;;  %v1537_v5 = vor.u32 %v1536_v9, %v1532_v32  ;;  %v544_v40 = vsel %vm4597_vm12, %v536_v56, %v543_v28  ;;  %727 = vst [vmem:[#allocation2 + $0xa8] sm:$0xf] %v726_v37  ;;  %v5637_v12 = vsel %vm4568_vm7, %v4023_v50, %v1862_v18  ;;  %v1864_v51 = vrot.slane %v1862_v18, 4 }
 0x109   : > { %v3988_v47 = vld [vmem:[#allocation2 + $0x50] sm:$0x1]  ;;  %v1528_v62 = vrot.slane %v1527_v2, 4  ;;  %728 = vst.msk [vmem:[#allocation2 + $0xac] sm:$0xf] %vm217_vm0, %v544_v40  ;;  %v1694_v55 = vrot.slane %v1692_v46, 5  ;;  %v3361_v58 = vsel %vm3343_vm2, %v5588_v23, %v5403_v43  ;;  %v3378_v46 = vsel %vm3376_vm3, %v5567_v7, %v5268_v11 }
 0x10a   : > { %v1698_v29 = vshll.u32 %v5571_v15, 16  ;;  %v1704_v34 = vrot.slane %v1702_v63, 4  ;;  %2884 = vrot.lane.b32.xlu0 %v4167_v39, %s4462_s25  ;;  %v1538_v24 = vrot.slane %v1537_v5, 4  ;;  %v1540_v26 = vshll.u32 %v3988_v47, 16 }
 0x10b   : > { %v1866_v48 = vsel %vm4568_vm7, %v1864_v51, %v1865_v59  ;;  %v1708_v50 = vshll.u32 %v5631_v16, 16  ;;  %v1695_v63 = vor.u32 %v1694_v55, %v1691_v38  ;;  %v3411_v39 = vsel %vm3409_vm4, %v3378_v46, %v5422_v13  ;;  %v5670_v5 = vpop.permute.xlu0 %2722 }
 0x10c   : > { %v1700_v30 = vrot.slane %v1698_v29, 5  ;;  %v3330_v22 = vsel %vm3310_vm1, %v5577_v10, %v5220_v52  ;;  %v1533_v56 = vsel %vm4588_vm11, %v1528_v62, %v1532_v32  ;;  %v1542_v9 = vrot.slane %v1540_v26, 5  ;;  %v5660_v28 = vpop.permute.xlu1 %3214  ;;  %v729_v52 = vld [vmem:[#allocation2 + $0xb0] sm:$0x1] }
 0x10d   : > { %v4183_v43 = vcombine.low %v5637_v12, %v1866_v48  ;;  %v1696_v23 = vrot.slane %v1695_v63, 4  ;;  %v1710_v11 = vrot.slane %v1708_v50, 5  ;;  %v4024_v13 = vrot.slane %v5603_v25, 9  ;;  %v4388_v29 = vld [vmem:[%s6631_s1 + $0x10] ss:$0 sps:$4 sm:$0x33]  }
 0x10e   : > { %v1705_v18 = vor.u32 %v1704_v34, %v1700_v30  ;;  %v1543_v7 = vsel %vm4588_vm11, %v1538_v24, %v1542_v9  ;;  %v1869_v2 = vrot.slane %v5608_v57, 5  ;;  %v1872_v37 = vrot.slane %v3988_v47, 5  ;;  %v5699_v9 = vld [vmem:[#allocation2 + $0x48] sm:$0xf] }
 0x10f   : > { %v4168_v10 = vcombine.low %v1533_v56, %v1543_v7  ;;  %v5667_v59 = vld [vmem:[#allocation2 + $0xa8] sm:$0xf]  ;;  %vm3442_vm5 = vcmask 228352   ;;  %v545_v38 = vrot.slane %v5615_v45, 4  ;;  %v1701_v25 = vsel %vm4588_vm11, %v1696_v23, %v1700_v30  ;;  %v5701_v23 = vld [vmem:[#allocation2 + $0x4c] sm:$0xf] }
 0x110   : > { %v1706_v32 = vrot.slane %v1705_v18, 4  ;;  %v5672_v40 = vld [vmem:[#allocation2 + $0xac] sm:$0xf]  ;;  %v1713_v12 = vshrl.u32 %v5667_v59, 16  ;;  %v1716_v51 = vshll.u32 %v5667_v59, 16  ;;  %v1871_v57 = vrot.slane %v1869_v2, 4 }
 0x111   : > { %2886 = vrot.lane.b32.xlu0 %v4168_v10, %s4462_s25  ;;  %v1726_v47 = vshrl.u32 %v5672_v40, 16  ;;  %v4160_v62 = vcombine.low %v5667_v59, %v5672_v40  ;;  %v730_v55 = vsel %vm4660_vm13, %v545_v38, %v729_v52  ;;  %v1870_v34 = vsel %vm4568_vm7, %v4024_v13, %v1869_v2 }
 0x112   : > { %v1711_v45 = vsel %vm4588_vm11, %v1706_v32, %v1710_v11  ;;  %v1873_v24 = vsel %vm4568_vm7, %v1871_v57, %v1872_v37  ;;  %731 = vst [vmem:[#allocation2 + $0xb0] sm:$0x1] %v730_v55  ;;  %v1715_v26 = vrot.slane %v1713_v12, 4  ;;  %v1718_v48 = vrot.slane %v1716_v51, 5  ;;  %v5693_v50 = vpop.permute.xlu1 %2658 }
 0x113   : > { %v3363_v46 = vsel %vm3343_vm2, %v3330_v22, %v5435_v21  ;;  %2822 = vrot.lane.b32.xlu1 %v4160_v62, %s4460_s23  ;;  %v4175_v63 = vcombine.low %v1701_v25, %v1711_v45  ;;  %v1722_v30 = vshll.u32 %v5672_v40, 16  ;;  %v1728_v56 = vrot.slane %v1726_v47, 4  ;;  %v285_v22 = vld [vmem:[%s4566_s20 + $0x30] sm:$0xf]  ;;  %v676_v25 = vld [vmem:[#allocation2 + $0x54] sm:$0xf] }
 0x114   : > { %v5706_v18 = vsel %vm3409_vm4, %v5584_v41, %v5440_v20  ;;  %v5710_v11 = vsel %vm3376_vm3, %v3363_v46, %v5452_v61  ;;  %v1719_v21 = vor.u32 %v1718_v48, %v1715_v26  ;;  %vm3561_vm6 = vcmask 1041408   ;;  %v4390_v20 = vld [vmem:[%s6631_s1 + $0x8] sm:$0xff]   ;;  %v5724_v61 = vpop.permute.xlu0 %2800 }
 0x115   : > { %2964 = vrot.lane.b32.xlu0 %v4183_v43, %s4461_s24  ;;  %v3444_v7 = vsel %vm3442_vm5, %v3411_v39, %v5459_v36  ;;  %v3394_v13 = vsel %vm3376_vm3, %v3361_v58, %v5311_v6  ;;  %v4184_v2 = vcombine.low %v1870_v34, %v1873_v24  ;;  %v5718_v37 = vrot.slane %v1722_v30, 5  ;;  %4332 = vmatprep.subr.msk.bf16.mxu0 %vm3561_vm6, %v4388_v29  ;;  %v286_v6 = vld [vmem:[%s4566_s20 + $0x34] sm:$0xf] }
 0x116   : > { %v2093_v41 = vshrl.u32 %v5699_v9, 16  ;;  %v2096_v43 = vshll.u32 %v5699_v9, 16  ;;  %v2106_v36 = vshrl.u32 %v5701_v23, 16  ;;  %v1918_v39 = vrot.slane %v5571_v15, 5  ;;  %4333 = vmatprep.subr.msk.bf16.mxu1 %vm3561_vm6, %v4388_v29  ;;  %v5739_v57 = vpop.permute.xlu1 %2736 }
 0x117   : > { %2900 = vrot.lane.b32.xlu1 %v4175_v63, %s4462_s25  ;;  %v1720_v58 = vrot.slane %v1719_v21, 4  ;;  %v1729_v52 = vor.u32 %v1728_v56, %v5718_v37  ;;  %v3563_v10 = vsel %vm3561_vm6, %v4388_v29, 0  ;;  %v411_v32 = vshrl.u32 %v285_v22, 16 }
 0x118   : > { %v4199_v38 = vcombine.low %v5699_v9, %v5701_v23  ;;  %v4031_v12 = vrot.slane %v5562_v49, 9  ;;  %v1921_v51 = vrot.slane %v5631_v16, 5  ;;  %4289 = vmatpush3.bf16.msra.mxu0 %v3563_v10  ;;  %v414_v15 = vshll.u32 %v285_v22, 16  ;;  %4329 = vmatpush3.bf16.msra.mxu1 %v3563_v10  ;;  %v4392_v49 = vld [vmem:[%s6631_s1] sm:$0xff]  }
 0x119   : > { %2966 = vrot.lane.b32.xlu0 %v4184_v2, %s4461_s24  ;;  %v4012_v47 = vld [vmem:[#allocation2 + $0xb0] sm:$0x1]  ;;  %v1920_v62 = vrot.slane %v1918_v39, 4  ;;  %4290 = vmatprep.subr.bf16.mxu0 %v4390_v20  ;;  %v413_v45 = vrot.slane %v411_v32, 7  ;;  %v419_v55 = vshrl.u32 %v286_v6, 16  ;;  %v422_v29 = vshll.u32 %v286_v6, 16 }
 0x11a   : > { %v1730_v34 = vrot.slane %v1729_v52, 4  ;;  %v1732_v24 = vshll.u32 %v4012_v47, 16  ;;  %vm3475_vm8 = vcmask 261120   ;;  %vm3528_vm9 = vcmask 293888   ;;  %4327 = vmatprep.subr.bf16.mxu1 %v4390_v20  ;;  %v5774_v32 = vld [vmem:[#allocation2 + $0xa8] sm:$0xf] }
 0x11b   : > { %v1725_v16 = vsel %vm4588_vm11, %v1720_v58, %v5718_v37  ;;  %v416_v26 = vor.u32 %v414_v15, %v413_v45  ;;  %v417_v48 = vrot.slane %v413_v45, 4  ;;  %v421_v46 = vrot.slane %v419_v55, 7  ;;  %v302_v55 = vld [vmem:[%s4566_s20 + $0x74] sm:$0xf] }
 0x11c   : > { %v1734_v30 = vrot.slane %v1732_v24, 5  ;;  %v3477_v56 = vsel %vm3475_vm8, %v3444_v7, %v5515_v27  ;;  %v4032_v21 = vrot.slane %v5667_v59, 9  ;;  %v1925_v22 = vrot.slane %v5672_v40, 5  ;;  %4291 = vmatpush3.bf16.msra.mxu0 %v4390_v20  ;;  %4330 = vmatpush3.bf16.msra.mxu1 %v4390_v20  ;;  %v5766_v7 = vld [vmem:[#allocation2 + $0x50] sm:$0x1] }
 0x11d   : > { %v5748_v63 = vpop.permute.xlu0 %2802  ;;  %v3427_v2 = vsel %vm3409_vm4, %v3394_v13, %v5490_v3  ;;  %3044 = vrot.lane.b32.xlu0 %v4199_v38, %s4463_s26  ;;  %v424_v37 = vor.u32 %v422_v29, %v421_v46  ;;  %v677_v6 = vsel %vm4582_vm10, %v416_v26, %v676_v25  ;;  %4294 = vmatprep.mubr.msk.bf16.mxu0 %vm3528_vm9, %v3477_v56  ;;  %v1928_v58 = vrot.slane %v4012_v47, 5  ;;  %v5768_v13 = vpop.permute.xlu1 %2738 }
 0x11e   : > { %v1735_v27 = vsel %vm4588_vm11, %v1730_v34, %v1734_v30  ;;  %v1919_v59 = vsel %vm4568_vm7, %v4031_v12, %v1918_v39  ;;  %v1922_v40 = vsel %vm4568_vm7, %v1920_v62, %v1921_v51  ;;  %678 = vst [vmem:[#allocation2 + $0x54] sm:$0xf] %v677_v6  ;;  %v1927_v3 = vrot.slane %v1925_v22, 4  ;;  %4292 = vmatprep.subr.bf16.mxu0 %v4392_v49 }
 0x11f   : > { %4328 = vmatprep.subr.bf16.mxu1 %v4392_v49  ;;  %v4176_v20 = vcombine.low %v1725_v16, %v1735_v27  ;;  %v425_v52 = vsel %vm4597_vm12, %v417_v48, %v424_v37  ;;  %v1926_v10 = vsel %vm4568_vm7, %v4032_v21, %v1925_v22  ;;  %v2095_v39 = vrot.slane %v2093_v41, 4  ;;  %v301_v41 = vld [vmem:[%s4566_s20 + $0x70] sm:$0xf]  ;;  %v680_v16 = vld [vmem:[#allocation2 + $0x5c] sm:$0x1] }
 0x120   : > { %679 = vst.msk [vmem:[#allocation2 + $0x58] sm:$0xf] %vm217_vm0, %v425_v52  ;;  %v1929_v12 = vsel %vm4568_vm7, %v1927_v3, %v1928_v58  ;;  %v2098_v51 = vrot.slane %v2096_v43, 5  ;;  %v2102_v15 = vshll.u32 %v5701_v23, 16  ;;  %v2108_v25 = vrot.slane %v2106_v36, 4  ;;  %4293 = vmatpush3.bf16.msra.mxu0 %v4392_v49  ;;  %4331 = vmatpush3.bf16.msra.mxu1 %v4392_v49 }
 0x121   : > { %v5776_v38 = vpop.permute.xlu0 %2880  ;;  %2902 = vrot.lane.b32.xlu1 %v4176_v20, %s4462_s25  ;;  %v3446_v47 = vsel %vm3442_vm5, %v5706_v18, %v5492_v8  ;;  %v4191_v62 = vcombine.low %v1919_v59, %v1922_v40  ;;  %v3460_v45 = vsel %vm3442_vm5, %v3427_v2, %v5544_v19  ;;  %v2112_v43 = vshll.u32 %v5766_v7, 16  ;;  %v5799_v19 = vpop.permute.xlu1 %2816  ;;  %v5812_v40 = vld [vmem:[#allocation2 + $0xac] sm:$0xf] }
 0x122   : > { %v4192_v29 = vcombine.low %v1926_v10, %v1929_v12  ;;  %v2099_v34 = vor.u32 %v2098_v51, %v2095_v39  ;;  %v2104_v24 = vrot.slane %v2102_v15, 5  ;;  %v2285_v36 = vshrl.u32 %v5774_v32, 16  ;;  %v732_v12 = vld [vmem:[#allocation2 + $0xb4] sm:$0xf] }
 0x123   : > { %v2114_v49 = vrot.slane %v2112_v43, 5  ;;  %v3479_v26 = vsel %vm3475_vm8, %v3446_v47, %v5580_v0  ;;  %v426_v48 = vrot.slane %v421_v46, 4  ;;  %v547_v30 = vshrl.u32 %v301_v41, 16 }
 0x124   : > { %v2100_v8 = vrot.slane %v2099_v34, 4  ;;  %v2109_v18 = vor.u32 %v2108_v25, %v2104_v24  ;;  %v550_v56 = vshll.u32 %v301_v41, 16  ;;  %v555_v21 = vshrl.u32 %v302_v55, 16  ;;  %4295 = vmatmul.mubr.msk.bf16.vlgmr.msra.gmra.mxu0 %vm3528_vm9, %v3479_v26 }
 0x125   : > { %2980 = vrot.lane.b32.xlu1 %v4191_v62, %s4461_s24  ;;  %v5802_v22 = vld [vmem:[#allocation2 + $0x54] sm:$0xf]  ;;  %v681_v2 = vsel %vm4660_vm13, %v426_v48, %v680_v16  ;;  %v549_v37 = vrot.slane %v547_v30, 7  ;;  %v558_v6 = vshll.u32 %v302_v55, 16  ;;  %v3493_v0 = vsel %vm3475_vm8, %v3460_v45, %v5606_v44 }
 0x126   : > { %v2117_v58 = vshrl.u32 %v5802_v22, 16  ;;  %v2120_v27 = vshll.u32 %v5802_v22, 16  ;;  %v2110_v59 = vrot.slane %v2109_v18, 4  ;;  %v2288_v3 = vshll.u32 %v5774_v32, 16  ;;  %682 = vst [vmem:[#allocation2 + $0x5c] sm:$0x1] %v681_v2  ;;  %4310 = vmatprep.mubr.msk.bf16.mxu1 %vm3528_vm9, %v3493_v0 }
 0x127   : > { %v5808_v46 = vpop.permute.xlu0 %2882  ;;  %v5816_v20 = vld [vmem:[#allocation2 + $0x58] sm:$0xf]  ;;  %v2105_v52 = vsel %vm4588_vm11, %v2100_v8, %v2104_v24  ;;  %v552_v44 = vor.u32 %v550_v56, %v549_v37  ;;  %v553_v10 = vrot.slane %v549_v37, 4  ;;  %v5820_v39 = vrot.slane %v555_v21, 7  ;;  %v5849_v2 = vld [vmem:[#allocation2 + $0xb0] sm:$0x1] }
 0x128   : > { %v2130_v51 = vshrl.u32 %v5816_v20, 16  ;;  %v4200_v15 = vcombine.low %v5802_v22, %v5816_v20  ;;  %v2115_v25 = vsel %vm4588_vm11, %v2110_v59, %v2114_v49  ;;  %v2119_v41 = vrot.slane %v2117_v58, 4  ;;  %v5836_v49 = vpop.permute.xlu1 %2818 }
 0x129   : > { %2982 = vrot.lane.b32.xlu1 %v4192_v29, %s4461_s24  ;;  %v4207_v47 = vcombine.low %v5774_v32, %v5812_v40  ;;  %v2122_v62 = vrot.slane %v2120_v27, 5  ;;  %v2126_v45 = vshll.u32 %v5816_v20, 16  ;;  %v560_v43 = vor.u32 %v558_v6, %v5820_v39 }
 0x12a   : > { %3046 = vrot.lane.b32.xlu0 %v4200_v15, %s4463_s26  ;;  %v4215_v55 = vcombine.low %v2105_v52, %v2115_v25  ;;  %v2298_v34 = vshrl.u32 %v5812_v40, 16  ;;  %v2132_v24 = vrot.slane %v2130_v51, 4  ;;  %v733_v16 = vsel %vm4582_vm10, %v552_v44, %v732_v12 }
 0x12b   : > { %v5838_v29 = vpop.permute.xlu0 %2960  ;;  %v2123_v26 = vor.u32 %v2122_v62, %v2119_v41  ;;  %v2128_v48 = vrot.slane %v2126_v45, 5  ;;  %v561_v30 = vsel %vm4597_vm12, %v553_v10, %v560_v43  ;;  %734 = vst [vmem:[#allocation2 + $0xb4] sm:$0xf] %v733_v16  ;;  %v4087_v8 = vrot.slane %v5699_v9, 9  ;;  %v5861_v10 = vld [vmem:[#allocation2 + $0x48] sm:$0xf] }
 0x12c   : > { %v3429_v18 = vsel %vm3409_vm4, %v5710_v11, %v5521_v17  ;;  %735 = vst.msk [vmem:[#allocation2 + $0xb8] sm:$0xf] %vm217_vm0, %v561_v30  ;;  %v2458_v56 = vrot.slane %v5701_v23, 5  ;;  %v2461_v21 = vrot.slane %v5766_v7, 5  ;;  %v2287_v37 = vrot.slane %v2285_v36, 4  ;;  %v5868_v25 = vpop.permute.xlu1 %2896 }
 0x12d   : > { %3060 = vrot.lane.b32.xlu1 %v4207_v47, %s4463_s26  ;;  %v5852_v6 = vld [vmem:[#allocation2 + $0x5c] sm:$0x1]  ;;  %v2124_v0 = vrot.slane %v2123_v26, 4  ;;  %v2133_v58 = vor.u32 %v2132_v24, %v2128_v48  ;;  %v2290_v9 = vrot.slane %v2288_v3, 5  ;;  %v2294_v27 = vshll.u32 %v5812_v40, 16 }
 0x12e   : > { %3124 = vrot.lane.b32.xlu0 %v4215_v55, %s4464_s27  ;;  %v2136_v17 = vshll.u32 %v5852_v6, 16  ;;  %v2459_v23 = vsel %vm4568_vm7, %v4087_v8, %v2458_v56  ;;  %v2460_v11 = vrot.slane %v2458_v56, 4  ;;  %v2300_v7 = vrot.slane %v2298_v34, 4  ;;  %v5874_v43 = vld [vmem:[#allocation2 + $0x4c] sm:$0xf] }
 0x12f   : > { %v3462_v36 = vsel %vm3442_vm5, %v3429_v18, %v5592_v4  ;;  %v2134_v59 = vrot.slane %v2133_v58, 4  ;;  %v2291_v52 = vor.u32 %v2290_v9, %v2287_v37  ;;  %v2296_v44 = vrot.slane %v2294_v27, 5  ;;  %v5870_v41 = vpop.permute.xlu0 %2962  ;;  %v5876_v55 = vld [vmem:[#allocation2 + $0x50] sm:$0x1] }
 0x130   : > { %v2129_v3 = vsel %vm4588_vm11, %v2124_v0, %v2128_v48  ;;  %v2138_v12 = vrot.slane %v2136_v17, 5  ;;  %v2462_v51 = vsel %vm4568_vm7, %v2460_v11, %v2461_v21  ;;  %v2304_v15 = vshll.u32 %v5849_v2, 16  ;;  %v736_v11 = vld [vmem:[#allocation2 + $0xbc] sm:$0x1] }
 0x131   : > { %v4231_v47 = vcombine.low %v2459_v23, %v2462_v51  ;;  %v2292_v4 = vrot.slane %v2291_v52, 4  ;;  %v2301_v62 = vor.u32 %v2300_v7, %v2296_v44  ;;  %v3495_v45 = vsel %vm3475_vm8, %v3462_v36, %v5660_v28  ;;  %v4411_v7 = vld [vmem:[#allocation2 + $0x18] sm:$0xf]  ;;  %v4412_v36 = vld [vmem:[#allocation2 + $0x1c] sm:$0xf] }
 0x132   : > { %v2139_v34 = vsel %vm4588_vm11, %v2134_v59, %v2138_v12  ;;  %v5880_v24 = vld [vmem:[#allocation2 + $0xb4] sm:$0xf]  ;;  %v2306_v16 = vrot.slane %v2304_v15, 5  ;;  %v946_v26 = vshrl.u32 %v5861_v10, 16  ;;  %v949_v48 = vshll.u32 %v5861_v10, 16  ;;  %4311 = vmatmul.mubr.msk.bf16.vlgmr.msra.gmra.mxu1 %vm3528_vm9, %v3495_v45 }
 0x133   : > { %v4216_v30 = vcombine.low %v2129_v3, %v2139_v34  ;;  %v5885_v8 = vld [vmem:[#allocation2 + $0xb8] sm:$0xf]  ;;  %v2309_v28 = vshrl.u32 %v5880_v24, 16  ;;  %v2312_v18 = vshll.u32 %v5880_v24, 16  ;;  %v2297_v56 = vsel %vm4588_vm11, %v2292_v4, %v2296_v44  ;;  %v5904_v51 = vpop.permute.xlu0 %3040  ;;  %v4413_v34 = vld [vmem:[#allocation2 + $0x24] sm:$0xf] }
 0x134   : > { %v2322_v21 = vshrl.u32 %v5885_v8, 16  ;;  %v4208_v37 = vcombine.low %v5880_v24, %v5885_v8  ;;  %v2302_v0 = vrot.slane %v2301_v62, 4  ;;  %v948_v58 = vrot.slane %v946_v26, 4  ;;  %v5902_v12 = vpop.permute.xlu1 %2898  ;;  %v4414_v26 = vld [vmem:[#allocation2 + $0x28] sm:$0xf] }
 0x135   : > { %3126 = vrot.lane.b32.xlu0 %v4216_v30, %s4464_s27  ;;  %v951_v9 = vrot.slane %v949_v48, 5  ;;  %v955_v27 = vshll.u32 %v5874_v43, 16  ;;  %v959_v17 = vshrl.u32 %v5874_v43, 16  ;;  %v965_v23 = vshll.u32 %v5876_v55, 16 }
 0x136   : > { %v4101_v59 = vcombine.low %v4411_v7, %v4412_v36  ;;  %3062 = vrot.lane.b32.xlu1 %v4208_v37, %s4463_s26  ;;  %v2307_v52 = vsel %vm4588_vm11, %v2302_v0, %v2306_v16  ;;  %v562_v44 = vrot.slane %v5820_v39, 4  ;;  %v2311_v3 = vrot.slane %v2309_v28, 4 }
 0x137   : > { %v4223_v15 = vcombine.low %v2297_v56, %v2307_v52  ;;  %v952_v4 = vor.u32 %v951_v9, %v948_v58  ;;  %v957_v62 = vrot.slane %v955_v27, 5  ;;  %v961_v45 = vrot.slane %v959_v17, 4  ;;  %v4415_v56 = vld [vmem:[#allocation2 + $0x78] sm:$0xf]  ;;  %v4416_v58 = vld [vmem:[#allocation2 + $0x7c] sm:$0xf] }
 0x138   : > { %v4102_v48 = vcombine.low %v4413_v34, %v4414_v26  ;;  %v737_v30 = vsel %vm4660_vm13, %v562_v44, %v736_v11  ;;  %v2314_v37 = vrot.slane %v2312_v18, 5  ;;  %v2318_v16 = vshll.u32 %v5885_v8, 16  ;;  %v5939_v26 = vld [vmem:[#allocation2 + $0x58] sm:$0xf] }
 0x139   : > { %3204 = vrot.lane.b32.xlu0 %v4231_v47, %s4465_s28  ;;  %v953_v39 = vrot.slane %v952_v4, 4  ;;  %v962_v28 = vor.u32 %v961_v45, %v957_v62  ;;  %v967_v0 = vrot.slane %v965_v23, 5  ;;  %738 = vst [vmem:[#allocation2 + $0xbc] sm:$0x1] %v737_v30  ;;  %v2324_v7 = vrot.slane %v2322_v21, 4 }
 0x13a   : > { %v4109_v9 = vcombine.low %v4415_v56, %v4416_v58  ;;  %3140 = vrot.lane.b32.xlu1 %v4223_v15, %s4464_s27  ;;  %v2315_v27 = vor.u32 %v2314_v37, %v2311_v3  ;;  %v2320_v17 = vrot.slane %v2318_v16, 5  ;;  %v4088_v36 = vrot.slane %v5802_v22, 9  ;;  %v5919_v15 = vpop.permute.xlu1 %2976  ;;  %v5928_v45 = vld [vmem:[#allocation2 + $0x54] sm:$0xf]  ;;  %v5949_v37 = vld [vmem:[#allocation2 + $0x5c] sm:$0x1] }
 0x13b   : > { %v958_v18 = vsel %vm4588_vm11, %v953_v39, %v957_v62  ;;  %v963_v11 = vrot.slane %v962_v28, 4  ;;  %v2465_v47 = vrot.slane %v5816_v20, 5  ;;  %v2468_v52 = vrot.slane %v5852_v6, 5 }
 0x13c   : > { %v3237_v21 = vsel %vm3228_vm14, %v4101_v59, %v5540_v14  ;;  %v2316_v23 = vrot.slane %v2315_v27, 4  ;;  %v2325_v44 = vor.u32 %v2324_v7, %v2320_v17  ;;  %v4095_v4 = vrot.slane %v5774_v32, 9  ;;  %v5921_v3 = vpop.permute.xlu0 %3042 }
 0x13d   : > { %v968_v22 = vsel %vm4588_vm11, %v963_v11, %v967_v0  ;;  %v2466_v62 = vsel %vm4568_vm7, %v4088_v36, %v2465_v47  ;;  %v2467_v20 = vrot.slane %v2465_v47, 4  ;;  %v2514_v6 = vrot.slane %v5812_v40, 5 }
 0x13e   : > { %v5932_v14 = vsel %vm3228_vm14, %v4102_v48, %v5617_v53  ;;  %v5936_v32 = vsel %vm3228_vm14, %v4109_v9, %v5626_v60  ;;  %v4121_v59 = vcombine.low %v958_v18, %v968_v22  ;;  %v2517_v34 = vrot.slane %v5849_v2, 5  ;;  %v5951_v60 = vld [vmem:[#allocation2 + $0xa8] sm:$0xf]  ;;  %v5963_v9 = vld [vmem:[#allocation2 + $0xac] sm:$0xf]  ;;  %v5968_v11 = vpop.permute.xlu1 %2978 }
 0x13f   : > { %v5943_v30 = vsel %vm3277_vm15, %v3237_v21, %v5641_v31  ;;  %v2321_v40 = vsel %vm4588_vm11, %v2316_v23, %v2320_v17  ;;  %v2469_v53 = vsel %vm4568_vm7, %v2467_v20, %v2468_v52  ;;  %v2516_v48 = vrot.slane %v2514_v6, 4  ;;  %6649 = vst [vmem:[#allocation3_spill] sm:$0xff] %v5968_v11 }
 0x140   : > { %2648 = vrot.lane.b32.xlu0 %v4121_v59, %s4459_s22  ;;  %v5954_v2 = vld [vmem:[#allocation2 + $0xbc] sm:$0x1]  ;;  %v2326_v16 = vrot.slane %v2325_v44, 4  ;;  %v4232_v39 = vcombine.low %v2466_v62, %v2469_v53  ;;  %v970_v31 = vshrl.u32 %v5928_v45, 16  ;;  %v973_v28 = vshll.u32 %v5928_v45, 16  ;;  %v5970_v47 = vpop.permute.xlu0 %3120 }
 0x141   : > { %v2328_v0 = vshll.u32 %v5954_v2, 16  ;;  %v2515_v7 = vsel %vm4568_vm7, %v4095_v4, %v2514_v6  ;;  %v979_v56 = vshll.u32 %v5939_v26, 16  ;;  %v983_v58 = vshrl.u32 %v5939_v26, 16  ;;  %6650 = vst [vmem:[#allocation4_spill] sm:$0xff] %v5970_v47  ;;  %v5974_v62 = vld [vmem:[#allocation2 + $0xb0] sm:$0x1] }
 0x142   : > { %v2518_v27 = vsel %vm4568_vm7, %v2516_v48, %v2517_v34  ;;  %v972_v17 = vrot.slane %v970_v31, 4  ;;  %v975_v36 = vrot.slane %v973_v28, 5  ;;  %v989_v18 = vshll.u32 %v5949_v37, 16  ;;  %v4418_v47 = vld [vmem:[#allocation2 + $0x88] sm:$0xf] }
 0x143   : > { %v2330_v52 = vrot.slane %v2328_v0, 5  ;;  %v981_v21 = vrot.slane %v979_v56, 5  ;;  %v985_v23 = vrot.slane %v983_v58, 4  ;;  %v1138_v44 = vshrl.u32 %v5951_v60, 16 }
 0x144   : > { %3206 = vrot.lane.b32.xlu0 %v4232_v39, %s4465_s28  ;;  %v976_v4 = vor.u32 %v975_v36, %v972_v17  ;;  %v991_v22 = vrot.slane %v989_v18, 5  ;;  %v1141_v20 = vshll.u32 %v5951_v60, 16  ;;  %v1147_v6 = vshll.u32 %v5963_v9, 16  ;;  %v4417_v18 = vld [vmem:[#allocation2 + $0x84] sm:$0xf] }
 0x145   : > { %v2331_v59 = vsel %vm4588_vm11, %v2326_v16, %v2330_v52  ;;  %v986_v34 = vor.u32 %v985_v23, %v981_v21  ;;  %v1140_v53 = vrot.slane %v1138_v44, 4  ;;  %v1151_v48 = vshrl.u32 %v5963_v9, 16 }
 0x146   : > { %v4224_v31 = vcombine.low %v2321_v40, %v2331_v59  ;;  %v977_v28 = vrot.slane %v976_v4, 4  ;;  %v1143_v0 = vrot.slane %v1141_v20, 5  ;;  %v1149_v56 = vrot.slane %v1147_v6, 5  ;;  %v5986_v40 = vpop.permute.xlu1 %3056  ;;  %v5988_v44 = vpop.permute.xlu0 %3122 }
 0x147   : > { %v1283_v39 = vrot.slane %v5876_v55, 5  ;;  %v987_v58 = vrot.slane %v986_v34, 4  ;;  %v1153_v17 = vrot.slane %v1151_v48, 4  ;;  %v1157_v36 = vshll.u32 %v5974_v62, 16 }
 0x148   : > { %3142 = vrot.lane.b32.xlu1 %v4224_v31, %s4464_s27  ;;  %v4110_v11 = vcombine.low %v4417_v18, %v4418_v47  ;;  %v4239_v16 = vcombine.low %v2515_v7, %v2518_v27  ;;  %v982_v52 = vsel %vm4588_vm11, %v977_v28, %v981_v21  ;;  %v1144_v23 = vor.u32 %v1143_v0, %v1140_v53 }
 0x149   : > { %v992_v55 = vsel %vm4588_vm11, %v987_v58, %v991_v22  ;;  %v1154_v4 = vor.u32 %v1153_v17, %v1149_v56  ;;  %v1159_v20 = vrot.slane %v1157_v36, 5  ;;  %v3961_v6 = vrot.slane %v5861_v10, 9  ;;  %v6021_v58 = vld [vmem:[#allocation2 + $0xbc] sm:$0x1] }
 0x14a   : > { %v4122_v59 = vcombine.low %v982_v52, %v992_v55  ;;  %v1145_v34 = vrot.slane %v1144_v23, 4  ;;  %v1280_v47 = vrot.slane %v5874_v43, 5  ;;  %v4096_v7 = vrot.slane %v5880_v24, 9  ;;  %v6023_v17 = vpop.permute.xlu1 %3058  ;;  %v6025_v36 = vpop.permute.xlu0 %3200  ;;  %v6035_v55 = vld [vmem:[#allocation2 + $0x54] sm:$0xf] }
 0x14b   : > { %v3285_v27 = vsel %vm3277_vm15, %v5932_v14, %v5670_v5  ;;  %v1155_v21 = vrot.slane %v1154_v4, 4  ;;  %v2521_v53 = vrot.slane %v5885_v8, 5  ;;  %v2524_v48 = vrot.slane %v5954_v2, 5  ;;  %v6008_v5 = vld [vmem:[#allocation2 + $0xb4] sm:$0xf] }
 0x14c   : > { %v3264_v22 = vsel %vm3228_vm14, %v4110_v11, %v5693_v50  ;;  %3220 = vrot.lane.b32.xlu1 %v4239_v16, %s4465_s28  ;;  %2650 = vrot.lane.b32.xlu0 %v4122_v59, %s4459_s22  ;;  %v1150_v10 = vsel %vm4588_vm11, %v1145_v34, %v1149_v56  ;;  %v1281_v43 = vsel %vm4568_vm7, %v3961_v6, %v1280_v47  ;;  %v1282_v24 = vrot.slane %v1280_v47, 4  ;;  %v6015_v11 = vld [vmem:[#allocation2 + $0xb8] sm:$0xf] }
 0x14d   : > { %6651 = vst [vmem:[#allocation5_spill] sm:$0xff] %v6008_v5  ;;  %v1160_v8 = vsel %vm4588_vm11, %v1155_v21, %v1159_v20  ;;  %v2522_v14 = vsel %vm4568_vm7, %v4096_v7, %v2521_v53  ;;  %v2523_v50 = vrot.slane %v2521_v53, 4  ;;  %v3962_v2 = vrot.slane %v5928_v45, 9  ;;  %v6040_v34 = vld [vmem:[#allocation2 + $0x58] sm:$0xf] }
 0x14e   : > { %v4129_v31 = vcombine.low %v1150_v10, %v1160_v8  ;;  %v1284_v28 = vsel %vm4568_vm7, %v1282_v24, %v1283_v39  ;;  %v1287_v0 = vrot.slane %v5939_v26, 5  ;;  %v1290_v56 = vrot.slane %v5949_v37, 5 }
 0x14f   : > { %v4137_v18 = vcombine.low %v1281_v43, %v1284_v28  ;;  %v2525_v45 = vsel %vm4568_vm7, %v2523_v50, %v2524_v48  ;;  %v1162_v16 = vshrl.u32 %v6008_v5, 16  ;;  %v1165_v52 = vshll.u32 %v6008_v5, 16 }
 0x150   : > { %2664 = vrot.lane.b32.xlu1 %v4129_v31, %s4459_s22  ;;  %v4240_v39 = vcombine.low %v2522_v14, %v2525_v45  ;;  %v1288_v26 = vsel %vm4568_vm7, %v3962_v2, %v1287_v0  ;;  %v1289_v37 = vrot.slane %v1287_v0, 4  ;;  %v1171_v23 = vshll.u32 %v6015_v11, 16  ;;  %v6075_v0 = vld [vmem:[#allocation2 + $0x64] sm:$0xf] }
 0x151   : > { %2728 = vrot.lane.b32.xlu0 %v4137_v18, %s4458_s21  ;;  %v1164_v4 = vrot.slane %v1162_v16, 4  ;;  %v1167_v20 = vrot.slane %v1165_v52, 5  ;;  %v1175_v6 = vshrl.u32 %v6015_v11, 16  ;;  %v1181_v59 = vshll.u32 %v6021_v58, 16 }
 0x152   : > { %v3316_v47 = vsel %vm3310_vm1, %v5943_v30, %v5724_v61  ;;  %v3299_v7 = vsel %vm3277_vm15, %v5936_v32, %v5739_v57  ;;  %v1291_v21 = vsel %vm4568_vm7, %v1289_v37, %v1290_v56  ;;  %v1173_v53 = vrot.slane %v1171_v23, 5  ;;  %v6058_v32 = vpop.permute.xlu1 %3136  ;;  %v6060_v30 = vpop.permute.xlu0 %2644  ;;  %v6093_v23 = vld [vmem:[#allocation2 + $0x5c] sm:$0x1] }
 0x153   : > { %v1339_v48 = vrot.slane %v5974_v62, 5  ;;  %v4138_v10 = vcombine.low %v1288_v26, %v1291_v21  ;;  %v1168_v43 = vor.u32 %v1167_v20, %v1164_v4  ;;  %v1177_v24 = vrot.slane %v1175_v6, 4 }
 0x154   : > { %v3318_v8 = vsel %vm3310_vm1, %v3285_v27, %v5748_v63  ;;  %v3301_v14 = vsel %vm3277_vm15, %v3264_v22, %v5768_v13  ;;  %3222 = vrot.lane.b32.xlu1 %v4240_v39, %s4465_s28  ;;  %v1183_v61 = vrot.slane %v1181_v59, 5  ;;  %v4153_v57 = vcombine.low %v6035_v55, %v6040_v34  ;;  %v6065_v27 = vld [vmem:[#allocation2 + $0x60] sm:$0xf] }
 0x155   : > { %2730 = vrot.lane.b32.xlu0 %v4138_v10, %s4458_s21  ;;  %v1169_v62 = vrot.slane %v1168_v43, 4  ;;  %v1178_v50 = vor.u32 %v1177_v24, %v1173_v53  ;;  %v3969_v2 = vrot.slane %v5951_v60, 9  ;;  %v1336_v63 = vrot.slane %v5963_v9, 5 }
 0x156   : > { %v3349_v13 = vsel %vm3343_vm2, %v3316_v47, %v5776_v38  ;;  %v6071_v22 = vsel %vm3310_vm1, %v3299_v7, %v5799_v19  ;;  %v1545_v31 = vshrl.u32 %v6035_v55, 16  ;;  %v1548_v28 = vshll.u32 %v6035_v55, 16  ;;  %v6099_v7 = vpop.permute.xlu0 %3202 }
 0x157   : > { %v1174_v60 = vsel %vm4588_vm11, %v1169_v62, %v1173_v53  ;;  %v1179_v56 = vrot.slane %v1178_v50, 4  ;;  %v1558_v9 = vshrl.u32 %v6040_v34, 16  ;;  %v1338_v18 = vrot.slane %v1336_v63, 4 }
 0x158   : > { %v1337_v38 = vsel %vm4568_vm7, %v3969_v2, %v1336_v63  ;;  %v1569_v45 = vshrl.u32 %v6065_v27, 16  ;;  %v3970_v19 = vrot.slane %v6008_v5, 9  ;;  %v1343_v16 = vrot.slane %v6015_v11, 5 }
 0x159   : > { %v1184_v52 = vsel %vm4588_vm11, %v1179_v56, %v1183_v61  ;;  %2808 = vrot.lane.b32.xlu0 %v4153_v57, %s4460_s23  ;;  %v1340_v39 = vsel %vm4568_vm7, %v1338_v18, %v1339_v48  ;;  %v4154_v26 = vcombine.low %v6065_v27, %v6075_v0  ;;  %v1346_v37 = vrot.slane %v6021_v58, 5  ;;  %v6097_v47 = vpop.permute.xlu1 %3138  ;;  %v6104_v58 = vld [vmem:[#allocation2 + $0xb4] sm:$0xf] }
 0x15a   : > { %v4130_v4 = vcombine.low %v1174_v60, %v1184_v52  ;;  %v1572_v20 = vshll.u32 %v6065_v27, 16  ;;  %v1582_v6 = vshrl.u32 %v6075_v0, 16  ;;  %v1345_v59 = vrot.slane %v1343_v16, 4 }
 0x15b   : > { %v1344_v21 = vsel %vm4568_vm7, %v3970_v19, %v1343_v16  ;;  %v1547_v53 = vrot.slane %v1545_v31, 4  ;;  %v1550_v48 = vrot.slane %v1548_v28, 5  ;;  %v1554_v10 = vshll.u32 %v6040_v34, 16  ;;  %v6119_v31 = vld [vmem:[#allocation2 + $0x68] sm:$0x1] }
 0x15c   : > { %2666 = vrot.lane.b32.xlu1 %v4130_v4, %s4459_s22  ;;  %v4145_v43 = vcombine.low %v1337_v38, %v1340_v39  ;;  %v1347_v24 = vsel %vm4568_vm7, %v1345_v59, %v1346_v37  ;;  %v1560_v61 = vrot.slane %v1558_v9, 4  ;;  %v1564_v57 = vshll.u32 %v6093_v23, 16  ;;  %v304_v9 = vld [vmem:[%s4566_s20 + $0x7c] sm:$0xf]  ;;  %v6129_v38 = vld [vmem:[#allocation2 + $0xb8] sm:$0xf] }
 0x15d   : > { %v6112_v62 = vsel %vm3343_vm2, %v3318_v8, %v5808_v46  ;;  %v6116_v50 = vsel %vm3310_vm1, %v3301_v14, %v5836_v49  ;;  %2810 = vrot.lane.b32.xlu0 %v4154_v26, %s4460_s23  ;;  %v1551_v2 = vor.u32 %v1550_v48, %v1547_v53  ;;  %v1556_v63 = vrot.slane %v1554_v10, 5  ;;  %v303_v8 = vld [vmem:[%s4566_s20 + $0x78] sm:$0xf]  ;;  %v6134_v39 = vpop.permute.xlu1 %3216  ;;  %v6136_v26 = vpop.permute.xlu0 %2646 }
 0x15e   : > { %v6123_v28 = vsel %vm3376_vm3, %v3349_v13, %v5838_v29  ;;  %v4146_v60 = vcombine.low %v1344_v21, %v1347_v24  ;;  %v1737_v56 = vshrl.u32 %v6104_v58, 16  ;;  %v1740_v46 = vshll.u32 %v6104_v58, 16 }
 0x15f   : > { %v1552_v18 = vrot.slane %v1551_v2, 4  ;;  %v1561_v49 = vor.u32 %v1560_v61, %v1556_v63  ;;  %v1566_v14 = vrot.slane %v1564_v57, 5  ;;  %v1571_v19 = vrot.slane %v1569_v45, 4 }
 0x160   : > { %2744 = vrot.lane.b32.xlu1 %v4145_v43, %s4458_s21  ;;  %v1574_v16 = vrot.slane %v1572_v20, 5  ;;  %v1578_v52 = vshll.u32 %v6075_v0, 16  ;;  %v1584_v29 = vrot.slane %v1582_v6, 4  ;;  %v1588_v13 = vshll.u32 %v6119_v31, 16 }
 0x161   : > { %v1557_v37 = vsel %vm4588_vm11, %v1552_v18, %v1556_v63  ;;  %v1562_v4 = vrot.slane %v1561_v49, 4  ;;  %v564_v59 = vshrl.u32 %v303_v8, 16  ;;  %v567_v21 = vshll.u32 %v303_v8, 16  ;;  %v739_v18 = vld [vmem:[#allocation2 + $0xc0] sm:$0xf] }
 0x162   : > { %v4161_v45 = vcombine.low %v6104_v58, %v6129_v38  ;;  %v1575_v53 = vor.u32 %v1574_v16, %v1571_v19  ;;  %v1580_v20 = vrot.slane %v1578_v52, 5  ;;  %v572_v48 = vshrl.u32 %v304_v9, 16  ;;  %v6151_v52 = vpop.permute.xlu1 %2660 }
 0x163   : > { %v1567_v6 = vsel %vm4588_vm11, %v1562_v4, %v1566_v14  ;;  %v1590_v10 = vrot.slane %v1588_v13, 5  ;;  %v566_v43 = vrot.slane %v564_v59, 7  ;;  %v575_v24 = vshll.u32 %v304_v9, 16  ;;  %v6158_v4 = vld [vmem:[#allocation2 + $0xbc] sm:$0x1] }
 0x164   : > { %2746 = vrot.lane.b32.xlu1 %v4146_v60, %s4458_s21  ;;  %v4169_v61 = vcombine.low %v1557_v37, %v1567_v6  ;;  %v1576_v57 = vrot.slane %v1575_v53, 4  ;;  %v1585_v2 = vor.u32 %v1584_v29, %v1580_v20  ;;  %v574_v63 = vrot.slane %v572_v48, 7  ;;  %v6153_v29 = vpop.permute.xlu0 %2724 }
 0x165   : > { %v1750_v8 = vshrl.u32 %v6129_v38, 16  ;;  %v569_v49 = vor.u32 %v567_v21, %v566_v43  ;;  %v570_v5 = vrot.slane %v566_v43, 4  ;;  %v4025_v19 = vrot.slane %v6035_v55, 9 }
 0x166   : > { %2888 = vrot.lane.b32.xlu0 %v4169_v61, %s4462_s25  ;;  %v1581_v14 = vsel %vm4588_vm11, %v1576_v57, %v1580_v20  ;;  %v1586_v16 = vrot.slane %v1585_v2, 4  ;;  %v577_v9 = vor.u32 %v575_v24, %v574_v63  ;;  %v1876_v60 = vrot.slane %v6040_v34, 5  ;;  %v6185_v57 = vpop.permute.xlu1 %3218 }
 0x167   : > { %v740_v13 = vsel %vm4582_vm10, %v569_v49, %v739_v18  ;;  %v1879_v37 = vrot.slane %v6093_v23, 5  ;;  %v1739_v55 = vrot.slane %v1737_v56, 4  ;;  %v1742_v59 = vrot.slane %v1740_v46, 5  ;;  %v6200_v49 = vld [vmem:[#allocation2 + $0x60] sm:$0xf] }
 0x168   : > { %2824 = vrot.lane.b32.xlu1 %v4161_v45, %s4460_s23  ;;  %v1591_v21 = vsel %vm4588_vm11, %v1586_v16, %v1590_v10  ;;  %v578_v34 = vsel %vm4597_vm12, %v570_v5, %v577_v9  ;;  %741 = vst [vmem:[#allocation2 + $0xc0] sm:$0xf] %v740_v13  ;;  %v1877_v53 = vsel %vm4568_vm7, %v4025_v19, %v1876_v60  ;;  %v1878_v33 = vrot.slane %v1876_v60, 4  ;;  %v6187_v2 = vpop.permute.xlu0 %2726  ;;  %v6211_v9 = vld [vmem:[#allocation2 + $0x64] sm:$0xf] }
 0x169   : > { %v4170_v20 = vcombine.low %v1581_v14, %v1591_v21  ;;  %742 = vst.msk [vmem:[#allocation2 + $0xc4] sm:$0xf] %vm217_vm0, %v578_v34  ;;  %v1743_v23 = vor.u32 %v1742_v59, %v1739_v55  ;;  %v1746_v56 = vshll.u32 %v6129_v38, 16  ;;  %v1752_v46 = vrot.slane %v1750_v8, 4  ;;  %v6653_v14 = vld [vmem:[#allocation4_spill] sm:$0xff] }
 0x16a   : > { %v3365_v45 = vsel %vm3343_vm2, %v6071_v22, %v5868_v25  ;;  %v3384_v42 = vsel %vm3376_vm3, %v6112_v62, %v5870_v41  ;;  %v1880_v5 = vsel %vm4568_vm7, %v1878_v33, %v1879_v37  ;;  %v1756_v48 = vshll.u32 %v6158_v4, 16  ;;  %v743_v25 = vld [vmem:[#allocation2 + $0xc8] sm:$0x1] }
 0x16b   : > { %v3367_v6 = vsel %vm3343_vm2, %v6116_v50, %v5902_v12  ;;  %2890 = vrot.lane.b32.xlu0 %v4170_v20, %s4462_s25  ;;  %v4185_v10 = vcombine.low %v1877_v53, %v1880_v5  ;;  %v1748_v43 = vrot.slane %v1746_v56, 5  ;;  %v4026_v24 = vrot.slane %v6065_v27, 9  ;;  %v6229_v56 = vpop.permute.xlu1 %2662 }
 0x16c   : > { %v1744_v22 = vrot.slane %v1743_v23, 4  ;;  %v1883_v61 = vrot.slane %v6075_v0, 5  ;;  %v1886_v41 = vrot.slane %v6119_v31, 5  ;;  %v579_v62 = vrot.slane %v574_v63, 4 }
 0x16d   : > { %v3415_v12 = vsel %vm3409_vm4, %v6123_v28, %v5904_v51  ;;  %v3398_v50 = vsel %vm3376_vm3, %v3365_v45, %v5919_v15  ;;  %v1753_v18 = vor.u32 %v1752_v46, %v1748_v43  ;;  %v1758_v27 = vrot.slane %v1756_v48, 5  ;;  %v6652_v51 = vld [vmem:[#allocation3_spill] sm:$0xff]  ;;  %v6231_v46 = vpop.permute.xlu0 %2804 }
 0x16e   : > { %v3417_v8 = vsel %vm3409_vm4, %v3384_v42, %v5921_v3  ;;  %v1884_v0 = vsel %vm4568_vm7, %v4026_v24, %v1883_v61  ;;  %v1885_v31 = vrot.slane %v1883_v61, 4  ;;  %v744_v63 = vsel %vm4660_vm13, %v579_v62, %v743_v25  ;;  %v6241_v25 = vld [vmem:[#allocation2 + $0x6c] sm:$0xf] }
 0x16f   : > { %v6202_v19 = vld [vmem:[#allocation2 + $0xc0] sm:$0xf]  ;;  %v3400_v28 = vsel %vm3376_vm3, %v3367_v6, %v6652_v51  ;;  %2968 = vrot.lane.b32.xlu0 %v4185_v10, %s4461_s24  ;;  %v1754_v15 = vrot.slane %v1753_v18, 4  ;;  %v3448_v3 = vsel %vm3442_vm5, %v3415_v12, %v6653_v14  ;;  %v3431_v16 = vsel %vm3409_vm4, %v3398_v50, %v5986_v40  ;;  %745 = vst [vmem:[#allocation2 + $0xc8] sm:$0x1] %v744_v63 }
 0x170   : > { %v6213_v54 = vld [vmem:[#allocation2 + $0xc4] sm:$0xf]  ;;  %v1761_v60 = vshrl.u32 %v6202_v19, 16  ;;  %v1764_v13 = vshll.u32 %v6202_v19, 16  ;;  %v1749_v37 = vsel %vm4588_vm11, %v1744_v22, %v1748_v43  ;;  %v1887_v55 = vsel %vm4568_vm7, %v1885_v31, %v1886_v41  ;;  %v6243_v22 = vld [vmem:[#allocation2 + $0x70] sm:$0xf] }
 0x171   : > { %v1774_v59 = vshrl.u32 %v6213_v54, 16  ;;  %v4162_v40 = vcombine.low %v6202_v19, %v6213_v54  ;;  %v1759_v21 = vsel %vm4588_vm11, %v1754_v15, %v1758_v27  ;;  %v4186_v34 = vcombine.low %v1884_v0, %v1887_v55  ;;  %v6263_v51 = vld [vmem:[#allocation2 + $0x68] sm:$0x1] }
 0x172   : > { %v1763_v53 = vrot.slane %v1761_v60, 4  ;;  %v1766_v33 = vrot.slane %v1764_v13, 5  ;;  %v1770_v20 = vshll.u32 %v6213_v54, 16  ;;  %v4201_v23 = vcombine.low %v6200_v49, %v6211_v9 }
 0x173   : > { %2826 = vrot.lane.b32.xlu1 %v4162_v40, %s4460_s23  ;;  %v4177_v45 = vcombine.low %v1749_v37, %v1759_v21  ;;  %2970 = vrot.lane.b32.xlu0 %v4186_v34, %s4461_s24  ;;  %v1776_v42 = vrot.slane %v1774_v59, 4  ;;  %v1932_v5 = vrot.slane %v6129_v38, 5  ;;  %v3481_v48 = vsel %vm3475_vm8, %v3448_v3, %v6025_v36 }
 0x174   : > { %v1767_v6 = vor.u32 %v1766_v33, %v1763_v53  ;;  %v1772_v10 = vrot.slane %v1770_v20, 5  ;;  %v3450_v43 = vsel %vm3442_vm5, %v3417_v8, %v5988_v44  ;;  %v4033_v24 = vrot.slane %v6104_v58, 9  ;;  %4298 = vmatprep.mubr.msk.bf16.mxu0 %vm3528_vm9, %v3481_v48 }
 0x175   : > { %v3433_v61 = vsel %vm3409_vm4, %v3400_v28, %v6023_v17  ;;  %v2141_v38 = vshrl.u32 %v6200_v49, 16  ;;  %v2144_v36 = vshll.u32 %v6200_v49, 16  ;;  %v2154_v41 = vshrl.u32 %v6211_v9, 16  ;;  %v6265_v28 = vpop.permute.xlu1 %2740 }
 0x176   : > { %v4018_v62 = vld [vmem:[#allocation2 + $0xc8] sm:$0x1]  ;;  %v1768_v12 = vrot.slane %v1767_v6, 4  ;;  %v1777_v44 = vor.u32 %v1776_v42, %v1772_v10  ;;  %v1934_v50 = vrot.slane %v1932_v5, 4  ;;  %v1935_v58 = vrot.slane %v6158_v4, 5 }
 0x177   : > { %2904 = vrot.lane.b32.xlu1 %v4177_v45, %s4462_s25  ;;  %v1780_v18 = vshll.u32 %v4018_v62, 16  ;;  %3048 = vrot.lane.b32.xlu0 %v4201_v23, %s4463_s26  ;;  %v3464_v17 = vsel %vm3442_vm5, %v3431_v16, %v6058_v32  ;;  %v4202_v27 = vcombine.low %v6241_v25, %v6243_v22  ;;  %v1939_v8 = vrot.slane %v6213_v54, 5 }
 0x178   : > { %v1778_v0 = vrot.slane %v1777_v44, 4  ;;  %v1933_v31 = vsel %vm4568_vm7, %v4033_v24, %v1932_v5  ;;  %v2165_v63 = vshrl.u32 %v6241_v25, 16  ;;  %v4034_v4 = vrot.slane %v6202_v19, 9  ;;  %v6267_v15 = vpop.permute.xlu0 %2806  ;;  %v6288_v5 = vld [vmem:[#allocation2 + $0x74] sm:$0x1] }
 0x179   : > { %v1773_v32 = vsel %vm4588_vm11, %v1768_v12, %v1772_v10  ;;  %v1782_v14 = vrot.slane %v1780_v18, 5  ;;  %v1941_v3 = vrot.slane %v1939_v8, 4  ;;  %v1942_v16 = vrot.slane %v4018_v62, 5  ;;  %v6291_v24 = vld [vmem:[#allocation2 + $0xc0] sm:$0xf] }
 0x17a   : > { %v1936_v54 = vsel %vm4568_vm7, %v1934_v50, %v1935_v58  ;;  %v2143_v60 = vrot.slane %v2141_v38, 4  ;;  %v2146_v13 = vrot.slane %v2144_v36, 5  ;;  %v2150_v37 = vshll.u32 %v6211_v9, 16  ;;  %v6295_v36 = vpop.permute.xlu1 %2742  ;;  %v6299_v62 = vld [vmem:[#allocation2 + $0xc4] sm:$0xf] }
 0x17b   : > { %v1783_v19 = vsel %vm4588_vm11, %v1778_v0, %v1782_v14  ;;  %v2168_v55 = vshll.u32 %v6241_v25, 16  ;;  %3050 = vrot.lane.b32.xlu0 %v4202_v27, %s4463_s26  ;;  %v2156_v59 = vrot.slane %v2154_v41, 4  ;;  %v2160_v40 = vshll.u32 %v6263_v51, 16 }
 0x17c   : > { %v4178_v21 = vcombine.low %v1773_v32, %v1783_v19  ;;  %v2178_v34 = vshrl.u32 %v6243_v22, 16  ;;  %v2147_v53 = vor.u32 %v2146_v13, %v2143_v60  ;;  %v2152_v33 = vrot.slane %v2150_v37, 5  ;;  %v6297_v41 = vpop.permute.xlu0 %2884 }
 0x17d   : > { %v4193_v20 = vcombine.low %v1933_v31, %v1936_v54  ;;  %v1940_v23 = vsel %vm4568_vm7, %v4034_v4, %v1939_v8  ;;  %v1943_v45 = vsel %vm4568_vm7, %v1941_v3, %v1942_v16  ;;  %v6286_v42 = vsel %vm3442_vm5, %v3433_v61, %v6097_v47  ;;  %v6319_v54 = vld [vmem:[#allocation2 + $0xd0] sm:$0xf] }
 0x17e   : > { %2906 = vrot.lane.b32.xlu1 %v4178_v21, %s4462_s25  ;;  %v2148_v48 = vrot.slane %v2147_v53, 4  ;;  %v2157_v6 = vor.u32 %v2156_v59, %v2152_v33  ;;  %v2162_v10 = vrot.slane %v2160_v40, 5  ;;  %v3483_v38 = vsel %vm3475_vm8, %v3450_v43, %v6099_v7  ;;  %v6327_v59 = vpop.permute.xlu1 %2820 }
 0x17f   : > { %v3497_v47 = vsel %vm3475_vm8, %v3464_v17, %v6134_v39  ;;  %v2167_v61 = vrot.slane %v2165_v63, 4  ;;  %v2170_v12 = vrot.slane %v2168_v55, 5  ;;  %v2174_v44 = vshll.u32 %v6243_v22, 16  ;;  %4299 = vmatmul.mubr.msk.bf16.gmra.mxu0 %vm3528_vm9, %v3483_v38  ;;  %v6310_v17 = vld [vmem:[#allocation2 + $0xcc] sm:$0xf] }
 0x180   : > { %v2153_v50 = vsel %vm4588_vm11, %v2148_v48, %v2152_v33  ;;  %v2158_v58 = vrot.slane %v2157_v6, 4  ;;  %v2180_v7 = vrot.slane %v2178_v34, 4  ;;  %v2184_v43 = vshll.u32 %v6288_v5, 16  ;;  %4314 = vmatprep.mubr.msk.bf16.mxu1 %vm3528_vm9, %v3497_v47  ;;  %v6325_v55 = vld [vmem:[#allocation2 + $0xc8] sm:$0x1] }
 0x181   : > { %v4194_v18 = vcombine.low %v1940_v23, %v1943_v45  ;;  %v2333_v27 = vshrl.u32 %v6291_v24, 16  ;;  %v2171_v8 = vor.u32 %v2170_v12, %v2167_v61  ;;  %v2176_v39 = vrot.slane %v2174_v44, 5 }
 0x182   : > { %2984 = vrot.lane.b32.xlu1 %v4193_v20, %s4461_s24  ;;  %v2163_v0 = vsel %vm4588_vm11, %v2158_v58, %v2162_v10  ;;  %v2336_v31 = vshll.u32 %v6291_v24, 16  ;;  %v2346_v63 = vshrl.u32 %v6299_v62, 16  ;;  %v4209_v4 = vcombine.low %v6291_v24, %v6299_v62 }
 0x183   : > { %v4217_v32 = vcombine.low %v2153_v50, %v2163_v0  ;;  %v2172_v14 = vrot.slane %v2171_v8, 4  ;;  %v2181_v3 = vor.u32 %v2180_v7, %v2176_v39  ;;  %v2186_v16 = vrot.slane %v2184_v43, 5  ;;  %v6329_v40 = vpop.permute.xlu0 %2886  ;;  %v4082_v8 = vld [vmem:[#allocation2 + $0xd4] sm:$0x1] }
 0x184   : > { %v2357_v60 = vshrl.u32 %v6310_v17, 16  ;;  %v4089_v13 = vrot.slane %v6200_v49, 9  ;;  %v2472_v37 = vrot.slane %v6211_v9, 5  ;;  %v2475_v19 = vrot.slane %v6263_v51, 5 }
 0x185   : > { %3128 = vrot.lane.b32.xlu0 %v4217_v32, %s4464_s27  ;;  %v2177_v21 = vsel %vm4588_vm11, %v2172_v14, %v2176_v39  ;;  %v2182_v34 = vrot.slane %v2181_v3, 4  ;;  %v2360_v53 = vshll.u32 %v6310_v17, 16  ;;  %v2335_v33 = vrot.slane %v2333_v27, 4  ;;  %v6355_v39 = vpop.permute.xlu1 %2822 }
 0x186   : > { %2986 = vrot.lane.b32.xlu1 %v4194_v18, %s4461_s24  ;;  %v2370_v49 = vshrl.u32 %v6319_v54, 16  ;;  %v2473_v9 = vsel %vm4568_vm7, %v4089_v13, %v2472_v37  ;;  %v2474_v51 = vrot.slane %v2472_v37, 4  ;;  %v2338_v20 = vrot.slane %v2336_v31, 5 }
 0x187   : > { %v2187_v23 = vsel %vm4588_vm11, %v2182_v34, %v2186_v16  ;;  %v2342_v45 = vshll.u32 %v6299_v62, 16  ;;  %v2348_v48 = vrot.slane %v2346_v63, 4  ;;  %v2352_v6 = vshll.u32 %v6325_v55, 16  ;;  %v6357_v0 = vpop.permute.xlu0 %2964 }
 0x188   : > { %v4218_v10 = vcombine.low %v2177_v21, %v2187_v23  ;;  %v4210_v38 = vcombine.low %v6310_v17, %v6319_v54  ;;  %v2476_v47 = vsel %vm4568_vm7, %v2474_v51, %v2475_v19  ;;  %v2339_v61 = vor.u32 %v2338_v20, %v2335_v33 }
 0x189   : > { %v4233_v12 = vcombine.low %v2473_v9, %v2476_v47  ;;  %v2344_v44 = vrot.slane %v2342_v45, 5  ;;  %v2354_v50 = vrot.slane %v2352_v6, 5  ;;  %v3499_v58 = vsel %vm3475_vm8, %v6286_v42, %v6185_v57  ;;  %v6373_v9 = vpop.permute.xlu1 %2900 }
 0x18a   : > { %3064 = vrot.lane.b32.xlu1 %v4209_v4, %s4463_s26  ;;  %3130 = vrot.lane.b32.xlu0 %v4218_v10, %s4464_s27  ;;  %v2340_v7 = vrot.slane %v2339_v61, 4  ;;  %v4090_v43 = vrot.slane %v6241_v25, 9  ;;  %v2479_v18 = vrot.slane %v6243_v22, 5  ;;  %v2482_v27 = vrot.slane %v6288_v5, 5 }
 0x18b   : > { %v2349_v31 = vor.u32 %v2348_v48, %v2344_v44  ;;  %v2359_v63 = vrot.slane %v2357_v60, 4  ;;  %v2362_v32 = vrot.slane %v2360_v53, 5  ;;  %v2366_v57 = vshll.u32 %v6319_v54, 16  ;;  %4315 = vmatmul.mubr.msk.bf16.gmra.mxu1 %vm3528_vm9, %v3499_v58  ;;  %v2967_v51 = vpop.permute.xlu0 %2966 }
 0x18c   : > { %v2345_v42 = vsel %vm4588_vm11, %v2340_v7, %v2344_v44  ;;  %v2480_v25 = vsel %vm4568_vm7, %v4090_v43, %v2479_v18  ;;  %v2481_v22 = vrot.slane %v2479_v18, 4  ;;  %v2372_v5 = vrot.slane %v2370_v49, 4  ;;  %v4419_v43 = vld [vmem:[#allocation2 + $0x30] sm:$0xf]  ;;  %v4420_v18 = vld [vmem:[#allocation2 + $0x34] sm:$0xf] }
 0x18d   : > { %v2350_v4 = vrot.slane %v2349_v31, 4  ;;  %v2363_v14 = vor.u32 %v2362_v32, %v2359_v63  ;;  %v2368_v3 = vrot.slane %v2366_v57, 5  ;;  %v2376_v16 = vshll.u32 %v4082_v8, 16 }
 0x18e   : > { %3066 = vrot.lane.b32.xlu1 %v4210_v38, %s4463_s26  ;;  %3208 = vrot.lane.b32.xlu0 %v4233_v12, %s4465_s28  ;;  %v2483_v60 = vsel %vm4568_vm7, %v2481_v22, %v2482_v27  ;;  %v4097_v13 = vrot.slane %v6291_v24, 9  ;;  %v2528_v49 = vrot.slane %v6299_v62, 5  ;;  %v2531_v45 = vrot.slane %v6325_v55, 5 }
 0x18f   : > { %v2355_v37 = vsel %vm4588_vm11, %v2350_v4, %v2354_v50  ;;  %v4234_v19 = vcombine.low %v2480_v25, %v2483_v60  ;;  %v2364_v21 = vrot.slane %v2363_v14, 4  ;;  %v2373_v34 = vor.u32 %v2372_v5, %v2368_v3  ;;  %v3045_v50 = vpop.permute.xlu0 %3044  ;;  %v4421_v5 = vld [vmem:[#allocation2 + $0x3c] sm:$0xf]  ;;  %v4422_v4 = vld [vmem:[#allocation2 + $0x40] sm:$0xf] }
 0x190   : > { %v4225_v53 = vcombine.low %v2345_v42, %v2355_v37  ;;  %v2378_v33 = vrot.slane %v2376_v16, 5  ;;  %v2529_v24 = vsel %vm4568_vm7, %v4097_v13, %v2528_v49  ;;  %v2530_v48 = vrot.slane %v2528_v49, 4 }
 0x191   : > { %v2369_v20 = vsel %vm4588_vm11, %v2364_v21, %v2368_v3  ;;  %v2374_v23 = vrot.slane %v2373_v34, 4  ;;  %v4098_v6 = vrot.slane %v6310_v17, 9  ;;  %v2535_v10 = vrot.slane %v6319_v54, 5  ;;  %v4424_v21 = vld [vmem:[#allocation2 + $0x94] sm:$0xf] }
 0x192   : > { %3144 = vrot.lane.b32.xlu1 %v4225_v53, %s4464_s27  ;;  %3210 = vrot.lane.b32.xlu0 %v4234_v19, %s4465_s28  ;;  %v2538_v38 = vrot.slane %v4082_v8, 5  ;;  %v2532_v55 = vsel %vm4568_vm7, %v2530_v48, %v2531_v45  ;;  %v4103_v27 = vcombine.low %v4419_v43, %v4420_v18  ;;  %v4104_v14 = vcombine.low %v4421_v5, %v4422_v4  ;;  %v4423_v19 = vld [vmem:[#allocation2 + $0x90] sm:$0xf]  ;;  %v4426_v48 = vld [vmem:[#allocation2 + $0xa0] sm:$0xf] }
 0x193   : > { %v2379_v62 = vsel %vm4588_vm11, %v2374_v23, %v2378_v33  ;;  %v2537_v61 = vrot.slane %v2535_v10, 4  ;;  %v4241_v12 = vcombine.low %v2529_v24, %v2532_v55  ;;  %v6389_v44 = vpop.permute.xlu1 %2902  ;;  %v2536_v35 = vsel %vm4568_vm7, %v4098_v6, %v2535_v10  ;;  %v4425_v24 = vld [vmem:[#allocation2 + $0x9c] sm:$0xf] }
 0x194   : > { %v4226_v47 = vcombine.low %v2369_v20, %v2379_v62  ;;  %v3243_v63 = vsel %vm3228_vm14, %v4103_v27, %v6060_v30  ;;  %v4111_v34 = vcombine.low %v4423_v19, %v4424_v21  ;;  %v4112_v62 = vcombine.low %v4425_v24, %v4426_v48  ;;  %v4429_v19 = vld [vmem:[#allocation2 + $0x54] sm:$0xf]  ;;  %v4430_v21 = vld [vmem:[#allocation2 + $0x58] sm:$0xf] }
 0x195   : > { %v2539_v17 = vsel %vm4568_vm7, %v2537_v61, %v2538_v38  ;;  %v3287_v32 = vsel %vm3277_vm15, %v3243_v63, %v6153_v29 }
 0x196   : > { %3146 = vrot.lane.b32.xlu1 %v4226_v47, %s4464_s27  ;;  %v4242_v54 = vcombine.low %v2536_v35, %v2539_v17  ;;  %v3320_v1 = vsel %vm3310_vm1, %v3287_v32, %v6231_v46  ;;  %v3246_v46 = vsel %vm3228_vm14, %v4104_v14, %v6136_v26 }
 0x197   : > { %v2981_v58 = vpop.permute.xlu1 %2980  ;;  %v3353_v42 = vsel %vm3343_vm2, %v3320_v1, %v6297_v41  ;;  %v3289_v60 = vsel %vm3277_vm15, %v3246_v46, %v6187_v2  ;;  %v4427_v46 = vld [vmem:[#allocation2 + $0x48] sm:$0xf] }
 0x198   : > { %v3386_v22 = vsel %vm3376_vm3, %v3353_v42, %v6357_v0  ;;  %v3322_v0 = vsel %vm3310_vm1, %v3289_v60, %v6267_v15  ;;  %v3267_v15 = vsel %vm3228_vm14, %v4111_v34, %v6151_v52  ;;  %v4106_v34 = vcombine.low %v4429_v19, %v4430_v21 }
 0x199   : > { %v3419_v3 = vsel %vm3409_vm4, %v3386_v22, %v3045_v50  ;;  %v3355_v37 = vsel %vm3343_vm2, %v3322_v0, %v6329_v40  ;;  %v3303_v40 = vsel %vm3277_vm15, %v3267_v15, %v6265_v28 }
 0x19a   : > { %3224 = vrot.lane.b32.xlu1 %v4241_v12, %s4465_s28  ;;  %v3388_v53 = vsel %vm3376_vm3, %v3355_v37, %v2967_v51  ;;  %v3336_v23 = vsel %vm3310_vm1, %v3303_v40, %v6327_v59  ;;  %v3270_v59 = vsel %vm3228_vm14, %v4112_v62, %v6229_v56 }
 0x19b   : > { %v2983_v31 = vpop.permute.xlu1 %2982  ;;  %v3369_v45 = vsel %vm3343_vm2, %v3336_v23, %v6373_v9  ;;  %v3305_v9 = vsel %vm3277_vm15, %v3270_v59, %v6295_v36 }
 0x19c   : > { %v3047_v7 = vpop.permute.xlu0 %3046  ;;  %v3402_v6 = vsel %vm3376_vm3, %v3369_v45, %v2981_v58  ;;  %v3338_v55 = vsel %vm3310_vm1, %v3305_v9, %v6355_v39 }
 0x19d   : > { %v3421_v26 = vsel %vm3409_vm4, %v3388_v53, %v3047_v7  ;;  %v3371_v12 = vsel %vm3343_vm2, %v3338_v55, %v6389_v44 }
 0x19e   : > { %3226 = vrot.lane.b32.xlu1 %v4242_v54, %s4465_s28  ;;  %v3404_v35 = vsel %vm3376_vm3, %v3371_v12, %v2983_v31 }
 0x19f   : > { %v3061_v25 = vpop.permute.xlu1 %3060 }
 0x1a0   : > { %v3125_v8 = vpop.permute.xlu0 %3124  ;;  %v3435_v10 = vsel %vm3409_vm4, %v3402_v6, %v3061_v25 }
 0x1a1   : > { %v3452_v30 = vsel %vm3442_vm5, %v3419_v3, %v3125_v8 }
 0x1a7   : > { %v3127_v57 = vpop.permute.xlu0 %3126 }
 0x1a8   : > { %v3063_v41 = vpop.permute.xlu1 %3062  ;;  %v3454_v49 = vsel %vm3442_vm5, %v3421_v26, %v3127_v57 }
 0x1a9   : > { %v3437_v17 = vsel %vm3409_vm4, %v3404_v35, %v3063_v41  ;;  %v4428_v41 = vld [vmem:[#allocation2 + $0x4c] sm:$0xf] }
 0x1aa   : > { %v4105_v60 = vcombine.low %v4427_v46, %v4428_v41 }
 0x1ab   : > { %v3205_v16 = vpop.permute.xlu0 %3204 }
 0x1ac   : > { %v3485_v29 = vsel %vm3475_vm8, %v3452_v30, %v3205_v16  ;;  %v3141_v33 = vpop.permute.xlu1 %3140 }
 0x1ad   : > { %4302 = vmatprep.mubr.msk.bf16.mxu0 %vm3528_vm9, %v3485_v29  ;;  %v3468_v52 = vsel %vm3442_vm5, %v3435_v10, %v3141_v33 }
 0x1b2   : > { %v6417_v13 = vpop.permute.xlu0 %2648 }
 0x1b3   : > { %v3249_v26 = vsel %vm3228_vm14, %v4105_v60, %v6417_v13 }
 0x1b6   : > { %v3207_v20 = vpop.permute.xlu0 %3206 }
 0x1b7   : > { %v3487_v2 = vsel %vm3475_vm8, %v3454_v49, %v3207_v20 }
 0x1b8   : > { %4303 = vmatmul.mubr.msk.bf16.gmra.mxu0 %vm3528_vm9, %v3487_v2 }
 0x1ba   : > { %v3143_v51 = vpop.permute.xlu1 %3142 }
 0x1bb   : > { %v3470_v56 = vsel %vm3442_vm5, %v3437_v17, %v3143_v51 }
 0x1be   : > { %v3221_v38 = vpop.permute.xlu1 %3220  ;;  %v2651_v47 = vpop.permute.xlu0 %2650 }
 0x1bf   : > { %v3501_v28 = vsel %vm3475_vm8, %v3468_v52, %v3221_v38  ;;  %v3252_v20 = vsel %vm3228_vm14, %v4106_v34, %v2651_v47  ;;  %v4431_v38 = vld [vmem:[#allocation2 + $0xa8] sm:$0xf]  ;;  %v4432_v47 = vld [vmem:[#allocation2 + $0xac] sm:$0xf] }
 0x1c0   : > { %4318 = vmatprep.mubr.msk.bf16.mxu1 %vm3528_vm9, %v3501_v28  ;;  %v4113_v28 = vcombine.low %v4431_v38, %v4432_v47 }
 0x1c2   : > { %v6445_v61 = vpop.permute.xlu1 %2664 }
 0x1c3   : > { %v2729_v50 = vpop.permute.xlu0 %2728  ;;  %v3273_v17 = vsel %vm3228_vm14, %v4113_v28, %v6445_v61 }
 0x1c4   : > { %v3291_v49 = vsel %vm3277_vm15, %v3249_v26, %v2729_v50 }
 0x1c6   : > { %v3223_v54 = vpop.permute.xlu1 %3222 }
 0x1c7   : > { %v3503_v58 = vsel %vm3475_vm8, %v3470_v56, %v3223_v54  ;;  %v2731_v7 = vpop.permute.xlu0 %2730  ;;  %v6654_v56 = vld [vmem:[#allocation5_spill] sm:$0xff] }
 0x1c8   : > { %4319 = vmatmul.mubr.msk.bf16.gmra.mxu1 %vm3528_vm9, %v3503_v58  ;;  %v3293_v45 = vsel %vm3277_vm15, %v3252_v20, %v2731_v7  ;;  %v4114_v54 = vcombine.low %v6654_v56, %v6015_v11 }
 0x1cb   : > { %v2809_v36 = vpop.permute.xlu0 %2808 }
 0x1cc   : > { %v3324_v2 = vsel %vm3310_vm1, %v3291_v49, %v2809_v36 }
 0x1ce   : > { %v6454_v39 = vpop.permute.xlu1 %2666 }
 0x1cf   : > { %v2811_v43 = vpop.permute.xlu0 %2810 }
 0x1d0   : > { %v3326_v48 = vsel %vm3310_vm1, %v3293_v45, %v2811_v43 }
 0x1d2   : > { %v2745_v18 = vpop.permute.xlu1 %2744 }
 0x1d3   : > { %v3307_v58 = vsel %vm3277_vm15, %v3273_v17, %v2745_v18 }
 0x1d6   : > { %v6456_v44 = vpop.permute.xlu1 %2746 }
 0x1d8   : > { %v2889_v27 = vpop.permute.xlu0 %2888 }
 0x1d9   : > { %v3357_v23 = vsel %vm3343_vm2, %v3324_v2, %v2889_v27  ;;  %v3276_v27 = vsel %vm3228_vm14, %v4114_v54, %v6454_v39 }
 0x1da   : > { %v2825_v31 = vpop.permute.xlu1 %2824  ;;  %v3309_v61 = vsel %vm3277_vm15, %v3276_v27, %v6456_v44 }
 0x1db   : > { %v3340_v7 = vsel %vm3310_vm1, %v3307_v58, %v2825_v31 }
 0x1dd   : > { %v2891_v8 = vpop.permute.xlu0 %2890 }
 0x1de   : > { %v3359_v10 = vsel %vm3343_vm2, %v3326_v48, %v2891_v8 }
 0x1e1   : > { %v2969_v63 = vpop.permute.xlu0 %2968 }
 0x1e2   : > { %v3390_v51 = vsel %vm3376_vm3, %v3357_v23, %v2969_v63 }
 0x1e4   : > { %v6458_v32 = vpop.f32.mrf.mxu0 }
 0x1e5   : > { %v2827_v1 = vpop.permute.xlu1 %2826  ;;  %v2971_v57 = vpop.permute.xlu0 %2970 }
 0x1e6   : > { %v6460_v42 = vpop.f32.mrf.mxu0  ;;  %v3392_v59 = vsel %vm3376_vm3, %v3359_v10, %v2971_v57  ;;  %v3342_v11 = vsel %vm3310_vm1, %v3309_v61, %v2827_v1  ;;  %v4466_v10 = vmov (%p3726_p5), 0.0  }
 0x1e7   : > { %3731 = vst [vmem:[%s6632_s2] sm:$0x1] (%p3726_p5), %v4466_v10  ;;  %3732 = vst [vmem:[%s6633_s3] sm:$0x1] (%p3726_p5), %v4466_v10 }
 0x1e8   : > { %v6462_v25 = vpop.f32.mrf.mxu0 }
 0x1e9   : > { %v2905_v22 = vpop.permute.xlu1 %2904  ;;  %v3049_v4 = vpop.permute.xlu0 %3048 }
 0x1ea   : > { %v6464_v5 = vpop.f32.mrf.mxu0  ;;  %v3423_v24 = vsel %vm3409_vm4, %v3390_v51, %v3049_v4  ;;  %v3373_v43 = vsel %vm3343_vm2, %v3340_v7, %v2905_v22 }
 0x1ed   : > { %v3051_v3 = vpop.permute.xlu0 %3050 }
 0x1ee   : > { %v3425_v9 = vsel %vm3409_vm4, %v3392_v59, %v3051_v3 }
 0x1f0   : > { %v2907_v14 = vpop.permute.xlu1 %2906 }
 0x1f1   : > { %v3375_v31 = vsel %vm3343_vm2, %v3342_v11, %v2907_v14 }
 0x1f2   : > { %v6466_v30 = vpop.f32.mrf.mxu1 }
 0x1f4   : > { %v2985_v16 = vpop.permute.xlu1 %2984  ;;  %v6468_v29 = vpop.f32.mrf.mxu1 }
 0x1f5   : > { %v3406_v8 = vsel %vm3376_vm3, %v3373_v43, %v2985_v16 }
 0x1f6   : > { %v6470_v0 = vpop.f32.mrf.mxu1 }
 0x1f7   : > { %v3129_v37 = vpop.permute.xlu0 %3128 }
 0x1f8   : > { %v2987_v53 = vpop.permute.xlu1 %2986  ;;  %v6472_v33 = vpop.f32.mrf.mxu1  ;;  %v3456_v13 = vsel %vm3442_vm5, %v3423_v24, %v3129_v37 }
 0x1f9   : > { %v3408_v22 = vsel %vm3376_vm3, %v3375_v31, %v2987_v53 }
 0x1fc   : > { %v3065_v15 = vpop.permute.xlu1 %3064  ;;  %v3131_v40 = vpop.permute.xlu0 %3130 }
 0x1fd   : > { %v3458_v55 = vsel %vm3442_vm5, %v3425_v9, %v3131_v40  ;;  %v3439_v63 = vsel %vm3409_vm4, %v3406_v8, %v3065_v15 }
 0x200   : > { %v3067_v62 = vpop.permute.xlu1 %3066  ;;  %v3209_v6 = vpop.permute.xlu0 %3208 }
 0x201   : > { %v3489_v52 = vsel %vm3475_vm8, %v3456_v13, %v3209_v6  ;;  %v3441_v39 = vsel %vm3409_vm4, %v3408_v22, %v3067_v62 }
 0x202   : > { %4306 = vmatprep.mubr.msk.bf16.mxu0 %vm3528_vm9, %v3489_v52 }
 0x204   : > { %v3145_v12 = vpop.permute.xlu1 %3144  ;;  %v3211_v50 = vpop.permute.xlu0 %3210 }
 0x205   : > { %v3491_v35 = vsel %vm3475_vm8, %v3458_v55, %v3211_v50  ;;  %v3472_v57 = vsel %vm3442_vm5, %v3439_v63, %v3145_v12 }
 0x206   : > { %4307 = vmatmul.mubr.msk.bf16.gmra.mxu0 %vm3528_vm9, %v3491_v35 }
 0x208   : > { %v3147_v36 = vpop.permute.xlu1 %3146 }
 0x209   : > { %v3474_v44 = vsel %vm3442_vm5, %v3441_v39, %v3147_v36 }
 0x20c   : > { %v3225_v18 = vpop.permute.xlu1 %3224 }
 0x20d   : > { %v3505_v4 = vsel %vm3475_vm8, %v3472_v57, %v3225_v18 }
 0x20e   : > { %4322 = vmatprep.mubr.msk.bf16.mxu1 %vm3528_vm9, %v3505_v4 }
 0x210   : > { %v3227_v3 = vpop.permute.xlu1 %3226 }
 0x211   : > { %v3507_v16 = vsel %vm3475_vm8, %v3474_v44, %v3227_v3 }
 0x212   : > { %4323 = vmatmul.mubr.msk.bf16.gmra.mxu1 %vm3528_vm9, %v3507_v16 }
 0x23f   : > { %v4300_v1 = vpop.f32.mrf.mxu0 }
 0x241   : > { %v3615_v46 = vpop.f32.mrf.mxu0 }
 0x243   : > { %v4301_v41 = vpop.f32.mrf.mxu0 }
 0x245   : > { %v3618_v14 = vpop.f32.mrf.mxu0 }
 0x24b   : > { %v6516_v60 = vpop.f32.mrf.mxu1 }
 0x24d   : > { %v6518_v37 = vpop.f32.mrf.mxu1 }
 0x24f   : > { %v6520_v19 = vpop.f32.mrf.mxu1 }
 0x251   : > { %v6522_v21 = vpop.f32.mrf.mxu1 }
 0x278   : > { %v4304_v34 = vpop.f32.mrf.mxu0 }
 0x27a   : > { %v3631_v53 = vpop.f32.mrf.mxu0 }
 0x27c   : > { %v4305_v26 = vpop.f32.mrf.mxu0 }
 0x27e   : > { %v3634_v49 = vpop.f32.mrf.mxu0 }
 0x288   : > { %v6525_v20 = vpop.f32.mrf.mxu1 }
 0x28a   : > { %v6527_v2 = vpop.f32.mrf.mxu1 }
 0x28c   : > { %v6529_v15 = vpop.f32.mrf.mxu1 }
 0x28e   : > { %v6531_v40 = vpop.f32.mrf.mxu1 }
 0x2c6   : > { %v4308_v23 = vpop.f32.mrf.mxu0 }
 0x2c8   : > { %v3647_v51 = vpop.f32.mrf.mxu0 }
 0x2ca   : > { %v4309_v45 = vpop.f32.mrf.mxu0 }
 0x2cc   : > { %v3650_v24 = vpop.f32.mrf.mxu0 }
 0x2d2   : > { %v6533_v48 = vpop.f32.mrf.mxu1 }
 0x2d4   : > { %v6535_v13 = vpop.f32.mrf.mxu1  ;;  %3730 = sbr.rel (!%p3726_p5) target bundleno = 729 (0x2d9), region = 36 }
 0x2d6   : > { %v6537_v62 = vpop.f32.mrf.mxu1 }
 0x2d8   : > { %v6539_v6 = vpop.f32.mrf.mxu1 }
 0x2d9 PF: > { %v3734_v52 = vadd.f32 %v6464_v5, %v6460_v42  ;;  %v3774_v28 = vmul.f32 %v6460_v42, %v6460_v42  ;;  %v3775_v59 = vmul.f32 %v6464_v5, %v6464_v5  ;;  %v3776_v55 = vmul.f32 %v6458_v32, %v6458_v32 }
 0x2da   : > { %v3777_v50 = vmul.f32 %v6462_v25, %v6462_v25  ;;  %v3778_v56 = vmul.f32 %v3615_v46, %v3615_v46  ;;  %v3779_v7 = vmul.f32 %v3618_v14, %v3618_v14  ;;  %v3780_v42 = vmul.f32 %v4300_v1, %v4300_v1 }
 0x2db   : > { %v3735_v38 = vadd.f32 %v6458_v32, %v3734_v52  ;;  %v3806_v35 = vadd.f32 %v3775_v59, %v3774_v28  ;;  %v3781_v5 = vmul.f32 %v4301_v41, %v4301_v41  ;;  %v3782_v11 = vmul.f32 %v3631_v53, %v3631_v53 }
 0x2dc   : > { %v3783_v18 = vmul.f32 %v3634_v49, %v3634_v49  ;;  %v3784_v4 = vmul.f32 %v4304_v34, %v4304_v34  ;;  %v3785_v44 = vmul.f32 %v4305_v26, %v4305_v26  ;;  %v3787_v10 = vmul.f32 %v3650_v24, %v3650_v24 }
 0x2dd   : > { %v3736_v47 = vadd.f32 %v6462_v25, %v3735_v38  ;;  %v3807_v54 = vadd.f32 %v3806_v35, %v3776_v55  ;;  %v3788_v38 = vmul.f32 %v4308_v23, %v4308_v23 }
 0x2df   : > { %v3737_v9 = vadd.f32 %v3736_v47, %v3615_v46  ;;  %v3808_v36 = vadd.f32 %v3807_v54, %v3777_v50  ;;  %v3786_v46 = vmul.f32 %v3647_v51, %v3647_v51  ;;  %v3793_v50 = vmul.f32 %v6470_v0, %v6470_v0 }
 0x2e0   : > { %v3795_v54 = vmul.f32 %v6522_v21, %v6522_v21 }
 0x2e1   : > { %v3738_v12 = vadd.f32 %v3737_v9, %v3618_v14  ;;  %v3809_v27 = vadd.f32 %v3808_v36, %v3778_v56 }
 0x2e3   : > { %v3739_v17 = vadd.f32 %v4300_v1, %v3738_v12  ;;  %v3810_v61 = vadd.f32 %v3809_v27, %v3779_v7  ;;  %v3796_v7 = vmul.f32 %v6516_v60, %v6516_v60  ;;  %v3798_v27 = vmul.f32 %v6527_v2, %v6527_v2 }
 0x2e5   : > { %v3740_v58 = vadd.f32 %v4301_v41, %v3739_v17  ;;  %v3811_v32 = vadd.f32 %v3810_v61, %v3780_v42  ;;  %v3794_v17 = vmul.f32 %v6518_v37, %v6518_v37 }
 0x2e7   : > { %v3741_v43 = vadd.f32 %v3740_v58, %v3631_v53  ;;  %v3812_v31 = vadd.f32 %v3811_v32, %v3781_v5  ;;  %v3799_v5 = vmul.f32 %v6531_v40, %v6531_v40  ;;  %v3801_v32 = vmul.f32 %v6529_v15, %v6529_v15 }
 0x2e9   : > { %v3742_v8 = vadd.f32 %v3741_v43, %v3634_v49  ;;  %v3813_v22 = vadd.f32 %v3812_v31, %v3782_v11  ;;  %v3789_v49 = vmul.f32 %v4309_v45, %v4309_v45  ;;  %v3797_v43 = vmul.f32 %v6520_v19, %v6520_v19 }
 0x2eb   : > { %v3743_v63 = vadd.f32 %v4304_v34, %v3742_v8  ;;  %v3814_v3 = vadd.f32 %v3813_v22, %v3783_v18  ;;  %v3802_v18 = vmul.f32 %v6535_v13, %v6535_v13  ;;  %v3804_v22 = vmul.f32 %v6533_v48, %v6533_v48 }
 0x2ed   : > { %v3744_v57 = vadd.f32 %v4305_v26, %v3743_v63  ;;  %v3815_v14 = vadd.f32 %v3814_v3, %v3784_v4  ;;  %v3790_v26 = vmul.f32 %v6468_v29, %v6468_v29  ;;  %v3800_v63 = vmul.f32 %v6525_v20, %v6525_v20 }
 0x2ef   : > { %v3745_v25 = vadd.f32 %v3744_v57, %v3647_v51  ;;  %v3816_v52 = vadd.f32 %v3815_v14, %v3785_v44 }
 0x2f1   : > { %v3746_v39 = vadd.f32 %v3745_v25, %v3650_v24  ;;  %v3817_v53 = vadd.f32 %v3816_v52, %v3786_v46  ;;  %v3791_v24 = vmul.f32 %v6472_v33, %v6472_v33  ;;  %v3803_v25 = vmul.f32 %v6539_v6, %v6539_v6 }
 0x2f3   : > { %v3747_v16 = vadd.f32 %v4308_v23, %v3746_v39  ;;  %v3818_v28 = vadd.f32 %v3817_v53, %v3787_v10  ;;  %v3792_v23 = vmul.f32 %v6466_v30, %v6466_v30 }
 0x2f5   : > { %v3748_v1 = vadd.f32 %v4309_v45, %v3747_v16  ;;  %v3819_v59 = vadd.f32 %v3818_v28, %v3788_v38 }
 0x2f7   : > { %v3749_v41 = vadd.f32 %v3748_v1, %v6468_v29  ;;  %v3820_v9 = vadd.f32 %v3819_v59, %v3789_v49 }
 0x2f9   : > { %v3750_v47 = vadd.f32 %v3749_v41, %v6472_v33  ;;  %v3821_v12 = vadd.f32 %v3820_v9, %v3790_v26 }
 0x2fb   : > { %v3751_v34 = vadd.f32 %v6466_v30, %v3750_v47  ;;  %v3822_v35 = vadd.f32 %v3821_v12, %v3791_v24  ;;  %v3773_v47 = vld [vmem:[%s6633_s3] sm:$0x1] }
 0x2fd   : > { %v3752_v51 = vadd.f32 %v6470_v0, %v3751_v34  ;;  %v3823_v56 = vadd.f32 %v3822_v35, %v3792_v23 }
 0x2ff   : > { %v3753_v55 = vadd.f32 %v3752_v51, %v6518_v37  ;;  %v3824_v58 = vadd.f32 %v3823_v56, %v3793_v50 }
 0x301   : > { %v3754_v45 = vadd.f32 %v3753_v55, %v6522_v21  ;;  %v3825_v36 = vadd.f32 %v3824_v58, %v3794_v17 }
 0x303   : > { %v3755_v29 = vadd.f32 %v6516_v60, %v3754_v45  ;;  %v3826_v42 = vadd.f32 %v3825_v36, %v3795_v54 }
 0x305   : > { %v3756_v33 = vadd.f32 %v6520_v19, %v3755_v29  ;;  %v3827_v8 = vadd.f32 %v3826_v42, %v3796_v7 }
 0x307   : > { %v3757_v30 = vadd.f32 %v3756_v33, %v6527_v2  ;;  %v3828_v61 = vadd.f32 %v3827_v8, %v3797_v43 }
 0x309   : > { %v3758_v0 = vadd.f32 %v3757_v30, %v6531_v40  ;;  %v3829_v11 = vadd.f32 %v3828_v61, %v3798_v27 }
 0x30b   : > { %v3759_v37 = vadd.f32 %v6525_v20, %v3758_v0  ;;  %v3830_v57 = vadd.f32 %v3829_v11, %v3799_v5 }
 0x30d   : > { %v3760_v21 = vadd.f32 %v6529_v15, %v3759_v37  ;;  %v3831_v31 = vadd.f32 %v3830_v57, %v3800_v63  ;;  %v3805_v15 = vmul.f32 %v6537_v62, %v6537_v62 }
 0x30f   : > { %v3761_v60 = vadd.f32 %v3760_v21, %v6535_v13  ;;  %v3832_v4 = vadd.f32 %v3831_v31, %v3801_v32 }
 0x311   : > { %v3762_v19 = vadd.f32 %v3761_v60, %v6539_v6  ;;  %v3833_v39 = vadd.f32 %v3832_v4, %v3802_v18  ;;  %v3733_v6 = vld [vmem:[%s6632_s2] sm:$0x1] }
 0x313   : > { %v3763_v2 = vadd.f32 %v6533_v48, %v3762_v19  ;;  %v3834_v3 = vadd.f32 %v3833_v39, %v3803_v25 }
 0x315   : > { %v3764_v40 = vadd.f32 %v6537_v62, %v3763_v2  ;;  %v3835_v46 = vadd.f32 %v3834_v3, %v3804_v22 }
 0x317   : > { %v3765_v20 = vrot.slane %v3764_v40, 4  ;;  %v3836_v14 = vadd.f32 %v3835_v46, %v3805_v15 }
 0x319   : > { %v3766_v44 = vadd.f32 %v3765_v20, %v3764_v40  ;;  %v3837_v10 = vrot.slane %v3836_v14, 4 }
 0x31b   : > { %v3767_v16 = vrot.slane %v3766_v44, 2  ;;  %v3838_v41 = vadd.f32 %v3837_v10, %v3836_v14 }
 0x31d   : > { %v3768_v13 = vadd.f32 %v3767_v16, %v3766_v44  ;;  %v3839_v48 = vrot.slane %v3838_v41, 2 }
 0x31f   : > { %v3769_v1 = vrot.slane %v3768_v13, 1  ;;  %v3840_v62 = vadd.f32 %v3839_v48, %v3838_v41 }
 0x321   : > { %v3770_v52 = vadd.f32 %v3769_v1, %v3768_v13  ;;  %v3841_v53 = vrot.slane %v3840_v62, 1 }
 0x323   : > { %v3771_v38 = vadd.f32 %v3770_v52, %v3733_v6  ;;  %v3842_v49 = vadd.f32 %v3841_v53, %v3840_v62 }
 0x325   : > { %3772 = vst [vmem:[%s6632_s2] sm:$0x1] %v3771_v38  ;;  %v3843_v28 = vadd.f32 %v3842_v49, %v3773_v47 }
 0x327   : > { %3844 = vst [vmem:[%s6633_s3] sm:$0x1] %v3843_v28 }
 0x328 PF: > { %s14_s14 = sadd.s32 1, %s4455_s14   ;;  %s6655_s12 = smov %s4451_s13 }
 0x329   : > { %p11_p6 = scmp.ge.s32.totalorder %s14_s14, 4   ;;  %s6656_s13 = smov %s6658_s15 }
 0x32b   :  { %13 = sbr.rel (!%p11_p6) target bundleno = 2 (0x2), region = 85 }

</bundles_post_ra>
